<compile_context>
chip_gen: v7x
topology: tpu7x:2x2x1
jax: 0.10.0
libtpu: 0.0.40
codegen_flags: <defaults>
</compile_context>

<pallas_src>
import math

import numpy as np

import jax
import jax.numpy as jnp
from jax.experimental import pallas as pl
from jax.experimental.pallas import tpu as pltpu

# Problem sizes implied by the module: ImpalaCNN(image_size=16, depth_in=3).
IMAGE_SIZE = 16
DEPTH_IN = 3
DEPTHS = (16, 32, 32)
BATCH = 2
HIDDEN = 256

_NEG = -1e30  # effectively -inf for the max-pool padding (every 3x3 window
              # at stride 2 / pad 1 contains at least one real element)


# ----------------------------------------------------------------------------
# In-kernel helpers (all operate on the row-packed (H, B, W*C) layout)
# ----------------------------------------------------------------------------
def _conv3x3_rows(x, w_ref, w_base, brow, pad_ref):
    """3x3 'same' conv (banded-matmul / im2col form).

    x       : (H, B, W*Cin) activation value, lane index = w*Cin + cin.
    w_ref   : ref with a leading tap axis; w_ref[w_base + dy] is the
              (W*Cin, W*Cout) banded weight for vertical tap dy.
    brow    : (1, W*Cout) bias already tiled across W.
    pad_ref : (H+2, B, W*Cin) VMEM scratch whose rows 0 and H+1 are zero and
              stay zero (only rows [1, H] are ever written) -> implicit 'same'
              zero padding along H.  Zero padding along W is encoded in the
              banded weight itself.
    """
    H, B, wcin = x.shape
    wcout = w_ref.shape[-1]
    pad_ref[1:H + 1, :, :] = x
    pad = pad_ref[...]
    acc = jnp.dot(pad[0:H].reshape(H * B, wcin), w_ref[w_base],
                  preferred_element_type=jnp.float32)
    acc = acc + jnp.dot(pad[1:H + 1].reshape(H * B, wcin), w_ref[w_base + 1],
                        preferred_element_type=jnp.float32)
    acc = acc + jnp.dot(pad[2:H + 2].reshape(H * B, wcin), w_ref[w_base + 2],
                        preferred_element_type=jnp.float32)
    return (acc + brow).reshape(H, B, wcout)


def _maxpool3x3_s2_rows(x, s_ref, e_ref, pool_ref):
    """MaxPool2d(kernel=3, stride=2, padding=1), H and W even.

    Horizontal taps + stride-2 subsample: 0/1 lane-selection matmuls s_ref[k]
    (shape (W*C, Wo*C)); e_ref[k] adds -1e30 where the tap is out of range.
    Vertical taps + stride-2 subsample: leading-dim slices of a -inf padded
    scratch pool_ref of shape (H+2, B, Wo*C).
    """
    H, B, wc = x.shape
    woc = s_ref.shape[-1]
    Ho = H // 2
    xw = x.reshape(H * B, wc)
    wmax = jnp.dot(xw, s_ref[0], preferred_element_type=jnp.float32) + e_ref[0]
    wmax = jnp.maximum(
        wmax, jnp.dot(xw, s_ref[1], preferred_element_type=jnp.float32) + e_ref[1])
    wmax = jnp.maximum(
        wmax, jnp.dot(xw, s_ref[2], preferred_element_type=jnp.float32) + e_ref[2])
    pool_ref[...] = jnp.full(pool_ref.shape, _NEG, jnp.float32)
    pool_ref[1:H + 1, :, :] = wmax.reshape(H, B, woc)
    pad = pool_ref[...]
    ev = pad[0:H].reshape(Ho, 2, B, woc)        # padded rows 2i   and 2i+1
    od = pad[2:H + 2].reshape(Ho, 2, B, woc)    # padded rows 2i+2
    return jnp.maximum(jnp.maximum(ev[:, 0], ev[:, 1]), od[:, 0])


def _impala_residual_rows(x, rw_ref, rb_ref, idx, pad_ref):
    """ImpalaResidual: conv2(relu(conv1(relu(x)))) + x (both convs biased)."""
    out = jnp.maximum(x, 0.0)
    out = _conv3x3_rows(out, rw_ref, (2 * idx) * 3, rb_ref[2 * idx], pad_ref)
    out = jnp.maximum(out, 0.0)
    out = _conv3x3_rows(out, rw_ref, (2 * idx + 1) * 3, rb_ref[2 * idx + 1],
                        pad_ref)
    return out + x


# ----------------------------------------------------------------------------
# The single fused kernel
# ----------------------------------------------------------------------------
def _impala_cnn_kernel(x_ref,
                       cw1, cb1, ps1, pe1, rw1, rb1,
                       cw2, cb2, ps2, pe2, rw2, rb2,
                       cw3, cb3, ps3, pe3, rw3, rb3,
                       hw_ref, hb_ref,
                       o_ref,
                       cpad0, cpad1, cpad2, cpad3,
                       ppad1, ppad2, ppad3):
    # Zero the conv padding scratches once; every conv below writes only rows
    # [1, H] of its scratch, so rows 0 / H+1 stay zero across all reuses.
    for ref in (cpad0, cpad1, cpad2, cpad3):
        ref[...] = jnp.zeros_like(ref)

    x = x_ref[...]                                        # (16, B, 16*3)

    # ---- stage 1: 16x16x3 -> conv(16) -> pool -> 8x8x16 -> 2 residuals ----
    x = _conv3x3_rows(x, cw1, 0, cb1[...], cpad0)         # (16, B, 256)
    x = _maxpool3x3_s2_rows(x, ps1, pe1, ppad1)           # ( 8, B, 128)
    x = _impala_residual_rows(x, rw1, rb1, 0, cpad1)
    x = _impala_residual_rows(x, rw1, rb1, 1, cpad1)

    # ---- stage 2: 8x8x16 -> conv(32) -> pool -> 4x4x32 -> 2 residuals ----
    x = _conv3x3_rows(x, cw2, 0, cb2[...], cpad1)         # ( 8, B, 256)
    x = _maxpool3x3_s2_rows(x, ps2, pe2, ppad2)           # ( 4, B, 128)
    x = _impala_residual_rows(x, rw2, rb2, 0, cpad2)
    x = _impala_residual_rows(x, rw2, rb2, 1, cpad2)

    # ---- stage 3: 4x4x32 -> conv(32) -> pool -> 2x2x32 -> 2 residuals ----
    x = _conv3x3_rows(x, cw3, 0, cb3[...], cpad2)         # ( 4, B, 128)
    x = _maxpool3x3_s2_rows(x, ps3, pe3, ppad3)           # ( 2, B,  64)
    x = _impala_residual_rows(x, rw3, rb3, 0, cpad3)
    x = _impala_residual_rows(x, rw3, rb3, 1, cpad3)

    # ---- head: relu -> channel-major flatten (folded into hw_ref layout)
    #            -> Linear -> relu ----
    x = jnp.maximum(x, 0.0)                               # (2, B, 64)
    acc = jnp.dot(x[0], hw_ref[0], preferred_element_type=jnp.float32)
    for h in range(1, x.shape[0]):
        acc = acc + jnp.dot(x[h], hw_ref[h], preferred_element_type=jnp.float32)
    o_ref[...] = jnp.maximum(acc + hb_ref[...], 0.0)      # (B, 256)


# ----------------------------------------------------------------------------
# Host-side parameter creation (PyTorch layouts) and one-time kernel packing
# ----------------------------------------------------------------------------
def init_params(key):
    """Parameters in PyTorch layouts: Conv2d (Cout, Cin, 3, 3) + (Cout,),
    Linear (out, in) + (out,); PyTorch-default uniform(-k, k) init."""
    keys = iter(jax.random.split(key, 64))

    def unif(shape, k):
        return jax.random.uniform(next(keys), shape, jnp.float32, -k, k)

    def conv_init(c_in, c_out):
        k = 1.0 / math.sqrt(c_in * 9)
        return unif((c_out, c_in, 3, 3), k), unif((c_out,), k)

    stages = []
    d_in = DEPTH_IN
    for d_out in DEPTHS:
        cw, cb = conv_init(d_in, d_out)
        res = []
        for _ in range(2):
            w1, b1 = conv_init(d_out, d_out)
            w2, b2 = conv_init(d_out, d_out)
            res.append({"conv1_w": w1, "conv1_b": b1,
                        "conv2_w": w2, "conv2_b": b2})
        stages.append({"conv_w": cw, "conv_b": cb, "res": res})
        d_in = d_out

    hw = math.ceil(IMAGE_SIZE / 8)
    flat = hw * hw * d_in
    k = 1.0 / math.sqrt(flat)
    return {"stages": stages,
            "lin_w": unif((HIDDEN, flat), k),
            "lin_b": unif((HIDDEN,), k)}


def _band_conv_weight(w_pt, width):
    """PyTorch Conv2d weight (Cout, Cin, 3, 3) -> banded matmul weights
    (3, width*Cin, width*Cout): one Toeplitz block per vertical tap dy, which
    encodes the horizontal taps and the zero padding along W."""
    c_out, c_in = int(w_pt.shape[0]), int(w_pt.shape[1])
    w9 = jnp.transpose(w_pt, (2, 3, 1, 0))                # (dy, dx, cin, cout)
    place = np.zeros((3, width, width), np.float32)       # place[dx, x_in, x_out]
    for dx in range(3):
        for xo in range(width):
            xi = xo + dx - 1
            if 0 <= xi < width:
                place[dx, xi, xo] = 1.0
    wb = jnp.einsum("kio,ykcu->yicou", jnp.asarray(place), w9)
    return wb.reshape(3, width * c_in, width * c_out)


def _tile_bias(b, width):
    """(Cout,) -> (1, width*Cout) matching the packed lane index w*Cout + cout."""
    return jnp.tile(b.reshape(1, -1), (1, width))


def _pool_select(width, ch):
    """Selection matmul operands for MaxPool2d(3, stride=2, padding=1) along W
    in the packed layout: s[k] picks input column 2*xo - 1 + k for every output
    column xo; e[k] adds -1e30 where that column is out of range."""
    wo = width // 2
    s = np.zeros((3, width * ch, wo * ch), np.float32)
    e = np.zeros((3, 1, wo * ch), np.float32)
    eye = np.eye(ch, dtype=np.float32)
    for k in range(3):
        for xo in range(wo):
            xi = 2 * xo - 1 + k
            if 0 <= xi < width:
                s[k, xi * ch:(xi + 1) * ch, xo * ch:(xo + 1) * ch] = eye
            else:
                e[k, 0, xo * ch:(xo + 1) * ch] = _NEG
    return jnp.asarray(s), jnp.asarray(e)


def pack_params(params):
    """One-time host-side repacking into the kernel's banded / lane-packed
    operand layouts (semantically identical to the PyTorch parameters)."""
    packed = []
    width = IMAGE_SIZE
    for st, d_out in zip(params["stages"], DEPTHS):
        cw = _band_conv_weight(st["conv_w"], width)        # (3, W*Cin, W*Cout)
        cb = _tile_bias(st["conv_b"], width)               # (1, W*Cout)
        ps, pe = _pool_select(width, d_out)                # pool over conv output
        width //= 2
        rw = jnp.concatenate(
            [_band_conv_weight(r["conv%d_w" % c], width)
             for r in st["res"] for c in (1, 2)], axis=0)  # (12, w*C, w*C)
        rb = jnp.stack(
            [_tile_bias(r["conv%d_b" % c], width)
             for r in st["res"] for c in (1, 2)], axis=0)  # (4, 1, w*C)
        packed += [cw, cb, ps, pe, rw, rb]

    # Fold PyTorch's channel-major (NCHW) flatten order into the Linear weight
    # so the kernel consumes the lane-packed NHWC activation directly.
    hw = math.ceil(IMAGE_SIZE / 8)
    c_last = DEPTHS[-1]
    lin_wt = params["lin_w"].T                 # (flat, 256), flat = c*hw*hw + h*hw + w
    hwght = jnp.transpose(lin_wt.reshape(c_last, hw, hw, HIDDEN),
                          (1, 2, 0, 3)).reshape(hw, hw * c_last, HIDDEN)
    packed += [hwght, params["lin_b"].reshape(1, HIDDEN)]
    return packed


# ----------------------------------------------------------------------------
# Forward pass = one pallas_call
# ----------------------------------------------------------------------------
@jax.jit
def impala_cnn_forward(packed, x_nhwc):
    """ImpalaCNN.forward.  x_nhwc: (B, H, W, depth_in) float32.  The PyTorch
    module's NHWC->NCHW permute is folded into the packed weight layouts."""
    B, H, W, C = x_nhwc.shape
    # Row-packed, lane-dense kernel layout: (H, B, W*C).
    x = jnp.transpose(x_nhwc, (1, 0, 2, 3)).reshape(H, B, W * C)

    conv_pads = [(H + 2, B, W * C)]
    pool_pads = []
    s = H
    for d in DEPTHS:
        pool_pads.append((s + 2, B, (s // 2) * d))
        s //= 2
        conv_pads.append((s + 2, B, s * d))
    scratch = [pltpu.VMEM(shape, jnp.float32) for shape in conv_pads + pool_pads]

    return pl.pallas_call(
        _impala_cnn_kernel,
        out_shape=jax.ShapeDtypeStruct((B, HIDDEN), jnp.float32),
        scratch_shapes=scratch,
    )(x, *packed)


if __name__ == "__main__":
    key = jax.random.PRNGKey(0)
    k_params, k_obs = jax.random.split(key)

    params = init_params(k_params)
    packed = pack_params(params)
    observations = jax.random.uniform(
        k_obs, (BATCH, IMAGE_SIZE, IMAGE_SIZE, DEPTH_IN), jnp.float32)

    out = impala_cnn_forward(packed, observations)
    jax.block_until_ready(out)
    assert out.shape == (BATCH, HIDDEN)
    assert out.dtype == jnp.float32
    print("KERNEL_OK")
</pallas_src>

<mosaic_0001>
module attributes {stable_mosaic.version = 11 : i64} {
  func.func @_impala_cnn_kernel(%arg0: memref<16x2x48xf32, #tpu.memory_space<vmem>>, %arg1: memref<3x48x256xf32, #tpu.memory_space<vmem>>, %arg2: memref<1x256xf32, #tpu.memory_space<vmem>>, %arg3: memref<3x256x128xf32, #tpu.memory_space<vmem>>, %arg4: memref<3x1x128xf32, #tpu.memory_space<vmem>>, %arg5: memref<12x128x128xf32, #tpu.memory_space<vmem>>, %arg6: memref<4x1x128xf32, #tpu.memory_space<vmem>>, %arg7: memref<3x128x256xf32, #tpu.memory_space<vmem>>, %arg8: memref<1x256xf32, #tpu.memory_space<vmem>>, %arg9: memref<3x256x128xf32, #tpu.memory_space<vmem>>, %arg10: memref<3x1x128xf32, #tpu.memory_space<vmem>>, %arg11: memref<12x128x128xf32, #tpu.memory_space<vmem>>, %arg12: memref<4x1x128xf32, #tpu.memory_space<vmem>>, %arg13: memref<3x128x128xf32, #tpu.memory_space<vmem>>, %arg14: memref<1x128xf32, #tpu.memory_space<vmem>>, %arg15: memref<3x128x64xf32, #tpu.memory_space<vmem>>, %arg16: memref<3x1x64xf32, #tpu.memory_space<vmem>>, %arg17: memref<12x64x64xf32, #tpu.memory_space<vmem>>, %arg18: memref<4x1x64xf32, #tpu.memory_space<vmem>>, %arg19: memref<2x64x256xf32, #tpu.memory_space<vmem>>, %arg20: memref<1x256xf32, #tpu.memory_space<vmem>>, %arg21: memref<2x256xf32, #tpu.memory_space<vmem>>, %arg22: memref<18x2x48xf32, #tpu.memory_space<vmem>>, %arg23: memref<10x2x128xf32, #tpu.memory_space<vmem>>, %arg24: memref<6x2x128xf32, #tpu.memory_space<vmem>>, %arg25: memref<4x2x64xf32, #tpu.memory_space<vmem>>, %arg26: memref<18x2x128xf32, #tpu.memory_space<vmem>>, %arg27: memref<10x2x128xf32, #tpu.memory_space<vmem>>, %arg28: memref<6x2x64xf32, #tpu.memory_space<vmem>>) attributes {dimension_semantics = [], scalar_prefetch = 0 : i64, scratch_operands = 7 : i64, tpu.core_type = #tpu.core_type<tc>} {
    %cst = arith.constant 0.000000e+00 : f32
    %0 = vector.broadcast %cst : f32 to vector<18x2x48xf32>
    %c0 = arith.constant 0 : index
    %c0_0 = arith.constant 0 : index
    %c0_1 = arith.constant 0 : index
    %1 = vector.load %arg22[%c0, %c0_0, %c0_1] : memref<18x2x48xf32, #tpu.memory_space<vmem>>, vector<18x2x48xf32>
    tpu.vector_store %arg22[%c0, %c0_0, %c0_1], %0 {strides = array<i32>} : memref<18x2x48xf32, #tpu.memory_space<vmem>>, vector<18x2x48xf32>,
    %cst_2 = arith.constant 0.000000e+00 : f32
    %2 = vector.broadcast %cst_2 : f32 to vector<10x2x128xf32>
    %c0_3 = arith.constant 0 : index
    %c0_4 = arith.constant 0 : index
    %c0_5 = arith.constant 0 : index
    %3 = vector.load %arg23[%c0_3, %c0_4, %c0_5] : memref<10x2x128xf32, #tpu.memory_space<vmem>>, vector<10x2x128xf32>
    tpu.vector_store %arg23[%c0_3, %c0_4, %c0_5], %2 {strides = array<i32>} : memref<10x2x128xf32, #tpu.memory_space<vmem>>, vector<10x2x128xf32>,
    %cst_6 = arith.constant 0.000000e+00 : f32
    %4 = vector.broadcast %cst_6 : f32 to vector<6x2x128xf32>
    %c0_7 = arith.constant 0 : index
    %c0_8 = arith.constant 0 : index
    %c0_9 = arith.constant 0 : index
    %5 = vector.load %arg24[%c0_7, %c0_8, %c0_9] : memref<6x2x128xf32, #tpu.memory_space<vmem>>, vector<6x2x128xf32>
    tpu.vector_store %arg24[%c0_7, %c0_8, %c0_9], %4 {strides = array<i32>} : memref<6x2x128xf32, #tpu.memory_space<vmem>>, vector<6x2x128xf32>,
    %cst_10 = arith.constant 0.000000e+00 : f32
    %6 = vector.broadcast %cst_10 : f32 to vector<4x2x64xf32>
    %c0_11 = arith.constant 0 : index
    %c0_12 = arith.constant 0 : index
    %c0_13 = arith.constant 0 : index
    %7 = vector.load %arg25[%c0_11, %c0_12, %c0_13] : memref<4x2x64xf32, #tpu.memory_space<vmem>>, vector<4x2x64xf32>
    tpu.vector_store %arg25[%c0_11, %c0_12, %c0_13], %6 {strides = array<i32>} : memref<4x2x64xf32, #tpu.memory_space<vmem>>, vector<4x2x64xf32>,
    %c0_14 = arith.constant 0 : index
    %c0_15 = arith.constant 0 : index
    %c0_16 = arith.constant 0 : index
    %8 = vector.load %arg0[%c0_14, %c0_15, %c0_16] : memref<16x2x48xf32, #tpu.memory_space<vmem>>, vector<16x2x48xf32>
    %c0_17 = arith.constant 0 : index
    %c0_18 = arith.constant 0 : index
    %9 = vector.load %arg2[%c0_17, %c0_18] : memref<1x256xf32, #tpu.memory_space<vmem>>, vector<1x256xf32>
    %c1 = arith.constant 1 : index
    %c0_19 = arith.constant 0 : index
    %c0_20 = arith.constant 0 : index
    %10 = vector.load %arg22[%c1, %c0_19, %c0_20] : memref<18x2x48xf32, #tpu.memory_space<vmem>>, vector<16x2x48xf32>
    tpu.vector_store %arg22[%c1, %c0_19, %c0_20], %8 {strides = array<i32>} : memref<18x2x48xf32, #tpu.memory_space<vmem>>, vector<16x2x48xf32>,
    %c0_21 = arith.constant 0 : index
    %c0_22 = arith.constant 0 : index
    %c0_23 = arith.constant 0 : index
    %11 = vector.load %arg22[%c0_21, %c0_22, %c0_23] : memref<18x2x48xf32, #tpu.memory_space<vmem>>, vector<18x2x48xf32>
    %12 = vector.extract_strided_slice %11 {offsets = [0, 0, 0], sizes = [16, 2, 48], strides = [1, 1, 1]} : vector<18x2x48xf32> to vector<16x2x48xf32>
    %13 = vector.shape_cast %12 : vector<16x2x48xf32> to vector<32x48xf32>
    %c0_24 = arith.constant 0 : index
    %c0_25 = arith.constant 0 : index
    %c0_26 = arith.constant 0 : index
    %14 = vector.load %arg1[%c0_24, %c0_25, %c0_26] : memref<3x48x256xf32, #tpu.memory_space<vmem>>, vector<1x48x256xf32>
    %15 = vector.shape_cast %14 : vector<1x48x256xf32> to vector<48x256xf32>
    %cst_27 = arith.constant dense<0.000000e+00> : vector<32x256xf32>
    %16 = tpu.matmul %13, %15, %cst_27 {dimension_numbers = #tpu.dot_dimension_numbers<[1], [0], [0], [1], [0, 0, 1, 1], [], []>} : vector<32x48xf32>, vector<48x256xf32>, vector<32x256xf32> -> vector<32x256xf32>
    %17 = vector.extract_strided_slice %11 {offsets = [1, 0, 0], sizes = [16, 2, 48], strides = [1, 1, 1]} : vector<18x2x48xf32> to vector<16x2x48xf32>
    %18 = vector.shape_cast %17 : vector<16x2x48xf32> to vector<32x48xf32>
    %c1_28 = arith.constant 1 : index
    %c0_29 = arith.constant 0 : index
    %c0_30 = arith.constant 0 : index
    %19 = vector.load %arg1[%c1_28, %c0_29, %c0_30] : memref<3x48x256xf32, #tpu.memory_space<vmem>>, vector<1x48x256xf32>
    %20 = vector.shape_cast %19 : vector<1x48x256xf32> to vector<48x256xf32>
    %cst_31 = arith.constant dense<0.000000e+00> : vector<32x256xf32>
    %21 = tpu.matmul %18, %20, %cst_31 {dimension_numbers = #tpu.dot_dimension_numbers<[1], [0], [0], [1], [0, 0, 1, 1], [], []>} : vector<32x48xf32>, vector<48x256xf32>, vector<32x256xf32> -> vector<32x256xf32>
    %22 = arith.addf %16, %21 : vector<32x256xf32>
    %23 = vector.extract_strided_slice %11 {offsets = [2, 0, 0], sizes = [16, 2, 48], strides = [1, 1, 1]} : vector<18x2x48xf32> to vector<16x2x48xf32>
    %24 = vector.shape_cast %23 : vector<16x2x48xf32> to vector<32x48xf32>
    %c2 = arith.constant 2 : index
    %c0_32 = arith.constant 0 : index
    %c0_33 = arith.constant 0 : index
    %25 = vector.load %arg1[%c2, %c0_32, %c0_33] : memref<3x48x256xf32, #tpu.memory_space<vmem>>, vector<1x48x256xf32>
    %26 = vector.shape_cast %25 : vector<1x48x256xf32> to vector<48x256xf32>
    %cst_34 = arith.constant dense<0.000000e+00> : vector<32x256xf32>
    %27 = tpu.matmul %24, %26, %cst_34 {dimension_numbers = #tpu.dot_dimension_numbers<[1], [0], [0], [1], [0, 0, 1, 1], [], []>} : vector<32x48xf32>, vector<48x256xf32>, vector<32x256xf32> -> vector<32x256xf32>
    %28 = arith.addf %22, %27 : vector<32x256xf32>
    %29 = vector.broadcast %9 : vector<1x256xf32> to vector<32x256xf32>
    %30 = arith.addf %28, %29 : vector<32x256xf32>
    %31 = vector.shape_cast %30 : vector<32x256xf32> to vector<16x2x256xf32>
    %32 = vector.shape_cast %31 : vector<16x2x256xf32> to vector<32x256xf32>
    %c0_35 = arith.constant 0 : index
    %c0_36 = arith.constant 0 : index
    %c0_37 = arith.constant 0 : index
    %33 = vector.load %arg3[%c0_35, %c0_36, %c0_37] : memref<3x256x128xf32, #tpu.memory_space<vmem>>, vector<1x256x128xf32>
    %34 = vector.shape_cast %33 : vector<1x256x128xf32> to vector<256x128xf32>
    %cst_38 = arith.constant dense<0.000000e+00> : vector<32x128xf32>
    %35 = tpu.matmul %32, %34, %cst_38 {dimension_numbers = #tpu.dot_dimension_numbers<[1], [0], [0], [1], [0, 0, 1, 1], [], []>} : vector<32x256xf32>, vector<256x128xf32>, vector<32x128xf32> -> vector<32x128xf32>
    %c0_39 = arith.constant 0 : index
    %c0_40 = arith.constant 0 : index
    %c0_41 = arith.constant 0 : index
    %36 = vector.load %arg4[%c0_39, %c0_40, %c0_41] : memref<3x1x128xf32, #tpu.memory_space<vmem>>, vector<1x1x128xf32>
    %37 = vector.shape_cast %36 : vector<1x1x128xf32> to vector<1x128xf32>
    %38 = vector.broadcast %37 : vector<1x128xf32> to vector<32x128xf32>
    %39 = arith.addf %35, %38 : vector<32x128xf32>
    %c1_42 = arith.constant 1 : index
    %c0_43 = arith.constant 0 : index
    %c0_44 = arith.constant 0 : index
    %40 = vector.load %arg3[%c1_42, %c0_43, %c0_44] : memref<3x256x128xf32, #tpu.memory_space<vmem>>, vector<1x256x128xf32>
    %41 = vector.shape_cast %40 : vector<1x256x128xf32> to vector<256x128xf32>
    %cst_45 = arith.constant dense<0.000000e+00> : vector<32x128xf32>
    %42 = tpu.matmul %32, %41, %cst_45 {dimension_numbers = #tpu.dot_dimension_numbers<[1], [0], [0], [1], [0, 0, 1, 1], [], []>} : vector<32x256xf32>, vector<256x128xf32>, vector<32x128xf32> -> vector<32x128xf32>
    %c1_46 = arith.constant 1 : index
    %c0_47 = arith.constant 0 : index
    %c0_48 = arith.constant 0 : index
    %43 = vector.load %arg4[%c1_46, %c0_47, %c0_48] : memref<3x1x128xf32, #tpu.memory_space<vmem>>, vector<1x1x128xf32>
    %44 = vector.shape_cast %43 : vector<1x1x128xf32> to vector<1x128xf32>
    %45 = vector.broadcast %44 : vector<1x128xf32> to vector<32x128xf32>
    %46 = arith.addf %42, %45 : vector<32x128xf32>
    %47 = arith.maximumf %39, %46 : vector<32x128xf32>
    %c2_49 = arith.constant 2 : index
    %c0_50 = arith.constant 0 : index
    %c0_51 = arith.constant 0 : index
    %48 = vector.load %arg3[%c2_49, %c0_50, %c0_51] : memref<3x256x128xf32, #tpu.memory_space<vmem>>, vector<1x256x128xf32>
    %49 = vector.shape_cast %48 : vector<1x256x128xf32> to vector<256x128xf32>
    %cst_52 = arith.constant dense<0.000000e+00> : vector<32x128xf32>
    %50 = tpu.matmul %32, %49, %cst_52 {dimension_numbers = #tpu.dot_dimension_numbers<[1], [0], [0], [1], [0, 0, 1, 1], [], []>} : vector<32x256xf32>, vector<256x128xf32>, vector<32x128xf32> -> vector<32x128xf32>
    %c2_53 = arith.constant 2 : index
    %c0_54 = arith.constant 0 : index
    %c0_55 = arith.constant 0 : index
    %51 = vector.load %arg4[%c2_53, %c0_54, %c0_55] : memref<3x1x128xf32, #tpu.memory_space<vmem>>, vector<1x1x128xf32>
    %52 = vector.shape_cast %51 : vector<1x1x128xf32> to vector<1x128xf32>
    %53 = vector.broadcast %52 : vector<1x128xf32> to vector<32x128xf32>
    %54 = arith.addf %50, %53 : vector<32x128xf32>
    %55 = arith.maximumf %47, %54 : vector<32x128xf32>
    %cst_56 = arith.constant -1.000000e+30 : f32
    %56 = vector.broadcast %cst_56 : f32 to vector<18x2x128xf32>
    %c0_57 = arith.constant 0 : index
    %c0_58 = arith.constant 0 : index
    %c0_59 = arith.constant 0 : index
    %57 = vector.load %arg26[%c0_57, %c0_58, %c0_59] : memref<18x2x128xf32, #tpu.memory_space<vmem>>, vector<18x2x128xf32>
    tpu.vector_store %arg26[%c0_57, %c0_58, %c0_59], %56 {strides = array<i32>} : memref<18x2x128xf32, #tpu.memory_space<vmem>>, vector<18x2x128xf32>,
    %58 = vector.shape_cast %55 : vector<32x128xf32> to vector<16x2x128xf32>
    %c1_60 = arith.constant 1 : index
    %c0_61 = arith.constant 0 : index
    %c0_62 = arith.constant 0 : index
    %59 = vector.load %arg26[%c1_60, %c0_61, %c0_62] : memref<18x2x128xf32, #tpu.memory_space<vmem>>, vector<16x2x128xf32>
    tpu.vector_store %arg26[%c1_60, %c0_61, %c0_62], %58 {strides = array<i32>} : memref<18x2x128xf32, #tpu.memory_space<vmem>>, vector<16x2x128xf32>,
    %c0_63 = arith.constant 0 : index
    %c0_64 = arith.constant 0 : index
    %c0_65 = arith.constant 0 : index
    %60 = vector.load %arg26[%c0_63, %c0_64, %c0_65] : memref<18x2x128xf32, #tpu.memory_space<vmem>>, vector<18x2x128xf32>
    %61 = vector.extract_strided_slice %60 {offsets = [0, 0, 0], sizes = [16, 2, 128], strides = [1, 1, 1]} : vector<18x2x128xf32> to vector<16x2x128xf32>
    %62 = vector.shape_cast %61 : vector<16x2x128xf32> to vector<8x2x2x128xf32>
    %63 = vector.extract_strided_slice %60 {offsets = [2, 0, 0], sizes = [16, 2, 128], strides = [1, 1, 1]} : vector<18x2x128xf32> to vector<16x2x128xf32>
    %64 = vector.shape_cast %63 : vector<16x2x128xf32> to vector<8x2x2x128xf32>
    %65 = vector.extract_strided_slice %62 {offsets = [0, 0, 0, 0], sizes = [8, 1, 2, 128], strides = [1, 1, 1, 1]} : vector<8x2x2x128xf32> to vector<8x1x2x128xf32>
    %66 = vector.shape_cast %65 : vector<8x1x2x128xf32> to vector<8x2x128xf32>
    %67 = vector.extract_strided_slice %62 {offsets = [0, 1, 0, 0], sizes = [8, 1, 2, 128], strides = [1, 1, 1, 1]} : vector<8x2x2x128xf32> to vector<8x1x2x128xf32>
    %68 = vector.shape_cast %67 : vector<8x1x2x128xf32> to vector<8x2x128xf32>
    %69 = arith.maximumf %66, %68 : vector<8x2x128xf32>
    %70 = vector.extract_strided_slice %64 {offsets = [0, 0, 0, 0], sizes = [8, 1, 2, 128], strides = [1, 1, 1, 1]} : vector<8x2x2x128xf32> to vector<8x1x2x128xf32>
    %71 = vector.shape_cast %70 : vector<8x1x2x128xf32> to vector<8x2x128xf32>
    %72 = arith.maximumf %69, %71 : vector<8x2x128xf32>
    %cst_66 = arith.constant 0.000000e+00 : f32
    %73 = vector.broadcast %cst_66 : f32 to vector<8x2x128xf32>
    %74 = arith.maximumf %72, %73 : vector<8x2x128xf32>
    %c0_67 = arith.constant 0 : index
    %c0_68 = arith.constant 0 : index
    %c0_69 = arith.constant 0 : index
    %75 = vector.load %arg6[%c0_67, %c0_68, %c0_69] : memref<4x1x128xf32, #tpu.memory_space<vmem>>, vector<1x1x128xf32>
    %76 = vector.shape_cast %75 : vector<1x1x128xf32> to vector<1x128xf32>
    %c1_70 = arith.constant 1 : index
    %c0_71 = arith.constant 0 : index
    %c0_72 = arith.constant 0 : index
    %77 = vector.load %arg23[%c1_70, %c0_71, %c0_72] : memref<10x2x128xf32, #tpu.memory_space<vmem>>, vector<8x2x128xf32>
    tpu.vector_store %arg23[%c1_70, %c0_71, %c0_72], %74 {strides = array<i32>} : memref<10x2x128xf32, #tpu.memory_space<vmem>>, vector<8x2x128xf32>,
    %c0_73 = arith.constant 0 : index
    %c0_74 = arith.constant 0 : index
    %c0_75 = arith.constant 0 : index
    %78 = vector.load %arg23[%c0_73, %c0_74, %c0_75] : memref<10x2x128xf32, #tpu.memory_space<vmem>>, vector<10x2x128xf32>
    %79 = vector.extract_strided_slice %78 {offsets = [0, 0, 0], sizes = [8, 2, 128], strides = [1, 1, 1]} : vector<10x2x128xf32> to vector<8x2x128xf32>
    %80 = vector.shape_cast %79 : vector<8x2x128xf32> to vector<16x128xf32>
    %c0_76 = arith.constant 0 : index
    %c0_77 = arith.constant 0 : index
    %c0_78 = arith.constant 0 : index
    %81 = vector.load %arg5[%c0_76, %c0_77, %c0_78] : memref<12x128x128xf32, #tpu.memory_space<vmem>>, vector<1x128x128xf32>
    %82 = vector.shape_cast %81 : vector<1x128x128xf32> to vector<128x128xf32>
    %cst_79 = arith.constant dense<0.000000e+00> : vector<16x128xf32>
    %83 = tpu.matmul %80, %82, %cst_79 {dimension_numbers = #tpu.dot_dimension_numbers<[1], [0], [0], [1], [0, 0, 1, 1], [], []>} : vector<16x128xf32>, vector<128x128xf32>, vector<16x128xf32> -> vector<16x128xf32>
    %84 = vector.extract_strided_slice %78 {offsets = [1, 0, 0], sizes = [8, 2, 128], strides = [1, 1, 1]} : vector<10x2x128xf32> to vector<8x2x128xf32>
    %85 = vector.shape_cast %84 : vector<8x2x128xf32> to vector<16x128xf32>
    %c1_80 = arith.constant 1 : index
    %c0_81 = arith.constant 0 : index
    %c0_82 = arith.constant 0 : index
    %86 = vector.load %arg5[%c1_80, %c0_81, %c0_82] : memref<12x128x128xf32, #tpu.memory_space<vmem>>, vector<1x128x128xf32>
    %87 = vector.shape_cast %86 : vector<1x128x128xf32> to vector<128x128xf32>
    %cst_83 = arith.constant dense<0.000000e+00> : vector<16x128xf32>
    %88 = tpu.matmul %85, %87, %cst_83 {dimension_numbers = #tpu.dot_dimension_numbers<[1], [0], [0], [1], [0, 0, 1, 1], [], []>} : vector<16x128xf32>, vector<128x128xf32>, vector<16x128xf32> -> vector<16x128xf32>
    %89 = arith.addf %83, %88 : vector<16x128xf32>
    %90 = vector.extract_strided_slice %78 {offsets = [2, 0, 0], sizes = [8, 2, 128], strides = [1, 1, 1]} : vector<10x2x128xf32> to vector<8x2x128xf32>
    %91 = vector.shape_cast %90 : vector<8x2x128xf32> to vector<16x128xf32>
    %c2_84 = arith.constant 2 : index
    %c0_85 = arith.constant 0 : index
    %c0_86 = arith.constant 0 : index
    %92 = vector.load %arg5[%c2_84, %c0_85, %c0_86] : memref<12x128x128xf32, #tpu.memory_space<vmem>>, vector<1x128x128xf32>
    %93 = vector.shape_cast %92 : vector<1x128x128xf32> to vector<128x128xf32>
    %cst_87 = arith.constant dense<0.000000e+00> : vector<16x128xf32>
    %94 = tpu.matmul %91, %93, %cst_87 {dimension_numbers = #tpu.dot_dimension_numbers<[1], [0], [0], [1], [0, 0, 1, 1], [], []>} : vector<16x128xf32>, vector<128x128xf32>, vector<16x128xf32> -> vector<16x128xf32>
    %95 = arith.addf %89, %94 : vector<16x128xf32>
    %96 = vector.broadcast %76 : vector<1x128xf32> to vector<16x128xf32>
    %97 = arith.addf %95, %96 : vector<16x128xf32>
    %98 = vector.shape_cast %97 : vector<16x128xf32> to vector<8x2x128xf32>
    %cst_88 = arith.constant 0.000000e+00 : f32
    %99 = vector.broadcast %cst_88 : f32 to vector<8x2x128xf32>
    %100 = arith.maximumf %98, %99 : vector<8x2x128xf32>
    %c1_89 = arith.constant 1 : index
    %c0_90 = arith.constant 0 : index
    %c0_91 = arith.constant 0 : index
    %101 = vector.load %arg6[%c1_89, %c0_90, %c0_91] : memref<4x1x128xf32, #tpu.memory_space<vmem>>, vector<1x1x128xf32>
    %102 = vector.shape_cast %101 : vector<1x1x128xf32> to vector<1x128xf32>
    %c1_92 = arith.constant 1 : index
    %c0_93 = arith.constant 0 : index
    %c0_94 = arith.constant 0 : index
    %103 = vector.load %arg23[%c1_92, %c0_93, %c0_94] : memref<10x2x128xf32, #tpu.memory_space<vmem>>, vector<8x2x128xf32>
    tpu.vector_store %arg23[%c1_92, %c0_93, %c0_94], %100 {strides = array<i32>} : memref<10x2x128xf32, #tpu.memory_space<vmem>>, vector<8x2x128xf32>,
    %c0_95 = arith.constant 0 : index
    %c0_96 = arith.constant 0 : index
    %c0_97 = arith.constant 0 : index
    %104 = vector.load %arg23[%c0_95, %c0_96, %c0_97] : memref<10x2x128xf32, #tpu.memory_space<vmem>>, vector<10x2x128xf32>
    %105 = vector.extract_strided_slice %104 {offsets = [0, 0, 0], sizes = [8, 2, 128], strides = [1, 1, 1]} : vector<10x2x128xf32> to vector<8x2x128xf32>
    %106 = vector.shape_cast %105 : vector<8x2x128xf32> to vector<16x128xf32>
    %c3 = arith.constant 3 : index
    %c0_98 = arith.constant 0 : index
    %c0_99 = arith.constant 0 : index
    %107 = vector.load %arg5[%c3, %c0_98, %c0_99] : memref<12x128x128xf32, #tpu.memory_space<vmem>>, vector<1x128x128xf32>
    %108 = vector.shape_cast %107 : vector<1x128x128xf32> to vector<128x128xf32>
    %cst_100 = arith.constant dense<0.000000e+00> : vector<16x128xf32>
    %109 = tpu.matmul %106, %108, %cst_100 {dimension_numbers = #tpu.dot_dimension_numbers<[1], [0], [0], [1], [0, 0, 1, 1], [], []>} : vector<16x128xf32>, vector<128x128xf32>, vector<16x128xf32> -> vector<16x128xf32>
    %110 = vector.extract_strided_slice %104 {offsets = [1, 0, 0], sizes = [8, 2, 128], strides = [1, 1, 1]} : vector<10x2x128xf32> to vector<8x2x128xf32>
    %111 = vector.shape_cast %110 : vector<8x2x128xf32> to vector<16x128xf32>
    %c4 = arith.constant 4 : index
    %c0_101 = arith.constant 0 : index
    %c0_102 = arith.constant 0 : index
    %112 = vector.load %arg5[%c4, %c0_101, %c0_102] : memref<12x128x128xf32, #tpu.memory_space<vmem>>, vector<1x128x128xf32>
    %113 = vector.shape_cast %112 : vector<1x128x128xf32> to vector<128x128xf32>
    %cst_103 = arith.constant dense<0.000000e+00> : vector<16x128xf32>
    %114 = tpu.matmul %111, %113, %cst_103 {dimension_numbers = #tpu.dot_dimension_numbers<[1], [0], [0], [1], [0, 0, 1, 1], [], []>} : vector<16x128xf32>, vector<128x128xf32>, vector<16x128xf32> -> vector<16x128xf32>
    %115 = arith.addf %109, %114 : vector<16x128xf32>
    %116 = vector.extract_strided_slice %104 {offsets = [2, 0, 0], sizes = [8, 2, 128], strides = [1, 1, 1]} : vector<10x2x128xf32> to vector<8x2x128xf32>
    %117 = vector.shape_cast %116 : vector<8x2x128xf32> to vector<16x128xf32>
    %c5 = arith.constant 5 : index
    %c0_104 = arith.constant 0 : index
    %c0_105 = arith.constant 0 : index
    %118 = vector.load %arg5[%c5, %c0_104, %c0_105] : memref<12x128x128xf32, #tpu.memory_space<vmem>>, vector<1x128x128xf32>
    %119 = vector.shape_cast %118 : vector<1x128x128xf32> to vector<128x128xf32>
    %cst_106 = arith.constant dense<0.000000e+00> : vector<16x128xf32>
    %120 = tpu.matmul %117, %119, %cst_106 {dimension_numbers = #tpu.dot_dimension_numbers<[1], [0], [0], [1], [0, 0, 1, 1], [], []>} : vector<16x128xf32>, vector<128x128xf32>, vector<16x128xf32> -> vector<16x128xf32>
    %121 = arith.addf %115, %120 : vector<16x128xf32>
    %122 = vector.broadcast %102 : vector<1x128xf32> to vector<16x128xf32>
    %123 = arith.addf %121, %122 : vector<16x128xf32>
    %124 = vector.shape_cast %123 : vector<16x128xf32> to vector<8x2x128xf32>
    %125 = arith.addf %124, %72 : vector<8x2x128xf32>
    %cst_107 = arith.constant 0.000000e+00 : f32
    %126 = vector.broadcast %cst_107 : f32 to vector<8x2x128xf32>
    %127 = arith.maximumf %125, %126 : vector<8x2x128xf32>
    %c2_108 = arith.constant 2 : index
    %c0_109 = arith.constant 0 : index
    %c0_110 = arith.constant 0 : index
    %128 = vector.load %arg6[%c2_108, %c0_109, %c0_110] : memref<4x1x128xf32, #tpu.memory_space<vmem>>, vector<1x1x128xf32>
    %129 = vector.shape_cast %128 : vector<1x1x128xf32> to vector<1x128xf32>
    %c1_111 = arith.constant 1 : index
    %c0_112 = arith.constant 0 : index
    %c0_113 = arith.constant 0 : index
    %130 = vector.load %arg23[%c1_111, %c0_112, %c0_113] : memref<10x2x128xf32, #tpu.memory_space<vmem>>, vector<8x2x128xf32>
    tpu.vector_store %arg23[%c1_111, %c0_112, %c0_113], %127 {strides = array<i32>} : memref<10x2x128xf32, #tpu.memory_space<vmem>>, vector<8x2x128xf32>,
    %c0_114 = arith.constant 0 : index
    %c0_115 = arith.constant 0 : index
    %c0_116 = arith.constant 0 : index
    %131 = vector.load %arg23[%c0_114, %c0_115, %c0_116] : memref<10x2x128xf32, #tpu.memory_space<vmem>>, vector<10x2x128xf32>
    %132 = vector.extract_strided_slice %131 {offsets = [0, 0, 0], sizes = [8, 2, 128], strides = [1, 1, 1]} : vector<10x2x128xf32> to vector<8x2x128xf32>
    %133 = vector.shape_cast %132 : vector<8x2x128xf32> to vector<16x128xf32>
    %c6 = arith.constant 6 : index
    %c0_117 = arith.constant 0 : index
    %c0_118 = arith.constant 0 : index
    %134 = vector.load %arg5[%c6, %c0_117, %c0_118] : memref<12x128x128xf32, #tpu.memory_space<vmem>>, vector<1x128x128xf32>
    %135 = vector.shape_cast %134 : vector<1x128x128xf32> to vector<128x128xf32>
    %cst_119 = arith.constant dense<0.000000e+00> : vector<16x128xf32>
    %136 = tpu.matmul %133, %135, %cst_119 {dimension_numbers = #tpu.dot_dimension_numbers<[1], [0], [0], [1], [0, 0, 1, 1], [], []>} : vector<16x128xf32>, vector<128x128xf32>, vector<16x128xf32> -> vector<16x128xf32>
    %137 = vector.extract_strided_slice %131 {offsets = [1, 0, 0], sizes = [8, 2, 128], strides = [1, 1, 1]} : vector<10x2x128xf32> to vector<8x2x128xf32>
    %138 = vector.shape_cast %137 : vector<8x2x128xf32> to vector<16x128xf32>
    %c7 = arith.constant 7 : index
    %c0_120 = arith.constant 0 : index
    %c0_121 = arith.constant 0 : index
    %139 = vector.load %arg5[%c7, %c0_120, %c0_121] : memref<12x128x128xf32, #tpu.memory_space<vmem>>, vector<1x128x128xf32>
    %140 = vector.shape_cast %139 : vector<1x128x128xf32> to vector<128x128xf32>
    %cst_122 = arith.constant dense<0.000000e+00> : vector<16x128xf32>
    %141 = tpu.matmul %138, %140, %cst_122 {dimension_numbers = #tpu.dot_dimension_numbers<[1], [0], [0], [1], [0, 0, 1, 1], [], []>} : vector<16x128xf32>, vector<128x128xf32>, vector<16x128xf32> -> vector<16x128xf32>
    %142 = arith.addf %136, %141 : vector<16x128xf32>
    %143 = vector.extract_strided_slice %131 {offsets = [2, 0, 0], sizes = [8, 2, 128], strides = [1, 1, 1]} : vector<10x2x128xf32> to vector<8x2x128xf32>
    %144 = vector.shape_cast %143 : vector<8x2x128xf32> to vector<16x128xf32>
    %c8 = arith.constant 8 : index
    %c0_123 = arith.constant 0 : index
    %c0_124 = arith.constant 0 : index
    %145 = vector.load %arg5[%c8, %c0_123, %c0_124] : memref<12x128x128xf32, #tpu.memory_space<vmem>>, vector<1x128x128xf32>
    %146 = vector.shape_cast %145 : vector<1x128x128xf32> to vector<128x128xf32>
    %cst_125 = arith.constant dense<0.000000e+00> : vector<16x128xf32>
    %147 = tpu.matmul %144, %146, %cst_125 {dimension_numbers = #tpu.dot_dimension_numbers<[1], [0], [0], [1], [0, 0, 1, 1], [], []>} : vector<16x128xf32>, vector<128x128xf32>, vector<16x128xf32> -> vector<16x128xf32>
    %148 = arith.addf %142, %147 : vector<16x128xf32>
    %149 = vector.broadcast %129 : vector<1x128xf32> to vector<16x128xf32>
    %150 = arith.addf %148, %149 : vector<16x128xf32>
    %151 = vector.shape_cast %150 : vector<16x128xf32> to vector<8x2x128xf32>
    %cst_126 = arith.constant 0.000000e+00 : f32
    %152 = vector.broadcast %cst_126 : f32 to vector<8x2x128xf32>
    %153 = arith.maximumf %151, %152 : vector<8x2x128xf32>
    %c3_127 = arith.constant 3 : index
    %c0_128 = arith.constant 0 : index
    %c0_129 = arith.constant 0 : index
    %154 = vector.load %arg6[%c3_127, %c0_128, %c0_129] : memref<4x1x128xf32, #tpu.memory_space<vmem>>, vector<1x1x128xf32>
    %155 = vector.shape_cast %154 : vector<1x1x128xf32> to vector<1x128xf32>
    %c1_130 = arith.constant 1 : index
    %c0_131 = arith.constant 0 : index
    %c0_132 = arith.constant 0 : index
    %156 = vector.load %arg23[%c1_130, %c0_131, %c0_132] : memref<10x2x128xf32, #tpu.memory_space<vmem>>, vector<8x2x128xf32>
    tpu.vector_store %arg23[%c1_130, %c0_131, %c0_132], %153 {strides = array<i32>} : memref<10x2x128xf32, #tpu.memory_space<vmem>>, vector<8x2x128xf32>,
    %c0_133 = arith.constant 0 : index
    %c0_134 = arith.constant 0 : index
    %c0_135 = arith.constant 0 : index
    %157 = vector.load %arg23[%c0_133, %c0_134, %c0_135] : memref<10x2x128xf32, #tpu.memory_space<vmem>>, vector<10x2x128xf32>
    %158 = vector.extract_strided_slice %157 {offsets = [0, 0, 0], sizes = [8, 2, 128], strides = [1, 1, 1]} : vector<10x2x128xf32> to vector<8x2x128xf32>
    %159 = vector.shape_cast %158 : vector<8x2x128xf32> to vector<16x128xf32>
    %c9 = arith.constant 9 : index
    %c0_136 = arith.constant 0 : index
    %c0_137 = arith.constant 0 : index
    %160 = vector.load %arg5[%c9, %c0_136, %c0_137] : memref<12x128x128xf32, #tpu.memory_space<vmem>>, vector<1x128x128xf32>
    %161 = vector.shape_cast %160 : vector<1x128x128xf32> to vector<128x128xf32>
    %cst_138 = arith.constant dense<0.000000e+00> : vector<16x128xf32>
    %162 = tpu.matmul %159, %161, %cst_138 {dimension_numbers = #tpu.dot_dimension_numbers<[1], [0], [0], [1], [0, 0, 1, 1], [], []>} : vector<16x128xf32>, vector<128x128xf32>, vector<16x128xf32> -> vector<16x128xf32>
    %163 = vector.extract_strided_slice %157 {offsets = [1, 0, 0], sizes = [8, 2, 128], strides = [1, 1, 1]} : vector<10x2x128xf32> to vector<8x2x128xf32>
    %164 = vector.shape_cast %163 : vector<8x2x128xf32> to vector<16x128xf32>
    %c10 = arith.constant 10 : index
    %c0_139 = arith.constant 0 : index
    %c0_140 = arith.constant 0 : index
    %165 = vector.load %arg5[%c10, %c0_139, %c0_140] : memref<12x128x128xf32, #tpu.memory_space<vmem>>, vector<1x128x128xf32>
    %166 = vector.shape_cast %165 : vector<1x128x128xf32> to vector<128x128xf32>
    %cst_141 = arith.constant dense<0.000000e+00> : vector<16x128xf32>
    %167 = tpu.matmul %164, %166, %cst_141 {dimension_numbers = #tpu.dot_dimension_numbers<[1], [0], [0], [1], [0, 0, 1, 1], [], []>} : vector<16x128xf32>, vector<128x128xf32>, vector<16x128xf32> -> vector<16x128xf32>
    %168 = arith.addf %162, %167 : vector<16x128xf32>
    %169 = vector.extract_strided_slice %157 {offsets = [2, 0, 0], sizes = [8, 2, 128], strides = [1, 1, 1]} : vector<10x2x128xf32> to vector<8x2x128xf32>
    %170 = vector.shape_cast %169 : vector<8x2x128xf32> to vector<16x128xf32>
    %c11 = arith.constant 11 : index
    %c0_142 = arith.constant 0 : index
    %c0_143 = arith.constant 0 : index
    %171 = vector.load %arg5[%c11, %c0_142, %c0_143] : memref<12x128x128xf32, #tpu.memory_space<vmem>>, vector<1x128x128xf32>
    %172 = vector.shape_cast %171 : vector<1x128x128xf32> to vector<128x128xf32>
    %cst_144 = arith.constant dense<0.000000e+00> : vector<16x128xf32>
    %173 = tpu.matmul %170, %172, %cst_144 {dimension_numbers = #tpu.dot_dimension_numbers<[1], [0], [0], [1], [0, 0, 1, 1], [], []>} : vector<16x128xf32>, vector<128x128xf32>, vector<16x128xf32> -> vector<16x128xf32>
    %174 = arith.addf %168, %173 : vector<16x128xf32>
    %175 = vector.broadcast %155 : vector<1x128xf32> to vector<16x128xf32>
    %176 = arith.addf %174, %175 : vector<16x128xf32>
    %177 = vector.shape_cast %176 : vector<16x128xf32> to vector<8x2x128xf32>
    %178 = arith.addf %177, %125 : vector<8x2x128xf32>
    %c0_145 = arith.constant 0 : index
    %c0_146 = arith.constant 0 : index
    %179 = vector.load %arg8[%c0_145, %c0_146] : memref<1x256xf32, #tpu.memory_space<vmem>>, vector<1x256xf32>
    %c1_147 = arith.constant 1 : index
    %c0_148 = arith.constant 0 : index
    %c0_149 = arith.constant 0 : index
    %180 = vector.load %arg23[%c1_147, %c0_148, %c0_149] : memref<10x2x128xf32, #tpu.memory_space<vmem>>, vector<8x2x128xf32>
    tpu.vector_store %arg23[%c1_147, %c0_148, %c0_149], %178 {strides = array<i32>} : memref<10x2x128xf32, #tpu.memory_space<vmem>>, vector<8x2x128xf32>,
    %c0_150 = arith.constant 0 : index
    %c0_151 = arith.constant 0 : index
    %c0_152 = arith.constant 0 : index
    %181 = vector.load %arg23[%c0_150, %c0_151, %c0_152] : memref<10x2x128xf32, #tpu.memory_space<vmem>>, vector<10x2x128xf32>
    %182 = vector.extract_strided_slice %181 {offsets = [0, 0, 0], sizes = [8, 2, 128], strides = [1, 1, 1]} : vector<10x2x128xf32> to vector<8x2x128xf32>
    %183 = vector.shape_cast %182 : vector<8x2x128xf32> to vector<16x128xf32>
    %c0_153 = arith.constant 0 : index
    %c0_154 = arith.constant 0 : index
    %c0_155 = arith.constant 0 : index
    %184 = vector.load %arg7[%c0_153, %c0_154, %c0_155] : memref<3x128x256xf32, #tpu.memory_space<vmem>>, vector<1x128x256xf32>
    %185 = vector.shape_cast %184 : vector<1x128x256xf32> to vector<128x256xf32>
    %cst_156 = arith.constant dense<0.000000e+00> : vector<16x256xf32>
    %186 = tpu.matmul %183, %185, %cst_156 {dimension_numbers = #tpu.dot_dimension_numbers<[1], [0], [0], [1], [0, 0, 1, 1], [], []>} : vector<16x128xf32>, vector<128x256xf32>, vector<16x256xf32> -> vector<16x256xf32>
    %187 = vector.extract_strided_slice %181 {offsets = [1, 0, 0], sizes = [8, 2, 128], strides = [1, 1, 1]} : vector<10x2x128xf32> to vector<8x2x128xf32>
    %188 = vector.shape_cast %187 : vector<8x2x128xf32> to vector<16x128xf32>
    %c1_157 = arith.constant 1 : index
    %c0_158 = arith.constant 0 : index
    %c0_159 = arith.constant 0 : index
    %189 = vector.load %arg7[%c1_157, %c0_158, %c0_159] : memref<3x128x256xf32, #tpu.memory_space<vmem>>, vector<1x128x256xf32>
    %190 = vector.shape_cast %189 : vector<1x128x256xf32> to vector<128x256xf32>
    %cst_160 = arith.constant dense<0.000000e+00> : vector<16x256xf32>
    %191 = tpu.matmul %188, %190, %cst_160 {dimension_numbers = #tpu.dot_dimension_numbers<[1], [0], [0], [1], [0, 0, 1, 1], [], []>} : vector<16x128xf32>, vector<128x256xf32>, vector<16x256xf32> -> vector<16x256xf32>
    %192 = arith.addf %186, %191 : vector<16x256xf32>
    %193 = vector.extract_strided_slice %181 {offsets = [2, 0, 0], sizes = [8, 2, 128], strides = [1, 1, 1]} : vector<10x2x128xf32> to vector<8x2x128xf32>
    %194 = vector.shape_cast %193 : vector<8x2x128xf32> to vector<16x128xf32>
    %c2_161 = arith.constant 2 : index
    %c0_162 = arith.constant 0 : index
    %c0_163 = arith.constant 0 : index
    %195 = vector.load %arg7[%c2_161, %c0_162, %c0_163] : memref<3x128x256xf32, #tpu.memory_space<vmem>>, vector<1x128x256xf32>
    %196 = vector.shape_cast %195 : vector<1x128x256xf32> to vector<128x256xf32>
    %cst_164 = arith.constant dense<0.000000e+00> : vector<16x256xf32>
    %197 = tpu.matmul %194, %196, %cst_164 {dimension_numbers = #tpu.dot_dimension_numbers<[1], [0], [0], [1], [0, 0, 1, 1], [], []>} : vector<16x128xf32>, vector<128x256xf32>, vector<16x256xf32> -> vector<16x256xf32>
    %198 = arith.addf %192, %197 : vector<16x256xf32>
    %199 = vector.broadcast %179 : vector<1x256xf32> to vector<16x256xf32>
    %200 = arith.addf %198, %199 : vector<16x256xf32>
    %201 = vector.shape_cast %200 : vector<16x256xf32> to vector<8x2x256xf32>
    %202 = vector.shape_cast %201 : vector<8x2x256xf32> to vector<16x256xf32>
    %c0_165 = arith.constant 0 : index
    %c0_166 = arith.constant 0 : index
    %c0_167 = arith.constant 0 : index
    %203 = vector.load %arg9[%c0_165, %c0_166, %c0_167] : memref<3x256x128xf32, #tpu.memory_space<vmem>>, vector<1x256x128xf32>
    %204 = vector.shape_cast %203 : vector<1x256x128xf32> to vector<256x128xf32>
    %cst_168 = arith.constant dense<0.000000e+00> : vector<16x128xf32>
    %205 = tpu.matmul %202, %204, %cst_168 {dimension_numbers = #tpu.dot_dimension_numbers<[1], [0], [0], [1], [0, 0, 1, 1], [], []>} : vector<16x256xf32>, vector<256x128xf32>, vector<16x128xf32> -> vector<16x128xf32>
    %c0_169 = arith.constant 0 : index
    %c0_170 = arith.constant 0 : index
    %c0_171 = arith.constant 0 : index
    %206 = vector.load %arg10[%c0_169, %c0_170, %c0_171] : memref<3x1x128xf32, #tpu.memory_space<vmem>>, vector<1x1x128xf32>
    %207 = vector.shape_cast %206 : vector<1x1x128xf32> to vector<1x128xf32>
    %208 = vector.broadcast %207 : vector<1x128xf32> to vector<16x128xf32>
    %209 = arith.addf %205, %208 : vector<16x128xf32>
    %c1_172 = arith.constant 1 : index
    %c0_173 = arith.constant 0 : index
    %c0_174 = arith.constant 0 : index
    %210 = vector.load %arg9[%c1_172, %c0_173, %c0_174] : memref<3x256x128xf32, #tpu.memory_space<vmem>>, vector<1x256x128xf32>
    %211 = vector.shape_cast %210 : vector<1x256x128xf32> to vector<256x128xf32>
    %cst_175 = arith.constant dense<0.000000e+00> : vector<16x128xf32>
    %212 = tpu.matmul %202, %211, %cst_175 {dimension_numbers = #tpu.dot_dimension_numbers<[1], [0], [0], [1], [0, 0, 1, 1], [], []>} : vector<16x256xf32>, vector<256x128xf32>, vector<16x128xf32> -> vector<16x128xf32>
    %c1_176 = arith.constant 1 : index
    %c0_177 = arith.constant 0 : index
    %c0_178 = arith.constant 0 : index
    %213 = vector.load %arg10[%c1_176, %c0_177, %c0_178] : memref<3x1x128xf32, #tpu.memory_space<vmem>>, vector<1x1x128xf32>
    %214 = vector.shape_cast %213 : vector<1x1x128xf32> to vector<1x128xf32>
    %215 = vector.broadcast %214 : vector<1x128xf32> to vector<16x128xf32>
    %216 = arith.addf %212, %215 : vector<16x128xf32>
    %217 = arith.maximumf %209, %216 : vector<16x128xf32>
    %c2_179 = arith.constant 2 : index
    %c0_180 = arith.constant 0 : index
    %c0_181 = arith.constant 0 : index
    %218 = vector.load %arg9[%c2_179, %c0_180, %c0_181] : memref<3x256x128xf32, #tpu.memory_space<vmem>>, vector<1x256x128xf32>
    %219 = vector.shape_cast %218 : vector<1x256x128xf32> to vector<256x128xf32>
    %cst_182 = arith.constant dense<0.000000e+00> : vector<16x128xf32>
    %220 = tpu.matmul %202, %219, %cst_182 {dimension_numbers = #tpu.dot_dimension_numbers<[1], [0], [0], [1], [0, 0, 1, 1], [], []>} : vector<16x256xf32>, vector<256x128xf32>, vector<16x128xf32> -> vector<16x128xf32>
    %c2_183 = arith.constant 2 : index
    %c0_184 = arith.constant 0 : index
    %c0_185 = arith.constant 0 : index
    %221 = vector.load %arg10[%c2_183, %c0_184, %c0_185] : memref<3x1x128xf32, #tpu.memory_space<vmem>>, vector<1x1x128xf32>
    %222 = vector.shape_cast %221 : vector<1x1x128xf32> to vector<1x128xf32>
    %223 = vector.broadcast %222 : vector<1x128xf32> to vector<16x128xf32>
    %224 = arith.addf %220, %223 : vector<16x128xf32>
    %225 = arith.maximumf %217, %224 : vector<16x128xf32>
    %cst_186 = arith.constant -1.000000e+30 : f32
    %226 = vector.broadcast %cst_186 : f32 to vector<10x2x128xf32>
    %c0_187 = arith.constant 0 : index
    %c0_188 = arith.constant 0 : index
    %c0_189 = arith.constant 0 : index
    %227 = vector.load %arg27[%c0_187, %c0_188, %c0_189] : memref<10x2x128xf32, #tpu.memory_space<vmem>>, vector<10x2x128xf32>
    tpu.vector_store %arg27[%c0_187, %c0_188, %c0_189], %226 {strides = array<i32>} : memref<10x2x128xf32, #tpu.memory_space<vmem>>, vector<10x2x128xf32>,
    %228 = vector.shape_cast %225 : vector<16x128xf32> to vector<8x2x128xf32>
    %c1_190 = arith.constant 1 : index
    %c0_191 = arith.constant 0 : index
    %c0_192 = arith.constant 0 : index
    %229 = vector.load %arg27[%c1_190, %c0_191, %c0_192] : memref<10x2x128xf32, #tpu.memory_space<vmem>>, vector<8x2x128xf32>
    tpu.vector_store %arg27[%c1_190, %c0_191, %c0_192], %228 {strides = array<i32>} : memref<10x2x128xf32, #tpu.memory_space<vmem>>, vector<8x2x128xf32>,
    %c0_193 = arith.constant 0 : index
    %c0_194 = arith.constant 0 : index
    %c0_195 = arith.constant 0 : index
    %230 = vector.load %arg27[%c0_193, %c0_194, %c0_195] : memref<10x2x128xf32, #tpu.memory_space<vmem>>, vector<10x2x128xf32>
    %231 = vector.extract_strided_slice %230 {offsets = [0, 0, 0], sizes = [8, 2, 128], strides = [1, 1, 1]} : vector<10x2x128xf32> to vector<8x2x128xf32>
    %232 = vector.shape_cast %231 : vector<8x2x128xf32> to vector<4x2x2x128xf32>
    %233 = vector.extract_strided_slice %230 {offsets = [2, 0, 0], sizes = [8, 2, 128], strides = [1, 1, 1]} : vector<10x2x128xf32> to vector<8x2x128xf32>
    %234 = vector.shape_cast %233 : vector<8x2x128xf32> to vector<4x2x2x128xf32>
    %235 = vector.extract_strided_slice %232 {offsets = [0, 0, 0, 0], sizes = [4, 1, 2, 128], strides = [1, 1, 1, 1]} : vector<4x2x2x128xf32> to vector<4x1x2x128xf32>
    %236 = vector.shape_cast %235 : vector<4x1x2x128xf32> to vector<4x2x128xf32>
    %237 = vector.extract_strided_slice %232 {offsets = [0, 1, 0, 0], sizes = [4, 1, 2, 128], strides = [1, 1, 1, 1]} : vector<4x2x2x128xf32> to vector<4x1x2x128xf32>
    %238 = vector.shape_cast %237 : vector<4x1x2x128xf32> to vector<4x2x128xf32>
    %239 = arith.maximumf %236, %238 : vector<4x2x128xf32>
    %240 = vector.extract_strided_slice %234 {offsets = [0, 0, 0, 0], sizes = [4, 1, 2, 128], strides = [1, 1, 1, 1]} : vector<4x2x2x128xf32> to vector<4x1x2x128xf32>
    %241 = vector.shape_cast %240 : vector<4x1x2x128xf32> to vector<4x2x128xf32>
    %242 = arith.maximumf %239, %241 : vector<4x2x128xf32>
    %cst_196 = arith.constant 0.000000e+00 : f32
    %243 = vector.broadcast %cst_196 : f32 to vector<4x2x128xf32>
    %244 = arith.maximumf %242, %243 : vector<4x2x128xf32>
    %c0_197 = arith.constant 0 : index
    %c0_198 = arith.constant 0 : index
    %c0_199 = arith.constant 0 : index
    %245 = vector.load %arg12[%c0_197, %c0_198, %c0_199] : memref<4x1x128xf32, #tpu.memory_space<vmem>>, vector<1x1x128xf32>
    %246 = vector.shape_cast %245 : vector<1x1x128xf32> to vector<1x128xf32>
    %c1_200 = arith.constant 1 : index
    %c0_201 = arith.constant 0 : index
    %c0_202 = arith.constant 0 : index
    %247 = vector.load %arg24[%c1_200, %c0_201, %c0_202] : memref<6x2x128xf32, #tpu.memory_space<vmem>>, vector<4x2x128xf32>
    tpu.vector_store %arg24[%c1_200, %c0_201, %c0_202], %244 {strides = array<i32>} : memref<6x2x128xf32, #tpu.memory_space<vmem>>, vector<4x2x128xf32>,
    %c0_203 = arith.constant 0 : index
    %c0_204 = arith.constant 0 : index
    %c0_205 = arith.constant 0 : index
    %248 = vector.load %arg24[%c0_203, %c0_204, %c0_205] : memref<6x2x128xf32, #tpu.memory_space<vmem>>, vector<6x2x128xf32>
    %249 = vector.extract_strided_slice %248 {offsets = [0, 0, 0], sizes = [4, 2, 128], strides = [1, 1, 1]} : vector<6x2x128xf32> to vector<4x2x128xf32>
    %250 = vector.shape_cast %249 : vector<4x2x128xf32> to vector<8x128xf32>
    %c0_206 = arith.constant 0 : index
    %c0_207 = arith.constant 0 : index
    %c0_208 = arith.constant 0 : index
    %251 = vector.load %arg11[%c0_206, %c0_207, %c0_208] : memref<12x128x128xf32, #tpu.memory_space<vmem>>, vector<1x128x128xf32>
    %252 = vector.shape_cast %251 : vector<1x128x128xf32> to vector<128x128xf32>
    %cst_209 = arith.constant dense<0.000000e+00> : vector<8x128xf32>
    %253 = tpu.matmul %250, %252, %cst_209 {dimension_numbers = #tpu.dot_dimension_numbers<[1], [0], [0], [1], [0, 0, 1, 1], [], []>} : vector<8x128xf32>, vector<128x128xf32>, vector<8x128xf32> -> vector<8x128xf32>
    %254 = vector.extract_strided_slice %248 {offsets = [1, 0, 0], sizes = [4, 2, 128], strides = [1, 1, 1]} : vector<6x2x128xf32> to vector<4x2x128xf32>
    %255 = vector.shape_cast %254 : vector<4x2x128xf32> to vector<8x128xf32>
    %c1_210 = arith.constant 1 : index
    %c0_211 = arith.constant 0 : index
    %c0_212 = arith.constant 0 : index
    %256 = vector.load %arg11[%c1_210, %c0_211, %c0_212] : memref<12x128x128xf32, #tpu.memory_space<vmem>>, vector<1x128x128xf32>
    %257 = vector.shape_cast %256 : vector<1x128x128xf32> to vector<128x128xf32>
    %cst_213 = arith.constant dense<0.000000e+00> : vector<8x128xf32>
    %258 = tpu.matmul %255, %257, %cst_213 {dimension_numbers = #tpu.dot_dimension_numbers<[1], [0], [0], [1], [0, 0, 1, 1], [], []>} : vector<8x128xf32>, vector<128x128xf32>, vector<8x128xf32> -> vector<8x128xf32>
    %259 = arith.addf %253, %258 : vector<8x128xf32>
    %260 = vector.extract_strided_slice %248 {offsets = [2, 0, 0], sizes = [4, 2, 128], strides = [1, 1, 1]} : vector<6x2x128xf32> to vector<4x2x128xf32>
    %261 = vector.shape_cast %260 : vector<4x2x128xf32> to vector<8x128xf32>
    %c2_214 = arith.constant 2 : index
    %c0_215 = arith.constant 0 : index
    %c0_216 = arith.constant 0 : index
    %262 = vector.load %arg11[%c2_214, %c0_215, %c0_216] : memref<12x128x128xf32, #tpu.memory_space<vmem>>, vector<1x128x128xf32>
    %263 = vector.shape_cast %262 : vector<1x128x128xf32> to vector<128x128xf32>
    %cst_217 = arith.constant dense<0.000000e+00> : vector<8x128xf32>
    %264 = tpu.matmul %261, %263, %cst_217 {dimension_numbers = #tpu.dot_dimension_numbers<[1], [0], [0], [1], [0, 0, 1, 1], [], []>} : vector<8x128xf32>, vector<128x128xf32>, vector<8x128xf32> -> vector<8x128xf32>
    %265 = arith.addf %259, %264 : vector<8x128xf32>
    %266 = vector.broadcast %246 : vector<1x128xf32> to vector<8x128xf32>
    %267 = arith.addf %265, %266 : vector<8x128xf32>
    %268 = vector.shape_cast %267 : vector<8x128xf32> to vector<4x2x128xf32>
    %cst_218 = arith.constant 0.000000e+00 : f32
    %269 = vector.broadcast %cst_218 : f32 to vector<4x2x128xf32>
    %270 = arith.maximumf %268, %269 : vector<4x2x128xf32>
    %c1_219 = arith.constant 1 : index
    %c0_220 = arith.constant 0 : index
    %c0_221 = arith.constant 0 : index
    %271 = vector.load %arg12[%c1_219, %c0_220, %c0_221] : memref<4x1x128xf32, #tpu.memory_space<vmem>>, vector<1x1x128xf32>
    %272 = vector.shape_cast %271 : vector<1x1x128xf32> to vector<1x128xf32>
    %c1_222 = arith.constant 1 : index
    %c0_223 = arith.constant 0 : index
    %c0_224 = arith.constant 0 : index
    %273 = vector.load %arg24[%c1_222, %c0_223, %c0_224] : memref<6x2x128xf32, #tpu.memory_space<vmem>>, vector<4x2x128xf32>
    tpu.vector_store %arg24[%c1_222, %c0_223, %c0_224], %270 {strides = array<i32>} : memref<6x2x128xf32, #tpu.memory_space<vmem>>, vector<4x2x128xf32>,
    %c0_225 = arith.constant 0 : index
    %c0_226 = arith.constant 0 : index
    %c0_227 = arith.constant 0 : index
    %274 = vector.load %arg24[%c0_225, %c0_226, %c0_227] : memref<6x2x128xf32, #tpu.memory_space<vmem>>, vector<6x2x128xf32>
    %275 = vector.extract_strided_slice %274 {offsets = [0, 0, 0], sizes = [4, 2, 128], strides = [1, 1, 1]} : vector<6x2x128xf32> to vector<4x2x128xf32>
    %276 = vector.shape_cast %275 : vector<4x2x128xf32> to vector<8x128xf32>
    %c3_228 = arith.constant 3 : index
    %c0_229 = arith.constant 0 : index
    %c0_230 = arith.constant 0 : index
    %277 = vector.load %arg11[%c3_228, %c0_229, %c0_230] : memref<12x128x128xf32, #tpu.memory_space<vmem>>, vector<1x128x128xf32>
    %278 = vector.shape_cast %277 : vector<1x128x128xf32> to vector<128x128xf32>
    %cst_231 = arith.constant dense<0.000000e+00> : vector<8x128xf32>
    %279 = tpu.matmul %276, %278, %cst_231 {dimension_numbers = #tpu.dot_dimension_numbers<[1], [0], [0], [1], [0, 0, 1, 1], [], []>} : vector<8x128xf32>, vector<128x128xf32>, vector<8x128xf32> -> vector<8x128xf32>
    %280 = vector.extract_strided_slice %274 {offsets = [1, 0, 0], sizes = [4, 2, 128], strides = [1, 1, 1]} : vector<6x2x128xf32> to vector<4x2x128xf32>
    %281 = vector.shape_cast %280 : vector<4x2x128xf32> to vector<8x128xf32>
    %c4_232 = arith.constant 4 : index
    %c0_233 = arith.constant 0 : index
    %c0_234 = arith.constant 0 : index
    %282 = vector.load %arg11[%c4_232, %c0_233, %c0_234] : memref<12x128x128xf32, #tpu.memory_space<vmem>>, vector<1x128x128xf32>
    %283 = vector.shape_cast %282 : vector<1x128x128xf32> to vector<128x128xf32>
    %cst_235 = arith.constant dense<0.000000e+00> : vector<8x128xf32>
    %284 = tpu.matmul %281, %283, %cst_235 {dimension_numbers = #tpu.dot_dimension_numbers<[1], [0], [0], [1], [0, 0, 1, 1], [], []>} : vector<8x128xf32>, vector<128x128xf32>, vector<8x128xf32> -> vector<8x128xf32>
    %285 = arith.addf %279, %284 : vector<8x128xf32>
    %286 = vector.extract_strided_slice %274 {offsets = [2, 0, 0], sizes = [4, 2, 128], strides = [1, 1, 1]} : vector<6x2x128xf32> to vector<4x2x128xf32>
    %287 = vector.shape_cast %286 : vector<4x2x128xf32> to vector<8x128xf32>
    %c5_236 = arith.constant 5 : index
    %c0_237 = arith.constant 0 : index
    %c0_238 = arith.constant 0 : index
    %288 = vector.load %arg11[%c5_236, %c0_237, %c0_238] : memref<12x128x128xf32, #tpu.memory_space<vmem>>, vector<1x128x128xf32>
    %289 = vector.shape_cast %288 : vector<1x128x128xf32> to vector<128x128xf32>
    %cst_239 = arith.constant dense<0.000000e+00> : vector<8x128xf32>
    %290 = tpu.matmul %287, %289, %cst_239 {dimension_numbers = #tpu.dot_dimension_numbers<[1], [0], [0], [1], [0, 0, 1, 1], [], []>} : vector<8x128xf32>, vector<128x128xf32>, vector<8x128xf32> -> vector<8x128xf32>
    %291 = arith.addf %285, %290 : vector<8x128xf32>
    %292 = vector.broadcast %272 : vector<1x128xf32> to vector<8x128xf32>
    %293 = arith.addf %291, %292 : vector<8x128xf32>
    %294 = vector.shape_cast %293 : vector<8x128xf32> to vector<4x2x128xf32>
    %295 = arith.addf %294, %242 : vector<4x2x128xf32>
    %cst_240 = arith.constant 0.000000e+00 : f32
    %296 = vector.broadcast %cst_240 : f32 to vector<4x2x128xf32>
    %297 = arith.maximumf %295, %296 : vector<4x2x128xf32>
    %c2_241 = arith.constant 2 : index
    %c0_242 = arith.constant 0 : index
    %c0_243 = arith.constant 0 : index
    %298 = vector.load %arg12[%c2_241, %c0_242, %c0_243] : memref<4x1x128xf32, #tpu.memory_space<vmem>>, vector<1x1x128xf32>
    %299 = vector.shape_cast %298 : vector<1x1x128xf32> to vector<1x128xf32>
    %c1_244 = arith.constant 1 : index
    %c0_245 = arith.constant 0 : index
    %c0_246 = arith.constant 0 : index
    %300 = vector.load %arg24[%c1_244, %c0_245, %c0_246] : memref<6x2x128xf32, #tpu.memory_space<vmem>>, vector<4x2x128xf32>
    tpu.vector_store %arg24[%c1_244, %c0_245, %c0_246], %297 {strides = array<i32>} : memref<6x2x128xf32, #tpu.memory_space<vmem>>, vector<4x2x128xf32>,
    %c0_247 = arith.constant 0 : index
    %c0_248 = arith.constant 0 : index
    %c0_249 = arith.constant 0 : index
    %301 = vector.load %arg24[%c0_247, %c0_248, %c0_249] : memref<6x2x128xf32, #tpu.memory_space<vmem>>, vector<6x2x128xf32>
    %302 = vector.extract_strided_slice %301 {offsets = [0, 0, 0], sizes = [4, 2, 128], strides = [1, 1, 1]} : vector<6x2x128xf32> to vector<4x2x128xf32>
    %303 = vector.shape_cast %302 : vector<4x2x128xf32> to vector<8x128xf32>
    %c6_250 = arith.constant 6 : index
    %c0_251 = arith.constant 0 : index
    %c0_252 = arith.constant 0 : index
    %304 = vector.load %arg11[%c6_250, %c0_251, %c0_252] : memref<12x128x128xf32, #tpu.memory_space<vmem>>, vector<1x128x128xf32>
    %305 = vector.shape_cast %304 : vector<1x128x128xf32> to vector<128x128xf32>
    %cst_253 = arith.constant dense<0.000000e+00> : vector<8x128xf32>
    %306 = tpu.matmul %303, %305, %cst_253 {dimension_numbers = #tpu.dot_dimension_numbers<[1], [0], [0], [1], [0, 0, 1, 1], [], []>} : vector<8x128xf32>, vector<128x128xf32>, vector<8x128xf32> -> vector<8x128xf32>
    %307 = vector.extract_strided_slice %301 {offsets = [1, 0, 0], sizes = [4, 2, 128], strides = [1, 1, 1]} : vector<6x2x128xf32> to vector<4x2x128xf32>
    %308 = vector.shape_cast %307 : vector<4x2x128xf32> to vector<8x128xf32>
    %c7_254 = arith.constant 7 : index
    %c0_255 = arith.constant 0 : index
    %c0_256 = arith.constant 0 : index
    %309 = vector.load %arg11[%c7_254, %c0_255, %c0_256] : memref<12x128x128xf32, #tpu.memory_space<vmem>>, vector<1x128x128xf32>
    %310 = vector.shape_cast %309 : vector<1x128x128xf32> to vector<128x128xf32>
    %cst_257 = arith.constant dense<0.000000e+00> : vector<8x128xf32>
    %311 = tpu.matmul %308, %310, %cst_257 {dimension_numbers = #tpu.dot_dimension_numbers<[1], [0], [0], [1], [0, 0, 1, 1], [], []>} : vector<8x128xf32>, vector<128x128xf32>, vector<8x128xf32> -> vector<8x128xf32>
    %312 = arith.addf %306, %311 : vector<8x128xf32>
    %313 = vector.extract_strided_slice %301 {offsets = [2, 0, 0], sizes = [4, 2, 128], strides = [1, 1, 1]} : vector<6x2x128xf32> to vector<4x2x128xf32>
    %314 = vector.shape_cast %313 : vector<4x2x128xf32> to vector<8x128xf32>
    %c8_258 = arith.constant 8 : index
    %c0_259 = arith.constant 0 : index
    %c0_260 = arith.constant 0 : index
    %315 = vector.load %arg11[%c8_258, %c0_259, %c0_260] : memref<12x128x128xf32, #tpu.memory_space<vmem>>, vector<1x128x128xf32>
    %316 = vector.shape_cast %315 : vector<1x128x128xf32> to vector<128x128xf32>
    %cst_261 = arith.constant dense<0.000000e+00> : vector<8x128xf32>
    %317 = tpu.matmul %314, %316, %cst_261 {dimension_numbers = #tpu.dot_dimension_numbers<[1], [0], [0], [1], [0, 0, 1, 1], [], []>} : vector<8x128xf32>, vector<128x128xf32>, vector<8x128xf32> -> vector<8x128xf32>
    %318 = arith.addf %312, %317 : vector<8x128xf32>
    %319 = vector.broadcast %299 : vector<1x128xf32> to vector<8x128xf32>
    %320 = arith.addf %318, %319 : vector<8x128xf32>
    %321 = vector.shape_cast %320 : vector<8x128xf32> to vector<4x2x128xf32>
    %cst_262 = arith.constant 0.000000e+00 : f32
    %322 = vector.broadcast %cst_262 : f32 to vector<4x2x128xf32>
    %323 = arith.maximumf %321, %322 : vector<4x2x128xf32>
    %c3_263 = arith.constant 3 : index
    %c0_264 = arith.constant 0 : index
    %c0_265 = arith.constant 0 : index
    %324 = vector.load %arg12[%c3_263, %c0_264, %c0_265] : memref<4x1x128xf32, #tpu.memory_space<vmem>>, vector<1x1x128xf32>
    %325 = vector.shape_cast %324 : vector<1x1x128xf32> to vector<1x128xf32>
    %c1_266 = arith.constant 1 : index
    %c0_267 = arith.constant 0 : index
    %c0_268 = arith.constant 0 : index
    %326 = vector.load %arg24[%c1_266, %c0_267, %c0_268] : memref<6x2x128xf32, #tpu.memory_space<vmem>>, vector<4x2x128xf32>
    tpu.vector_store %arg24[%c1_266, %c0_267, %c0_268], %323 {strides = array<i32>} : memref<6x2x128xf32, #tpu.memory_space<vmem>>, vector<4x2x128xf32>,
    %c0_269 = arith.constant 0 : index
    %c0_270 = arith.constant 0 : index
    %c0_271 = arith.constant 0 : index
    %327 = vector.load %arg24[%c0_269, %c0_270, %c0_271] : memref<6x2x128xf32, #tpu.memory_space<vmem>>, vector<6x2x128xf32>
    %328 = vector.extract_strided_slice %327 {offsets = [0, 0, 0], sizes = [4, 2, 128], strides = [1, 1, 1]} : vector<6x2x128xf32> to vector<4x2x128xf32>
    %329 = vector.shape_cast %328 : vector<4x2x128xf32> to vector<8x128xf32>
    %c9_272 = arith.constant 9 : index
    %c0_273 = arith.constant 0 : index
    %c0_274 = arith.constant 0 : index
    %330 = vector.load %arg11[%c9_272, %c0_273, %c0_274] : memref<12x128x128xf32, #tpu.memory_space<vmem>>, vector<1x128x128xf32>
    %331 = vector.shape_cast %330 : vector<1x128x128xf32> to vector<128x128xf32>
    %cst_275 = arith.constant dense<0.000000e+00> : vector<8x128xf32>
    %332 = tpu.matmul %329, %331, %cst_275 {dimension_numbers = #tpu.dot_dimension_numbers<[1], [0], [0], [1], [0, 0, 1, 1], [], []>} : vector<8x128xf32>, vector<128x128xf32>, vector<8x128xf32> -> vector<8x128xf32>
    %333 = vector.extract_strided_slice %327 {offsets = [1, 0, 0], sizes = [4, 2, 128], strides = [1, 1, 1]} : vector<6x2x128xf32> to vector<4x2x128xf32>
    %334 = vector.shape_cast %333 : vector<4x2x128xf32> to vector<8x128xf32>
    %c10_276 = arith.constant 10 : index
    %c0_277 = arith.constant 0 : index
    %c0_278 = arith.constant 0 : index
    %335 = vector.load %arg11[%c10_276, %c0_277, %c0_278] : memref<12x128x128xf32, #tpu.memory_space<vmem>>, vector<1x128x128xf32>
    %336 = vector.shape_cast %335 : vector<1x128x128xf32> to vector<128x128xf32>
    %cst_279 = arith.constant dense<0.000000e+00> : vector<8x128xf32>
    %337 = tpu.matmul %334, %336, %cst_279 {dimension_numbers = #tpu.dot_dimension_numbers<[1], [0], [0], [1], [0, 0, 1, 1], [], []>} : vector<8x128xf32>, vector<128x128xf32>, vector<8x128xf32> -> vector<8x128xf32>
    %338 = arith.addf %332, %337 : vector<8x128xf32>
    %339 = vector.extract_strided_slice %327 {offsets = [2, 0, 0], sizes = [4, 2, 128], strides = [1, 1, 1]} : vector<6x2x128xf32> to vector<4x2x128xf32>
    %340 = vector.shape_cast %339 : vector<4x2x128xf32> to vector<8x128xf32>
    %c11_280 = arith.constant 11 : index
    %c0_281 = arith.constant 0 : index
    %c0_282 = arith.constant 0 : index
    %341 = vector.load %arg11[%c11_280, %c0_281, %c0_282] : memref<12x128x128xf32, #tpu.memory_space<vmem>>, vector<1x128x128xf32>
    %342 = vector.shape_cast %341 : vector<1x128x128xf32> to vector<128x128xf32>
    %cst_283 = arith.constant dense<0.000000e+00> : vector<8x128xf32>
    %343 = tpu.matmul %340, %342, %cst_283 {dimension_numbers = #tpu.dot_dimension_numbers<[1], [0], [0], [1], [0, 0, 1, 1], [], []>} : vector<8x128xf32>, vector<128x128xf32>, vector<8x128xf32> -> vector<8x128xf32>
    %344 = arith.addf %338, %343 : vector<8x128xf32>
    %345 = vector.broadcast %325 : vector<1x128xf32> to vector<8x128xf32>
    %346 = arith.addf %344, %345 : vector<8x128xf32>
    %347 = vector.shape_cast %346 : vector<8x128xf32> to vector<4x2x128xf32>
    %348 = arith.addf %347, %295 : vector<4x2x128xf32>
    %c0_284 = arith.constant 0 : index
    %c0_285 = arith.constant 0 : index
    %349 = vector.load %arg14[%c0_284, %c0_285] : memref<1x128xf32, #tpu.memory_space<vmem>>, vector<1x128xf32>
    %c1_286 = arith.constant 1 : index
    %c0_287 = arith.constant 0 : index
    %c0_288 = arith.constant 0 : index
    %350 = vector.load %arg24[%c1_286, %c0_287, %c0_288] : memref<6x2x128xf32, #tpu.memory_space<vmem>>, vector<4x2x128xf32>
    tpu.vector_store %arg24[%c1_286, %c0_287, %c0_288], %348 {strides = array<i32>} : memref<6x2x128xf32, #tpu.memory_space<vmem>>, vector<4x2x128xf32>,
    %c0_289 = arith.constant 0 : index
    %c0_290 = arith.constant 0 : index
    %c0_291 = arith.constant 0 : index
    %351 = vector.load %arg24[%c0_289, %c0_290, %c0_291] : memref<6x2x128xf32, #tpu.memory_space<vmem>>, vector<6x2x128xf32>
    %352 = vector.extract_strided_slice %351 {offsets = [0, 0, 0], sizes = [4, 2, 128], strides = [1, 1, 1]} : vector<6x2x128xf32> to vector<4x2x128xf32>
    %353 = vector.shape_cast %352 : vector<4x2x128xf32> to vector<8x128xf32>
    %c0_292 = arith.constant 0 : index
    %c0_293 = arith.constant 0 : index
    %c0_294 = arith.constant 0 : index
    %354 = vector.load %arg13[%c0_292, %c0_293, %c0_294] : memref<3x128x128xf32, #tpu.memory_space<vmem>>, vector<1x128x128xf32>
    %355 = vector.shape_cast %354 : vector<1x128x128xf32> to vector<128x128xf32>
    %cst_295 = arith.constant dense<0.000000e+00> : vector<8x128xf32>
    %356 = tpu.matmul %353, %355, %cst_295 {dimension_numbers = #tpu.dot_dimension_numbers<[1], [0], [0], [1], [0, 0, 1, 1], [], []>} : vector<8x128xf32>, vector<128x128xf32>, vector<8x128xf32> -> vector<8x128xf32>
    %357 = vector.extract_strided_slice %351 {offsets = [1, 0, 0], sizes = [4, 2, 128], strides = [1, 1, 1]} : vector<6x2x128xf32> to vector<4x2x128xf32>
    %358 = vector.shape_cast %357 : vector<4x2x128xf32> to vector<8x128xf32>
    %c1_296 = arith.constant 1 : index
    %c0_297 = arith.constant 0 : index
    %c0_298 = arith.constant 0 : index
    %359 = vector.load %arg13[%c1_296, %c0_297, %c0_298] : memref<3x128x128xf32, #tpu.memory_space<vmem>>, vector<1x128x128xf32>
    %360 = vector.shape_cast %359 : vector<1x128x128xf32> to vector<128x128xf32>
    %cst_299 = arith.constant dense<0.000000e+00> : vector<8x128xf32>
    %361 = tpu.matmul %358, %360, %cst_299 {dimension_numbers = #tpu.dot_dimension_numbers<[1], [0], [0], [1], [0, 0, 1, 1], [], []>} : vector<8x128xf32>, vector<128x128xf32>, vector<8x128xf32> -> vector<8x128xf32>
    %362 = arith.addf %356, %361 : vector<8x128xf32>
    %363 = vector.extract_strided_slice %351 {offsets = [2, 0, 0], sizes = [4, 2, 128], strides = [1, 1, 1]} : vector<6x2x128xf32> to vector<4x2x128xf32>
    %364 = vector.shape_cast %363 : vector<4x2x128xf32> to vector<8x128xf32>
    %c2_300 = arith.constant 2 : index
    %c0_301 = arith.constant 0 : index
    %c0_302 = arith.constant 0 : index
    %365 = vector.load %arg13[%c2_300, %c0_301, %c0_302] : memref<3x128x128xf32, #tpu.memory_space<vmem>>, vector<1x128x128xf32>
    %366 = vector.shape_cast %365 : vector<1x128x128xf32> to vector<128x128xf32>
    %cst_303 = arith.constant dense<0.000000e+00> : vector<8x128xf32>
    %367 = tpu.matmul %364, %366, %cst_303 {dimension_numbers = #tpu.dot_dimension_numbers<[1], [0], [0], [1], [0, 0, 1, 1], [], []>} : vector<8x128xf32>, vector<128x128xf32>, vector<8x128xf32> -> vector<8x128xf32>
    %368 = arith.addf %362, %367 : vector<8x128xf32>
    %369 = vector.broadcast %349 : vector<1x128xf32> to vector<8x128xf32>
    %370 = arith.addf %368, %369 : vector<8x128xf32>
    %371 = vector.shape_cast %370 : vector<8x128xf32> to vector<4x2x128xf32>
    %372 = vector.shape_cast %371 : vector<4x2x128xf32> to vector<8x128xf32>
    %c0_304 = arith.constant 0 : index
    %c0_305 = arith.constant 0 : index
    %c0_306 = arith.constant 0 : index
    %373 = vector.load %arg15[%c0_304, %c0_305, %c0_306] : memref<3x128x64xf32, #tpu.memory_space<vmem>>, vector<1x128x64xf32>
    %374 = vector.shape_cast %373 : vector<1x128x64xf32> to vector<128x64xf32>
    %cst_307 = arith.constant dense<0.000000e+00> : vector<8x64xf32>
    %375 = tpu.matmul %372, %374, %cst_307 {dimension_numbers = #tpu.dot_dimension_numbers<[1], [0], [0], [1], [0, 0, 1, 1], [], []>} : vector<8x128xf32>, vector<128x64xf32>, vector<8x64xf32> -> vector<8x64xf32>
    %c0_308 = arith.constant 0 : index
    %c0_309 = arith.constant 0 : index
    %c0_310 = arith.constant 0 : index
    %376 = vector.load %arg16[%c0_308, %c0_309, %c0_310] : memref<3x1x64xf32, #tpu.memory_space<vmem>>, vector<1x1x64xf32>
    %377 = vector.shape_cast %376 : vector<1x1x64xf32> to vector<1x64xf32>
    %378 = vector.broadcast %377 : vector<1x64xf32> to vector<8x64xf32>
    %379 = arith.addf %375, %378 : vector<8x64xf32>
    %c1_311 = arith.constant 1 : index
    %c0_312 = arith.constant 0 : index
    %c0_313 = arith.constant 0 : index
    %380 = vector.load %arg15[%c1_311, %c0_312, %c0_313] : memref<3x128x64xf32, #tpu.memory_space<vmem>>, vector<1x128x64xf32>
    %381 = vector.shape_cast %380 : vector<1x128x64xf32> to vector<128x64xf32>
    %cst_314 = arith.constant dense<0.000000e+00> : vector<8x64xf32>
    %382 = tpu.matmul %372, %381, %cst_314 {dimension_numbers = #tpu.dot_dimension_numbers<[1], [0], [0], [1], [0, 0, 1, 1], [], []>} : vector<8x128xf32>, vector<128x64xf32>, vector<8x64xf32> -> vector<8x64xf32>
    %c1_315 = arith.constant 1 : index
    %c0_316 = arith.constant 0 : index
    %c0_317 = arith.constant 0 : index
    %383 = vector.load %arg16[%c1_315, %c0_316, %c0_317] : memref<3x1x64xf32, #tpu.memory_space<vmem>>, vector<1x1x64xf32>
    %384 = vector.shape_cast %383 : vector<1x1x64xf32> to vector<1x64xf32>
    %385 = vector.broadcast %384 : vector<1x64xf32> to vector<8x64xf32>
    %386 = arith.addf %382, %385 : vector<8x64xf32>
    %387 = arith.maximumf %379, %386 : vector<8x64xf32>
    %c2_318 = arith.constant 2 : index
    %c0_319 = arith.constant 0 : index
    %c0_320 = arith.constant 0 : index
    %388 = vector.load %arg15[%c2_318, %c0_319, %c0_320] : memref<3x128x64xf32, #tpu.memory_space<vmem>>, vector<1x128x64xf32>
    %389 = vector.shape_cast %388 : vector<1x128x64xf32> to vector<128x64xf32>
    %cst_321 = arith.constant dense<0.000000e+00> : vector<8x64xf32>
    %390 = tpu.matmul %372, %389, %cst_321 {dimension_numbers = #tpu.dot_dimension_numbers<[1], [0], [0], [1], [0, 0, 1, 1], [], []>} : vector<8x128xf32>, vector<128x64xf32>, vector<8x64xf32> -> vector<8x64xf32>
    %c2_322 = arith.constant 2 : index
    %c0_323 = arith.constant 0 : index
    %c0_324 = arith.constant 0 : index
    %391 = vector.load %arg16[%c2_322, %c0_323, %c0_324] : memref<3x1x64xf32, #tpu.memory_space<vmem>>, vector<1x1x64xf32>
    %392 = vector.shape_cast %391 : vector<1x1x64xf32> to vector<1x64xf32>
    %393 = vector.broadcast %392 : vector<1x64xf32> to vector<8x64xf32>
    %394 = arith.addf %390, %393 : vector<8x64xf32>
    %395 = arith.maximumf %387, %394 : vector<8x64xf32>
    %cst_325 = arith.constant -1.000000e+30 : f32
    %396 = vector.broadcast %cst_325 : f32 to vector<6x2x64xf32>
    %c0_326 = arith.constant 0 : index
    %c0_327 = arith.constant 0 : index
    %c0_328 = arith.constant 0 : index
    %397 = vector.load %arg28[%c0_326, %c0_327, %c0_328] : memref<6x2x64xf32, #tpu.memory_space<vmem>>, vector<6x2x64xf32>
    tpu.vector_store %arg28[%c0_326, %c0_327, %c0_328], %396 {strides = array<i32>} : memref<6x2x64xf32, #tpu.memory_space<vmem>>, vector<6x2x64xf32>,
    %398 = vector.shape_cast %395 : vector<8x64xf32> to vector<4x2x64xf32>
    %c1_329 = arith.constant 1 : index
    %c0_330 = arith.constant 0 : index
    %c0_331 = arith.constant 0 : index
    %399 = vector.load %arg28[%c1_329, %c0_330, %c0_331] : memref<6x2x64xf32, #tpu.memory_space<vmem>>, vector<4x2x64xf32>
    tpu.vector_store %arg28[%c1_329, %c0_330, %c0_331], %398 {strides = array<i32>} : memref<6x2x64xf32, #tpu.memory_space<vmem>>, vector<4x2x64xf32>,
    %c0_332 = arith.constant 0 : index
    %c0_333 = arith.constant 0 : index
    %c0_334 = arith.constant 0 : index
    %400 = vector.load %arg28[%c0_332, %c0_333, %c0_334] : memref<6x2x64xf32, #tpu.memory_space<vmem>>, vector<6x2x64xf32>
    %401 = vector.extract_strided_slice %400 {offsets = [0, 0, 0], sizes = [4, 2, 64], strides = [1, 1, 1]} : vector<6x2x64xf32> to vector<4x2x64xf32>
    %402 = vector.shape_cast %401 : vector<4x2x64xf32> to vector<2x2x2x64xf32>
    %403 = vector.extract_strided_slice %400 {offsets = [2, 0, 0], sizes = [4, 2, 64], strides = [1, 1, 1]} : vector<6x2x64xf32> to vector<4x2x64xf32>
    %404 = vector.shape_cast %403 : vector<4x2x64xf32> to vector<2x2x2x64xf32>
    %405 = vector.extract_strided_slice %402 {offsets = [0, 0, 0, 0], sizes = [2, 1, 2, 64], strides = [1, 1, 1, 1]} : vector<2x2x2x64xf32> to vector<2x1x2x64xf32>
    %406 = vector.shape_cast %405 : vector<2x1x2x64xf32> to vector<2x2x64xf32>
    %407 = vector.extract_strided_slice %402 {offsets = [0, 1, 0, 0], sizes = [2, 1, 2, 64], strides = [1, 1, 1, 1]} : vector<2x2x2x64xf32> to vector<2x1x2x64xf32>
    %408 = vector.shape_cast %407 : vector<2x1x2x64xf32> to vector<2x2x64xf32>
    %409 = arith.maximumf %406, %408 : vector<2x2x64xf32>
    %410 = vector.extract_strided_slice %404 {offsets = [0, 0, 0, 0], sizes = [2, 1, 2, 64], strides = [1, 1, 1, 1]} : vector<2x2x2x64xf32> to vector<2x1x2x64xf32>
    %411 = vector.shape_cast %410 : vector<2x1x2x64xf32> to vector<2x2x64xf32>
    %412 = arith.maximumf %409, %411 : vector<2x2x64xf32>
    %cst_335 = arith.constant 0.000000e+00 : f32
    %413 = vector.broadcast %cst_335 : f32 to vector<2x2x64xf32>
    %414 = arith.maximumf %412, %413 : vector<2x2x64xf32>
    %c0_336 = arith.constant 0 : index
    %c0_337 = arith.constant 0 : index
    %c0_338 = arith.constant 0 : index
    %415 = vector.load %arg18[%c0_336, %c0_337, %c0_338] : memref<4x1x64xf32, #tpu.memory_space<vmem>>, vector<1x1x64xf32>
    %416 = vector.shape_cast %415 : vector<1x1x64xf32> to vector<1x64xf32>
    %c1_339 = arith.constant 1 : index
    %c0_340 = arith.constant 0 : index
    %c0_341 = arith.constant 0 : index
    %417 = vector.load %arg25[%c1_339, %c0_340, %c0_341] : memref<4x2x64xf32, #tpu.memory_space<vmem>>, vector<2x2x64xf32>
    tpu.vector_store %arg25[%c1_339, %c0_340, %c0_341], %414 {strides = array<i32>} : memref<4x2x64xf32, #tpu.memory_space<vmem>>, vector<2x2x64xf32>,
    %c0_342 = arith.constant 0 : index
    %c0_343 = arith.constant 0 : index
    %c0_344 = arith.constant 0 : index
    %418 = vector.load %arg25[%c0_342, %c0_343, %c0_344] : memref<4x2x64xf32, #tpu.memory_space<vmem>>, vector<4x2x64xf32>
    %419 = vector.extract_strided_slice %418 {offsets = [0, 0, 0], sizes = [2, 2, 64], strides = [1, 1, 1]} : vector<4x2x64xf32> to vector<2x2x64xf32>
    %420 = vector.shape_cast %419 : vector<2x2x64xf32> to vector<4x64xf32>
    %c0_345 = arith.constant 0 : index
    %c0_346 = arith.constant 0 : index
    %c0_347 = arith.constant 0 : index
    %421 = vector.load %arg17[%c0_345, %c0_346, %c0_347] : memref<12x64x64xf32, #tpu.memory_space<vmem>>, vector<1x64x64xf32>
    %422 = vector.shape_cast %421 : vector<1x64x64xf32> to vector<64x64xf32>
    %cst_348 = arith.constant dense<0.000000e+00> : vector<4x64xf32>
    %423 = tpu.matmul %420, %422, %cst_348 {dimension_numbers = #tpu.dot_dimension_numbers<[1], [0], [0], [1], [0, 0, 1, 1], [], []>} : vector<4x64xf32>, vector<64x64xf32>, vector<4x64xf32> -> vector<4x64xf32>
    %424 = vector.extract_strided_slice %418 {offsets = [1, 0, 0], sizes = [2, 2, 64], strides = [1, 1, 1]} : vector<4x2x64xf32> to vector<2x2x64xf32>
    %425 = vector.shape_cast %424 : vector<2x2x64xf32> to vector<4x64xf32>
    %c1_349 = arith.constant 1 : index
    %c0_350 = arith.constant 0 : index
    %c0_351 = arith.constant 0 : index
    %426 = vector.load %arg17[%c1_349, %c0_350, %c0_351] : memref<12x64x64xf32, #tpu.memory_space<vmem>>, vector<1x64x64xf32>
    %427 = vector.shape_cast %426 : vector<1x64x64xf32> to vector<64x64xf32>
    %cst_352 = arith.constant dense<0.000000e+00> : vector<4x64xf32>
    %428 = tpu.matmul %425, %427, %cst_352 {dimension_numbers = #tpu.dot_dimension_numbers<[1], [0], [0], [1], [0, 0, 1, 1], [], []>} : vector<4x64xf32>, vector<64x64xf32>, vector<4x64xf32> -> vector<4x64xf32>
    %429 = arith.addf %423, %428 : vector<4x64xf32>
    %430 = vector.extract_strided_slice %418 {offsets = [2, 0, 0], sizes = [2, 2, 64], strides = [1, 1, 1]} : vector<4x2x64xf32> to vector<2x2x64xf32>
    %431 = vector.shape_cast %430 : vector<2x2x64xf32> to vector<4x64xf32>
    %c2_353 = arith.constant 2 : index
    %c0_354 = arith.constant 0 : index
    %c0_355 = arith.constant 0 : index
    %432 = vector.load %arg17[%c2_353, %c0_354, %c0_355] : memref<12x64x64xf32, #tpu.memory_space<vmem>>, vector<1x64x64xf32>
    %433 = vector.shape_cast %432 : vector<1x64x64xf32> to vector<64x64xf32>
    %cst_356 = arith.constant dense<0.000000e+00> : vector<4x64xf32>
    %434 = tpu.matmul %431, %433, %cst_356 {dimension_numbers = #tpu.dot_dimension_numbers<[1], [0], [0], [1], [0, 0, 1, 1], [], []>} : vector<4x64xf32>, vector<64x64xf32>, vector<4x64xf32> -> vector<4x64xf32>
    %435 = arith.addf %429, %434 : vector<4x64xf32>
    %436 = vector.broadcast %416 : vector<1x64xf32> to vector<4x64xf32>
    %437 = arith.addf %435, %436 : vector<4x64xf32>
    %438 = vector.shape_cast %437 : vector<4x64xf32> to vector<2x2x64xf32>
    %cst_357 = arith.constant 0.000000e+00 : f32
    %439 = vector.broadcast %cst_357 : f32 to vector<2x2x64xf32>
    %440 = arith.maximumf %438, %439 : vector<2x2x64xf32>
    %c1_358 = arith.constant 1 : index
    %c0_359 = arith.constant 0 : index
    %c0_360 = arith.constant 0 : index
    %441 = vector.load %arg18[%c1_358, %c0_359, %c0_360] : memref<4x1x64xf32, #tpu.memory_space<vmem>>, vector<1x1x64xf32>
    %442 = vector.shape_cast %441 : vector<1x1x64xf32> to vector<1x64xf32>
    %c1_361 = arith.constant 1 : index
    %c0_362 = arith.constant 0 : index
    %c0_363 = arith.constant 0 : index
    %443 = vector.load %arg25[%c1_361, %c0_362, %c0_363] : memref<4x2x64xf32, #tpu.memory_space<vmem>>, vector<2x2x64xf32>
    tpu.vector_store %arg25[%c1_361, %c0_362, %c0_363], %440 {strides = array<i32>} : memref<4x2x64xf32, #tpu.memory_space<vmem>>, vector<2x2x64xf32>,
    %c0_364 = arith.constant 0 : index
    %c0_365 = arith.constant 0 : index
    %c0_366 = arith.constant 0 : index
    %444 = vector.load %arg25[%c0_364, %c0_365, %c0_366] : memref<4x2x64xf32, #tpu.memory_space<vmem>>, vector<4x2x64xf32>
    %445 = vector.extract_strided_slice %444 {offsets = [0, 0, 0], sizes = [2, 2, 64], strides = [1, 1, 1]} : vector<4x2x64xf32> to vector<2x2x64xf32>
    %446 = vector.shape_cast %445 : vector<2x2x64xf32> to vector<4x64xf32>
    %c3_367 = arith.constant 3 : index
    %c0_368 = arith.constant 0 : index
    %c0_369 = arith.constant 0 : index
    %447 = vector.load %arg17[%c3_367, %c0_368, %c0_369] : memref<12x64x64xf32, #tpu.memory_space<vmem>>, vector<1x64x64xf32>
    %448 = vector.shape_cast %447 : vector<1x64x64xf32> to vector<64x64xf32>
    %cst_370 = arith.constant dense<0.000000e+00> : vector<4x64xf32>
    %449 = tpu.matmul %446, %448, %cst_370 {dimension_numbers = #tpu.dot_dimension_numbers<[1], [0], [0], [1], [0, 0, 1, 1], [], []>} : vector<4x64xf32>, vector<64x64xf32>, vector<4x64xf32> -> vector<4x64xf32>
    %450 = vector.extract_strided_slice %444 {offsets = [1, 0, 0], sizes = [2, 2, 64], strides = [1, 1, 1]} : vector<4x2x64xf32> to vector<2x2x64xf32>
    %451 = vector.shape_cast %450 : vector<2x2x64xf32> to vector<4x64xf32>
    %c4_371 = arith.constant 4 : index
    %c0_372 = arith.constant 0 : index
    %c0_373 = arith.constant 0 : index
    %452 = vector.load %arg17[%c4_371, %c0_372, %c0_373] : memref<12x64x64xf32, #tpu.memory_space<vmem>>, vector<1x64x64xf32>
    %453 = vector.shape_cast %452 : vector<1x64x64xf32> to vector<64x64xf32>
    %cst_374 = arith.constant dense<0.000000e+00> : vector<4x64xf32>
    %454 = tpu.matmul %451, %453, %cst_374 {dimension_numbers = #tpu.dot_dimension_numbers<[1], [0], [0], [1], [0, 0, 1, 1], [], []>} : vector<4x64xf32>, vector<64x64xf32>, vector<4x64xf32> -> vector<4x64xf32>
    %455 = arith.addf %449, %454 : vector<4x64xf32>
    %456 = vector.extract_strided_slice %444 {offsets = [2, 0, 0], sizes = [2, 2, 64], strides = [1, 1, 1]} : vector<4x2x64xf32> to vector<2x2x64xf32>
    %457 = vector.shape_cast %456 : vector<2x2x64xf32> to vector<4x64xf32>
    %c5_375 = arith.constant 5 : index
    %c0_376 = arith.constant 0 : index
    %c0_377 = arith.constant 0 : index
    %458 = vector.load %arg17[%c5_375, %c0_376, %c0_377] : memref<12x64x64xf32, #tpu.memory_space<vmem>>, vector<1x64x64xf32>
    %459 = vector.shape_cast %458 : vector<1x64x64xf32> to vector<64x64xf32>
    %cst_378 = arith.constant dense<0.000000e+00> : vector<4x64xf32>
    %460 = tpu.matmul %457, %459, %cst_378 {dimension_numbers = #tpu.dot_dimension_numbers<[1], [0], [0], [1], [0, 0, 1, 1], [], []>} : vector<4x64xf32>, vector<64x64xf32>, vector<4x64xf32> -> vector<4x64xf32>
    %461 = arith.addf %455, %460 : vector<4x64xf32>
    %462 = vector.broadcast %442 : vector<1x64xf32> to vector<4x64xf32>
    %463 = arith.addf %461, %462 : vector<4x64xf32>
    %464 = vector.shape_cast %463 : vector<4x64xf32> to vector<2x2x64xf32>
    %465 = arith.addf %464, %412 : vector<2x2x64xf32>
    %cst_379 = arith.constant 0.000000e+00 : f32
    %466 = vector.broadcast %cst_379 : f32 to vector<2x2x64xf32>
    %467 = arith.maximumf %465, %466 : vector<2x2x64xf32>
    %c2_380 = arith.constant 2 : index
    %c0_381 = arith.constant 0 : index
    %c0_382 = arith.constant 0 : index
    %468 = vector.load %arg18[%c2_380, %c0_381, %c0_382] : memref<4x1x64xf32, #tpu.memory_space<vmem>>, vector<1x1x64xf32>
    %469 = vector.shape_cast %468 : vector<1x1x64xf32> to vector<1x64xf32>
    %c1_383 = arith.constant 1 : index
    %c0_384 = arith.constant 0 : index
    %c0_385 = arith.constant 0 : index
    %470 = vector.load %arg25[%c1_383, %c0_384, %c0_385] : memref<4x2x64xf32, #tpu.memory_space<vmem>>, vector<2x2x64xf32>
    tpu.vector_store %arg25[%c1_383, %c0_384, %c0_385], %467 {strides = array<i32>} : memref<4x2x64xf32, #tpu.memory_space<vmem>>, vector<2x2x64xf32>,
    %c0_386 = arith.constant 0 : index
    %c0_387 = arith.constant 0 : index
    %c0_388 = arith.constant 0 : index
    %471 = vector.load %arg25[%c0_386, %c0_387, %c0_388] : memref<4x2x64xf32, #tpu.memory_space<vmem>>, vector<4x2x64xf32>
    %472 = vector.extract_strided_slice %471 {offsets = [0, 0, 0], sizes = [2, 2, 64], strides = [1, 1, 1]} : vector<4x2x64xf32> to vector<2x2x64xf32>
    %473 = vector.shape_cast %472 : vector<2x2x64xf32> to vector<4x64xf32>
    %c6_389 = arith.constant 6 : index
    %c0_390 = arith.constant 0 : index
    %c0_391 = arith.constant 0 : index
    %474 = vector.load %arg17[%c6_389, %c0_390, %c0_391] : memref<12x64x64xf32, #tpu.memory_space<vmem>>, vector<1x64x64xf32>
    %475 = vector.shape_cast %474 : vector<1x64x64xf32> to vector<64x64xf32>
    %cst_392 = arith.constant dense<0.000000e+00> : vector<4x64xf32>
    %476 = tpu.matmul %473, %475, %cst_392 {dimension_numbers = #tpu.dot_dimension_numbers<[1], [0], [0], [1], [0, 0, 1, 1], [], []>} : vector<4x64xf32>, vector<64x64xf32>, vector<4x64xf32> -> vector<4x64xf32>
    %477 = vector.extract_strided_slice %471 {offsets = [1, 0, 0], sizes = [2, 2, 64], strides = [1, 1, 1]} : vector<4x2x64xf32> to vector<2x2x64xf32>
    %478 = vector.shape_cast %477 : vector<2x2x64xf32> to vector<4x64xf32>
    %c7_393 = arith.constant 7 : index
    %c0_394 = arith.constant 0 : index
    %c0_395 = arith.constant 0 : index
    %479 = vector.load %arg17[%c7_393, %c0_394, %c0_395] : memref<12x64x64xf32, #tpu.memory_space<vmem>>, vector<1x64x64xf32>
    %480 = vector.shape_cast %479 : vector<1x64x64xf32> to vector<64x64xf32>
    %cst_396 = arith.constant dense<0.000000e+00> : vector<4x64xf32>
    %481 = tpu.matmul %478, %480, %cst_396 {dimension_numbers = #tpu.dot_dimension_numbers<[1], [0], [0], [1], [0, 0, 1, 1], [], []>} : vector<4x64xf32>, vector<64x64xf32>, vector<4x64xf32> -> vector<4x64xf32>
    %482 = arith.addf %476, %481 : vector<4x64xf32>
    %483 = vector.extract_strided_slice %471 {offsets = [2, 0, 0], sizes = [2, 2, 64], strides = [1, 1, 1]} : vector<4x2x64xf32> to vector<2x2x64xf32>
    %484 = vector.shape_cast %483 : vector<2x2x64xf32> to vector<4x64xf32>
    %c8_397 = arith.constant 8 : index
    %c0_398 = arith.constant 0 : index
    %c0_399 = arith.constant 0 : index
    %485 = vector.load %arg17[%c8_397, %c0_398, %c0_399] : memref<12x64x64xf32, #tpu.memory_space<vmem>>, vector<1x64x64xf32>
    %486 = vector.shape_cast %485 : vector<1x64x64xf32> to vector<64x64xf32>
    %cst_400 = arith.constant dense<0.000000e+00> : vector<4x64xf32>
    %487 = tpu.matmul %484, %486, %cst_400 {dimension_numbers = #tpu.dot_dimension_numbers<[1], [0], [0], [1], [0, 0, 1, 1], [], []>} : vector<4x64xf32>, vector<64x64xf32>, vector<4x64xf32> -> vector<4x64xf32>
    %488 = arith.addf %482, %487 : vector<4x64xf32>
    %489 = vector.broadcast %469 : vector<1x64xf32> to vector<4x64xf32>
    %490 = arith.addf %488, %489 : vector<4x64xf32>
    %491 = vector.shape_cast %490 : vector<4x64xf32> to vector<2x2x64xf32>
    %cst_401 = arith.constant 0.000000e+00 : f32
    %492 = vector.broadcast %cst_401 : f32 to vector<2x2x64xf32>
    %493 = arith.maximumf %491, %492 : vector<2x2x64xf32>
    %c3_402 = arith.constant 3 : index
    %c0_403 = arith.constant 0 : index
    %c0_404 = arith.constant 0 : index
    %494 = vector.load %arg18[%c3_402, %c0_403, %c0_404] : memref<4x1x64xf32, #tpu.memory_space<vmem>>, vector<1x1x64xf32>
    %495 = vector.shape_cast %494 : vector<1x1x64xf32> to vector<1x64xf32>
    %c1_405 = arith.constant 1 : index
    %c0_406 = arith.constant 0 : index
    %c0_407 = arith.constant 0 : index
    %496 = vector.load %arg25[%c1_405, %c0_406, %c0_407] : memref<4x2x64xf32, #tpu.memory_space<vmem>>, vector<2x2x64xf32>
    tpu.vector_store %arg25[%c1_405, %c0_406, %c0_407], %493 {strides = array<i32>} : memref<4x2x64xf32, #tpu.memory_space<vmem>>, vector<2x2x64xf32>,
    %c0_408 = arith.constant 0 : index
    %c0_409 = arith.constant 0 : index
    %c0_410 = arith.constant 0 : index
    %497 = vector.load %arg25[%c0_408, %c0_409, %c0_410] : memref<4x2x64xf32, #tpu.memory_space<vmem>>, vector<4x2x64xf32>
    %498 = vector.extract_strided_slice %497 {offsets = [0, 0, 0], sizes = [2, 2, 64], strides = [1, 1, 1]} : vector<4x2x64xf32> to vector<2x2x64xf32>
    %499 = vector.shape_cast %498 : vector<2x2x64xf32> to vector<4x64xf32>
    %c9_411 = arith.constant 9 : index
    %c0_412 = arith.constant 0 : index
    %c0_413 = arith.constant 0 : index
    %500 = vector.load %arg17[%c9_411, %c0_412, %c0_413] : memref<12x64x64xf32, #tpu.memory_space<vmem>>, vector<1x64x64xf32>
    %501 = vector.shape_cast %500 : vector<1x64x64xf32> to vector<64x64xf32>
    %cst_414 = arith.constant dense<0.000000e+00> : vector<4x64xf32>
    %502 = tpu.matmul %499, %501, %cst_414 {dimension_numbers = #tpu.dot_dimension_numbers<[1], [0], [0], [1], [0, 0, 1, 1], [], []>} : vector<4x64xf32>, vector<64x64xf32>, vector<4x64xf32> -> vector<4x64xf32>
    %503 = vector.extract_strided_slice %497 {offsets = [1, 0, 0], sizes = [2, 2, 64], strides = [1, 1, 1]} : vector<4x2x64xf32> to vector<2x2x64xf32>
    %504 = vector.shape_cast %503 : vector<2x2x64xf32> to vector<4x64xf32>
    %c10_415 = arith.constant 10 : index
    %c0_416 = arith.constant 0 : index
    %c0_417 = arith.constant 0 : index
    %505 = vector.load %arg17[%c10_415, %c0_416, %c0_417] : memref<12x64x64xf32, #tpu.memory_space<vmem>>, vector<1x64x64xf32>
    %506 = vector.shape_cast %505 : vector<1x64x64xf32> to vector<64x64xf32>
    %cst_418 = arith.constant dense<0.000000e+00> : vector<4x64xf32>
    %507 = tpu.matmul %504, %506, %cst_418 {dimension_numbers = #tpu.dot_dimension_numbers<[1], [0], [0], [1], [0, 0, 1, 1], [], []>} : vector<4x64xf32>, vector<64x64xf32>, vector<4x64xf32> -> vector<4x64xf32>
    %508 = arith.addf %502, %507 : vector<4x64xf32>
    %509 = vector.extract_strided_slice %497 {offsets = [2, 0, 0], sizes = [2, 2, 64], strides = [1, 1, 1]} : vector<4x2x64xf32> to vector<2x2x64xf32>
    %510 = vector.shape_cast %509 : vector<2x2x64xf32> to vector<4x64xf32>
    %c11_419 = arith.constant 11 : index
    %c0_420 = arith.constant 0 : index
    %c0_421 = arith.constant 0 : index
    %511 = vector.load %arg17[%c11_419, %c0_420, %c0_421] : memref<12x64x64xf32, #tpu.memory_space<vmem>>, vector<1x64x64xf32>
    %512 = vector.shape_cast %511 : vector<1x64x64xf32> to vector<64x64xf32>
    %cst_422 = arith.constant dense<0.000000e+00> : vector<4x64xf32>
    %513 = tpu.matmul %510, %512, %cst_422 {dimension_numbers = #tpu.dot_dimension_numbers<[1], [0], [0], [1], [0, 0, 1, 1], [], []>} : vector<4x64xf32>, vector<64x64xf32>, vector<4x64xf32> -> vector<4x64xf32>
    %514 = arith.addf %508, %513 : vector<4x64xf32>
    %515 = vector.broadcast %495 : vector<1x64xf32> to vector<4x64xf32>
    %516 = arith.addf %514, %515 : vector<4x64xf32>
    %517 = vector.shape_cast %516 : vector<4x64xf32> to vector<2x2x64xf32>
    %518 = arith.addf %517, %465 : vector<2x2x64xf32>
    %cst_423 = arith.constant 0.000000e+00 : f32
    %519 = vector.broadcast %cst_423 : f32 to vector<2x2x64xf32>
    %520 = arith.maximumf %518, %519 : vector<2x2x64xf32>
    %521 = vector.extract_strided_slice %520 {offsets = [0, 0, 0], sizes = [1, 2, 64], strides = [1, 1, 1]} : vector<2x2x64xf32> to vector<1x2x64xf32>
    %522 = vector.shape_cast %521 : vector<1x2x64xf32> to vector<2x64xf32>
    %c0_424 = arith.constant 0 : index
    %c0_425 = arith.constant 0 : index
    %c0_426 = arith.constant 0 : index
    %523 = vector.load %arg19[%c0_424, %c0_425, %c0_426] : memref<2x64x256xf32, #tpu.memory_space<vmem>>, vector<1x64x256xf32>
    %524 = vector.shape_cast %523 : vector<1x64x256xf32> to vector<64x256xf32>
    %cst_427 = arith.constant dense<0.000000e+00> : vector<2x256xf32>
    %525 = tpu.matmul %522, %524, %cst_427 {dimension_numbers = #tpu.dot_dimension_numbers<[1], [0], [0], [1], [0, 0, 1, 1], [], []>} : vector<2x64xf32>, vector<64x256xf32>, vector<2x256xf32> -> vector<2x256xf32>
    %526 = vector.extract_strided_slice %520 {offsets = [1, 0, 0], sizes = [1, 2, 64], strides = [1, 1, 1]} : vector<2x2x64xf32> to vector<1x2x64xf32>
    %527 = vector.shape_cast %526 : vector<1x2x64xf32> to vector<2x64xf32>
    %c1_428 = arith.constant 1 : index
    %c0_429 = arith.constant 0 : index
    %c0_430 = arith.constant 0 : index
    %528 = vector.load %arg19[%c1_428, %c0_429, %c0_430] : memref<2x64x256xf32, #tpu.memory_space<vmem>>, vector<1x64x256xf32>
    %529 = vector.shape_cast %528 : vector<1x64x256xf32> to vector<64x256xf32>
    %cst_431 = arith.constant dense<0.000000e+00> : vector<2x256xf32>
    %530 = tpu.matmul %527, %529, %cst_431 {dimension_numbers = #tpu.dot_dimension_numbers<[1], [0], [0], [1], [0, 0, 1, 1], [], []>} : vector<2x64xf32>, vector<64x256xf32>, vector<2x256xf32> -> vector<2x256xf32>
    %531 = arith.addf %525, %530 : vector<2x256xf32>
    %c0_432 = arith.constant 0 : index
    %c0_433 = arith.constant 0 : index
    %532 = vector.load %arg20[%c0_432, %c0_433] : memref<1x256xf32, #tpu.memory_space<vmem>>, vector<1x256xf32>
    %533 = vector.broadcast %532 : vector<1x256xf32> to vector<2x256xf32>
    %534 = arith.addf %531, %533 : vector<2x256xf32>
    %cst_434 = arith.constant 0.000000e+00 : f32
    %535 = vector.broadcast %cst_434 : f32 to vector<2x256xf32>
    %536 = arith.maximumf %534, %535 : vector<2x256xf32>
    %c0_435 = arith.constant 0 : index
    %c0_436 = arith.constant 0 : index
    %537 = vector.load %arg21[%c0_435, %c0_436] : memref<2x256xf32, #tpu.memory_space<vmem>>, vector<2x256xf32>
    tpu.vector_store %arg21[%c0_435, %c0_436], %536 {strides = array<i32>} : memref<2x256xf32, #tpu.memory_space<vmem>>, vector<2x256xf32>,
    return
  }
}

</mosaic_0001>

<bundles_post_ra>
// kernel: impala_cnn_forward.1
= control target key start
LH: loop header
LB: loop body
LE: loop exit
PB: predicated region body
PF: predicated region fallthrough
CT: control target
= control target key end

     0   :  { %s13214_s0 = inlined_call_operand.vmem [shape: f32[16,2,48], index: 0, kind: input, shape index: {}]   ;;  %s13215_s1 = inlined_call_operand.hbm [shape: f32[3,48,256], index: 1, kind: input, shape index: {}]   ;;  %s13216_s2 = inlined_call_operand.vmem [shape: f32[1,256], index: 2, kind: input, shape index: {}]   ;;  %s13217_s3 = inlined_call_operand.vmem [shape: f32[3,256,128], index: 3, kind: input, shape index: {}]   ;;  %s13218_s4 = inlined_call_operand.vmem [shape: f32[3,1,128], index: 4, kind: input, shape index: {}]   ;;  %s13219_s5 = inlined_call_operand.hbm [shape: f32[12,128,128], index: 5, kind: input, shape index: {}]   ;;  %s13220_s6 = inlined_call_operand.vmem [shape: f32[4,1,128], index: 6, kind: input, shape index: {}]   ;;  %s13221_s7 = inlined_call_operand.hbm [shape: f32[3,128,256], index: 7, kind: input, shape index: {}]   ;;  %s13222_s8 = inlined_call_operand.vmem [shape: f32[1,256], index: 8, kind: input, shape index: {}]   ;;  %s13223_s9 = inlined_call_operand.hbm [shape: f32[3,256,128], index: 9, kind: input, shape index: {}]   ;;  %s13224_s10 = inlined_call_operand.vmem [shape: f32[3,1,128], index: 10, kind: input, shape index: {}]   ;;  %s13225_s11 = inlined_call_operand.hbm [shape: f32[12,128,128], index: 11, kind: input, shape index: {}]   ;;  %s13226_s12 = inlined_call_operand.vmem [shape: f32[4,1,128], index: 12, kind: input, shape index: {}]   ;;  %s13227_s13 = inlined_call_operand.hbm [shape: f32[3,128,128], index: 13, kind: input, shape index: {}]   ;;  %s13228_s14 = inlined_call_operand.vmem [shape: f32[1,128], index: 14, kind: input, shape index: {}]   ;;  %s13229_s15 = inlined_call_operand.vmem [shape: f32[3,128,64], index: 15, kind: input, shape index: {}]   ;;  %s13230_s16 = inlined_call_operand.vmem [shape: f32[3,1,64], index: 16, kind: input, shape index: {}]   ;;  %s13231_s17 = inlined_call_operand.hbm [shape: f32[12,64,64], index: 17, kind: input, shape index: {}]   ;;  %s13232_s18 = inlined_call_operand.vmem [shape: f32[4,1,64], index: 18, kind: input, shape index: {}]   ;;  %s13233_s19 = inlined_call_operand.hbm [shape: f32[2,64,256], index: 19, kind: input, shape index: {}]   ;;  %s13234_s20 = inlined_call_operand.vmem [shape: f32[1,256], index: 20, kind: input, shape index: {}]   ;;  %s13235_s21 = inlined_call_operand.hbm [shape: f32[2,256], index: 21, kind: output, shape index: {}]  }
   0x1   :  { %13242 = sst [smem:[#allocation30_spill]] %s13214_s0 }
   0x2   :  { %13243 = sst [smem:[#allocation31_spill]] %s13215_s1 }
   0x3   :  { %13244 = sst [smem:[#allocation32_spill]] %s13216_s2 }
   0x4   :  { %13245 = sst [smem:[#allocation33_spill]] %s13217_s3 }
   0x5   :  { %13246 = sst [smem:[#allocation34_spill]] %s13218_s4 }
   0x6   :  { %13247 = sst [smem:[#allocation35_spill]] %s13219_s5 }
   0x7   :  { %13248 = sst [smem:[#allocation36_spill]] %s13234_s20 }
   0x8   :  { %13249 = sst [smem:[#allocation37_spill]] %s13235_s21 }
   0x9   :  { %26 = vsyncpa [#allocation10], 0 }
   0xa   :  { %27 = vsyncpa [#allocation13], 0 }
   0xb   :  { %28 = vsyncpa [#allocation16], 0 }
   0xc   :  { %29 = vsyncpa [#allocation19], 0 }
   0xd   :  { %30 = vsyncpa [#allocation22], 0 }
   0xe   :  { %31 = vsyncpa [#allocation11], 0  ;;  %s11494_s2 = smov [#allocation12]   ;;  %s13250_s3 = sld [smem:[#allocation35_spill]] }
   0xf   :  { %s57_s25 = sshll.u32 %s11494_s2, 4  ;;  %s58_s25 = int_to_ptr.vmem [resolvable:$true] %s57_s25 }
  0x14   :  { %s11284_s28 = scalar_lea.hbm %s13250_s3, 24576 }
  0x15   :  { %p11285_p0 = scmp.ne.s32.totalorder %s13250_s3, %s11284_s28  ;;  %p11288_p1 = scmp.lt.u32.totalorder %s11284_s28, %s13250_s3 }
  0x17   :  { %p11290_p2 = pnand %p11288_p1, %p11285_p0 }
  0x19   :  { %11293 = shalt.err (!%p11290_p2)
}
  0x1a   :  { %s11294_s5 = scalar_lea.vmem %s58_s25, 24576  ;;  %p11299_p4 = scmp.lt.s32.totalorder %s58_s25, %s58_s25 }
  0x1b   :  { %p11295_p3 = scmp.ne.s32.totalorder %s58_s25, %s11294_s5  ;;  %p11300_p5 = scmp.lt.s32.totalorder %s11294_s5, %s11294_s5 }
  0x1d   :  { %p11301_p6 = por %p11300_p5, %p11299_p4 }
  0x1f   :  { %p11302_p7 = pnand %p11301_p6, %p11295_p3 }
  0x21   :  { %11305 = shalt.err (!%p11302_p7)
}
  0x22   :  { %s11495_s22 = smov 128   ;;  %s11496_s23 = smov 8  }
  0x23   :  { %63 = dma.hbm_to_vmem [thread:$0]  %s13250_s3, 24576, %s58_s25, [#allocation13], %s11495_s22, %s11495_s22, %s11496_s23  }
  0x24   :  { %s11497_s2 = smov [#allocation15]   ;;  %s11498_s27 = smov [#allocation18]  }
  0x25   :  { %s85_s26 = sshll.u32 %s11497_s2, 4  ;;  %s113_s28 = sshll.u32 %s11498_s27, 4  ;;  %s86_s26 = int_to_ptr.vmem [resolvable:$true] %s85_s26  ;;  %s114_s28 = int_to_ptr.vmem [resolvable:$true] %s113_s28 }
  0x26   :  { %s11306_s4 = scalar_lea.hbm %s13223_s9, 12288 }
  0x27   :  { %p11307_p8 = scmp.ne.s32.totalorder %s13223_s9, %s11306_s4  ;;  %p11310_p9 = scmp.lt.u32.totalorder %s11306_s4, %s13223_s9 }
  0x29   :  { %p11312_p10 = pnand %p11310_p9, %p11307_p8 }
  0x2b   :  { %11315 = shalt.err (!%p11312_p10)
}
  0x2c   :  { %s11316_s25 = scalar_lea.vmem %s86_s26, 12288  ;;  %p11321_p12 = scmp.lt.s32.totalorder %s86_s26, %s86_s26 }
  0x2d   :  { %p11317_p11 = scmp.ne.s32.totalorder %s86_s26, %s11316_s25  ;;  %p11322_p13 = scmp.lt.s32.totalorder %s11316_s25, %s11316_s25 }
  0x2f   :  { %p11323_p0 = por %p11322_p13, %p11321_p12 }
  0x31   :  { %p11324_p1 = pnand %p11323_p0, %p11317_p11 }
  0x33   :  { %11327 = shalt.err (!%p11324_p1)
}
  0x34   :  { %91 = dma.hbm_to_vmem [thread:$0]  %s13223_s9, 12288, %s86_s26, [#allocation16], %s11495_s22, %s11495_s22, %s11496_s23  }
  0x35   :  { %s11328_s21 = scalar_lea.hbm %s13227_s13, 6144 }
  0x36   :  { %p11329_p2 = scmp.ne.s32.totalorder %s13227_s13, %s11328_s21  ;;  %p11332_p3 = scmp.lt.u32.totalorder %s11328_s21, %s13227_s13 }
  0x38   :  { %p11334_p4 = pnand %p11332_p3, %p11329_p2 }
  0x3a   :  { %11337 = shalt.err (!%p11334_p4)
}
  0x3b   :  { %s11338_s4 = scalar_lea.vmem %s114_s28, 6144  ;;  %p11343_p6 = scmp.lt.s32.totalorder %s114_s28, %s114_s28 }
  0x3c   :  { %p11339_p5 = scmp.ne.s32.totalorder %s114_s28, %s11338_s4  ;;  %p11344_p7 = scmp.lt.s32.totalorder %s11338_s4, %s11338_s4 }
  0x3e   :  { %p11345_p8 = por %p11344_p7, %p11343_p6 }
  0x40   :  { %p11346_p9 = pnand %p11345_p8, %p11339_p5 }
  0x42   :  { %11349 = shalt.err (!%p11346_p9)
}
  0x43   :  { %119 = dma.hbm_to_vmem [thread:$0]  %s13227_s13, 6144, %s114_s28, [#allocation19], %s11495_s22, %s11495_s22, %s11496_s23  }
  0x44   :  { %s11499_s30 = smov [#allocation9]   ;;  %s13251_s1 = sld [smem:[#allocation31_spill]] }
  0x45   :  { %s39_s5 = sshll.u32 %s11499_s30, 4  ;;  %s40_s5 = int_to_ptr.vmem [resolvable:$true] %s39_s5 }
  0x4a   :  { %s11350_s24 = scalar_lea.hbm %s13251_s1, 4608 }
  0x4b   :  { %p11351_p10 = scmp.ne.s32.totalorder %s13251_s1, %s11350_s24  ;;  %p11354_p11 = scmp.lt.u32.totalorder %s11350_s24, %s13251_s1 }
  0x4d   :  { %p11356_p12 = pnand %p11354_p11, %p11351_p10 }
  0x4f   :  { %11359 = shalt.err (!%p11356_p12)
}
  0x50   :  { %s11360_s29 = scalar_lea.vmem %s40_s5, 4608  ;;  %p11365_p0 = scmp.lt.s32.totalorder %s40_s5, %s40_s5 }
  0x51   :  { %p11361_p13 = scmp.ne.s32.totalorder %s40_s5, %s11360_s29  ;;  %p11366_p1 = scmp.lt.s32.totalorder %s11360_s29, %s11360_s29 }
  0x53   :  { %p11367_p2 = por %p11366_p1, %p11365_p0 }
  0x55   :  { %p11368_p3 = pnand %p11367_p2, %p11361_p13 }
  0x57   :  { %11371 = shalt.err (!%p11368_p3)
}
  0x58   :  { %s11500_s13 = smov 256   ;;  %s11501_s28 = smov 16  }
  0x59   :  { %45 = dma.hbm_to_vmem [thread:$0]  %s13251_s1, 4608, %s40_s5, [#allocation10], %s11500_s13, %s11500_s13, %s11501_s28  }
  0x5a   :  { %s11502_s9 = smov [#allocation14]   ;;  %s11503_s30 = smov [#allocation17]  }
  0x5b   :  { %s71_s26 = sshll.u32 %s11502_s9, 4  ;;  %s99_s25 = sshll.u32 %s11503_s30, 4  ;;  %s72_s26 = int_to_ptr.vmem [resolvable:$true] %s71_s26  ;;  %s11682_s25 = int_to_ptr.vmem [resolvable:$true] %s99_s25 }
  0x5c   :  { %s11372_s20 = scalar_lea.hbm %s13221_s7, 12288 }
  0x5d   :  { %p11373_p4 = scmp.ne.s32.totalorder %s13221_s7, %s11372_s20  ;;  %p11376_p5 = scmp.lt.u32.totalorder %s11372_s20, %s13221_s7 }
  0x5f   :  { %p11378_p6 = pnand %p11376_p5, %p11373_p4 }
  0x61   :  { %11381 = shalt.err (!%p11378_p6)
}
  0x62   :  { %s11382_s5 = scalar_lea.vmem %s72_s26, 12288  ;;  %p11387_p8 = scmp.lt.s32.totalorder %s72_s26, %s72_s26 }
  0x63   :  { %p11383_p7 = scmp.ne.s32.totalorder %s72_s26, %s11382_s5  ;;  %p11388_p9 = scmp.lt.s32.totalorder %s11382_s5, %s11382_s5 }
  0x65   :  { %p11389_p10 = por %p11388_p9, %p11387_p8 }
  0x67   :  { %p11390_p11 = pnand %p11389_p10, %p11383_p7 }
  0x69   :  { %11393 = shalt.err (!%p11390_p11)
}
  0x6a   :  { %77 = dma.hbm_to_vmem [thread:$0]  %s13221_s7, 12288, %s72_s26, [#allocation13], %s11500_s13, %s11500_s13, %s11501_s28  }
  0x6b   :  { %s11394_s30 = scalar_lea.hbm %s13225_s11, 24576 }
  0x6c   :  { %p11395_p12 = scmp.ne.s32.totalorder %s13225_s11, %s11394_s30  ;;  %p11398_p13 = scmp.lt.u32.totalorder %s11394_s30, %s13225_s11 }
  0x6e   :  { %p11400_p0 = pnand %p11398_p13, %p11395_p12 }
  0x70   :  { %11403 = shalt.err (!%p11400_p0)
}
  0x71   :  { %s11404_s2 = scalar_lea.vmem %s11682_s25, 24576  ;;  %p11409_p2 = scmp.lt.s32.totalorder %s11682_s25, %s11682_s25 }
  0x72   :  { %p11405_p1 = scmp.ne.s32.totalorder %s11682_s25, %s11404_s2  ;;  %p11410_p3 = scmp.lt.s32.totalorder %s11404_s2, %s11404_s2 }
  0x74   :  { %p11411_p4 = por %p11410_p3, %p11409_p2 }
  0x76   :  { %p11412_p5 = pnand %p11411_p4, %p11405_p1 }
  0x78   :  { %11415 = shalt.err (!%p11412_p5)
}
  0x79   :  { %105 = dma.hbm_to_vmem [thread:$0]  %s13225_s11, 24576, %s11682_s25, [#allocation16], %s11495_s22, %s11495_s22, %s11496_s23  }
  0x7a   :  { %s11504_s27 = smov [#allocation20]   ;;  %s11505_s5 = smov [#allocation21]  }
  0x7b   :  { %s131_s29 = sshll.u32 %s11504_s27, 4  ;;  %s145_s1 = sshll.u32 %s11505_s5, 4  ;;  %s132_s29 = int_to_ptr.vmem [resolvable:$true] %s131_s29  ;;  %s11719_s1 = int_to_ptr.vmem [resolvable:$true] %s145_s1 }
  0x7c   :  { %s11416_s9 = scalar_lea.hbm %s13231_s17, 12288 }
  0x7d   :  { %p11417_p6 = scmp.ne.s32.totalorder %s13231_s17, %s11416_s9  ;;  %p11420_p7 = scmp.lt.u32.totalorder %s11416_s9, %s13231_s17 }
  0x7f   :  { %p11422_p8 = pnand %p11420_p7, %p11417_p6 }
  0x81   :  { %11425 = shalt.err (!%p11422_p8)
}
  0x82   :  { %s11426_s11 = scalar_lea.vmem %s132_s29, 12288  ;;  %p11431_p10 = scmp.lt.s32.totalorder %s132_s29, %s132_s29 }
  0x83   :  { %p11427_p9 = scmp.ne.s32.totalorder %s132_s29, %s11426_s11  ;;  %p11432_p11 = scmp.lt.s32.totalorder %s11426_s11, %s11426_s11 }
  0x85   :  { %p11433_p12 = por %p11432_p11, %p11431_p10 }
  0x87   :  { %p11434_p13 = pnand %p11433_p12, %p11427_p9 }
  0x89   :  { %11437 = shalt.err (!%p11434_p13)
}
  0x8a   :  { %137 = dma.hbm_to_vmem [thread:$0]  %s13231_s17, 12288, %s132_s29, [#allocation19], %s11495_s22, %s11495_s22, %s11496_s23  }
  0x8b   :  { %s11438_s26 = scalar_lea.hbm %s13233_s19, 4096 }
  0x8c   :  { %p11439_p0 = scmp.ne.s32.totalorder %s13233_s19, %s11438_s26  ;;  %p11442_p1 = scmp.lt.u32.totalorder %s11438_s26, %s13233_s19 }
  0x8e   :  { %p11444_p2 = pnand %p11442_p1, %p11439_p0 }
  0x90   :  { %11447 = shalt.err (!%p11444_p2)
}
  0x91   :  { %s11448_s9 = scalar_lea.vmem %s11719_s1, 4096  ;;  %p11453_p4 = scmp.lt.s32.totalorder %s11719_s1, %s11719_s1 }
  0x92   :  { %p11449_p3 = scmp.ne.s32.totalorder %s11719_s1, %s11448_s9  ;;  %p11454_p5 = scmp.lt.s32.totalorder %s11448_s9, %s11448_s9 }
  0x94   :  { %p11455_p6 = por %p11454_p5, %p11453_p4 }
  0x96   :  { %p11456_p7 = pnand %p11455_p6, %p11449_p3 }
  0x98   :  { %11459 = shalt.err (!%p11456_p7)
}
  0x99   :  { %151 = dma.hbm_to_vmem [thread:$0]  %s13233_s19, 4096, %s11719_s1, [#allocation22], %s11500_s13, %s11500_s13, %s11501_s28  }
  0x9a   :  { %11482 = dma.done.wait [#allocation10], 4608  }
  0x9b   :  { %11483 = vsyncadd [#allocation10], 4294962688 }
  0x9c   :  { %11484 = dma.done.wait [#allocation13], 36864  }
  0x9d   :  { %11485 = vsyncadd [#allocation13], 4294930432 }
  0x9e   :  { %11486 = dma.done.wait [#allocation16], 36864  }
  0x9f   :  { %11487 = vsyncadd [#allocation16], 4294930432 }
  0xa0   :  { %11488 = dma.done.wait [#allocation19], 18432  }
  0xa1   :  { %11489 = vsyncadd [#allocation19], 4294948864 }
  0xa2   :  { %11490 = dma.done.wait [#allocation22], 4096  }
  0xa3   :  { %11491 = vsyncadd [#allocation22], 4294963200  ;;  %vm213_vm0 = vcmask 517120   ;;  %v11506_v0 = vmov -1e+30   ;;  %v11507_v1 = vmov 0.0   ;;  %v316_v14 = vlaneseq }
  0xa4   :  { %1177 = vst [vmem:[#allocation6] sm:$0x3] %v11506_v0  ;;  %1178 = vst [vmem:[#allocation6 + $0x2] sm:$0x3] %v11506_v0  ;;  %452 = vmatprep.mubr.f32.mxu0 %v11507_v1  ;;  %vm178_vm1 = vcmask 386048   ;;  %v284_v2 = vld [vmem:[#allocation9 + $0x68] sm:$0xff] }
  0xa5   :  { %1179 = vst [vmem:[#allocation6 + $0x4] sm:$0x3] %v11506_v0  ;;  %1180 = vst [vmem:[#allocation6 + $0x6] sm:$0x3] %v11506_v0  ;;  %v286_v3 = vld [vmem:[#allocation9 + $0x78] sm:$0xff]  ;;  %v283_v4 = vld [vmem:[#allocation9 + $0x60] sm:$0xff] }
  0xa6   :  { %1181 = vst [vmem:[#allocation6 + $0x8] sm:$0x3] %v11506_v0  ;;  %1182 = vst [vmem:[#allocation6 + $0xa] sm:$0x3] %v11506_v0  ;;  %v9908_v5 = vpack.c.bf16 %v286_v3, %v284_v2  ;;  %v285_v6 = vld [vmem:[#allocation9 + $0x70] sm:$0xff]  ;;  %v288_v7 = vld [vmem:[#allocation9 + $0x88] sm:$0xff] }
  0xa7   :  { %1183 = vst [vmem:[#allocation6 + $0xc] sm:$0x3] %v11506_v0  ;;  %1184 = vst [vmem:[#allocation6 + $0xe] sm:$0x3] %v11506_v0  ;;  %v290_v8 = vld [vmem:[#allocation9 + $0x98] sm:$0xff]  ;;  %v9910_v9 = vpack.c.bf16 %v285_v6, %v283_v4  ;;  %v287_v11 = vld [vmem:[#allocation9 + $0x80] sm:$0xff] }
  0xa8   :  { %1185 = vst [vmem:[#allocation6 + $0x10] sm:$0x3] %v11506_v0  ;;  %1186 = vst [vmem:[#allocation6 + $0x12] sm:$0x3] %v11506_v0  ;;  %v9912_v10 = vpack.c.bf16 %v290_v8, %v288_v7  ;;  %v289_v12 = vld [vmem:[#allocation9 + $0x90] sm:$0xff]  ;;  %v292_v13 = vld [vmem:[#allocation9 + $0xa8] sm:$0xff]  ;;  %9909 = vmatprep.subr.bf16.mxu0 %v9908_v5 }
  0xa9   :  { %1187 = vst [vmem:[#allocation6 + $0x14] sm:$0x3] %v11506_v0  ;;  %1188 = vst [vmem:[#allocation6 + $0x16] sm:$0x3] %v11506_v0  ;;  %v294_v15 = vld [vmem:[#allocation9 + $0xb8] sm:$0xff]  ;;  %9911 = vmatpush1.bf16.msra.mxu0 %v9910_v9  ;;  %v9914_v18 = vpack.c.bf16 %v289_v12, %v287_v11  ;;  %s13252_s13 = sld [smem:[#allocation30_spill]] }
  0xaa   :  { %1189 = vst [vmem:[#allocation6 + $0x18] sm:$0x3] %v11506_v0  ;;  %1190 = vst [vmem:[#allocation6 + $0x1a] sm:$0x3] %v11506_v0  ;;  %v11508_v16 = vmov 1983009808   ;;  %9913 = vmatprep.subr.bf16.mxu0 %v9912_v10  ;;  %v9916_v22 = vpack.c.bf16 %v294_v15, %v292_v13 }
  0xab   :  { %1191 = vst [vmem:[#allocation6 + $0x1c] sm:$0x3] %v11506_v0  ;;  %1192 = vst [vmem:[#allocation6 + $0x1e] sm:$0x3] %v11506_v0  ;;  %v314_v17 = vunpack.c.l.s4 %v11508_v16  ;;  %v291_v23 = vld [vmem:[#allocation9 + $0xa0] sm:$0xff]  ;;  %v293_v24 = vld [vmem:[#allocation9 + $0xb0] sm:$0xff] }
  0xac   :  { %1193 = vst [vmem:[#allocation6 + $0x20] sm:$0x3] %v11506_v0  ;;  %3967 = vst [vmem:[#allocation7] sm:$0x3] %v11506_v0  ;;  %v11838_v26 = vshrl.u32 %v316_v14, 7  ;;  %v271_v27 = vld [vmem:[#allocation9 + $0x8] sm:$0xff]  ;;  %v9918_v33 = vpack.c.bf16 %v293_v24, %v291_v23 }
  0xad   :  { %3968 = vst [vmem:[#allocation7 + $0x2] sm:$0x3] %v11506_v0  ;;  %3969 = vst [vmem:[#allocation7 + $0x4] sm:$0x3] %v11506_v0  ;;  %v273_v28 = vld [vmem:[#allocation9 + $0x18] sm:$0xff]  ;;  %v315_v29 = vunpack.c.0.s8 %v314_v17  ;;  %9915 = vmatpush1.bf16.msra.mxu0 %v9914_v18  ;;  %v270_v45 = vld [vmem:[#allocation9] sm:$0xff] }
  0xae   :  { %3970 = vst [vmem:[#allocation7 + $0x6] sm:$0x3] %v11506_v0  ;;  %3971 = vst [vmem:[#allocation7 + $0x8] sm:$0x3] %v11506_v0  ;;  %9917 = vmatprep.subr.bf16.mxu0 %v9916_v22  ;;  %v9920_v35 = vpack.c.bf16 %v273_v28, %v271_v27  ;;  %v272_v46 = vld [vmem:[#allocation9 + $0x10] sm:$0xff]  ;;  %v275_v52 = vld [vmem:[#allocation9 + $0x28] sm:$0xff] }
  0xaf   :  { %3972 = vst [vmem:[#allocation7 + $0xa] sm:$0x3] %v11506_v0  ;;  %3973 = vst [vmem:[#allocation7 + $0xc] sm:$0x3] %v11506_v0  ;;  %v218_v19 = vld [vmem:[%s13252_s13] sm:$0x3]  ;;  %v11870_v40 = vsub.s32 %v315_v29, %v11838_v26  ;;  %v9922_v62 = vpack.c.bf16 %v272_v46, %v270_v45 }
  0xb0   :  { %3974 = vst [vmem:[#allocation7 + $0xe] sm:$0x3] %v11506_v0  ;;  %3975 = vst [vmem:[#allocation7 + $0x10] sm:$0x3] %v11506_v0  ;;  %v219_v20 = vld [vmem:[%s13252_s13 + $0x2] sm:$0x3] }
  0xb1   :  { %6106 = vst.msk [vmem:[#allocation8] sm:$0x3] %vm213_vm0, %v11506_v0  ;;  %6107 = vst.msk [vmem:[#allocation8 + $0x2] sm:$0x3] %vm213_vm0, %v11506_v0  ;;  %v220_v21 = vld [vmem:[%s13252_s13 + $0x4] sm:$0x3]  ;;  %9919 = vmatpush1.bf16.msra.mxu0 %v9918_v33 }
  0xb2   :  { %6108 = vst.msk [vmem:[#allocation8 + $0x4] sm:$0x3] %vm213_vm0, %v11506_v0  ;;  %6109 = vst.msk [vmem:[#allocation8 + $0x6] sm:$0x3] %vm213_vm0, %v11506_v0  ;;  %v221_v25 = vld [vmem:[%s13252_s13 + $0x6] sm:$0x3]  ;;  %9921 = vmatprep.subr.bf16.mxu0 %v9920_v35 }
  0xb3   :  { %6110 = vst.msk [vmem:[#allocation8 + $0x8] sm:$0x3] %vm213_vm0, %v11506_v0  ;;  %197 = vst [vmem:[#allocation3] sm:$0x3] %v11507_v1  ;;  %v222_v30 = vld [vmem:[%s13252_s13 + $0x8] sm:$0x3] }
  0xb4   :  { %198 = vst [vmem:[#allocation3 + $0x2] sm:$0x3] %v11507_v1  ;;  %199 = vst [vmem:[#allocation3 + $0x4] sm:$0x3] %v11507_v1  ;;  %v223_v31 = vld [vmem:[%s13252_s13 + $0xa] sm:$0x3] }
  0xb5   :  { %200 = vst [vmem:[#allocation3 + $0x6] sm:$0x3] %v11507_v1  ;;  %201 = vst [vmem:[#allocation3 + $0x8] sm:$0x3] %v11507_v1  ;;  %v224_v32 = vld [vmem:[%s13252_s13 + $0xc] sm:$0x3] }
  0xb6   :  { %202 = vst [vmem:[#allocation3 + $0xa] sm:$0x3] %v11507_v1  ;;  %203 = vst [vmem:[#allocation3 + $0xc] sm:$0x3] %v11507_v1  ;;  %v225_v34 = vld [vmem:[%s13252_s13 + $0xe] sm:$0x3] }
  0xb7   :  { %204 = vst [vmem:[#allocation3 + $0xe] sm:$0x3] %v11507_v1  ;;  %205 = vst [vmem:[#allocation3 + $0x10] sm:$0x3] %v11507_v1  ;;  %v226_v36 = vld [vmem:[%s13252_s13 + $0x10] sm:$0x3] }
  0xb8   :  { %206 = vst [vmem:[#allocation3 + $0x12] sm:$0x3] %v11507_v1  ;;  %207 = vst [vmem:[#allocation4] sm:$0x3] %v11507_v1  ;;  %v227_v37 = vld [vmem:[%s13252_s13 + $0x12] sm:$0x3] }
  0xb9   :  { %208 = vst [vmem:[#allocation4 + $0x2] sm:$0x3] %v11507_v1  ;;  %209 = vst [vmem:[#allocation4 + $0x4] sm:$0x3] %v11507_v1  ;;  %v228_v38 = vld [vmem:[%s13252_s13 + $0x14] sm:$0x3] }
  0xba   :  { %210 = vst [vmem:[#allocation4 + $0x6] sm:$0x3] %v11507_v1  ;;  %211 = vst [vmem:[#allocation4 + $0x8] sm:$0x3] %v11507_v1  ;;  %v229_v39 = vld [vmem:[%s13252_s13 + $0x16] sm:$0x3] }
  0xbb   :  { %212 = vst [vmem:[#allocation4 + $0xa] sm:$0x3] %v11507_v1  ;;  %214 = vst.msk [vmem:[#allocation5] sm:$0x3] %vm213_vm0, %v11507_v1  ;;  %v230_v41 = vld [vmem:[%s13252_s13 + $0x18] sm:$0x3] }
  0xbc   :  { %215 = vst.msk [vmem:[#allocation5 + $0x2] sm:$0x3] %vm213_vm0, %v11507_v1  ;;  %216 = vst.msk [vmem:[#allocation5 + $0x4] sm:$0x3] %vm213_vm0, %v11507_v1  ;;  %v231_v49 = vld [vmem:[%s13252_s13 + $0x1a] sm:$0x3] }
  0xbd   :  { %217 = vst.msk [vmem:[#allocation5 + $0x6] sm:$0x3] %vm213_vm0, %v11507_v1  ;;  %v232_v50 = vld [vmem:[%s13252_s13 + $0x1c] sm:$0x3]  ;;  %v277_v53 = vld [vmem:[#allocation9 + $0x38] sm:$0xff]  ;;  %vm379_vm2 = vcmask 392192  }
  0xbe   :  { %179 = vst.msk [vmem:[#allocation2] sm:$0x3] %vm178_vm1, %v11507_v1  ;;  %180 = vst.msk [vmem:[#allocation2 + $0x2] sm:$0x3] %vm178_vm1, %v11507_v1  ;;  %v233_v54 = vld [vmem:[%s13252_s13 + $0x1e] sm:$0x3]  ;;  %v9924_v6 = vpack.c.bf16 %v277_v53, %v275_v52 }
  0xbf   :  { %181 = vst.msk [vmem:[#allocation2 + $0x4] sm:$0x3] %vm178_vm1, %v11507_v1  ;;  %182 = vst.msk [vmem:[#allocation2 + $0x6] sm:$0x3] %vm178_vm1, %v11507_v1  ;;  %v274_v0 = vld [vmem:[#allocation9 + $0x20] sm:$0xff]  ;;  %v276_v2 = vld [vmem:[#allocation9 + $0x30] sm:$0xff] }
  0xc0   :  { %183 = vst.msk [vmem:[#allocation2 + $0x8] sm:$0x3] %vm178_vm1, %v11507_v1  ;;  %184 = vst.msk [vmem:[#allocation2 + $0xa] sm:$0x3] %vm178_vm1, %v11507_v1  ;;  %v279_v13 = vld [vmem:[#allocation9 + $0x48] sm:$0xff]  ;;  %v281_v14 = vld [vmem:[#allocation9 + $0x58] sm:$0xff]  ;;  %v9926_v17 = vpack.c.bf16 %v276_v2, %v274_v0 }
  0xc1   :  { %185 = vst.msk [vmem:[#allocation2 + $0xc] sm:$0x3] %vm178_vm1, %v11507_v1  ;;  %186 = vst.msk [vmem:[#allocation2 + $0xe] sm:$0x3] %vm178_vm1, %v11507_v1  ;;  %v278_v23 = vld [vmem:[#allocation9 + $0x40] sm:$0xff]  ;;  %v9928_v24 = vpack.c.bf16 %v281_v14, %v279_v13  ;;  %v280_v28 = vld [vmem:[#allocation9 + $0x50] sm:$0xff] }
  0xc2   :  { %187 = vst.msk [vmem:[#allocation2 + $0x10] sm:$0x3] %vm178_vm1, %v11507_v1  ;;  %188 = vst.msk [vmem:[#allocation2 + $0x12] sm:$0x3] %vm178_vm1, %v11507_v1  ;;  %v645_v29 = vld [vmem:[#allocation9 + $0xc8] sm:$0xff]  ;;  %s13253_s21 = sld [smem:[#allocation33_spill]] }
  0xc3   :  { %189 = vst.msk [vmem:[#allocation2 + $0x14] sm:$0x3] %vm178_vm1, %v11507_v1  ;;  %190 = vst.msk [vmem:[#allocation2 + $0x16] sm:$0x3] %vm178_vm1, %v11507_v1  ;;  %v651_v2 = vld [vmem:[#allocation9 + $0xf8] sm:$0xff]  ;;  %s13254_s2 = sld [smem:[#allocation32_spill]] }
  0xc4   :  { %191 = vst.msk [vmem:[#allocation2 + $0x18] sm:$0x3] %vm178_vm1, %v11507_v1  ;;  %192 = vst.msk [vmem:[#allocation2 + $0x1a] sm:$0x3] %vm178_vm1, %v11507_v1  ;;  %s13255_s20 = sld [smem:[#allocation34_spill]]  ;;  %vm11510_vm3 = vmmov 0  }
  0xc5   :  { %193 = vst.msk [vmem:[#allocation2 + $0x1c] sm:$0x3] %vm178_vm1, %v11507_v1  ;;  %194 = vst.msk [vmem:[#allocation2 + $0x1e] sm:$0x3] %vm178_vm1, %v11507_v1  ;;  %v252_v16 = vld [vmem:[#allocation2] sm:$0x3] }
  0xc6   :  { %195 = vst.msk [vmem:[#allocation2 + $0x20] sm:$0x3] %vm178_vm1, %v11507_v1  ;;  %196 = vst.msk [vmem:[#allocation2 + $0x22] sm:$0x3] %vm178_vm1, %v11507_v1  ;;  %vm6185_vm4 = vcmask 523264   ;;  %s13256_s25 = sld [smem:[#allocation36_spill]] }
  0xc7   :  { %236 = vst.msk [vmem:[#allocation2 + $0x2] sm:$0x3] %vm178_vm1, %v218_v19  ;;  %237 = vst.msk [vmem:[#allocation2 + $0x4] sm:$0x3] %vm178_vm1, %v219_v20 }
  0xc8   :  { %238 = vst.msk [vmem:[#allocation2 + $0x6] sm:$0x3] %vm178_vm1, %v220_v21  ;;  %239 = vst.msk [vmem:[#allocation2 + $0x8] sm:$0x3] %vm178_vm1, %v221_v25  ;;  %v810_v33 = vld [vmem:[%s13253_s21 + $0x88] sm:$0xff]  ;;  %v811_v45 = vld [vmem:[%s13253_s21 + $0x90] sm:$0xff] }
  0xc9   :  { %240 = vst.msk [vmem:[#allocation2 + $0xa] sm:$0x3] %vm178_vm1, %v222_v30  ;;  %241 = vst.msk [vmem:[#allocation2 + $0xc] sm:$0x3] %vm178_vm1, %v223_v31  ;;  %v647_v31 = vld [vmem:[#allocation9 + $0xd8] sm:$0xff]  ;;  %v812_v46 = vld [vmem:[%s13253_s21 + $0x98] sm:$0xff] }
  0xca   :  { %242 = vst.msk [vmem:[#allocation2 + $0xe] sm:$0x3] %vm178_vm1, %v224_v32  ;;  %243 = vst.msk [vmem:[#allocation2 + $0x10] sm:$0x3] %vm178_vm1, %v225_v34  ;;  %v809_v32 = vld [vmem:[%s13253_s21 + $0x80] sm:$0xff]  ;;  %v796_v52 = vld [vmem:[%s13253_s21 + $0x18] sm:$0xff] }
  0xcb   :  { %244 = vst.msk [vmem:[#allocation2 + $0x12] sm:$0x3] %vm178_vm1, %v226_v36  ;;  %245 = vst.msk [vmem:[#allocation2 + $0x14] sm:$0x3] %vm178_vm1, %v227_v37  ;;  %v815_v13 = vld [vmem:[%s13253_s21 + $0xb0] sm:$0xff]  ;;  %v816_v14 = vld [vmem:[%s13253_s21 + $0xb8] sm:$0xff] }
  0xcc   :  { %246 = vst.msk [vmem:[#allocation2 + $0x16] sm:$0x3] %vm178_vm1, %v228_v38  ;;  %247 = vst.msk [vmem:[#allocation2 + $0x18] sm:$0x3] %vm178_vm1, %v229_v39  ;;  %v793_v38 = vld [vmem:[%s13253_s21] sm:$0xff]  ;;  %v794_v39 = vld [vmem:[%s13253_s21 + $0x8] sm:$0xff] }
  0xcd   :  { %248 = vst.msk [vmem:[#allocation2 + $0x1a] sm:$0x3] %vm178_vm1, %v230_v41  ;;  %249 = vst.msk [vmem:[#allocation2 + $0x1c] sm:$0x3] %vm178_vm1, %v231_v49 }
  0xce   :  { %v11878_v42 = vld [vmem:[#allocation2 + $0x2] sm:$0x3]  ;;  %v11880_v43 = vld [vmem:[#allocation2 + $0x4] sm:$0x3]  ;;  %250 = vst.msk [vmem:[#allocation2 + $0x1e] sm:$0x3] %vm178_vm1, %v232_v50  ;;  %v9946_v50 = vpack.c.bf16 %v794_v39, %v793_v38 }
  0xcf   :  { %v11882_v44 = vld [vmem:[#allocation2 + $0x6] sm:$0x3]  ;;  %v11885_v47 = vld [vmem:[#allocation2 + $0x8] sm:$0x3]  ;;  %v311_v48 = vcombine.low %v11878_v42, %v11880_v43  ;;  %251 = vst.msk [vmem:[#allocation2 + $0x20] sm:$0x3] %vm178_vm1, %v233_v54  ;;  %v478_v34 = vcombine.low %v252_v16, %v11878_v42  ;;  %v9930_v42 = vpack.c.bf16 %v280_v28, %v278_v23 }
  0xd0   :  { %v312_v51 = vcombine.low %v11882_v44, %v11885_v47  ;;  %v11903_v56 = vld [vmem:[#allocation2 + $0xa] sm:$0x3]  ;;  %v11905_v57 = vld [vmem:[#allocation2 + $0xc] sm:$0x3]  ;;  %v479_v35 = vcombine.low %v11880_v43, %v11882_v44  ;;  %v9932_v43 = vpack.c.bf16 %v647_v31, %v645_v29  ;;  %v9944_v44 = vpack.c.bf16 %v810_v33, %v809_v32  ;;  %v799_v23 = vld [vmem:[%s13253_s21 + $0x30] sm:$0xff] }
  0xd1   :  { %v319_v55 = vrot.slane %v311_v48, %v11870_v40  ;;  %v11907_v58 = vld [vmem:[#allocation2 + $0xe] sm:$0x3]  ;;  %v11911_v60 = vld [vmem:[#allocation2 + $0x10] sm:$0x3]  ;;  %v328_v61 = vcombine.low %v11903_v56, %v11905_v57  ;;  %v495_v48 = vcombine.low %v11885_v47, %v11903_v56  ;;  %v486_v53 = vrot.slane %v478_v34, %v11870_v40  ;;  %v817_v31 = vld [vmem:[%s13253_s21 + $0xc0] sm:$0xff] }
  0xd2   :  { %v326_v59 = vrot.slane %v312_v51, %v11870_v40  ;;  %v329_v63 = vcombine.low %v11907_v58, %v11911_v60  ;;  %v11917_v3 = vld [vmem:[#allocation2 + $0x12] sm:$0x3]  ;;  %v11920_v7 = vld [vmem:[#allocation2 + $0x14] sm:$0x3]  ;;  %v496_v49 = vcombine.low %v11905_v57, %v11907_v58  ;;  %v11984_v54 = vrot.slane %v479_v35, %v11870_v40  ;;  %9945 = vmatprep.subr.bf16.mxu1 %v9944_v44  ;;  %v814_v57 = vld [vmem:[%s13253_s21 + $0xa8] sm:$0xff] }
  0xd3   :  { %v336_v5 = vrot.slane %v328_v61, %v11870_v40  ;;  %v11922_v8 = vld [vmem:[#allocation2 + $0x16] sm:$0x3]  ;;  %v11924_v9 = vld [vmem:[#allocation2 + $0x18] sm:$0x3]  ;;  %v345_v11 = vcombine.low %v11917_v3, %v11920_v7  ;;  %v9948_v56 = vpack.c.bf16 %v812_v46, %v811_v45  ;;  %9947 = vmatpush3.bf16.msra.mxu1 %v9946_v50  ;;  %v818_v32 = vld [vmem:[%s13253_s21 + $0xc8] sm:$0xff] }
  0xd4   :  { %v327_v4 = vcombine.low %v319_v55, %v326_v59  ;;  %v343_v10 = vrot.slane %v329_v63, %v11870_v40  ;;  %v346_v12 = vcombine.low %v11922_v8, %v11924_v9  ;;  %v11931_v15 = vld [vmem:[#allocation2 + $0x1a] sm:$0x3]  ;;  %v11937_v21 = vld [vmem:[#allocation2 + $0x1c] sm:$0x3]  ;;  %v795_v51 = vld [vmem:[%s13253_s21 + $0x10] sm:$0xff]  ;;  %v11995_v63 = vrot.slane %v495_v48, %v11870_v40 }
  0xd5   :  { %v353_v19 = vrot.slane %v345_v11, %v11870_v40  ;;  %v11939_v22 = vld [vmem:[#allocation2 + $0x1e] sm:$0x3]  ;;  %v362_v27 = vcombine.low %v11931_v15, %v11937_v21  ;;  %v813_v55 = vld [vmem:[%s13253_s21 + $0xa0] sm:$0xff]  ;;  %v644_v58 = vld [vmem:[#allocation9 + $0xc0] sm:$0xff]  ;;  %v11998_v0 = vrot.slane %v496_v49, %v11870_v40  ;;  %9949 = vmatprep.subr.bf16.mxu1 %v9948_v56  ;;  %v512_v11 = vcombine.low %v11911_v60, %v11917_v3 }
  0xd6   :  { %7582 = vmatmul.mubr.msk.f32.vlgmr.msra.gmra.mrb[0].mxu0 %vm379_vm2, %v327_v4  ;;  %v344_v18 = vcombine.low %v336_v5, %v343_v10  ;;  %v360_v20 = vrot.slane %v346_v12, %v11870_v40  ;;  %v11941_v25 = vld [vmem:[#allocation2 + $0x20] sm:$0x3]  ;;  %v649_v61 = vld [vmem:[#allocation9 + $0xe8] sm:$0xff]  ;;  %v9952_v4 = vpack.c.bf16 %v814_v57, %v813_v55  ;;  %v494_v10 = vcombine.low %v486_v53, %v11984_v54  ;;  %v652_v35 = vld [vmem:[#allocation9 + $0x100] sm:$0xff] }
  0xd7   :  { %9923 = vmatpush1.bf16.msra.mxu0 %v9922_v62  ;;  %458 = vmatprep.mubr.f32.mxu0 %v11507_v1  ;;  %v363_v30 = vcombine.low %v11939_v22, %v11941_v25  ;;  %v370_v37 = vrot.slane %v362_v27, %v11870_v40  ;;  %v646_v59 = vld [vmem:[#allocation9 + $0xd0] sm:$0xff]  ;;  %v9950_v62 = vpack.c.bf16 %v796_v52, %v795_v51  ;;  %v802_v38 = vld [vmem:[%s13253_s21 + $0x48] sm:$0xff]  ;;  %v820_v44 = vld [vmem:[%s13253_s21 + $0xd8] sm:$0xff] }
  0xd8   :  { %9925 = vmatprep.subr.bf16.mxu0 %v9924_v6  ;;  %v361_v36 = vcombine.low %v353_v19, %v360_v20  ;;  %v797_v5 = vld [vmem:[%s13253_s21 + $0x20] sm:$0xff]  ;;  %v798_v6 = vld [vmem:[%s13253_s21 + $0x28] sm:$0xff]  ;;  %v513_v12 = vcombine.low %v11920_v7, %v11922_v8  ;;  %v9934_v16 = vpack.c.bf16 %v646_v59, %v644_v58  ;;  %v653_v20 = vld [vmem:[#allocation9 + $0x108] sm:$0xff]  ;;  %v511_v3 = vcombine.low %v11995_v63, %v11998_v0 }
  0xd9   :  { %v377_v41 = vrot.slane %v363_v30, %v11870_v40  ;;  %v650_v19 = vld [vmem:[#allocation9 + $0xf0] sm:$0xff]  ;;  %9951 = vmatpush3.bf16.msra.mxu1 %v9950_v62  ;;  %v9954_v60 = vpack.c.bf16 %v798_v6, %v797_v5  ;;  %v655_v7 = vld [vmem:[#allocation9 + $0x118] sm:$0xff]  ;;  %v9956_v8 = vpack.c.bf16 %v816_v14, %v815_v13  ;;  %v12029_v27 = vrot.slane %v512_v11, %v11870_v40  ;;  %v803_v50 = vld [vmem:[%s13253_s21 + $0x50] sm:$0xff] }
  0xda   :  { %7583 = vmatmul.mubr.msk.f32.gmra.mrb[2].mxu0 %vm379_vm2, %v344_v18  ;;  %v648_v18 = vld [vmem:[#allocation9 + $0xe0] sm:$0xff]  ;;  %9953 = vmatprep.subr.bf16.mxu1 %v9952_v4  ;;  %v12032_v28 = vrot.slane %v513_v12, %v11870_v40  ;;  %v529_v29 = vcombine.low %v11924_v9, %v11931_v15  ;;  %v530_v30 = vcombine.low %v11937_v21, %v11939_v22  ;;  %v7645_v9 = vld [vmem:[%s13253_s21 + $0x280] sm:$0xff]  ;;  %v7646_v21 = vld [vmem:[%s13253_s21 + $0x288] sm:$0xff] }
  0xdb   :  { %464 = vmatprep.mubr.f32.mxu0 %v11507_v1  ;;  %9927 = vmatpush1.bf16.msra.mxu0 %v9926_v17  ;;  %v378_v47 = vcombine.low %v370_v37, %v377_v41  ;;  %v9936_v17 = vpack.c.bf16 %v651_v2, %v649_v61  ;;  %v9938_v33 = vpack.c.bf16 %v650_v19, %v648_v18  ;;  %v801_v37 = vld [vmem:[%s13253_s21 + $0x40] sm:$0xff]  ;;  %v804_v51 = vld [vmem:[%s13253_s21 + $0x58] sm:$0xff]  ;;  %v7630_v56 = vld [vmem:[%s13253_s21 + $0x208] sm:$0xff] }
  0xdc   :  { %9929 = vmatprep.subr.bf16.mxu0 %v9928_v24  ;;  %v800_v24 = vld [vmem:[%s13253_s21 + $0x38] sm:$0xff]  ;;  %v9940_v34 = vpack.c.bf16 %v655_v7, %v653_v20  ;;  %v9960_v22 = vpack.c.bf16 %v818_v32, %v817_v31  ;;  %v528_v39 = vcombine.low %v12029_v27, %v12032_v28  ;;  %v12061_v41 = vrot.slane %v529_v29, %v11870_v40  ;;  %v821_v53 = vld [vmem:[%s13253_s21 + $0xe0] sm:$0xff]  ;;  %v7647_v57 = vld [vmem:[%s13253_s21 + $0x290] sm:$0xff] }
  0xdd   :  { %9955 = vmatpush3.bf16.msra.mxu1 %v9954_v60  ;;  %v9958_v15 = vpack.c.bf16 %v800_v24, %v799_v23  ;;  %v10008_v46 = vpack.c.bf16 %v7646_v21, %v7645_v9  ;;  %v9962_v48 = vpack.c.bf16 %v802_v38, %v801_v37  ;;  %v7629_v55 = vld [vmem:[%s13253_s21 + $0x200] sm:$0xff]  ;;  %v9966_v58 = vpack.c.bf16 %v804_v51, %v803_v50  ;;  %v7648_v59 = vld [vmem:[%s13253_s21 + $0x298] sm:$0xff]  ;;  %v806_v2 = vld [vmem:[%s13253_s21 + $0x68] sm:$0xff] }
  0xde   :  { %7584 = vmatmul.mubr.msk.f32.gmra.mrb[4].mxu0 %vm379_vm2, %v361_v36  ;;  %v654_v36 = vld [vmem:[#allocation9 + $0x110] sm:$0xff]  ;;  %9957 = vmatprep.subr.bf16.mxu1 %v9956_v8  ;;  %v657_v4 = vcombine.low %v11984_v54, %v11995_v63  ;;  %v10010_v6 = vpack.c.bf16 %v7630_v56, %v7629_v55  ;;  %v7631_v11 = vld [vmem:[%s13253_s21 + $0x210] sm:$0xff]  ;;  %v7632_v12 = vld [vmem:[%s13253_s21 + $0x218] sm:$0xff]  ;;  %v658_v14 = vcombine.low %v11998_v0, %v12029_v27 }
  0xdf   :  { %470 = vmatprep.mubr.f32.mxu0 %v11507_v1  ;;  %9931 = vmatpush1.bf16.msra.mxu0 %v9930_v42  ;;  %v12064_v42 = vrot.slane %v530_v30, %v11870_v40  ;;  %v9942_v45 = vpack.c.bf16 %v654_v36, %v652_v35  ;;  %v805_v62 = vld [vmem:[%s13253_s21 + $0x60] sm:$0xff]  ;;  %v7650_v63 = vld [vmem:[%s13253_s21 + $0x2a8] sm:$0xff]  ;;  %v7651_v0 = vld [vmem:[%s13253_s21 + $0x2b0] sm:$0xff]  ;;  %v659_v60 = vcombine.low %v12032_v28, %v12061_v41 }
  0xe0   :  { %9933 = vmatprep.subr.bf16.mxu0 %v9932_v43  ;;  %v819_v43 = vld [vmem:[%s13253_s21 + $0xd0] sm:$0xff]  ;;  %v269_v5 = vld [vmem:[#allocation2 + $0x22] sm:$0x3]  ;;  %v9970_v13 = vpack.c.bf16 %v806_v2, %v805_v62  ;;  %v7634_v20 = vld [vmem:[%s13253_s21 + $0x228] sm:$0xff]  ;;  %v12228_v2 = vsub.s32 0, %v11838_v26 }
  0xe1   :  { %9959 = vmatpush3.bf16.msra.mxu1 %v9958_v15  ;;  %v9964_v49 = vpack.c.bf16 %v820_v44, %v819_v43  ;;  %v545_v52 = vcombine.low %v12061_v41, %v12064_v42  ;;  %v7649_v54 = vld [vmem:[%s13253_s21 + $0x2a0] sm:$0xff]  ;;  %v7635_v23 = vld [vmem:[%s13253_s21 + $0x230] sm:$0xff]  ;;  %v7636_v24 = vld [vmem:[%s13253_s21 + $0x238] sm:$0xff] }
  0xe2   :  { %7585 = vmatmul.mubr.msk.f32.gmra.mrb[6].mxu0 %vm379_vm2, %v378_v47  ;;  %9961 = vmatprep.subr.bf16.mxu1 %v9960_v22  ;;  %v822_v47 = vld [vmem:[%s13253_s21 + $0xe8] sm:$0xff]  ;;  %v10016_v18 = vpack.c.bf16 %v7650_v63, %v7649_v54  ;;  %v7633_v19 = vld [vmem:[%s13253_s21 + $0x220] sm:$0xff]  ;;  %v10022_v30 = vpack.c.bf16 %v7636_v24, %v7635_v23  ;;  %v7656_v35 = vld [vmem:[%s13253_s21 + $0x2d8] sm:$0xff] }
  0xe3   :  { %618 = vmatprep.mubr.f32.mxu0 %v11507_v1  ;;  %v9968_v61 = vpack.c.bf16 %v822_v47, %v821_v53  ;;  %v10018_v7 = vpack.c.bf16 %v7634_v20, %v7633_v19  ;;  %v7653_v27 = vld [vmem:[%s13253_s21 + $0x2c0] sm:$0xff]  ;;  %v7654_v28 = vld [vmem:[%s13253_s21 + $0x2c8] sm:$0xff]  ;;  %v7639_v15 = vld [vmem:[%s13253_s21 + $0x250] sm:$0xff] }
  0xe4   :  { %v10024_v31 = vpack.c.bf16 %v7654_v28, %v7653_v27  ;;  %v7637_v32 = vld [vmem:[%s13253_s21 + $0x240] sm:$0xff]  ;;  %v7640_v21 = vld [vmem:[%s13253_s21 + $0x258] sm:$0xff]  ;;  %v7658_v37 = vld [vmem:[%s13253_s21 + $0x2e8] sm:$0xff] }
  0xe5   :  { %9963 = vmatpush3.bf16.msra.mxu1 %v9962_v48  ;;  %v7657_v22 = vld [vmem:[%s13253_s21 + $0x2e0] sm:$0xff]  ;;  %v10030_v38 = vpack.c.bf16 %v7640_v21, %v7639_v15  ;;  %v823_v44 = vld [vmem:[%s13253_s21 + $0xf0] sm:$0xff]  ;;  %v7644_v47 = vld [vmem:[%s13253_s21 + $0x278] sm:$0xff] }
  0xe6   :  { %7586 = vmatmul.mubr.msk.f32.vlgmr.msra.gmra.mrb[0].mxu0 %vm379_vm2, %v494_v10  ;;  %9965 = vmatprep.subr.bf16.mxu1 %v9964_v49  ;;  %v10012_v10 = vpack.c.bf16 %v7648_v59, %v7647_v57  ;;  %v7641_v41 = vld [vmem:[%s13253_s21 + $0x260] sm:$0xff]  ;;  %v807_v48 = vld [vmem:[%s13253_s21 + $0x70] sm:$0xff]  ;;  %v808_v49 = vld [vmem:[%s13253_s21 + $0x78] sm:$0xff] }
  0xe7   :  { %9935 = vmatpush1.bf16.msra.mxu0 %v9934_v16  ;;  %624 = vmatprep.mubr.f32.mxu0 %v11507_v1  ;;  %v660_v16 = vcombine.low %v11941_v25, %v269_v5  ;;  %v7652_v25 = vld [vmem:[%s13253_s21 + $0x2b8] sm:$0xff]  ;;  %v7659_v50 = vld [vmem:[%s13253_s21 + $0x2f0] sm:$0xff]  ;;  %v9974_v51 = vpack.c.bf16 %v808_v49, %v807_v48  ;;  %v7611_v57 = vld [vmem:[%s13253_s21 + $0x180] sm:$0xff] }
  0xe8   :  { %9937 = vmatprep.subr.bf16.mxu0 %v9936_v17  ;;  %v10014_v17 = vpack.c.bf16 %v7632_v12, %v7631_v11  ;;  %v10020_v8 = vpack.c.bf16 %v7652_v25, %v7651_v0  ;;  %v7643_v53 = vld [vmem:[%s13253_s21 + $0x270] sm:$0xff]  ;;  %v234_v62 = vld [vmem:[%s13254_s2] sm:$0x3]  ;;  %v7616_v0 = vld [vmem:[%s13253_s21 + $0x1a8] sm:$0xff]  ;;  %s11511_s2 = smov [#allocation23]  }
  0xe9   :  { %9967 = vmatpush3.bf16.msra.mxu1 %v9966_v58  ;;  %v10038_v56 = vpack.c.bf16 %v7644_v47, %v7643_v53  ;;  %v7612_v58 = vld [vmem:[%s13253_s21 + $0x188] sm:$0xff]  ;;  %v778_v5 = vrot.slane %v234_v62, %v12228_v2  ;;  %v7613_v12 = vld [vmem:[%s13253_s21 + $0x190] sm:$0xff]  ;;  %v7615_v20 = vld [vmem:[%s13253_s21 + $0x1a0] sm:$0xff]  ;;  %s7569_s7 = sshll.u32 %s11511_s2, 4  ;;  %s7570_s7 = int_to_ptr.vmem [resolvable:$true] %s7569_s7 }
  0xea   :  { %7587 = vmatmul.mubr.msk.f32.gmra.mrb[2].mxu0 %vm379_vm2, %v511_v3  ;;  %9969 = vmatprep.subr.bf16.mxu1 %v9968_v61  ;;  %v667_v3 = vrot.slane %v660_v16, %v11870_v40  ;;  %v9976_v59 = vpack.c.bf16 %v7612_v58, %v7611_v57  ;;  %v12222_v61 = vsub.s32 1, %v11838_v26  ;;  %v7614_v26 = vld [vmem:[%s13253_s21 + $0x198] sm:$0xff]  ;;  %v7599_v23 = vld [vmem:[%s13253_s21 + $0x120] sm:$0xff]  ;;  %v7600_v24 = vld [vmem:[%s13253_s21 + $0x128] sm:$0xff]  ;;  %s11460_s26 = scalar_lea.vmem %s7570_s7, 64  ;;  %p11465_p9 = scmp.lt.s32.totalorder %s7570_s7, %s7570_s7 }
  0xeb   :  { %630 = vmatprep.mubr.f32.mxu0 %v11507_v1  ;;  %9939 = vmatpush1.bf16.msra.mxu0 %v9938_v33  ;;  %v7638_v33 = vld [vmem:[%s13253_s21 + $0x248] sm:$0xff]  ;;  %v9980_v16 = vpack.c.bf16 %v7614_v26, %v7613_v12  ;;  %v7617_v28 = vld [vmem:[%s13253_s21 + $0x1b0] sm:$0xff]  ;;  %v7619_v15 = vld [vmem:[%s13253_s21 + $0x1c0] sm:$0xff]  ;;  %p11461_p8 = scmp.ne.s32.totalorder %s7570_s7, %s11460_s26  ;;  %p11466_p10 = scmp.lt.s32.totalorder %s11460_s26, %s11460_s26 }
  0xec   :  { %9941 = vmatprep.subr.bf16.mxu0 %v9940_v34  ;;  %v668_v29 = vcombine.low %v12064_v42, %v667_v3  ;;  %v7655_v34 = vld [vmem:[%s13253_s21 + $0x2d0] sm:$0xff]  ;;  %v10026_v36 = vpack.c.bf16 %v7638_v33, %v7637_v32  ;;  %v7642_v42 = vld [vmem:[%s13253_s21 + $0x268] sm:$0xff]  ;;  %v9986_v32 = vpack.c.bf16 %v7600_v24, %v7599_v23  ;;  %v7626_v58 = vld [vmem:[%s13253_s21 + $0x1f8] sm:$0xff] }
  0xed   :  { %9971 = vmatpush3.bf16.msra.mxu1 %v9970_v13  ;;  %v10028_v9 = vpack.c.bf16 %v7656_v35, %v7655_v34  ;;  %v10034_v43 = vpack.c.bf16 %v7642_v42, %v7641_v41  ;;  %v7601_v35 = vld [vmem:[%s13253_s21 + $0x130] sm:$0xff]  ;;  %v7620_v21 = vld [vmem:[%s13253_s21 + $0x1c8] sm:$0xff]  ;;  %v7603_v42 = vld [vmem:[%s13253_s21 + $0x140] sm:$0xff]  ;;  %p11467_p11 = por %p11466_p10, %p11465_p9 }
  0xee   :  { %7588 = vmatmul.mubr.msk.f32.gmra.mrb[4].mxu0 %vm379_vm2, %v528_v39  ;;  %v10032_v39 = vpack.c.bf16 %v7658_v37, %v7657_v22  ;;  %v9992_v41 = vpack.c.bf16 %v7620_v21, %v7619_v15  ;;  %v7605_v49 = vld [vmem:[%s13253_s21 + $0x150] sm:$0xff]  ;;  %v1380_v26 = vld [vmem:[#allocation12 + $0x90] sm:$0xff]  ;;  %v1391_v23 = vld [vmem:[#allocation12 + $0xe8] sm:$0xff] }
  0xef   :  { %636 = vmatprep.mubr.f32.mxu0 %v11507_v1  ;;  %9943 = vmatpush1.bf16.msra.mxu0 %v9942_v45  ;;  %v824_v45 = vld [vmem:[%s13253_s21 + $0xf8] sm:$0xff]  ;;  %v7625_v57 = vld [vmem:[%s13253_s21 + $0x1f0] sm:$0xff]  ;;  %p11468_p12 = pnand %p11467_p11, %p11461_p8 }
  0xf0   :  { %10009 = vmatprep.subr.bf16.mxu0 %v10008_v46  ;;  %v9972_v46 = vpack.c.bf16 %v824_v45, %v823_v44  ;;  %v7621_v44 = vld [vmem:[%s13253_s21 + $0x1d0] sm:$0xff]  ;;  %v7622_v45 = vld [vmem:[%s13253_s21 + $0x1d8] sm:$0xff] }
  0xf1   :  { %v9996_v48 = vpack.c.bf16 %v7622_v45, %v7621_v44 }
  0xf2   :  { %7589 = vmatmul.mubr.msk.f32.gmra.mrb[6].mxu0 %vm379_vm2, %v545_v52  ;;  %v7660_v52 = vld [vmem:[%s13253_s21 + $0x2f8] sm:$0xff]  ;;  %9973 = vmatprep.subr.bf16.mxu1 %v9972_v46 }
  0xf3   :  { %741 = vmatprep.mubr.f32.mxu0 %v11507_v1  ;;  %v10036_v55 = vpack.c.bf16 %v7660_v52, %v7659_v50  ;;  %9975 = vmatpush3.bf16.msra.mxu1 %v9974_v51  ;;  %v7606_v50 = vld [vmem:[%s13253_s21 + $0x158] sm:$0xff]  ;;  %v7623_v51 = vld [vmem:[%s13253_s21 + $0x1e0] sm:$0xff]  ;;  %v7624_v52 = vld [vmem:[%s13253_s21 + $0x1e8] sm:$0xff] }
  0xf4   :  { %9977 = vmatprep.subr.bf16.mxu1 %v9976_v59  ;;  %v9998_v53 = vpack.c.bf16 %v7606_v50, %v7605_v49  ;;  %v10000_v47 = vpack.c.bf16 %v7624_v52, %v7623_v51 }
  0xf6   :  { %7590 = vmatmul.mubr.msk.f32.vlgmr.msra.gmra.mrb[0].mxu0 %vm379_vm2, %v657_v4  ;;  %v782_v4 = vrot.slane %v234_v62, %v12222_v61  ;;  %v10004_v62 = vpack.c.bf16 %v7626_v58, %v7625_v57  ;;  %v1832_v57 = vld [vmem:[#allocation12 + $0x210] sm:$0xff] }
  0xf7   :  { %747 = vmatprep.mubr.f32.mxu0 %v11507_v1  ;;  %10011 = vmatpush3.bf16.msra.mxu0 %v10010_v6  ;;  %v7595_v6 = vld [vmem:[%s13253_s21 + $0x100] sm:$0xff] }
  0xf8   :  { %10013 = vmatprep.subr.bf16.mxu0 %v10012_v10  ;;  %v7596_v10 = vld [vmem:[%s13253_s21 + $0x108] sm:$0xff] }
  0xf9   :  { %v9978_v63 = vpack.c.bf16 %v7596_v10, %v7595_v6  ;;  %v1378_v10 = vld [vmem:[#allocation12 + $0x80] sm:$0xff] }
  0xfa   :  { %7591 = vmatmul.mubr.msk.f32.gmra.mrb[2].mxu0 %vm379_vm2, %v658_v14 }
  0xfb   :  { %753 = vmatprep.mubr.f32.mxu0 %v11507_v1  ;;  %10015 = vmatpush3.bf16.msra.mxu0 %v10014_v17  ;;  %v7597_v17 = vld [vmem:[%s13253_s21 + $0x110] sm:$0xff] }
  0xfc   :  { %10017 = vmatprep.subr.bf16.mxu0 %v10016_v18  ;;  %v7598_v18 = vld [vmem:[%s13253_s21 + $0x118] sm:$0xff] }
  0xfd   :  { %v9982_v3 = vpack.c.bf16 %v7598_v18, %v7597_v17  ;;  %v1384_v17 = vld [vmem:[#allocation12 + $0xb0] sm:$0xff]  ;;  %v1385_v18 = vld [vmem:[#allocation12 + $0xb8] sm:$0xff] }
  0xfe   :  { %7592 = vmatmul.mubr.msk.f32.gmra.mrb[4].mxu0 %vm379_vm2, %v659_v60 }
  0xff   :  { %759 = vmatprep.mubr.f32.mxu0 %v11507_v1  ;;  %10019 = vmatpush3.bf16.msra.mxu0 %v10018_v7 }
 0x100   :  { %10021 = vmatprep.subr.bf16.mxu0 %v10020_v8  ;;  %v9984_v8 = vpack.c.bf16 %v7616_v0, %v7615_v20  ;;  %v1386_v20 = vld [vmem:[#allocation12 + $0xc0] sm:$0xff]  ;;  %v1387_v0 = vld [vmem:[#allocation12 + $0xc8] sm:$0xff] }
 0x102   :  { %7593 = vmatmul.mubr.msk.f32.gmra.mrb[6].mxu0 %vm379_vm2, %v668_v29  ;;  %v7618_v29 = vld [vmem:[%s13253_s21 + $0x1b8] sm:$0xff] }
 0x103   :  { %10023 = vmatpush3.bf16.msra.mxu0 %v10022_v30  ;;  %v9988_v34 = vpack.c.bf16 %v7618_v29, %v7617_v28  ;;  %v1393_v28 = vld [vmem:[#allocation12 + $0xf8] sm:$0xff]  ;;  %v1361_v29 = vld [vmem:[#allocation12] sm:$0xff] }
 0x104   :  { %10025 = vmatprep.subr.bf16.mxu0 %v10024_v31 }
 0x107   :  { %10027 = vmatpush3.bf16.msra.mxu0 %v10026_v36  ;;  %v7602_v36 = vld [vmem:[%s13253_s21 + $0x138] sm:$0xff] }
 0x108   :  { %10029 = vmatprep.subr.bf16.mxu0 %v10028_v9 }
 0x10b   :  { %10031 = vmatpush3.bf16.msra.mxu0 %v10030_v38  ;;  %v9990_v38 = vpack.c.bf16 %v7602_v36, %v7601_v35 }
 0x10c   :  { %10033 = vmatprep.subr.bf16.mxu0 %v10032_v39 }
 0x10f   :  { %10035 = vmatpush3.bf16.msra.mxu0 %v10034_v43  ;;  %v7604_v43 = vld [vmem:[%s13253_s21 + $0x148] sm:$0xff] }
 0x110   :  { %10037 = vmatprep.subr.bf16.mxu0 %v10036_v55  ;;  %v9994_v46 = vpack.c.bf16 %v7604_v43, %v7603_v42  ;;  %v7607_v55 = vld [vmem:[%s13253_s21 + $0x160] sm:$0xff] }
 0x113   :  { %10039 = vmatpush3.bf16.msra.mxu0 %v10038_v56  ;;  %v7608_v56 = vld [vmem:[%s13253_s21 + $0x168] sm:$0xff] }
 0x114   :  { %v10002_v59 = vpack.c.bf16 %v7608_v56, %v7607_v55  ;;  %v1830_v55 = vld [vmem:[#allocation12 + $0x200] sm:$0xff]  ;;  %v1831_v56 = vld [vmem:[#allocation12 + $0x208] sm:$0xff] }
 0x115   :  { %v10136_v58 = vpack.c.bf16 %v1831_v56, %v1830_v55 }
 0x117   :  { %10137 = vmatprep.subr.bf16.mxu0 %v10136_v58 }
 0x1c9   :  { %v743_v11 = vpop.f32.mrb[0].mxu0 }
 0x1ca   :  { %v745_v13 = vpop.f32.mrb[1].mxu0  ;;  %v12244_v14 = vadd.f32 %v778_v5, %v743_v11  ;;  %v1379_v11 = vld [vmem:[#allocation12 + $0x88] sm:$0xff] }
 0x1cb   :  { %v786_v54 = vadd.f32 %v782_v4, %v745_v13  ;;  %v10040_v12 = vpack.c.bf16 %v1379_v11, %v1378_v10  ;;  %v1381_v13 = vld [vmem:[#allocation12 + $0x98] sm:$0xff] }
 0x1cd   :  { %v749_v19 = vpop.f32.mrb[2].mxu0  ;;  %896 = vmatprep.mubr.f32.mxu1 %v786_v54  ;;  %1152 = vmatprep.mubr.f32.mxu0 %v786_v54 }
 0x1ce   :  { %v751_v25 = vpop.f32.mrb[3].mxu0  ;;  %897 = vmatmul.mubr.f32.vlgmr.msra.gmra.mrb[0].mxu1 %v12244_v14  ;;  %1153 = vmatmul.mubr.f32.vlgmr.msra.gmra.mrb[8].mxu0 %v12244_v14  ;;  %v12262_v7 = vadd.f32 %v778_v5, %v749_v19  ;;  %v10052_v19 = vpack.c.bf16 %v1385_v18, %v1384_v17 }
 0x1cf   :  { %v12260_v60 = vadd.f32 %v782_v4, %v751_v25  ;;  %9979 = vmatpush3.bf16.msra.mxu1 %v9978_v63  ;;  %v1382_v63 = vld [vmem:[#allocation12 + $0xa0] sm:$0xff]  ;;  %v10056_v25 = vpack.c.bf16 %v1387_v0, %v1386_v20  ;;  %10139 = vmatpush3.bf16.msra.mxu0 %v10136_v58 }
 0x1d0   :  { %9981 = vmatprep.subr.bf16.mxu1 %v9980_v16 }
 0x1d1   :  { %v755_v27 = vpop.f32.mrb[4].mxu0  ;;  %901 = vmatprep.mubr.f32.mxu1 %v12260_v60  ;;  %1157 = vmatprep.mubr.f32.mxu0 %v12260_v60 }
 0x1d2   :  { %v757_v30 = vpop.f32.mrb[5].mxu0  ;;  %902 = vmatmul.mubr.f32.gmra.mrb[2].mxu1 %v12262_v7  ;;  %1158 = vmatmul.mubr.f32.gmra.mrb[10].mxu0 %v12262_v7  ;;  %v789_v33 = vadd.f32 %v778_v5, %v755_v27  ;;  %v1392_v27 = vld [vmem:[#allocation12 + $0xf0] sm:$0xff] }
 0x1d3   :  { %v790_v31 = vadd.f32 %v782_v4, %v757_v30  ;;  %9983 = vmatpush3.bf16.msra.mxu1 %v9982_v3  ;;  %v1389_v3 = vld [vmem:[#allocation12 + $0xd8] sm:$0xff]  ;;  %v10068_v30 = vpack.c.bf16 %v1393_v28, %v1392_v27 }
 0x1d4   :  { %9985 = vmatprep.subr.bf16.mxu1 %v9984_v8  ;;  %v1390_v8 = vld [vmem:[#allocation12 + $0xe0] sm:$0xff] }
 0x1d5   :  { %v761_v9 = vpop.f32.mrb[6].mxu0  ;;  %906 = vmatprep.mubr.f32.mxu1 %v790_v31  ;;  %1162 = vmatprep.mubr.f32.mxu0 %v790_v31  ;;  %v10064_v24 = vpack.c.bf16 %v1391_v23, %v1390_v8 }
 0x1d6   :  { %v763_v22 = vpop.f32.mrb[7].mxu0  ;;  %907 = vmatmul.mubr.f32.gmra.mrb[4].mxu1 %v789_v33  ;;  %1163 = vmatmul.mubr.f32.gmra.mrb[12].mxu0 %v789_v33  ;;  %v791_v39 = vadd.f32 %v778_v5, %v761_v9  ;;  %v7610_v5 = vld [vmem:[%s13253_s21 + $0x178] sm:$0xff] }
 0x1d7   :  { %v792_v37 = vadd.f32 %v782_v4, %v763_v22  ;;  %9987 = vmatpush3.bf16.msra.mxu1 %v9986_v32  ;;  %v7609_v4 = vld [vmem:[%s13253_s21 + $0x170] sm:$0xff] }
 0x1d8   :  { %9989 = vmatprep.subr.bf16.mxu1 %v9988_v34  ;;  %v10006_v6 = vpack.c.bf16 %v7610_v5, %v7609_v4  ;;  %v7594_v5 = vld [vmem:[%s13255_s20] ss:$0 sm:$0xff] }
 0x1d9   :  { %911 = vmatprep.mubr.f32.mxu1 %v792_v37  ;;  %1167 = vmatprep.mubr.f32.mxu0 %v792_v37 }
 0x1da   :  { %912 = vmatmul.mubr.f32.gmra.mrb[6].mxu1 %v791_v39  ;;  %1168 = vmatmul.mubr.f32.gmra.mrb[14].mxu0 %v791_v39 }
 0x1db   :  { %9991 = vmatpush3.bf16.msra.mxu1 %v9990_v38  ;;  %1022 = vmatprep.mubr.f32.mxu1 %v786_v54  ;;  %v10044_v54 = vpack.c.bf16 %v1381_v13, %v1380_v26 }
 0x1dc   :  { %9993 = vmatprep.subr.bf16.mxu1 %v9992_v41 }
 0x1df   :  { %9995 = vmatpush3.bf16.msra.mxu1 %v9994_v46 }
 0x1e0   :  { %9997 = vmatprep.subr.bf16.mxu1 %v9996_v48 }
 0x1e3   :  { %9999 = vmatpush3.bf16.msra.mxu1 %v9998_v53 }
 0x1e4   :  { %10001 = vmatprep.subr.bf16.mxu1 %v10000_v47 }
 0x1e7   :  { %10003 = vmatpush3.bf16.msra.mxu1 %v10002_v59  ;;  %v1833_v59 = vld [vmem:[#allocation12 + $0x218] sm:$0xff] }
 0x1e8   :  { %10005 = vmatprep.subr.bf16.mxu1 %v10004_v62  ;;  %v10140_v62 = vpack.c.bf16 %v1833_v59, %v1832_v57 }
 0x1ea   :  { %10141 = vmatprep.subr.bf16.mxu0 %v10140_v62 }
 0x1eb   :  { %10007 = vmatpush3.bf16.msra.mxu1 %v10006_v6  ;;  %10143 = vmatpush3.bf16.msra.mxu0 %v10140_v62  ;;  %v7628_v6 = vld [vmem:[%s13255_s20 + $0x1] ss:$0 sm:$0xff] }
 0x1ec   :  { %10041 = vmatprep.subr.bf16.mxu1 %v10040_v12 }
 0x1ee   :  { %1023 = vmatmul.mubr.f32.vlgmr.msra.gmra.mrb[8].mxu1 %v12244_v14  ;;  %v1383_v14 = vld [vmem:[#allocation12 + $0xa8] sm:$0xff] }
 0x1ef   :  { %1027 = vmatprep.mubr.f32.mxu1 %v12260_v60  ;;  %10043 = vmatpush3.bf16.msra.mxu1 %v10040_v12  ;;  %v10048_v16 = vpack.c.bf16 %v1383_v14, %v1382_v63  ;;  %v1388_v60 = vld [vmem:[#allocation12 + $0xd0] sm:$0xff] }
 0x1f0   :  { %10045 = vmatprep.subr.bf16.mxu1 %v10044_v54  ;;  %v7662_v12 = vld [vmem:[%s13255_s20 + $0x2] ss:$0 sm:$0xff] }
 0x1f2   :  { %1028 = vmatmul.mubr.f32.gmra.mrb[10].mxu1 %v12262_v7  ;;  %v10060_v7 = vpack.c.bf16 %v1389_v3, %v1388_v60 }
 0x1f3   :  { %1032 = vmatprep.mubr.f32.mxu1 %v790_v31  ;;  %10047 = vmatpush3.bf16.msra.mxu1 %v10044_v54  ;;  %v1362_v31 = vld [vmem:[#allocation12 + $0x8] sm:$0xff] }
 0x1f4   :  { %10049 = vmatprep.subr.bf16.mxu1 %v10048_v16  ;;  %v12337_v32 = vpack.c.bf16 %v1362_v31, %v1361_v29 }
 0x1f6   :  { %1033 = vmatmul.mubr.f32.gmra.mrb[12].mxu1 %v789_v33 }
 0x1f7   :  { %1037 = vmatprep.mubr.f32.mxu1 %v792_v37  ;;  %10051 = vmatpush3.bf16.msra.mxu1 %v10048_v16 }
 0x1f8   :  { %10053 = vmatprep.subr.bf16.mxu1 %v10052_v19 }
 0x1fa   :  { %1038 = vmatmul.mubr.f32.gmra.mrb[14].mxu1 %v791_v39 }
 0x1fb   :  { %10055 = vmatpush3.bf16.msra.mxu1 %v10052_v19 }
 0x1fc   :  { %10057 = vmatprep.subr.bf16.mxu1 %v10056_v25 }
 0x1ff   :  { %10059 = vmatpush3.bf16.msra.mxu1 %v10056_v25 }
 0x200   :  { %10061 = vmatprep.subr.bf16.mxu1 %v10060_v7 }
 0x203   :  { %10063 = vmatpush3.bf16.msra.mxu1 %v10060_v7 }
 0x204   :  { %10065 = vmatprep.subr.bf16.mxu1 %v10064_v24 }
 0x207   :  { %10067 = vmatpush3.bf16.msra.mxu1 %v10064_v24 }
 0x208   :  { %10069 = vmatprep.subr.bf16.mxu1 %v10068_v30 }
 0x20b   :  { %10071 = vmatpush3.bf16.msra.mxu1 %v10068_v30 }
 0x20c   :  { %10073 = vmatprep.subr.bf16.mxu1 %v12337_v32 }
 0x2a1   :  { %v7786_v33 = vpop.f32.mrb[0].mxu1  ;;  %v7874_v34 = vpop.f32.mrb[8].mxu0 }
 0x2a2   :  { %v7787_v35 = vpop.f32.mrb[1].mxu1  ;;  %v7875_v36 = vpop.f32.mrb[9].mxu0 }
 0x2a3   :  { %v7788_v9 = vadd.f32 %v7787_v35, %v7786_v33  ;;  %v7876_v15 = vadd.f32 %v7875_v36, %v7874_v34 }
 0x2a5   :  { %v7789_v21 = vpop.f32.mrb[2].mxu1  ;;  %v7877_v22 = vpop.f32.mrb[10].mxu0  ;;  %v899_v26 = vadd.f32 %v7788_v9, %v7594_v5  ;;  %v1155_v14 = vadd.f32 %v7876_v15, %v7662_v12 }
 0x2a6   :  { %v7790_v37 = vpop.f32.mrb[3].mxu1  ;;  %v7878_v38 = vpop.f32.mrb[11].mxu0 }
 0x2a7   :  { %v7791_v39 = vadd.f32 %v7790_v37, %v7789_v21  ;;  %v7879_v41 = vadd.f32 %v7878_v38, %v7877_v22 }
 0x2a9   :  { %v7792_v42 = vpop.f32.mrb[4].mxu1  ;;  %v7880_v43 = vpop.f32.mrb[12].mxu0  ;;  %v904_v18 = vadd.f32 %v7791_v39, %v7594_v5  ;;  %v1160_v25 = vadd.f32 %v7879_v41, %v7662_v12  ;;  %v1300_v41 = vld [vmem:[#allocation6] sm:$0x3] }
 0x2aa   :  { %v7793_v44 = vpop.f32.mrb[5].mxu1  ;;  %v7881_v45 = vpop.f32.mrb[13].mxu0 }
 0x2ab   :  { %v7794_v46 = vadd.f32 %v7793_v44, %v7792_v42  ;;  %v7882_v48 = vadd.f32 %v7881_v45, %v7880_v43 }
 0x2ad   :  { %v7795_v49 = vpop.f32.mrb[6].mxu1  ;;  %v7883_v50 = vpop.f32.mrb[14].mxu0  ;;  %v909_v24 = vadd.f32 %v7794_v46, %v7594_v5  ;;  %v1165_v33 = vadd.f32 %v7882_v48, %v7662_v12 }
 0x2ae   :  { %v7796_v51 = vpop.f32.mrb[7].mxu1  ;;  %v7884_v52 = vpop.f32.mrb[15].mxu0 }
 0x2af   :  { %v7797_v53 = vadd.f32 %v7796_v51, %v7795_v49  ;;  %v12340_v47 = vadd.f32 %v7884_v52, %v7883_v50 }
 0x2b1   :  { %v914_v39 = vadd.f32 %v7797_v53, %v7594_v5  ;;  %v1170_v48 = vadd.f32 %v12340_v47, %v7662_v12 }
 0x2c1   :  { %v7830_v4 = vpop.f32.mrb[8].mxu1 }
 0x2c2   :  { %v7831_v10 = vpop.f32.mrb[9].mxu1 }
 0x2c3   :  { %v7832_v11 = vadd.f32 %v7831_v10, %v7830_v4 }
 0x2c5   :  { %v1025_v13 = vadd.f32 %v7832_v11, %v7628_v6  ;;  %v7833_v54 = vpop.f32.mrb[10].mxu1 }
 0x2c6   :  { %v7834_v63 = vpop.f32.mrb[11].mxu1 }
 0x2c7   :  { %v1043_v16 = vmax.f32 %v899_v26, %v1025_v13  ;;  %v7835_v17 = vadd.f32 %v7834_v63, %v7833_v54 }
 0x2c9   :  { %v1173_v19 = vmax.f32 %v1043_v16, %v1155_v14  ;;  %v1030_v20 = vadd.f32 %v7835_v17, %v7628_v6  ;;  %v7836_v0 = vpop.f32.mrb[12].mxu1 }
 0x2ca   :  { %v7837_v60 = vpop.f32.mrb[13].mxu1 }
 0x2cb   :  { %v1199_v3 = vcombine.high %v1173_v19, %v1173_v19  ;;  %v1206_v7 = vrot.slane %v1173_v19, %v11870_v40  ;;  %7663 = vst.sshfl [vmem:[#allocation6 + $0x2] sm:$0x3 pattern:$0x76325410] %v1173_v19  ;;  %v1044_v8 = vmax.f32 %v904_v18, %v1030_v20  ;;  %v7838_v23 = vadd.f32 %v7837_v60, %v7836_v0 }
 0x2cd   :  { %v1213_v27 = vrot.slane %v1199_v3, %v11870_v40  ;;  %v1214_v28 = vcombine.high %v1206_v7, %v1206_v7  ;;  %7664 = vst.sshfl [vmem:[#allocation6 + $0x6] sm:$0x3 pattern:$0x76325410] %v1199_v3  ;;  %v1174_v29 = vmax.f32 %v1044_v8, %v1160_v25  ;;  %v1035_v30 = vadd.f32 %v7838_v23, %v7628_v6  ;;  %v7839_v31 = vpop.f32.mrb[14].mxu1 }
 0x2ce   :  { %v7840_v34 = vpop.f32.mrb[15].mxu1 }
 0x2cf   :  { %v1215_v35 = vcombine.high %v1213_v27, %v1213_v27  ;;  %1285 = vst [vmem:[#allocation6 + $0x4] sm:$0x3] %v1214_v28  ;;  %v1216_v36 = vcombine.high %v1174_v29, %v1174_v29  ;;  %v1223_v9 = vrot.slane %v1174_v29, %v11870_v40  ;;  %7665 = vst.sshfl [vmem:[#allocation6 + $0xa] sm:$0x3 pattern:$0x76325410] %v1174_v29 }
 0x2d0   :  { %v1045_v15 = vmax.f32 %v909_v24, %v1035_v30  ;;  %v7841_v21 = vadd.f32 %v7840_v34, %v7839_v31 }
 0x2d1   :  { %1287 = vst [vmem:[#allocation6 + $0x8] sm:$0x3] %v1215_v35  ;;  %v1230_v22 = vrot.slane %v1216_v36, %v11870_v40  ;;  %v1231_v37 = vcombine.high %v1223_v9, %v1223_v9  ;;  %7666 = vst.sshfl [vmem:[#allocation6 + $0xe] sm:$0x3 pattern:$0x76325410] %v1216_v36 }
 0x2d2   :  { %v1175_v38 = vmax.f32 %v1045_v15, %v1165_v33  ;;  %v1301_v42 = vld [vmem:[#allocation6 + $0x2] sm:$0x3]  ;;  %v1040_v43 = vadd.f32 %v7841_v21, %v7628_v6 }
 0x2d3   :  { %v1232_v44 = vcombine.high %v1230_v22, %v1230_v22  ;;  %1289 = vst [vmem:[#allocation6 + $0xc] sm:$0x3] %v1231_v37  ;;  %v1317_v50 = vmax.f32 %v1300_v41, %v1301_v42 }
 0x2d4   :  { %v1233_v45 = vcombine.high %v1175_v38, %v1175_v38  ;;  %v1240_v46 = vrot.slane %v1175_v38, %v11870_v40  ;;  %7667 = vst.sshfl [vmem:[#allocation6 + $0x12] sm:$0x3 pattern:$0x76325410] %v1175_v38  ;;  %v1046_v49 = vmax.f32 %v914_v39, %v1040_v43  ;;  %v1303_v53 = vld [vmem:[#allocation6 + $0x6] sm:$0x3] }
 0x2d5   :  { %1291 = vst [vmem:[#allocation6 + $0x10] sm:$0x3] %v1232_v44 }
 0x2d6   :  { %v1247_v51 = vrot.slane %v1233_v45, %v11870_v40  ;;  %v1248_v52 = vcombine.high %v1240_v46, %v1240_v46  ;;  %7668 = vst.sshfl [vmem:[#allocation6 + $0x16] sm:$0x3 pattern:$0x76325410] %v1233_v45  ;;  %v1302_v55 = vld [vmem:[#allocation6 + $0x4] sm:$0x3]  ;;  %v1176_v56 = vmax.f32 %v1046_v49, %v1170_v48 }
 0x2d7   :  { %v12358_v57 = vmax.f32 %v1317_v50, %v1302_v55  ;;  %v1318_v58 = vmax.f32 %v1302_v55, %v1303_v53  ;;  %v1305_v4 = vld [vmem:[#allocation6 + $0xa] sm:$0x3]  ;;  %v1351_v49 = vld [vmem:[#allocation3] sm:$0x3] }
 0x2d8   :  { %v1249_v59 = vcombine.high %v1247_v51, %v1247_v51  ;;  %1293 = vst [vmem:[#allocation6 + $0x14] sm:$0x3] %v1248_v52  ;;  %v1304_v62 = vld [vmem:[#allocation6 + $0x8] sm:$0x3]  ;;  %v1250_v5 = vcombine.high %v1176_v56, %v1176_v56  ;;  %v1257_v47 = vrot.slane %v1176_v56, %v11870_v40  ;;  %v1307_v26 = vld [vmem:[#allocation6 + $0xe] sm:$0x3] }
 0x2d9   :  { %7669 = vst.sshfl [vmem:[#allocation6 + $0x1a] sm:$0x3 pattern:$0x76325410] %v1176_v56  ;;  %v1333_v6 = vmax.f32 %v12358_v57, 0.0  ;;  %v1319_v10 = vmax.f32 %v1304_v62, %v1305_v4  ;;  %v12362_v11 = vmax.f32 %v1318_v58, %v1304_v62  ;;  %v1363_v62 = vld [vmem:[#allocation12 + $0x10] sm:$0xff] }
 0x2da   :  { %1295 = vst [vmem:[#allocation6 + $0x18] sm:$0x3] %v1249_v59  ;;  %v1306_v12 = vld [vmem:[#allocation6 + $0xc] sm:$0x3]  ;;  %v1264_v13 = vrot.slane %v1250_v5, %v11870_v40  ;;  %v1265_v54 = vcombine.high %v1257_v47, %v1257_v47  ;;  %v1364_v4 = vld [vmem:[#allocation12 + $0x18] sm:$0xff] }
 0x2db   :  { %7670 = vst.sshfl [vmem:[#allocation6 + $0x1e] sm:$0x3 pattern:$0x76325410] %v1250_v5  ;;  %1343 = vst [vmem:[#allocation3 + $0x2] sm:$0x3] %v1333_v6  ;;  %v12365_v63 = vmax.f32 %v1319_v10, %v1306_v12  ;;  %v1320_v16 = vmax.f32 %v1306_v12, %v1307_v26  ;;  %v10076_v12 = vpack.c.bf16 %v1364_v4, %v1363_v62 }
 0x2dc   :  { %v1334_v14 = vmax.f32 %v12362_v11, 0.0  ;;  %v1308_v17 = vld [vmem:[#allocation6 + $0x10] sm:$0x3]  ;;  %v1309_v18 = vld [vmem:[#allocation6 + $0x12] sm:$0x3]  ;;  %v1266_v19 = vcombine.high %v1264_v13, %v1264_v13  ;;  %v1365_v13 = vld [vmem:[#allocation12 + $0x20] sm:$0xff] }
 0x2dd   :  { %1297 = vst [vmem:[#allocation6 + $0x1c] sm:$0x3] %v1265_v54  ;;  %v1335_v20 = vmax.f32 %v12365_v63, 0.0  ;;  %v1321_v0 = vmax.f32 %v1308_v17, %v1309_v18  ;;  %v12369_v25 = vmax.f32 %v1320_v16, %v1308_v17  ;;  %v1311_v3 = vld [vmem:[#allocation6 + $0x16] sm:$0x3]  ;;  %v1366_v54 = vld [vmem:[#allocation12 + $0x28] sm:$0xff] }
 0x2de   :  { %1344 = vst [vmem:[#allocation3 + $0x4] sm:$0x3] %v1334_v14  ;;  %1299 = vst [vmem:[#allocation6 + $0x20] sm:$0x3] %v1266_v19  ;;  %v10080_v14 = vpack.c.bf16 %v1366_v54, %v1365_v13  ;;  %v1367_v16 = vld [vmem:[#allocation12 + $0x30] sm:$0xff]  ;;  %v1368_v17 = vld [vmem:[#allocation12 + $0x38] sm:$0xff] }
 0x2df   :  { %v1310_v60 = vld [vmem:[#allocation6 + $0x14] sm:$0x3]  ;;  %1345 = vst [vmem:[#allocation3 + $0x6] sm:$0x3] %v1335_v20  ;;  %v1336_v8 = vmax.f32 %v12369_v25, 0.0  ;;  %v10084_v18 = vpack.c.bf16 %v1368_v17, %v1367_v16  ;;  %v1369_v19 = vld [vmem:[#allocation12 + $0x40] sm:$0xff] }
 0x2e0   :  { %v12371_v7 = vmax.f32 %v1321_v0, %v1310_v60  ;;  %v1322_v23 = vmax.f32 %v1310_v60, %v1311_v3  ;;  %v1313_v27 = vld [vmem:[#allocation6 + $0x1a] sm:$0x3]  ;;  %v1370_v20 = vld [vmem:[#allocation12 + $0x48] sm:$0xff]  ;;  %v1372_v3 = vld [vmem:[#allocation12 + $0x58] sm:$0xff] }
 0x2e1   :  { %v1312_v24 = vld [vmem:[#allocation6 + $0x18] sm:$0x3]  ;;  %1346 = vst [vmem:[#allocation3 + $0x8] sm:$0x3] %v1336_v8  ;;  %v10088_v0 = vpack.c.bf16 %v1370_v20, %v1369_v19  ;;  %v1639_v62 = vld [vmem:[#allocation12 + $0x168] sm:$0xff]  ;;  %v1834_v54 = vld [vmem:[#allocation12 + $0x220] sm:$0xff] }
 0x2e2   :  { %v1337_v28 = vmax.f32 %v12371_v7, 0.0  ;;  %v1323_v29 = vmax.f32 %v1312_v24, %v1313_v27  ;;  %v12375_v30 = vmax.f32 %v1322_v23, %v1312_v24  ;;  %v1315_v33 = vld [vmem:[#allocation6 + $0x1e] sm:$0x3]  ;;  %v1352_v37 = vld [vmem:[#allocation3 + $0x2] sm:$0x3]  ;;  %v1373_v23 = vld [vmem:[#allocation12 + $0x60] sm:$0xff] }
 0x2e3   :  { %v1514_v56 = vcombine.low %v1351_v49, %v1352_v37  ;;  %v1371_v60 = vld [vmem:[#allocation12 + $0x50] sm:$0xff]  ;;  %v1838_v20 = vld [vmem:[#allocation12 + $0x240] sm:$0xff] }
 0x2e4   :  { %1347 = vst [vmem:[#allocation3 + $0xa] sm:$0x3] %v1337_v28  ;;  %v1314_v31 = vld [vmem:[#allocation6 + $0x1c] sm:$0x3]  ;;  %v1338_v34 = vmax.f32 %v12375_v30, 0.0  ;;  %v10092_v8 = vpack.c.bf16 %v1372_v3, %v1371_v60  ;;  %v1375_v27 = vld [vmem:[#allocation12 + $0x70] sm:$0xff] }
 0x2e5   :  { %v1324_v35 = vmax.f32 %v1314_v31, %v1315_v33  ;;  %v12378_v36 = vmax.f32 %v1323_v29, %v1314_v31  ;;  %v1353_v9 = vld [vmem:[#allocation3 + $0x4] sm:$0x3]  ;;  %v1316_v15 = vld [vmem:[#allocation6 + $0x20] sm:$0x3]  ;;  %v1522_v6 = vrot.slane %v1514_v56, %v11870_v40  ;;  %v1836_v17 = vld [vmem:[#allocation12 + $0x230] sm:$0xff] }
 0x2e6   :  { %1348 = vst [vmem:[#allocation3 + $0xc] sm:$0x3] %v1338_v34  ;;  %v1402_v38 = vcombine.low %v1352_v37, %v1353_v9  ;;  %v1354_v41 = vld [vmem:[#allocation3 + $0x6] sm:$0x3]  ;;  %v1626_v34 = vld [vmem:[#allocation12 + $0x100] sm:$0xff]  ;;  %v1628_v37 = vld [vmem:[#allocation12 + $0x110] sm:$0xff] }
 0x2e7   :  { %v12380_v21 = vmax.f32 %v1324_v35, %v1316_v15  ;;  %v1339_v22 = vmax.f32 %v12378_v36, 0.0  ;;  %v1515_v51 = vcombine.low %v1353_v9, %v1354_v41  ;;  %v1376_v28 = vld [vmem:[#allocation12 + $0x78] sm:$0xff]  ;;  %v1627_v35 = vld [vmem:[#allocation12 + $0x108] sm:$0xff]  ;;  %v1840_v60 = vld [vmem:[#allocation12 + $0x250] sm:$0xff] }
 0x2e8   :  { %v12384_v42 = vld [vmem:[#allocation3 + $0x8] sm:$0x3]  ;;  %v1410_v44 = vrot.slane %v1402_v38, %v11870_v40  ;;  %v10100_v29 = vpack.c.bf16 %v1376_v28, %v1375_v27  ;;  %v10104_v15 = vpack.c.bf16 %v1627_v35, %v1626_v34  ;;  %v1844_v27 = vld [vmem:[#allocation12 + $0x270] sm:$0xff]  ;;  %v2290_v35 = vld [vmem:[#allocation12 + $0x380] sm:$0xff] }
 0x2e9   :  { %v1340_v39 = vmax.f32 %v12380_v21, 0.0  ;;  %1349 = vst [vmem:[#allocation3 + $0xe] sm:$0x3] %v1339_v22  ;;  %v1403_v43 = vcombine.low %v1354_v41, %v12384_v42  ;;  %v1529_v59 = vrot.slane %v1515_v51, %v11870_v40  ;;  %v1629_v38 = vld [vmem:[#allocation12 + $0x118] sm:$0xff]  ;;  %v1635_v51 = vld [vmem:[#allocation12 + $0x148] sm:$0xff] }
 0x2ea   :  { %v10108_v41 = vpack.c.bf16 %v1629_v38, %v1628_v37  ;;  %v1637_v56 = vld [vmem:[#allocation12 + $0x158] sm:$0xff] }
 0x2eb   :  { %1350 = vst [vmem:[#allocation3 + $0x10] sm:$0x3] %v1340_v39  ;;  %v1417_v45 = vrot.slane %v1403_v43, %v11870_v40  ;;  %v1356_v50 = vld [vmem:[#allocation3 + $0xa] sm:$0x3]  ;;  %v1530_v26 = vcombine.low %v1522_v6, %v1529_v59  ;;  %v1360_v6 = vld [vmem:[#allocation3 + $0x12] sm:$0x3] }
 0x2ec   :  { %v1531_v33 = vcombine.low %v12384_v42, %v1356_v50  ;;  %v1841_v3 = vld [vmem:[#allocation12 + $0x258] sm:$0xff] }
 0x2ed   :  { %v1418_v46 = vcombine.low %v1410_v44, %v1417_v45  ;;  %v1357_v48 = vld [vmem:[#allocation3 + $0xc] sm:$0x3]  ;;  %v1631_v45 = vld [vmem:[#allocation12 + $0x128] sm:$0xff]  ;;  %v1845_v28 = vld [vmem:[#allocation12 + $0x278] sm:$0xff] }
 0x2ee   :  { %v1419_v52 = vcombine.low %v1356_v50, %v1357_v48  ;;  %v1539_v22 = vrot.slane %v1531_v33, %v11870_v40  ;;  %v1630_v44 = vld [vmem:[#allocation12 + $0x120] sm:$0xff]  ;;  %v1814_v33 = vld [vmem:[#allocation12 + $0x188] sm:$0xff] }
 0x2ef   :  { %8662 = vmatprep.mubr.f32.mxu1 %v1418_v46  ;;  %v10112_v42 = vpack.c.bf16 %v1631_v45, %v1630_v44  ;;  %v1632_v46 = vld [vmem:[#allocation12 + $0x130] sm:$0xff]  ;;  %v1634_v50 = vld [vmem:[#allocation12 + $0x140] sm:$0xff] }
 0x2f0   :  { %v1358_v55 = vld [vmem:[#allocation3 + $0xe] sm:$0x3]  ;;  %v1427_v5 = vrot.slane %v1419_v52, %v11870_v40  ;;  %v1643_v43 = vcombine.low %v1529_v59, %v1539_v22  ;;  %v10120_v52 = vpack.c.bf16 %v1635_v51, %v1634_v50 }
 0x2f1   :  { %v1532_v31 = vcombine.low %v1357_v48, %v1358_v55  ;;  %v1633_v48 = vld [vmem:[#allocation12 + $0x138] sm:$0xff]  ;;  %v1638_v59 = vld [vmem:[#allocation12 + $0x160] sm:$0xff] }
 0x2f2   :  { %v12389_v53 = vld [vmem:[#allocation3 + $0x10] sm:$0x3]  ;;  %v10116_v49 = vpack.c.bf16 %v1633_v48, %v1632_v46  ;;  %v10128_v4 = vpack.c.bf16 %v1639_v62, %v1638_v59 }
 0x2f3   :  { %v1420_v58 = vcombine.low %v1358_v55, %v12389_v53  ;;  %v1546_v9 = vrot.slane %v1532_v31, %v11870_v40  ;;  %v1636_v55 = vld [vmem:[#allocation12 + $0x150] sm:$0xff]  ;;  %v1813_v31 = vld [vmem:[#allocation12 + $0x180] sm:$0xff] }
 0x2f4   :  { %v12402_v34 = vpack.c.bf16 %v1814_v33, %v1813_v31 }
 0x2f5   :  { %v1434_v47 = vrot.slane %v1420_v58, %v11870_v40  ;;  %v1547_v39 = vcombine.low %v1539_v22, %v1546_v9  ;;  %v10124_v58 = vpack.c.bf16 %v1637_v56, %v1636_v55  ;;  %v7671_v22 = vld [vmem:[%s13220_s6] ss:$0 sm:$0xff] }
 0x2f7   :  { %v1435_v10 = vcombine.low %v1427_v5, %v1434_v47  ;;  %v1640_v5 = vld [vmem:[#allocation12 + $0x170] sm:$0xff]  ;;  %v1641_v47 = vld [vmem:[#allocation12 + $0x178] sm:$0xff] }
 0x2f9   :  { %8663 = vmatmul.mubr.f32.vlgmr.msra.gmra.mrb[16].mxu1 %v1435_v10  ;;  %v10132_v10 = vpack.c.bf16 %v1641_v47, %v1640_v5 }
 0x2fa   :  { %10075 = vmatpush3.bf16.msra.mxu1 %v12337_v32  ;;  %8697 = vmatprep.mubr.f32.mxu1 %v1530_v26  ;;  %v1374_v32 = vld [vmem:[#allocation12 + $0x68] sm:$0xff] }
 0x2fb   :  { %10077 = vmatprep.subr.bf16.mxu1 %v10076_v12  ;;  %v10096_v24 = vpack.c.bf16 %v1374_v32, %v1373_v23  ;;  %v1842_v23 = vld [vmem:[#allocation12 + $0x260] sm:$0xff]  ;;  %v1843_v32 = vld [vmem:[#allocation12 + $0x268] sm:$0xff] }
 0x2fe   :  { %10079 = vmatpush3.bf16.msra.mxu1 %v10076_v12  ;;  %v1644_v12 = vcombine.low %v12389_v53, %v1360_v6 }
 0x2ff   :  { %10081 = vmatprep.subr.bf16.mxu1 %v10080_v14 }
 0x300   :  { %v1651_v26 = vrot.slane %v1644_v12, %v11870_v40 }
 0x302   :  { %10083 = vmatpush3.bf16.msra.mxu1 %v10080_v14  ;;  %v1652_v13 = vcombine.low %v1546_v9, %v1651_v26  ;;  %v1835_v14 = vld [vmem:[#allocation12 + $0x228] sm:$0xff] }
 0x303   :  { %10085 = vmatprep.subr.bf16.mxu1 %v10084_v18  ;;  %v10144_v16 = vpack.c.bf16 %v1835_v14, %v1834_v54  ;;  %v2291_v9 = vld [vmem:[#allocation12 + $0x388] sm:$0xff] }
 0x305   :  { %10145 = vmatprep.subr.bf16.mxu0 %v10144_v16 }
 0x306   :  { %10087 = vmatpush3.bf16.msra.mxu1 %v10084_v18  ;;  %10147 = vmatpush3.bf16.msra.mxu0 %v10144_v16  ;;  %v1837_v18 = vld [vmem:[#allocation12 + $0x238] sm:$0xff] }
 0x307   :  { %10089 = vmatprep.subr.bf16.mxu1 %v10088_v0  ;;  %v10148_v19 = vpack.c.bf16 %v1837_v18, %v1836_v17 }
 0x309   :  { %10149 = vmatprep.subr.bf16.mxu0 %v10148_v19 }
 0x30a   :  { %10091 = vmatpush3.bf16.msra.mxu1 %v10088_v0  ;;  %10151 = vmatpush3.bf16.msra.mxu0 %v10148_v19  ;;  %v1839_v0 = vld [vmem:[#allocation12 + $0x248] sm:$0xff] }
 0x30b   :  { %10093 = vmatprep.subr.bf16.mxu1 %v10092_v8  ;;  %v10152_v53 = vpack.c.bf16 %v1839_v0, %v1838_v20 }
 0x30d   :  { %10153 = vmatprep.subr.bf16.mxu0 %v10152_v53 }
 0x30e   :  { %10095 = vmatpush3.bf16.msra.mxu1 %v10092_v8  ;;  %10155 = vmatpush3.bf16.msra.mxu0 %v10152_v53  ;;  %v10156_v8 = vpack.c.bf16 %v1841_v3, %v1840_v60 }
 0x30f   :  { %10097 = vmatprep.subr.bf16.mxu1 %v10096_v24 }
 0x310   :  { %10157 = vmatprep.subr.bf16.mxu0 %v10156_v8 }
 0x312   :  { %10099 = vmatpush3.bf16.msra.mxu1 %v10096_v24  ;;  %v10160_v24 = vpack.c.bf16 %v1843_v32, %v1842_v23  ;;  %10159 = vmatpush3.bf16.msra.mxu0 %v10156_v8 }
 0x313   :  { %10101 = vmatprep.subr.bf16.mxu1 %v10100_v29 }
 0x314   :  { %10161 = vmatprep.subr.bf16.mxu0 %v10160_v24 }
 0x316   :  { %10103 = vmatpush3.bf16.msra.mxu1 %v10100_v29  ;;  %v10164_v29 = vpack.c.bf16 %v1845_v28, %v1844_v27  ;;  %10163 = vmatpush3.bf16.msra.mxu0 %v10160_v24  ;;  %v1815_v24 = vld [vmem:[#allocation12 + $0x190] sm:$0xff]  ;;  %v1816_v27 = vld [vmem:[#allocation12 + $0x198] sm:$0xff] }
 0x317   :  { %10105 = vmatprep.subr.bf16.mxu1 %v10104_v15 }
 0x318   :  { %10165 = vmatprep.subr.bf16.mxu0 %v10164_v29 }
 0x319   :  { %8698 = vmatmul.mubr.f32.vlgmr.msra.gmra.mrb[16].mxu1 %v1547_v39 }
 0x31a   :  { %10107 = vmatpush3.bf16.msra.mxu1 %v10104_v15  ;;  %8732 = vmatprep.mubr.f32.mxu1 %v1643_v43  ;;  %v10232_v15 = vpack.c.bf16 %v2291_v9, %v2290_v35  ;;  %v10172_v35 = vpack.c.bf16 %v1816_v27, %v1815_v24  ;;  %v2091_v24 = vld [vmem:[#allocation12 + $0x2e8] sm:$0xff] }
 0x31b   :  { %10109 = vmatprep.subr.bf16.mxu1 %v10108_v41  ;;  %10167 = vmatpush3.bf16.msra.mxu0 %v10164_v29 }
 0x31c   :  { %10169 = vmatprep.subr.bf16.mxu0 %v12402_v34 }
 0x31e   :  { %10111 = vmatpush3.bf16.msra.mxu1 %v10108_v41 }
 0x31f   :  { %10113 = vmatprep.subr.bf16.mxu1 %v10112_v42 }
 0x322   :  { %10115 = vmatpush3.bf16.msra.mxu1 %v10112_v42 }
 0x323   :  { %10117 = vmatprep.subr.bf16.mxu1 %v10116_v49 }
 0x326   :  { %10119 = vmatpush3.bf16.msra.mxu1 %v10116_v49 }
 0x327   :  { %10121 = vmatprep.subr.bf16.mxu1 %v10120_v52 }
 0x32a   :  { %10123 = vmatpush3.bf16.msra.mxu1 %v10120_v52 }
 0x32b   :  { %10125 = vmatprep.subr.bf16.mxu1 %v10124_v58 }
 0x32e   :  { %10127 = vmatpush3.bf16.msra.mxu1 %v10124_v58 }
 0x32f   :  { %10129 = vmatprep.subr.bf16.mxu1 %v10128_v4 }
 0x332   :  { %10131 = vmatpush3.bf16.msra.mxu1 %v10128_v4 }
 0x333   :  { %10133 = vmatprep.subr.bf16.mxu1 %v10132_v10 }
 0x336   :  { %10135 = vmatpush3.bf16.msra.mxu1 %v10132_v10  ;;  %v1802_v10 = vld [vmem:[#allocation3] sm:$0x3] }
 0x337   :  { %10233 = vmatprep.subr.bf16.mxu1 %v10232_v15 }
 0x339   :  { %8733 = vmatmul.mubr.f32.vlgmr.msra.gmra.mrb[16].mxu1 %v1652_v13 }
 0x33a   :  { %10235 = vmatpush3.bf16.msra.mxu1 %v10232_v15  ;;  %v1817_v15 = vld [vmem:[#allocation12 + $0x1a0] sm:$0xff] }
 0x40c   :  { %v8734_v37 = vpop.f32.mrb[16].mxu1 }
 0x40d   :  { %v1739_v38 = vadd.f32 %v8734_v37, %v7671_v22  ;;  %v1721_v39 = vpop.f32.mrb[17].mxu1 }
 0x40e   :  { %v1738_v41 = vadd.f32 %v7671_v22, %v1721_v39  ;;  %v1818_v22 = vld [vmem:[#allocation12 + $0x1a8] sm:$0xff]  ;;  %v1820_v39 = vld [vmem:[#allocation12 + $0x1b8] sm:$0xff] }
 0x40f   :  { %v1759_v43 = vcombine.high %v1739_v38, %v1739_v38  ;;  %v1766_v44 = vrot.slane %v1739_v38, %v11870_v40  ;;  %v10176_v37 = vpack.c.bf16 %v1818_v22, %v1817_v15  ;;  %v1819_v38 = vld [vmem:[#allocation12 + $0x1b0] sm:$0xff] }
 0x410   :  { %v1742_v45 = vcombine.high %v1738_v41, %v1738_v41  ;;  %v1749_v42 = vrot.slane %v1738_v41, %v11870_v40  ;;  %v10180_v41 = vpack.c.bf16 %v1820_v39, %v1819_v38  ;;  %v2292_v22 = vld [vmem:[#allocation12 + $0x390] sm:$0xff]  ;;  %v2294_v39 = vld [vmem:[#allocation12 + $0x3a0] sm:$0xff] }
 0x411   :  { %v1773_v46 = vrot.slane %v1759_v43, %v11870_v40  ;;  %v1774_v48 = vcombine.high %v1766_v44, %v1766_v44  ;;  %v1788_v49 = vmax.f32 %v1766_v44, 0.0  ;;  %v1821_v43 = vld [vmem:[#allocation12 + $0x1c0] sm:$0xff]  ;;  %v1822_v44 = vld [vmem:[#allocation12 + $0x1c8] sm:$0xff] }
 0x412   :  { %v1756_v50 = vrot.slane %v1742_v45, %v11870_v40  ;;  %v1757_v51 = vcombine.high %v1749_v42, %v1749_v42  ;;  %v1784_v52 = vmax.f32 %v1749_v42, 0.0  ;;  %v10184_v45 = vpack.c.bf16 %v1822_v44, %v1821_v43  ;;  %v1823_v42 = vld [vmem:[#allocation12 + $0x1d0] sm:$0xff] }
 0x413   :  { %v1775_v55 = vcombine.high %v1773_v46, %v1773_v46  ;;  %v1789_v56 = vmax.f32 %v1774_v48, 0.0  ;;  %v1790_v58 = vmax.f32 %v1773_v46, 0.0  ;;  %1798 = vst [vmem:[#allocation3 + $0xa] sm:$0x3] %v1788_v49  ;;  %v1824_v46 = vld [vmem:[#allocation12 + $0x1d8] sm:$0xff]  ;;  %v1825_v49 = vld [vmem:[#allocation12 + $0x1e0] sm:$0xff] }
 0x414   :  { %v1758_v59 = vcombine.high %v1756_v50, %v1756_v50  ;;  %v1785_v62 = vmax.f32 %v1757_v51, 0.0  ;;  %v1786_v4 = vmax.f32 %v1756_v50, 0.0  ;;  %1794 = vst [vmem:[#allocation3 + $0x2] sm:$0x3] %v1784_v52  ;;  %v10188_v48 = vpack.c.bf16 %v1824_v46, %v1823_v42  ;;  %v1827_v51 = vld [vmem:[#allocation12 + $0x1f0] sm:$0xff]  ;;  %v1828_v52 = vld [vmem:[#allocation12 + $0x1f8] sm:$0xff] }
 0x415   :  { %v1791_v5 = vmax.f32 %v1775_v55, 0.0  ;;  %1799 = vst [vmem:[#allocation3 + $0xc] sm:$0x3] %v1789_v56  ;;  %1800 = vst [vmem:[#allocation3 + $0xe] sm:$0x3] %v1790_v58  ;;  %v10196_v55 = vpack.c.bf16 %v1828_v52, %v1827_v51  ;;  %v2078_v58 = vld [vmem:[#allocation12 + $0x280] sm:$0xff] }
 0x416   :  { %v1787_v47 = vmax.f32 %v1758_v59, 0.0  ;;  %1795 = vst [vmem:[#allocation3 + $0x4] sm:$0x3] %v1785_v62  ;;  %1796 = vst [vmem:[#allocation3 + $0x6] sm:$0x3] %v1786_v4  ;;  %v2079_v59 = vld [vmem:[#allocation12 + $0x288] sm:$0xff] }
 0x417   :  { %1801 = vst [vmem:[#allocation3 + $0x10] sm:$0x3] %v1791_v5  ;;  %v10200_v5 = vpack.c.bf16 %v2079_v59, %v2078_v58  ;;  %v2296_v44 = vld [vmem:[#allocation12 + $0x3b0] sm:$0xff]  ;;  %v2298_v42 = vld [vmem:[#allocation12 + $0x3c0] sm:$0xff]  ;;  %v2299_v46 = vld [vmem:[#allocation12 + $0x3c8] sm:$0xff] }
 0x418   :  { %1797 = vst [vmem:[#allocation3 + $0x8] sm:$0x3] %v1787_v47  ;;  %v2080_v47 = vld [vmem:[#allocation12 + $0x290] sm:$0xff]  ;;  %v2302_v51 = vld [vmem:[#allocation12 + $0x3e0] sm:$0xff]  ;;  %v2303_v52 = vld [vmem:[#allocation12 + $0x3e8] sm:$0xff] }
 0x419   :  { %v2305_v58 = vld [vmem:[#allocation12 + $0x3f8] sm:$0xff] }
 0x41a   :  { %v1807_v14 = vld [vmem:[#allocation3 + $0xa] sm:$0x3] }
 0x41b   :  { %v1803_v12 = vld [vmem:[#allocation3 + $0x2] sm:$0x3] }
 0x41c   :  { %v12412_v6 = vld [vmem:[#allocation3 + $0xc] sm:$0x3]  ;;  %v12414_v16 = vld [vmem:[#allocation3 + $0xe] sm:$0x3]  ;;  %v1966_v60 = vcombine.low %v1802_v10, %v1803_v12  ;;  %v2081_v10 = vld [vmem:[#allocation12 + $0x298] sm:$0xff] }
 0x41d   :  { %v1804_v26 = vld [vmem:[#allocation3 + $0x4] sm:$0x3]  ;;  %v1805_v13 = vld [vmem:[#allocation3 + $0x6] sm:$0x3]  ;;  %v1871_v20 = vcombine.low %v1807_v14, %v12412_v6  ;;  %v1984_v62 = vcombine.low %v12412_v6, %v12414_v16 }
 0x41e   :  { %v1854_v54 = vcombine.low %v1803_v12, %v1804_v26  ;;  %v12416_v17 = vld [vmem:[#allocation3 + $0x10] sm:$0x3]  ;;  %v1967_v18 = vcombine.low %v1804_v26, %v1805_v13  ;;  %v1974_v31 = vrot.slane %v1966_v60, %v11870_v40 }
 0x41f   :  { %v1806_v19 = vld [vmem:[#allocation3 + $0x8] sm:$0x3]  ;;  %v1872_v0 = vcombine.low %v12414_v16, %v12416_v17  ;;  %v1879_v28 = vrot.slane %v1871_v20, %v11870_v40  ;;  %v1998_v12 = vrot.slane %v1984_v62, %v11870_v40  ;;  %v2084_v16 = vld [vmem:[#allocation12 + $0x2b0] sm:$0xff]  ;;  %v2273_v62 = vld [vmem:[#allocation12 + $0x300] sm:$0xff] }
 0x420   :  { %v1855_v53 = vcombine.low %v1805_v13, %v1806_v19  ;;  %v1862_v8 = vrot.slane %v1854_v54, %v11870_v40  ;;  %v1981_v32 = vrot.slane %v1967_v18, %v11870_v40  ;;  %v1983_v56 = vcombine.low %v1806_v19, %v1807_v14  ;;  %v2082_v14 = vld [vmem:[#allocation12 + $0x2a0] sm:$0xff]  ;;  %v2083_v18 = vld [vmem:[#allocation12 + $0x2a8] sm:$0xff]  ;;  %v2085_v19 = vld [vmem:[#allocation12 + $0x2b8] sm:$0xff] }
 0x421   :  { %v1886_v3 = vrot.slane %v1872_v0, %v11870_v40  ;;  %v10204_v13 = vpack.c.bf16 %v2081_v10, %v2080_v47  ;;  %v10208_v6 = vpack.c.bf16 %v2083_v18, %v2082_v14  ;;  %v10212_v20 = vpack.c.bf16 %v2085_v19, %v2084_v16  ;;  %v2086_v0 = vld [vmem:[#allocation12 + $0x2c0] sm:$0xff]  ;;  %v2743_v10 = vld [vmem:[#allocation12 + $0x508] sm:$0xff]  ;;  %v7673_v14 = vld [vmem:[%s13220_s6 + $0x1] ss:$0 sm:$0xff] }
 0x422   :  { %v1869_v23 = vrot.slane %v1855_v53, %v11870_v40  ;;  %v1982_v9 = vcombine.low %v1974_v31, %v1981_v32  ;;  %v1991_v4 = vrot.slane %v1983_v56, %v11870_v40  ;;  %v2087_v53 = vld [vmem:[#allocation12 + $0x2c8] sm:$0xff]  ;;  %v1811_v31 = vld [vmem:[#allocation3 + $0x12] sm:$0x3]  ;;  %v2304_v56 = vld [vmem:[#allocation12 + $0x3f0] sm:$0xff] }
 0x423   :  { %v1887_v33 = vcombine.low %v1879_v28, %v1886_v3  ;;  %v10216_v60 = vpack.c.bf16 %v2087_v53, %v2086_v0  ;;  %v2088_v3 = vld [vmem:[#allocation12 + $0x2d0] sm:$0xff]  ;;  %v10260_v59 = vpack.c.bf16 %v2305_v58, %v2304_v56  ;;  %v2742_v47 = vld [vmem:[#allocation12 + $0x500] sm:$0xff] }
 0x424   :  { %v1870_v29 = vcombine.low %v1862_v8, %v1869_v23  ;;  %v1999_v26 = vcombine.low %v1991_v4, %v1998_v12  ;;  %v2095_v54 = vcombine.low %v1981_v32, %v1991_v4  ;;  %v2089_v8 = vld [vmem:[#allocation12 + $0x2d8] sm:$0xff]  ;;  %v2090_v32 = vld [vmem:[#allocation12 + $0x2e0] sm:$0xff]  ;;  %v2092_v28 = vld [vmem:[#allocation12 + $0x2f0] sm:$0xff] }
 0x425   :  { %v10220_v23 = vpack.c.bf16 %v2089_v8, %v2088_v3  ;;  %v10224_v27 = vpack.c.bf16 %v2091_v24, %v2090_v32  ;;  %v2274_v4 = vld [vmem:[#allocation12 + $0x308] sm:$0xff] }
 0x426   :  { %8767 = vmatprep.mubr.f32.mxu0 %v1870_v29  ;;  %v2093_v29 = vld [vmem:[#allocation12 + $0x2f8] sm:$0xff] }
 0x427   :  { %8768 = vmatmul.mubr.f32.vlgmr.msra.gmra.mrb[16].mxu0 %v1887_v33  ;;  %v10228_v33 = vpack.c.bf16 %v2093_v29, %v2092_v28 }
 0x428   :  { %10171 = vmatpush3.bf16.msra.mxu0 %v12402_v34  ;;  %8802 = vmatprep.mubr.f32.mxu0 %v1982_v9  ;;  %v1826_v34 = vld [vmem:[#allocation12 + $0x1e8] sm:$0xff] }
 0x429   :  { %10173 = vmatprep.subr.bf16.mxu0 %v10172_v35  ;;  %v10192_v50 = vpack.c.bf16 %v1826_v34, %v1825_v49  ;;  %v2300_v49 = vld [vmem:[#allocation12 + $0x3d0] sm:$0xff]  ;;  %v2301_v34 = vld [vmem:[#allocation12 + $0x3d8] sm:$0xff] }
 0x42c   :  { %10175 = vmatpush3.bf16.msra.mxu0 %v10172_v35  ;;  %v2096_v35 = vcombine.low %v12416_v17, %v1811_v31 }
 0x42d   :  { %10177 = vmatprep.subr.bf16.mxu0 %v10176_v37 }
 0x42e   :  { %v2103_v9 = vrot.slane %v2096_v35, %v11870_v40 }
 0x430   :  { %10179 = vmatpush3.bf16.msra.mxu0 %v10176_v37  ;;  %v2104_v15 = vcombine.low %v1998_v12, %v2103_v9  ;;  %v2293_v37 = vld [vmem:[#allocation12 + $0x398] sm:$0xff]  ;;  %v2744_v12 = vld [vmem:[#allocation12 + $0x510] sm:$0xff] }
 0x431   :  { %10181 = vmatprep.subr.bf16.mxu0 %v10180_v41  ;;  %v10236_v38 = vpack.c.bf16 %v2293_v37, %v2292_v22 }
 0x433   :  { %10237 = vmatprep.subr.bf16.mxu1 %v10236_v38 }
 0x434   :  { %10183 = vmatpush3.bf16.msra.mxu0 %v10180_v41  ;;  %10239 = vmatpush3.bf16.msra.mxu1 %v10236_v38  ;;  %v2295_v41 = vld [vmem:[#allocation12 + $0x3a8] sm:$0xff] }
 0x435   :  { %10185 = vmatprep.subr.bf16.mxu0 %v10184_v45  ;;  %v10240_v43 = vpack.c.bf16 %v2295_v41, %v2294_v39  ;;  %v2262_v39 = vld [vmem:[#allocation3] sm:$0x3] }
 0x437   :  { %10241 = vmatprep.subr.bf16.mxu1 %v10240_v43 }
 0x438   :  { %10187 = vmatpush3.bf16.msra.mxu0 %v10184_v45  ;;  %10243 = vmatpush3.bf16.msra.mxu1 %v10240_v43  ;;  %v2297_v45 = vld [vmem:[#allocation12 + $0x3b8] sm:$0xff] }
 0x439   :  { %10189 = vmatprep.subr.bf16.mxu0 %v10188_v48  ;;  %v10244_v17 = vpack.c.bf16 %v2297_v45, %v2296_v44 }
 0x43b   :  { %10245 = vmatprep.subr.bf16.mxu1 %v10244_v17 }
 0x43c   :  { %10191 = vmatpush3.bf16.msra.mxu0 %v10188_v48  ;;  %10247 = vmatpush3.bf16.msra.mxu1 %v10244_v17  ;;  %v10248_v48 = vpack.c.bf16 %v2299_v46, %v2298_v42 }
 0x43d   :  { %10193 = vmatprep.subr.bf16.mxu0 %v10192_v50 }
 0x43e   :  { %10249 = vmatprep.subr.bf16.mxu1 %v10248_v48 }
 0x440   :  { %10195 = vmatpush3.bf16.msra.mxu0 %v10192_v50  ;;  %10251 = vmatpush3.bf16.msra.mxu1 %v10248_v48  ;;  %v10252_v50 = vpack.c.bf16 %v2301_v34, %v2300_v49 }
 0x441   :  { %10197 = vmatprep.subr.bf16.mxu0 %v10196_v55 }
 0x442   :  { %10253 = vmatprep.subr.bf16.mxu1 %v10252_v50 }
 0x444   :  { %10199 = vmatpush3.bf16.msra.mxu0 %v10196_v55  ;;  %v10256_v55 = vpack.c.bf16 %v2303_v52, %v2302_v51  ;;  %10255 = vmatpush3.bf16.msra.mxu1 %v10252_v50 }
 0x445   :  { %10201 = vmatprep.subr.bf16.mxu0 %v10200_v5 }
 0x446   :  { %10257 = vmatprep.subr.bf16.mxu1 %v10256_v55 }
 0x447   :  { %8803 = vmatmul.mubr.f32.vlgmr.msra.gmra.mrb[16].mxu0 %v1999_v26  ;;  %v10328_v26 = vpack.c.bf16 %v2743_v10, %v2742_v47 }
 0x448   :  { %10203 = vmatpush3.bf16.msra.mxu0 %v10200_v5  ;;  %8837 = vmatprep.mubr.f32.mxu0 %v2095_v54  ;;  %v12434_v5 = vpack.c.bf16 %v2274_v4, %v2273_v62  ;;  %v2276_v62 = vld [vmem:[#allocation12 + $0x318] sm:$0xff] }
 0x449   :  { %10205 = vmatprep.subr.bf16.mxu0 %v10204_v13  ;;  %10259 = vmatpush3.bf16.msra.mxu1 %v10256_v55 }
 0x44a   :  { %10261 = vmatprep.subr.bf16.mxu1 %v10260_v59 }
 0x44c   :  { %10207 = vmatpush3.bf16.msra.mxu0 %v10204_v13  ;;  %v2745_v13 = vld [vmem:[#allocation12 + $0x518] sm:$0xff] }
 0x44d   :  { %10209 = vmatprep.subr.bf16.mxu0 %v10208_v6  ;;  %10263 = vmatpush3.bf16.msra.mxu1 %v10260_v59  ;;  %v10332_v54 = vpack.c.bf16 %v2745_v13, %v2744_v12  ;;  %v2275_v59 = vld [vmem:[#allocation12 + $0x310] sm:$0xff] }
 0x44e   :  { %10265 = vmatprep.subr.bf16.mxu1 %v12434_v5 }
 0x450   :  { %10211 = vmatpush3.bf16.msra.mxu0 %v10208_v6 }
 0x451   :  { %10213 = vmatprep.subr.bf16.mxu0 %v10212_v20 }
 0x454   :  { %10215 = vmatpush3.bf16.msra.mxu0 %v10212_v20 }
 0x455   :  { %10217 = vmatprep.subr.bf16.mxu0 %v10216_v60 }
 0x458   :  { %10219 = vmatpush3.bf16.msra.mxu0 %v10216_v60 }
 0x459   :  { %10221 = vmatprep.subr.bf16.mxu0 %v10220_v23 }
 0x45c   :  { %10223 = vmatpush3.bf16.msra.mxu0 %v10220_v23 }
 0x45d   :  { %10225 = vmatprep.subr.bf16.mxu0 %v10224_v27 }
 0x460   :  { %10227 = vmatpush3.bf16.msra.mxu0 %v10224_v27 }
 0x461   :  { %10229 = vmatprep.subr.bf16.mxu0 %v10228_v33 }
 0x464   :  { %10231 = vmatpush3.bf16.msra.mxu0 %v10228_v33 }
 0x465   :  { %10329 = vmatprep.subr.bf16.mxu0 %v10328_v26 }
 0x467   :  { %8838 = vmatmul.mubr.f32.vlgmr.msra.gmra.mrb[16].mxu0 %v2104_v15 }
 0x468   :  { %10331 = vmatpush3.bf16.msra.mxu0 %v10328_v26  ;;  %v10268_v26 = vpack.c.bf16 %v2276_v62, %v2275_v59  ;;  %v2551_v59 = vld [vmem:[#allocation12 + $0x468] sm:$0xff] }
 0x469   :  { %10333 = vmatprep.subr.bf16.mxu0 %v10332_v54 }
 0x46c   :  { %10335 = vmatpush3.bf16.msra.mxu0 %v10332_v54  ;;  %v2277_v54 = vld [vmem:[#allocation12 + $0x320] sm:$0xff] }
 0x53a   :  { %v8839_v18 = vpop.f32.mrb[16].mxu0 }
 0x53b   :  { %v2191_v6 = vadd.f32 %v8839_v18, %v7673_v14  ;;  %v2173_v16 = vpop.f32.mrb[17].mxu0 }
 0x53c   :  { %v2190_v19 = vadd.f32 %v7673_v14, %v2173_v16  ;;  %v2278_v14 = vld [vmem:[#allocation12 + $0x328] sm:$0xff]  ;;  %v2280_v16 = vld [vmem:[#allocation12 + $0x338] sm:$0xff] }
 0x53d   :  { %v2211_v20 = vcombine.high %v2191_v6, %v2191_v6  ;;  %v2218_v0 = vrot.slane %v2191_v6, %v11870_v40  ;;  %v10272_v18 = vpack.c.bf16 %v2278_v14, %v2277_v54  ;;  %v2279_v6 = vld [vmem:[#allocation12 + $0x330] sm:$0xff]  ;;  %v2746_v14 = vld [vmem:[#allocation12 + $0x520] sm:$0xff] }
 0x53e   :  { %v2194_v53 = vcombine.high %v2190_v19, %v2190_v19  ;;  %v2201_v60 = vrot.slane %v2190_v19, %v11870_v40  ;;  %v10276_v19 = vpack.c.bf16 %v2280_v16, %v2279_v6  ;;  %v2748_v16 = vld [vmem:[#allocation12 + $0x530] sm:$0xff] }
 0x53f   :  { %v2225_v3 = vrot.slane %v2211_v20, %v11870_v40  ;;  %v2226_v8 = vcombine.high %v2218_v0, %v2218_v0  ;;  %v12444_v23 = vadd.f32 %v2218_v0, %v12371_v7  ;;  %v2281_v20 = vld [vmem:[#allocation12 + $0x340] sm:$0xff]  ;;  %v2282_v0 = vld [vmem:[#allocation12 + $0x348] sm:$0xff] }
 0x540   :  { %v2208_v32 = vrot.slane %v2194_v53, %v11870_v40  ;;  %v2209_v24 = vcombine.high %v2201_v60, %v2201_v60  ;;  %v12448_v27 = vadd.f32 %v2201_v60, %v12358_v57  ;;  %v10280_v53 = vpack.c.bf16 %v2282_v0, %v2281_v20  ;;  %v2283_v60 = vld [vmem:[#allocation12 + $0x350] sm:$0xff]  ;;  %v2751_v0 = vld [vmem:[#allocation12 + $0x548] sm:$0xff] }
 0x541   :  { %v2227_v28 = vcombine.high %v2225_v3, %v2225_v3  ;;  %v12451_v29 = vadd.f32 %v2226_v8, %v12375_v30  ;;  %v12454_v31 = vadd.f32 %v2225_v3, %v12378_v36  ;;  %v2248_v33 = vmax.f32 %v12444_v23, 0.0  ;;  %v2284_v3 = vld [vmem:[#allocation12 + $0x358] sm:$0xff] }
 0x542   :  { %v2210_v35 = vcombine.high %v2208_v32, %v2208_v32  ;;  %v12458_v9 = vadd.f32 %v2209_v24, %v12362_v11  ;;  %v12461_v7 = vadd.f32 %v2208_v32, %v12365_v63  ;;  %v2244_v15 = vmax.f32 %v12448_v27, 0.0  ;;  %v2285_v32 = vld [vmem:[#allocation12 + $0x360] sm:$0xff] }
 0x543   :  { %v12465_v57 = vadd.f32 %v2227_v28, %v12380_v21  ;;  %v2249_v30 = vmax.f32 %v12451_v29, 0.0  ;;  %v2250_v22 = vmax.f32 %v12454_v31, 0.0  ;;  %2258 = vst [vmem:[#allocation3 + $0xa] sm:$0x3] %v2248_v33  ;;  %v10284_v8 = vpack.c.bf16 %v2284_v3, %v2283_v60  ;;  %v2287_v28 = vld [vmem:[#allocation12 + $0x370] sm:$0xff]  ;;  %v2288_v33 = vld [vmem:[#allocation12 + $0x378] sm:$0xff] }
 0x544   :  { %v12470_v36 = vadd.f32 %v2210_v35, %v12369_v25  ;;  %v2245_v37 = vmax.f32 %v12458_v9, 0.0  ;;  %v2246_v11 = vmax.f32 %v12461_v7, 0.0  ;;  %2254 = vst [vmem:[#allocation3 + $0x2] sm:$0x3] %v2244_v15  ;;  %v10292_v35 = vpack.c.bf16 %v2288_v33, %v2287_v28  ;;  %v2752_v60 = vld [vmem:[#allocation12 + $0x550] sm:$0xff]  ;;  %v2753_v3 = vld [vmem:[#allocation12 + $0x558] sm:$0xff] }
 0x545   :  { %v2251_v63 = vmax.f32 %v12465_v57, 0.0  ;;  %2259 = vst [vmem:[#allocation3 + $0xc] sm:$0x3] %v2249_v30  ;;  %2260 = vst [vmem:[#allocation3 + $0xe] sm:$0x3] %v2250_v22  ;;  %v2538_v30 = vld [vmem:[#allocation12 + $0x400] sm:$0xff] }
 0x546   :  { %v2247_v21 = vmax.f32 %v12470_v36, 0.0  ;;  %2255 = vst [vmem:[#allocation3 + $0x4] sm:$0x3] %v2245_v37  ;;  %2256 = vst [vmem:[#allocation3 + $0x6] sm:$0x3] %v2246_v11  ;;  %v2539_v22 = vld [vmem:[#allocation12 + $0x408] sm:$0xff] }
 0x547   :  { %2261 = vst [vmem:[#allocation3 + $0x10] sm:$0x3] %v2251_v63  ;;  %v10296_v63 = vpack.c.bf16 %v2539_v22, %v2538_v30  ;;  %v2756_v28 = vld [vmem:[#allocation12 + $0x570] sm:$0xff]  ;;  %v2757_v33 = vld [vmem:[#allocation12 + $0x578] sm:$0xff]  ;;  %v2726_v30 = vld [vmem:[#allocation12 + $0x488] sm:$0xff] }
 0x548   :  { %2257 = vst [vmem:[#allocation3 + $0x8] sm:$0x3] %v2247_v21  ;;  %v2540_v21 = vld [vmem:[#allocation12 + $0x410] sm:$0xff] }
 0x54a   :  { %v2267_v45 = vld [vmem:[#allocation3 + $0xa] sm:$0x3] }
 0x54b   :  { %v2263_v25 = vld [vmem:[#allocation3 + $0x2] sm:$0x3] }
 0x54c   :  { %v12476_v38 = vld [vmem:[#allocation3 + $0xc] sm:$0x3]  ;;  %v12478_v17 = vld [vmem:[#allocation3 + $0xe] sm:$0x3]  ;;  %v2426_v51 = vcombine.low %v2262_v39, %v2263_v25  ;;  %v2541_v39 = vld [vmem:[#allocation12 + $0x418] sm:$0xff] }
 0x54d   :  { %v2264_v41 = vld [vmem:[#allocation3 + $0x4] sm:$0x3]  ;;  %v2265_v43 = vld [vmem:[#allocation3 + $0x6] sm:$0x3]  ;;  %v2331_v49 = vcombine.low %v2267_v45, %v12476_v38  ;;  %v2444_v37 = vcombine.low %v12476_v38, %v12478_v17 }
 0x54e   :  { %v2314_v44 = vcombine.low %v2263_v25, %v2264_v41  ;;  %v12480_v42 = vld [vmem:[#allocation3 + $0x10] sm:$0x3]  ;;  %v2427_v46 = vcombine.low %v2264_v41, %v2265_v43  ;;  %v2434_v10 = vrot.slane %v2426_v51, %v11870_v40 }
 0x54f   :  { %v2266_v48 = vld [vmem:[#allocation3 + $0x8] sm:$0x3]  ;;  %v2332_v34 = vcombine.low %v12478_v17, %v12480_v42  ;;  %v2339_v4 = vrot.slane %v2331_v49, %v11870_v40  ;;  %v2458_v25 = vrot.slane %v2444_v37, %v11870_v40  ;;  %v2544_v17 = vld [vmem:[#allocation12 + $0x430] sm:$0xff]  ;;  %v3209_v37 = vld [vmem:[#allocation14 + $0x108] sm:$0xff] }
 0x550   :  { %v2315_v50 = vcombine.low %v2265_v43, %v2266_v48  ;;  %v2322_v55 = vrot.slane %v2314_v44, %v11870_v40  ;;  %v2441_v58 = vrot.slane %v2427_v46, %v11870_v40  ;;  %v2443_v15 = vcombine.low %v2266_v48, %v2267_v45  ;;  %v2542_v45 = vld [vmem:[#allocation12 + $0x420] sm:$0xff]  ;;  %v2543_v46 = vld [vmem:[#allocation12 + $0x428] sm:$0xff]  ;;  %v2545_v48 = vld [vmem:[#allocation12 + $0x438] sm:$0xff] }
 0x551   :  { %v2346_v52 = vrot.slane %v2332_v34, %v11870_v40  ;;  %v10300_v43 = vpack.c.bf16 %v2541_v39, %v2540_v21  ;;  %v10304_v38 = vpack.c.bf16 %v2543_v46, %v2542_v45  ;;  %v10308_v49 = vpack.c.bf16 %v2545_v48, %v2544_v17  ;;  %v2546_v34 = vld [vmem:[#allocation12 + $0x440] sm:$0xff]  ;;  %v3210_v39 = vld [vmem:[#allocation14 + $0x110] sm:$0xff] }
 0x552   :  { %v2329_v56 = vrot.slane %v2315_v50, %v11870_v40  ;;  %v2442_v13 = vcombine.low %v2434_v10, %v2441_v58  ;;  %v2451_v11 = vrot.slane %v2443_v15, %v11870_v40  ;;  %v2547_v50 = vld [vmem:[#allocation12 + $0x448] sm:$0xff]  ;;  %v2271_v10 = vld [vmem:[#allocation3 + $0x12] sm:$0x3]  ;;  %v3214_v46 = vld [vmem:[#allocation14 + $0x130] sm:$0xff] }
 0x553   :  { %v2347_v12 = vcombine.low %v2339_v4, %v2346_v52  ;;  %v10312_v51 = vpack.c.bf16 %v2547_v50, %v2546_v34  ;;  %v2548_v52 = vld [vmem:[#allocation12 + $0x450] sm:$0xff]  ;;  %v2725_v15 = vld [vmem:[#allocation12 + $0x480] sm:$0xff] }
 0x554   :  { %v2330_v47 = vcombine.low %v2322_v55, %v2329_v56  ;;  %v2459_v41 = vcombine.low %v2451_v11, %v2458_v25  ;;  %v2555_v44 = vcombine.low %v2441_v58, %v2451_v11  ;;  %v2549_v55 = vld [vmem:[#allocation12 + $0x458] sm:$0xff]  ;;  %v2550_v58 = vld [vmem:[#allocation12 + $0x460] sm:$0xff]  ;;  %v2552_v4 = vld [vmem:[#allocation12 + $0x470] sm:$0xff]  ;;  %v12499_v22 = vpack.c.bf16 %v2726_v30, %v2725_v15 }
 0x555   :  { %v10316_v56 = vpack.c.bf16 %v2549_v55, %v2548_v52  ;;  %v10320_v62 = vpack.c.bf16 %v2551_v59, %v2550_v58  ;;  %v3211_v11 = vld [vmem:[#allocation14 + $0x118] sm:$0xff]  ;;  %v3212_v45 = vld [vmem:[#allocation14 + $0x120] sm:$0xff]  ;;  %v7675_v17 = vld [vmem:[%s13220_s6 + $0x2] ss:$0 sm:$0xff] }
 0x556   :  { %8872 = vmatprep.mubr.f32.mxu1 %v2330_v47  ;;  %v2553_v47 = vld [vmem:[#allocation12 + $0x478] sm:$0xff]  ;;  %v10424_v21 = vpack.c.bf16 %v3211_v11, %v3209_v37 }
 0x557   :  { %8873 = vmatmul.mubr.f32.vlgmr.msra.gmra.mrb[18].mxu1 %v2347_v12  ;;  %v10324_v12 = vpack.c.bf16 %v2553_v47, %v2552_v4 }
 0x558   :  { %10267 = vmatpush3.bf16.msra.mxu1 %v12434_v5  ;;  %8907 = vmatprep.mubr.f32.mxu1 %v2442_v13  ;;  %v2286_v5 = vld [vmem:[#allocation12 + $0x368] sm:$0xff] }
 0x559   :  { %10269 = vmatprep.subr.bf16.mxu1 %v10268_v26  ;;  %v10288_v24 = vpack.c.bf16 %v2286_v5, %v2285_v32  ;;  %v2754_v32 = vld [vmem:[#allocation12 + $0x560] sm:$0xff]  ;;  %v2755_v5 = vld [vmem:[#allocation12 + $0x568] sm:$0xff] }
 0x55c   :  { %10271 = vmatpush3.bf16.msra.mxu1 %v10268_v26  ;;  %v2556_v26 = vcombine.low %v12480_v42, %v2271_v10  ;;  %v2750_v42 = vld [vmem:[#allocation12 + $0x540] sm:$0xff] }
 0x55d   :  { %10273 = vmatprep.subr.bf16.mxu1 %v10272_v18 }
 0x55e   :  { %v2563_v13 = vrot.slane %v2556_v26, %v11870_v40 }
 0x560   :  { %10275 = vmatpush3.bf16.msra.mxu1 %v10272_v18  ;;  %v2564_v54 = vcombine.low %v2458_v25, %v2563_v13  ;;  %v2747_v18 = vld [vmem:[#allocation12 + $0x528] sm:$0xff] }
 0x561   :  { %10277 = vmatprep.subr.bf16.mxu1 %v10276_v19  ;;  %v10336_v6 = vpack.c.bf16 %v2747_v18, %v2746_v14  ;;  %v3213_v25 = vld [vmem:[#allocation14 + $0x128] sm:$0xff] }
 0x563   :  { %10337 = vmatprep.subr.bf16.mxu0 %v10336_v6 }
 0x564   :  { %10279 = vmatpush3.bf16.msra.mxu1 %v10276_v19  ;;  %10339 = vmatpush3.bf16.msra.mxu0 %v10336_v6  ;;  %v2749_v19 = vld [vmem:[#allocation12 + $0x538] sm:$0xff] }
 0x565   :  { %10281 = vmatprep.subr.bf16.mxu1 %v10280_v53  ;;  %v10340_v20 = vpack.c.bf16 %v2749_v19, %v2748_v16 }
 0x567   :  { %10341 = vmatprep.subr.bf16.mxu0 %v10340_v20 }
 0x568   :  { %10283 = vmatpush3.bf16.msra.mxu1 %v10280_v53  ;;  %10343 = vmatpush3.bf16.msra.mxu0 %v10340_v20  ;;  %v10344_v53 = vpack.c.bf16 %v2751_v0, %v2750_v42  ;;  %v2714_v20 = vld [vmem:[#allocation3] sm:$0x3] }
 0x569   :  { %10285 = vmatprep.subr.bf16.mxu1 %v10284_v8 }
 0x56a   :  { %10345 = vmatprep.subr.bf16.mxu0 %v10344_v53 }
 0x56c   :  { %10287 = vmatpush3.bf16.msra.mxu1 %v10284_v8  ;;  %10347 = vmatpush3.bf16.msra.mxu0 %v10344_v53  ;;  %v10348_v8 = vpack.c.bf16 %v2753_v3, %v2752_v60 }
 0x56d   :  { %10289 = vmatprep.subr.bf16.mxu1 %v10288_v24 }
 0x56e   :  { %10349 = vmatprep.subr.bf16.mxu0 %v10348_v8 }
 0x570   :  { %10291 = vmatpush3.bf16.msra.mxu1 %v10288_v24  ;;  %v10352_v24 = vpack.c.bf16 %v2755_v5, %v2754_v32  ;;  %10351 = vmatpush3.bf16.msra.mxu0 %v10348_v8 }
 0x571   :  { %10293 = vmatprep.subr.bf16.mxu1 %v10292_v35 }
 0x572   :  { %10353 = vmatprep.subr.bf16.mxu0 %v10352_v24 }
 0x574   :  { %10295 = vmatpush3.bf16.msra.mxu1 %v10292_v35  ;;  %v10356_v35 = vpack.c.bf16 %v2757_v33, %v2756_v28  ;;  %10355 = vmatpush3.bf16.msra.mxu0 %v10352_v24 }
 0x575   :  { %10297 = vmatprep.subr.bf16.mxu1 %v10296_v63 }
 0x576   :  { %10357 = vmatprep.subr.bf16.mxu0 %v10356_v35 }
 0x577   :  { %8908 = vmatmul.mubr.f32.vlgmr.msra.gmra.mrb[18].mxu1 %v2459_v41  ;;  %v3215_v41 = vld [vmem:[#allocation14 + $0x138] sm:$0xff] }
 0x578   :  { %10299 = vmatpush3.bf16.msra.mxu1 %v10296_v63  ;;  %8942 = vmatprep.mubr.f32.mxu1 %v2555_v44  ;;  %v3208_v63 = vld [vmem:[#allocation14 + $0x100] sm:$0xff]  ;;  %v10428_v44 = vpack.c.bf16 %v3215_v41, %v3213_v25 }
 0x579   :  { %10301 = vmatprep.subr.bf16.mxu1 %v10300_v43  ;;  %10359 = vmatpush3.bf16.msra.mxu0 %v10356_v35 }
 0x57a   :  { %10361 = vmatprep.subr.bf16.mxu0 %v12499_v22 }
 0x57c   :  { %10303 = vmatpush3.bf16.msra.mxu1 %v10300_v43  ;;  %v10426_v43 = vpack.c.bf16 %v3210_v39, %v3208_v63  ;;  %v2728_v39 = vld [vmem:[#allocation12 + $0x498] sm:$0xff] }
 0x57d   :  { %10305 = vmatprep.subr.bf16.mxu1 %v10304_v38 }
 0x580   :  { %10307 = vmatpush3.bf16.msra.mxu1 %v10304_v38  ;;  %v10430_v38 = vpack.c.bf16 %v3214_v46, %v3212_v45 }
 0x581   :  { %10309 = vmatprep.subr.bf16.mxu1 %v10308_v49 }
 0x584   :  { %10311 = vmatpush3.bf16.msra.mxu1 %v10308_v49 }
 0x585   :  { %10313 = vmatprep.subr.bf16.mxu1 %v10312_v51 }
 0x588   :  { %10315 = vmatpush3.bf16.msra.mxu1 %v10312_v51 }
 0x589   :  { %10317 = vmatprep.subr.bf16.mxu1 %v10316_v56 }
 0x58c   :  { %10319 = vmatpush3.bf16.msra.mxu1 %v10316_v56 }
 0x58d   :  { %10321 = vmatprep.subr.bf16.mxu1 %v10320_v62 }
 0x590   :  { %10323 = vmatpush3.bf16.msra.mxu1 %v10320_v62 }
 0x591   :  { %10325 = vmatprep.subr.bf16.mxu1 %v10324_v12 }
 0x594   :  { %10327 = vmatpush3.bf16.msra.mxu1 %v10324_v12 }
 0x595   :  { %10425 = vmatprep.subr.bf16.mxu1 %v10424_v21  ;;  %v2727_v21 = vld [vmem:[#allocation12 + $0x490] sm:$0xff] }
 0x596   :  { %v10364_v45 = vpack.c.bf16 %v2728_v39, %v2727_v21  ;;  %v3003_v21 = vld [vmem:[#allocation12 + $0x5e8] sm:$0xff] }
 0x597   :  { %8943 = vmatmul.mubr.f32.vlgmr.msra.gmra.mrb[18].mxu1 %v2564_v54 }
 0x598   :  { %3348 = vmatprep.mubr.f32.mxu1 %v11507_v1  ;;  %10427 = vmatpush1.bf16.msra.mxu1 %v10426_v43 }
 0x599   :  { %10429 = vmatprep.subr.bf16.mxu1 %v10428_v44 }
 0x59c   :  { %10431 = vmatpush1.bf16.msra.mxu1 %v10430_v38  ;;  %v2729_v38 = vld [vmem:[#allocation12 + $0x4a0] sm:$0xff] }
 0x66a   :  { %v8944_v48 = vpop.f32.mrb[18].mxu1 }
 0x66b   :  { %v2651_v49 = vadd.f32 %v8944_v48, %v7675_v17  ;;  %v2633_v34 = vpop.f32.mrb[19].mxu1 }
 0x66c   :  { %v2650_v50 = vadd.f32 %v7675_v17, %v2633_v34  ;;  %v2730_v17 = vld [vmem:[#allocation12 + $0x4a8] sm:$0xff]  ;;  %v2732_v34 = vld [vmem:[#allocation12 + $0x4b8] sm:$0xff] }
 0x66d   :  { %v2671_v51 = vcombine.high %v2651_v49, %v2651_v49  ;;  %v2678_v52 = vrot.slane %v2651_v49, %v11870_v40  ;;  %v10368_v48 = vpack.c.bf16 %v2730_v17, %v2729_v38  ;;  %v2731_v49 = vld [vmem:[#allocation12 + $0x4b0] sm:$0xff]  ;;  %v3217_v17 = vld [vmem:[#allocation14 + $0x148] sm:$0xff] }
 0x66e   :  { %v2654_v55 = vcombine.high %v2650_v50, %v2650_v50  ;;  %v2661_v56 = vrot.slane %v2650_v50, %v11870_v40  ;;  %v10372_v50 = vpack.c.bf16 %v2732_v34, %v2731_v49  ;;  %v3216_v34 = vld [vmem:[#allocation14 + $0x140] sm:$0xff] }
 0x66f   :  { %v2685_v58 = vrot.slane %v2671_v51, %v11870_v40  ;;  %v2686_v59 = vcombine.high %v2678_v52, %v2678_v52  ;;  %v2700_v62 = vmax.f32 %v2678_v52, 0.0  ;;  %v2733_v51 = vld [vmem:[#allocation12 + $0x4c0] sm:$0xff]  ;;  %v2734_v52 = vld [vmem:[#allocation12 + $0x4c8] sm:$0xff] }
 0x670   :  { %v2668_v4 = vrot.slane %v2654_v55, %v11870_v40  ;;  %v2669_v47 = vcombine.high %v2661_v56, %v2661_v56  ;;  %v2696_v10 = vmax.f32 %v2661_v56, 0.0  ;;  %v10376_v55 = vpack.c.bf16 %v2734_v52, %v2733_v51  ;;  %v2735_v56 = vld [vmem:[#allocation12 + $0x4d0] sm:$0xff]  ;;  %v3221_v52 = vld [vmem:[#allocation14 + $0x168] sm:$0xff] }
 0x671   :  { %v2687_v12 = vcombine.high %v2685_v58, %v2685_v58  ;;  %v2701_v26 = vmax.f32 %v2686_v59, 0.0  ;;  %v2702_v13 = vmax.f32 %v2685_v58, 0.0  ;;  %2710 = vst [vmem:[#allocation3 + $0xa] sm:$0x3] %v2700_v62  ;;  %v2736_v58 = vld [vmem:[#allocation12 + $0x4d8] sm:$0xff]  ;;  %v2737_v62 = vld [vmem:[#allocation12 + $0x4e0] sm:$0xff] }
 0x672   :  { %v2670_v54 = vcombine.high %v2668_v4, %v2668_v4  ;;  %v2697_v14 = vmax.f32 %v2669_v47, 0.0  ;;  %v2698_v18 = vmax.f32 %v2668_v4, 0.0  ;;  %2706 = vst [vmem:[#allocation3 + $0x2] sm:$0x3] %v2696_v10  ;;  %v10380_v59 = vpack.c.bf16 %v2736_v58, %v2735_v56  ;;  %v2739_v47 = vld [vmem:[#allocation12 + $0x4f0] sm:$0xff]  ;;  %v2740_v10 = vld [vmem:[#allocation12 + $0x4f8] sm:$0xff] }
 0x673   :  { %v2703_v6 = vmax.f32 %v2687_v12, 0.0  ;;  %2711 = vst [vmem:[#allocation3 + $0xc] sm:$0x3] %v2701_v26  ;;  %2712 = vst [vmem:[#allocation3 + $0xe] sm:$0x3] %v2702_v13  ;;  %v10388_v12 = vpack.c.bf16 %v2740_v10, %v2739_v47  ;;  %v2990_v13 = vld [vmem:[#allocation12 + $0x580] sm:$0xff] }
 0x674   :  { %v2699_v16 = vmax.f32 %v2670_v54, 0.0  ;;  %2707 = vst [vmem:[#allocation3 + $0x4] sm:$0x3] %v2697_v14  ;;  %2708 = vst [vmem:[#allocation3 + $0x6] sm:$0x3] %v2698_v18  ;;  %v2991_v54 = vld [vmem:[#allocation12 + $0x588] sm:$0xff] }
 0x675   :  { %2713 = vst [vmem:[#allocation3 + $0x10] sm:$0x3] %v2703_v6  ;;  %v10392_v6 = vpack.c.bf16 %v2991_v54, %v2990_v13  ;;  %v3220_v58 = vld [vmem:[#allocation14 + $0x160] sm:$0xff]  ;;  %v3226_v10 = vld [vmem:[#allocation14 + $0x190] sm:$0xff]  ;;  %v3231_v13 = vld [vmem:[#allocation14 + $0x1b8] sm:$0xff] }
 0x676   :  { %2709 = vst [vmem:[#allocation3 + $0x8] sm:$0x3] %v2699_v16  ;;  %v2992_v16 = vld [vmem:[#allocation12 + $0x590] sm:$0xff]  ;;  %v3224_v47 = vld [vmem:[#allocation14 + $0x180] sm:$0xff] }
 0x678   :  { %v2719_v3 = vld [vmem:[#allocation3 + $0xa] sm:$0x3] }
 0x679   :  { %v2715_v42 = vld [vmem:[#allocation3 + $0x2] sm:$0x3] }
 0x67a   :  { %v12509_v19 = vld [vmem:[#allocation3 + $0xc] sm:$0x3]  ;;  %v12511_v8 = vld [vmem:[#allocation3 + $0xe] sm:$0x3]  ;;  %v2878_v15 = vcombine.low %v2714_v20, %v2715_v42  ;;  %v2993_v20 = vld [vmem:[#allocation12 + $0x598] sm:$0xff] }
 0x67b   :  { %v2716_v0 = vld [vmem:[#allocation3 + $0x4] sm:$0x3]  ;;  %v2717_v53 = vld [vmem:[#allocation3 + $0x6] sm:$0x3]  ;;  %v2783_v28 = vcombine.low %v2719_v3, %v12509_v19  ;;  %v2896_v14 = vcombine.low %v12509_v19, %v12511_v8 }
 0x67c   :  { %v2766_v60 = vcombine.low %v2715_v42, %v2716_v0  ;;  %v12513_v32 = vld [vmem:[#allocation3 + $0x10] sm:$0x3]  ;;  %v2879_v5 = vcombine.low %v2716_v0, %v2717_v53  ;;  %v2886_v43 = vrot.slane %v2878_v15, %v11870_v40 }
 0x67d   :  { %v2718_v24 = vld [vmem:[#allocation3 + $0x8] sm:$0x3]  ;;  %v2784_v33 = vcombine.low %v12511_v8, %v12513_v32  ;;  %v2791_v25 = vrot.slane %v2783_v28, %v11870_v40  ;;  %v2910_v42 = vrot.slane %v2896_v14, %v11870_v40  ;;  %v2996_v8 = vld [vmem:[#allocation12 + $0x5b0] sm:$0xff]  ;;  %v3228_v14 = vld [vmem:[#allocation14 + $0x1a0] sm:$0xff] }
 0x67e   :  { %v2767_v35 = vcombine.low %v2717_v53, %v2718_v24  ;;  %v2774_v37 = vrot.slane %v2766_v60, %v11870_v40  ;;  %v2893_v63 = vrot.slane %v2879_v5, %v11870_v40  ;;  %v2895_v26 = vcombine.low %v2718_v24, %v2719_v3  ;;  %v2994_v3 = vld [vmem:[#allocation12 + $0x5a0] sm:$0xff]  ;;  %v2995_v5 = vld [vmem:[#allocation12 + $0x5a8] sm:$0xff]  ;;  %v2997_v24 = vld [vmem:[#allocation12 + $0x5b8] sm:$0xff] }
 0x67f   :  { %v2798_v30 = vrot.slane %v2784_v33, %v11870_v40  ;;  %v10396_v53 = vpack.c.bf16 %v2993_v20, %v2992_v16  ;;  %v10400_v19 = vpack.c.bf16 %v2995_v5, %v2994_v3  ;;  %v10404_v28 = vpack.c.bf16 %v2997_v24, %v2996_v8  ;;  %v2998_v33 = vld [vmem:[#allocation12 + $0x5c0] sm:$0xff]  ;;  %v3233_v16 = vld [vmem:[#allocation14 + $0x1c8] sm:$0xff]  ;;  %v3235_v20 = vld [vmem:[#allocation14 + $0x1d8] sm:$0xff] }
 0x680   :  { %v2781_v11 = vrot.slane %v2767_v35, %v11870_v40  ;;  %v2894_v46 = vcombine.low %v2886_v43, %v2893_v63  ;;  %v2903_v18 = vrot.slane %v2895_v26, %v11870_v40  ;;  %v2999_v35 = vld [vmem:[#allocation12 + $0x5c8] sm:$0xff]  ;;  %v2723_v43 = vld [vmem:[#allocation3 + $0x12] sm:$0x3]  ;;  %v3239_v3 = vld [vmem:[#allocation14 + $0x1f8] sm:$0xff] }
 0x681   :  { %v2799_v44 = vcombine.low %v2791_v25, %v2798_v30  ;;  %v10408_v15 = vpack.c.bf16 %v2999_v35, %v2998_v33  ;;  %v3000_v30 = vld [vmem:[#allocation12 + $0x5d0] sm:$0xff]  ;;  %v3229_v26 = vld [vmem:[#allocation14 + $0x1a8] sm:$0xff]  ;;  %v3236_v8 = vld [vmem:[#allocation14 + $0x1e0] sm:$0xff] }
 0x682   :  { %v2782_v41 = vcombine.low %v2774_v37, %v2781_v11  ;;  %v2911_v0 = vcombine.low %v2903_v18, %v2910_v42  ;;  %v3007_v60 = vcombine.low %v2893_v63, %v2903_v18  ;;  %v3001_v37 = vld [vmem:[#allocation12 + $0x5d8] sm:$0xff]  ;;  %v3002_v63 = vld [vmem:[#allocation12 + $0x5e0] sm:$0xff]  ;;  %v3004_v25 = vld [vmem:[#allocation12 + $0x5f0] sm:$0xff]  ;;  %v10444_v54 = vpack.c.bf16 %v3231_v13, %v3229_v26 }
 0x683   :  { %v10412_v11 = vpack.c.bf16 %v3001_v37, %v3000_v30  ;;  %v10416_v39 = vpack.c.bf16 %v3003_v21, %v3002_v63  ;;  %v3230_v18 = vld [vmem:[#allocation14 + $0x1b0] sm:$0xff]  ;;  %v3178_v33 = vld [vmem:[#allocation14 + $0x18] sm:$0xff]  ;;  %v3633_v30 = vld [vmem:[#allocation15 + $0x80] sm:$0xff] }
 0x684   :  { %8977 = vmatprep.mubr.f32.mxu0 %v2782_v41  ;;  %v3005_v41 = vld [vmem:[#allocation12 + $0x5f8] sm:$0xff]  ;;  %v3238_v24 = vld [vmem:[#allocation14 + $0x1f0] sm:$0xff]  ;;  %v3634_v37 = vld [vmem:[#allocation15 + $0x88] sm:$0xff] }
 0x685   :  { %8978 = vmatmul.mubr.f32.vlgmr.msra.gmra.mrb[18].mxu0 %v2799_v44  ;;  %v10420_v44 = vpack.c.bf16 %v3005_v41, %v3004_v25  ;;  %v10454_v35 = vpack.c.bf16 %v3238_v24, %v3236_v8  ;;  %v10520_v63 = vpack.c.bf16 %v3634_v37, %v3633_v30  ;;  %v3618_v21 = vld [vmem:[#allocation15 + $0x8] sm:$0xff]  ;;  %v3636_v25 = vld [vmem:[#allocation15 + $0x98] sm:$0xff] }
 0x686   :  { %10363 = vmatpush3.bf16.msra.mxu0 %v12499_v22  ;;  %9012 = vmatprep.mubr.f32.mxu0 %v2894_v46  ;;  %v2738_v22 = vld [vmem:[#allocation12 + $0x4e8] sm:$0xff] }
 0x687   :  { %10365 = vmatprep.subr.bf16.mxu0 %v10364_v45  ;;  %v10384_v4 = vpack.c.bf16 %v2738_v22, %v2737_v62  ;;  %v3225_v62 = vld [vmem:[#allocation14 + $0x188] sm:$0xff]  ;;  %v3227_v22 = vld [vmem:[#allocation14 + $0x198] sm:$0xff] }
 0x68a   :  { %10367 = vmatpush3.bf16.msra.mxu0 %v10364_v45  ;;  %v3008_v45 = vcombine.low %v12513_v32, %v2723_v43  ;;  %v3222_v32 = vld [vmem:[#allocation14 + $0x170] sm:$0xff] }
 0x68b   :  { %10369 = vmatprep.subr.bf16.mxu0 %v10368_v48 }
 0x68c   :  { %v3015_v46 = vrot.slane %v3008_v45, %v11870_v40  ;;  %v3620_v45 = vld [vmem:[#allocation15 + $0x18] sm:$0xff] }
 0x68e   :  { %10371 = vmatpush3.bf16.msra.mxu0 %v10368_v48  ;;  %v3016_v38 = vcombine.low %v2910_v42, %v3015_v46  ;;  %v3219_v48 = vld [vmem:[#allocation14 + $0x158] sm:$0xff]  ;;  %v3232_v42 = vld [vmem:[#allocation14 + $0x1c0] sm:$0xff] }
 0x68f   :  { %10373 = vmatprep.subr.bf16.mxu0 %v10372_v50  ;;  %v10432_v49 = vpack.c.bf16 %v3219_v48, %v3217_v17  ;;  %v3637_v46 = vld [vmem:[#allocation15 + $0xa0] sm:$0xff] }
 0x691   :  { %10433 = vmatprep.subr.bf16.mxu1 %v10432_v49  ;;  %v3621_v49 = vld [vmem:[#allocation15 + $0x20] sm:$0xff] }
 0x692   :  { %10375 = vmatpush3.bf16.msra.mxu0 %v10372_v50  ;;  %v3218_v50 = vld [vmem:[#allocation14 + $0x150] sm:$0xff] }
 0x693   :  { %10377 = vmatprep.subr.bf16.mxu0 %v10376_v55  ;;  %v10434_v51 = vpack.c.bf16 %v3218_v50, %v3216_v34  ;;  %v3622_v34 = vld [vmem:[#allocation15 + $0x28] sm:$0xff]  ;;  %v3639_v50 = vld [vmem:[#allocation15 + $0xb0] sm:$0xff] }
 0x695   :  { %10435 = vmatpush1.bf16.msra.mxu1 %v10434_v51  ;;  %v3640_v51 = vld [vmem:[#allocation15 + $0xb8] sm:$0xff] }
 0x696   :  { %10379 = vmatpush3.bf16.msra.mxu0 %v10376_v55  ;;  %v3223_v55 = vld [vmem:[#allocation14 + $0x178] sm:$0xff] }
 0x697   :  { %10381 = vmatprep.subr.bf16.mxu0 %v10380_v59  ;;  %v10436_v56 = vpack.c.bf16 %v3223_v55, %v3221_v52  ;;  %v10530_v52 = vpack.c.bf16 %v3622_v34, %v3621_v49  ;;  %v10532_v55 = vpack.c.bf16 %v3640_v51, %v3639_v50  ;;  %v3177_v49 = vld [vmem:[#allocation14 + $0x10] sm:$0xff]  ;;  %v3180_v50 = vld [vmem:[#allocation14 + $0x28] sm:$0xff]  ;;  %v3182_v51 = vld [vmem:[#allocation14 + $0x38] sm:$0xff] }
 0x699   :  { %10437 = vmatprep.subr.bf16.mxu1 %v10436_v56  ;;  %v3623_v56 = vld [vmem:[#allocation15 + $0x30] sm:$0xff] }
 0x69a   :  { %10383 = vmatpush3.bf16.msra.mxu0 %v10380_v59  ;;  %v10438_v59 = vpack.c.bf16 %v3222_v32, %v3220_v58  ;;  %v3624_v58 = vld [vmem:[#allocation15 + $0x38] sm:$0xff]  ;;  %v3641_v32 = vld [vmem:[#allocation15 + $0xc0] sm:$0xff] }
 0x69b   :  { %10385 = vmatprep.subr.bf16.mxu0 %v10384_v4 }
 0x69c   :  { %10439 = vmatpush1.bf16.msra.mxu1 %v10438_v59  ;;  %v3642_v59 = vld [vmem:[#allocation15 + $0xc8] sm:$0xff] }
 0x69e   :  { %10387 = vmatpush3.bf16.msra.mxu0 %v10384_v4  ;;  %v10440_v4 = vpack.c.bf16 %v3227_v22, %v3225_v62  ;;  %v10534_v62 = vpack.c.bf16 %v3624_v58, %v3623_v56  ;;  %v10536_v22 = vpack.c.bf16 %v3642_v59, %v3641_v32 }
 0x69f   :  { %10389 = vmatprep.subr.bf16.mxu0 %v10388_v12 }
 0x6a0   :  { %10441 = vmatprep.subr.bf16.mxu1 %v10440_v4  ;;  %v3625_v4 = vld [vmem:[#allocation15 + $0x40] sm:$0xff] }
 0x6a2   :  { %10391 = vmatpush3.bf16.msra.mxu0 %v10388_v12  ;;  %v10442_v12 = vpack.c.bf16 %v3226_v10, %v3224_v47  ;;  %v3626_v47 = vld [vmem:[#allocation15 + $0x48] sm:$0xff]  ;;  %v3643_v10 = vld [vmem:[#allocation15 + $0xd0] sm:$0xff] }
 0x6a3   :  { %10393 = vmatprep.subr.bf16.mxu0 %v10392_v6  ;;  %v10538_v26 = vpack.c.bf16 %v3626_v47, %v3625_v4  ;;  %v3179_v4 = vld [vmem:[#allocation14 + $0x20] sm:$0xff]  ;;  %v3181_v47 = vld [vmem:[#allocation14 + $0x30] sm:$0xff] }
 0x6a4   :  { %10443 = vmatpush1.bf16.msra.mxu1 %v10442_v12  ;;  %v3644_v12 = vld [vmem:[#allocation15 + $0xd8] sm:$0xff] }
 0x6a5   :  { %9013 = vmatmul.mubr.f32.vlgmr.msra.gmra.mrb[18].mxu0 %v2911_v0  ;;  %10445 = vmatprep.subr.bf16.mxu1 %v10444_v54  ;;  %v10448_v0 = vpack.c.bf16 %v3235_v20, %v3233_v16  ;;  %v10540_v13 = vpack.c.bf16 %v3644_v12, %v3643_v10  ;;  %v3627_v54 = vld [vmem:[#allocation15 + $0x50] sm:$0xff]  ;;  %v3184_v10 = vld [vmem:[#allocation14 + $0x48] sm:$0xff]  ;;  %v3186_v12 = vld [vmem:[#allocation14 + $0x58] sm:$0xff] }
 0x6a6   :  { %10395 = vmatpush3.bf16.msra.mxu0 %v10392_v6  ;;  %9047 = vmatprep.mubr.f32.mxu0 %v3007_v60  ;;  %v10446_v6 = vpack.c.bf16 %v3230_v18, %v3228_v14  ;;  %v3237_v60 = vld [vmem:[#allocation14 + $0x1e8] sm:$0xff]  ;;  %v3628_v14 = vld [vmem:[#allocation15 + $0x58] sm:$0xff]  ;;  %v3645_v18 = vld [vmem:[#allocation15 + $0xe0] sm:$0xff] }
 0x6a7   :  { %10397 = vmatprep.subr.bf16.mxu0 %v10396_v53  ;;  %v10542_v16 = vpack.c.bf16 %v3628_v14, %v3627_v54  ;;  %v10464_v14 = vpack.c.bf16 %v3186_v12, %v3184_v10 }
 0x6a8   :  { %10447 = vmatpush1.bf16.msra.mxu1 %v10446_v6  ;;  %v3646_v6 = vld [vmem:[#allocation15 + $0xe8] sm:$0xff] }
 0x6a9   :  { %10449 = vmatprep.subr.bf16.mxu1 %v10448_v0  ;;  %v10544_v20 = vpack.c.bf16 %v3646_v6, %v3645_v18  ;;  %v3630_v0 = vld [vmem:[#allocation15 + $0x68] sm:$0xff]  ;;  %v3183_v18 = vld [vmem:[#allocation14 + $0x40] sm:$0xff]  ;;  %v3185_v6 = vld [vmem:[#allocation14 + $0x50] sm:$0xff] }
 0x6aa   :  { %10399 = vmatpush3.bf16.msra.mxu0 %v10396_v53  ;;  %v3234_v53 = vld [vmem:[#allocation14 + $0x1d0] sm:$0xff] }
 0x6ab   :  { %10401 = vmatprep.subr.bf16.mxu0 %v10400_v19  ;;  %v10450_v5 = vpack.c.bf16 %v3234_v53, %v3232_v42  ;;  %v3629_v42 = vld [vmem:[#allocation15 + $0x60] sm:$0xff] }
 0x6ac   :  { %v10546_v53 = vpack.c.bf16 %v3630_v0, %v3629_v42  ;;  %v10466_v42 = vpack.c.bf16 %v3185_v6, %v3183_v18  ;;  %v3484_v18 = vld [vmem:[#allocation14 + $0x240] sm:$0xff]  ;;  %v3486_v6 = vld [vmem:[#allocation14 + $0x250] sm:$0xff] }
 0x6ad   :  { %10451 = vmatpush1.bf16.msra.mxu1 %v10450_v5 }
 0x6ae   :  { %10403 = vmatpush3.bf16.msra.mxu0 %v10400_v19  ;;  %v10452_v19 = vpack.c.bf16 %v3239_v3, %v3237_v60  ;;  %v7677_v60 = vld [vmem:[%s13220_s6 + $0x3] ss:$0 sm:$0xff] }
 0x6af   :  { %10405 = vmatprep.subr.bf16.mxu0 %v10404_v28 }
 0x6b0   :  { %10453 = vmatprep.subr.bf16.mxu1 %v10452_v19 }
 0x6b1   :  { %10455 = vmatpush1.bf16.msra.mxu1 %v10454_v35 }
 0x6b2   :  { %10407 = vmatpush3.bf16.msra.mxu0 %v10404_v28  ;;  %v3176_v28 = vld [vmem:[#allocation14 + $0x8] sm:$0xff] }
 0x6b3   :  { %10409 = vmatprep.subr.bf16.mxu0 %v10408_v15 }
 0x6b6   :  { %10411 = vmatpush3.bf16.msra.mxu0 %v10408_v15  ;;  %v10456_v15 = vpack.c.bf16 %v3178_v33, %v3176_v28 }
 0x6b7   :  { %10413 = vmatprep.subr.bf16.mxu0 %v10412_v11 }
 0x6b8   :  { %10457 = vmatprep.subr.bf16.mxu1 %v10456_v15 }
 0x6ba   :  { %10415 = vmatpush3.bf16.msra.mxu0 %v10412_v11  ;;  %v3617_v11 = vld [vmem:[#allocation15] sm:$0xff] }
 0x6bb   :  { %10417 = vmatprep.subr.bf16.mxu0 %v10416_v39  ;;  %v10522_v41 = vpack.c.bf16 %v3618_v21, %v3617_v11 }
 0x6be   :  { %10419 = vmatpush3.bf16.msra.mxu0 %v10416_v39  ;;  %v3635_v39 = vld [vmem:[#allocation15 + $0x90] sm:$0xff] }
 0x6bf   :  { %10421 = vmatprep.subr.bf16.mxu0 %v10420_v44  ;;  %v10524_v43 = vpack.c.bf16 %v3636_v25, %v3635_v39 }
 0x6c2   :  { %10423 = vmatpush3.bf16.msra.mxu0 %v10420_v44  ;;  %v3619_v44 = vld [vmem:[#allocation15 + $0x10] sm:$0xff] }
 0x6c3   :  { %10521 = vmatprep.subr.bf16.mxu0 %v10520_v63  ;;  %v10526_v17 = vpack.c.bf16 %v3620_v45, %v3619_v44 }
 0x6c5   :  { %9048 = vmatmul.mubr.f32.vlgmr.msra.gmra.mrb[18].mxu0 %v3016_v38  ;;  %v3638_v38 = vld [vmem:[#allocation15 + $0xa8] sm:$0xff] }
 0x6c6   :  { %10523 = vmatpush3.bf16.msra.mxu0 %v10522_v41  ;;  %v10528_v48 = vpack.c.bf16 %v3638_v38, %v3637_v46 }
 0x6c7   :  { %10525 = vmatprep.subr.bf16.mxu0 %v10524_v43 }
 0x6ca   :  { %10527 = vmatpush3.bf16.msra.mxu0 %v10526_v17 }
 0x6cb   :  { %10529 = vmatprep.subr.bf16.mxu0 %v10528_v48  ;;  %v3175_v48 = vld [vmem:[#allocation14] sm:$0xff] }
 0x6cc   :  { %v10458_v32 = vpack.c.bf16 %v3177_v49, %v3175_v48  ;;  %v3203_v48 = vld [vmem:[#allocation14 + $0xe0] sm:$0xff]  ;;  %v3205_v49 = vld [vmem:[#allocation14 + $0xf0] sm:$0xff] }
 0x6ce   :  { %10531 = vmatpush3.bf16.msra.mxu0 %v10530_v52 }
 0x6cf   :  { %10533 = vmatprep.subr.bf16.mxu0 %v10532_v55 }
 0x6d2   :  { %10535 = vmatpush3.bf16.msra.mxu0 %v10534_v62  ;;  %v10460_v62 = vpack.c.bf16 %v3182_v51, %v3180_v50  ;;  %v3479_v50 = vld [vmem:[#allocation14 + $0x218] sm:$0xff] }
 0x6d3   :  { %10537 = vmatprep.subr.bf16.mxu0 %v10536_v22 }
 0x6d6   :  { %10539 = vmatpush3.bf16.msra.mxu0 %v10538_v26 }
 0x6d7   :  { %10541 = vmatprep.subr.bf16.mxu0 %v10540_v13  ;;  %v10462_v13 = vpack.c.bf16 %v3181_v47, %v3179_v4 }
 0x6da   :  { %10543 = vmatpush3.bf16.msra.mxu0 %v10542_v16  ;;  %v3188_v16 = vld [vmem:[#allocation14 + $0x68] sm:$0xff] }
 0x6db   :  { %10545 = vmatprep.subr.bf16.mxu0 %v10544_v20  ;;  %v3190_v20 = vld [vmem:[#allocation14 + $0x78] sm:$0xff] }
 0x6dc   :  { %v10468_v0 = vpack.c.bf16 %v3190_v20, %v3188_v16  ;;  %v3489_v16 = vld [vmem:[#allocation14 + $0x268] sm:$0xff]  ;;  %v3491_v20 = vld [vmem:[#allocation14 + $0x278] sm:$0xff] }
 0x6de   :  { %10547 = vmatpush3.bf16.msra.mxu0 %v10546_v53  ;;  %v3187_v53 = vld [vmem:[#allocation14 + $0x60] sm:$0xff] }
 0x798   :  { %v9049_v3 = vpop.f32.mrb[18].mxu0 }
 0x799   :  { %v3103_v5 = vadd.f32 %v9049_v3, %v7677_v60  ;;  %v3085_v19 = vpop.f32.mrb[19].mxu0  ;;  %v3192_v3 = vld [vmem:[#allocation14 + $0x88] sm:$0xff] }
 0x79a   :  { %v3102_v8 = vadd.f32 %v7677_v60, %v3085_v19  ;;  %v3189_v60 = vld [vmem:[#allocation14 + $0x70] sm:$0xff] }
 0x79b   :  { %v3123_v24 = vcombine.high %v3103_v5, %v3103_v5  ;;  %v3130_v28 = vrot.slane %v3103_v5, %v11870_v40  ;;  %v3194_v5 = vld [vmem:[#allocation14 + $0x98] sm:$0xff]  ;;  %v10470_v19 = vpack.c.bf16 %v3189_v60, %v3187_v53  ;;  %v3488_v53 = vld [vmem:[#allocation14 + $0x260] sm:$0xff]  ;;  %v3490_v60 = vld [vmem:[#allocation14 + $0x270] sm:$0xff] }
 0x79c   :  { %v3106_v33 = vcombine.high %v3102_v8, %v3102_v8  ;;  %v3113_v35 = vrot.slane %v3102_v8, %v11870_v40  ;;  %v10472_v8 = vpack.c.bf16 %v3194_v5, %v3192_v3  ;;  %v3493_v3 = vld [vmem:[#allocation14 + $0x288] sm:$0xff]  ;;  %v3495_v5 = vld [vmem:[#allocation14 + $0x298] sm:$0xff] }
 0x79d   :  { %v3137_v15 = vrot.slane %v3123_v24, %v11870_v40  ;;  %v3138_v30 = vcombine.high %v3130_v28, %v3130_v28  ;;  %v3152_v37 = vadd.f32 %v3130_v28, %v12444_v23  ;;  %v3191_v24 = vld [vmem:[#allocation14 + $0x80] sm:$0xff]  ;;  %v3193_v28 = vld [vmem:[#allocation14 + $0x90] sm:$0xff] }
 0x79e   :  { %v3120_v11 = vrot.slane %v3106_v33, %v11870_v40  ;;  %v3121_v63 = vcombine.high %v3113_v35, %v3113_v35  ;;  %v3148_v21 = vadd.f32 %v3113_v35, %v12448_v27  ;;  %v3196_v33 = vld [vmem:[#allocation14 + $0xa8] sm:$0xff]  ;;  %v3198_v35 = vld [vmem:[#allocation14 + $0xb8] sm:$0xff] }
 0x79f   :  { %v3139_v39 = vcombine.high %v3137_v15, %v3137_v15  ;;  %v3153_v25 = vadd.f32 %v3138_v30, %v12451_v29  ;;  %v3154_v41 = vadd.f32 %v3137_v15, %v12454_v31  ;;  %3161 = vst [vmem:[#allocation3 + $0xa] sm:$0x3] %v3152_v37  ;;  %v10474_v15 = vpack.c.bf16 %v3193_v28, %v3191_v24  ;;  %v3195_v37 = vld [vmem:[#allocation14 + $0xa0] sm:$0xff]  ;;  %v3494_v28 = vld [vmem:[#allocation14 + $0x290] sm:$0xff] }
 0x7a0   :  { %v3122_v43 = vcombine.high %v3120_v11, %v3120_v11  ;;  %v3149_v44 = vadd.f32 %v3121_v63, %v12458_v9  ;;  %v3150_v45 = vadd.f32 %v3120_v11, %v12461_v7  ;;  %3157 = vst [vmem:[#allocation3 + $0x2] sm:$0x3] %v3148_v21  ;;  %v10476_v30 = vpack.c.bf16 %v3198_v35, %v3196_v33  ;;  %v3197_v11 = vld [vmem:[#allocation14 + $0xb0] sm:$0xff]  ;;  %v3200_v63 = vld [vmem:[#allocation14 + $0xc8] sm:$0xff]  ;;  %v3202_v21 = vld [vmem:[#allocation14 + $0xd8] sm:$0xff] }
 0x7a1   :  { %v3155_v46 = vadd.f32 %v3139_v39, %v12465_v57  ;;  %3162 = vst [vmem:[#allocation3 + $0xc] sm:$0x3] %v3153_v25  ;;  %3163 = vst [vmem:[#allocation3 + $0xe] sm:$0x3] %v3154_v41  ;;  %v10478_v39 = vpack.c.bf16 %v3197_v11, %v3195_v37  ;;  %v10480_v25 = vpack.c.bf16 %v3202_v21, %v3200_v63  ;;  %v3199_v41 = vld [vmem:[#allocation14 + $0xc0] sm:$0xff]  ;;  %v3497_v33 = vld [vmem:[#allocation14 + $0x2a8] sm:$0xff] }
 0x7a2   :  { %v3151_v23 = vadd.f32 %v3122_v43, %v12470_v36  ;;  %3158 = vst [vmem:[#allocation3 + $0x4] sm:$0x3] %v3149_v44  ;;  %3159 = vst [vmem:[#allocation3 + $0x6] sm:$0x3] %v3150_v45  ;;  %v3201_v43 = vld [vmem:[#allocation14 + $0xd0] sm:$0xff]  ;;  %v3204_v44 = vld [vmem:[#allocation14 + $0xe8] sm:$0xff] }
 0x7a3   :  { %3164 = vst [vmem:[#allocation3 + $0x10] sm:$0x3] %v3155_v46  ;;  %v3206_v45 = vld [vmem:[#allocation14 + $0xf8] sm:$0xff]  ;;  %v3165_v46 = vld [vmem:[#allocation3] sm:$0x3]  ;;  %v3492_v24 = vld [vmem:[#allocation14 + $0x280] sm:$0xff] }
 0x7a4   :  { %3160 = vst [vmem:[#allocation3 + $0x8] sm:$0x3] %v3151_v23  ;;  %v10482_v23 = vpack.c.bf16 %v3201_v43, %v3199_v41  ;;  %v3499_v35 = vld [vmem:[#allocation14 + $0x2b8] sm:$0xff]  ;;  %v3496_v37 = vld [vmem:[#allocation14 + $0x2a0] sm:$0xff]  ;;  %v3498_v11 = vld [vmem:[#allocation14 + $0x2b0] sm:$0xff] }
 0x7a5   :  { %v3501_v63 = vld [vmem:[#allocation14 + $0x2c8] sm:$0xff]  ;;  %v3503_v21 = vld [vmem:[#allocation14 + $0x2d8] sm:$0xff]  ;;  %v3500_v41 = vld [vmem:[#allocation14 + $0x2c0] sm:$0xff] }
 0x7a6   :  { %v12566_v52 = vld [vmem:[#allocation3 + $0xa] sm:$0x3]  ;;  %v3502_v43 = vld [vmem:[#allocation14 + $0x2d0] sm:$0xff] }
 0x7a7   :  { %v12546_v27 = vld [vmem:[#allocation3 + $0x2] sm:$0x3] }
 0x7a8   :  { %v12552_v9 = vld [vmem:[#allocation3 + $0xc] sm:$0x3]  ;;  %v12560_v36 = vld [vmem:[#allocation3 + $0xe] sm:$0x3]  ;;  %v3362_v51 = vcombine.low %v3165_v46, %v12546_v27  ;;  %v10514_v46 = vpack.c.bf16 %v3502_v43, %v3500_v41  ;;  %v3758_v41 = vld [vmem:[#allocation15 + $0x1d0] sm:$0xff] }
 0x7a9   :  { %v12548_v29 = vld [vmem:[#allocation3 + $0x4] sm:$0x3]  ;;  %v12556_v57 = vld [vmem:[#allocation3 + $0x6] sm:$0x3]  ;;  %v3265_v58 = vcombine.low %v12566_v52, %v12552_v9  ;;  %v3380_v4 = vcombine.low %v12552_v9, %v12560_v36 }
 0x7aa   :  { %v3248_v31 = vcombine.low %v12546_v27, %v12548_v29  ;;  %v12554_v7 = vld [vmem:[#allocation3 + $0x10] sm:$0x3]  ;;  %v3759_v43 = vld [vmem:[#allocation15 + $0x1d8] sm:$0xff] }
 0x7ab   :  { %v12558_v38 = vld [vmem:[#allocation3 + $0x8] sm:$0x3]  ;;  %v3266_v34 = vcombine.low %v12560_v36, %v12554_v7  ;;  %v3273_v26 = vrot.slane %v3265_v58, %v11870_v40 }
 0x7ac   :  { %v3249_v17 = vcombine.low %v12556_v57, %v12558_v38  ;;  %v3256_v55 = vrot.slane %v3248_v31, %v11870_v40  ;;  %v3363_v31 = vcombine.low %v12548_v29, %v12556_v57  ;;  %v3379_v29 = vcombine.low %v12558_v38, %v12566_v52  ;;  %v3481_v57 = vld [vmem:[#allocation14 + $0x228] sm:$0xff]  ;;  %v3487_v38 = vld [vmem:[#allocation14 + $0x258] sm:$0xff] }
 0x7ad   :  { %v3280_v22 = vrot.slane %v3266_v34, %v11870_v40  ;;  %v3477_v34 = vld [vmem:[#allocation14 + $0x208] sm:$0xff]  ;;  %v3394_v52 = vrot.slane %v3380_v4, %v11870_v40 }
 0x7ae   :  { %v3263_v56 = vrot.slane %v3249_v17, %v11870_v40  ;;  %v10484_v17 = vpack.c.bf16 %v3206_v45, %v3204_v44  ;;  %v10488_v58 = vpack.c.bf16 %v3479_v50, %v3477_v34  ;;  %v12589_v10 = vrot.slane %v3379_v29, %v11870_v40  ;;  %v3505_v44 = vld [vmem:[#allocation14 + $0x2e8] sm:$0xff]  ;;  %v3507_v45 = vld [vmem:[#allocation14 + $0x2f8] sm:$0xff]  ;;  %v3631_v29 = vld [vmem:[#allocation15 + $0x70] sm:$0xff] }
 0x7af   :  { %v3281_v54 = vcombine.low %v3273_v26, %v3280_v22  ;;  %v3370_v22 = vrot.slane %v3362_v51, %v11870_v40  ;;  %v3480_v26 = vld [vmem:[#allocation14 + $0x220] sm:$0xff] }
 0x7b0   :  { %v3264_v59 = vcombine.low %v3256_v55, %v3263_v56  ;;  %v10486_v55 = vpack.c.bf16 %v3205_v49, %v3203_v48  ;;  %v12580_v56 = vrot.slane %v3363_v31, %v11870_v40  ;;  %v3395_v36 = vcombine.low %v12589_v10, %v3394_v52  ;;  %v3504_v31 = vld [vmem:[#allocation14 + $0x2e0] sm:$0xff] }
 0x7b1   :  { %v3174_v48 = vld [vmem:[#allocation3 + $0x12] sm:$0x3] }
 0x7b2   :  { %3349 = vmatmul.mubr.f32.vlgmr.msra.gmra.mrb[20].mxu1 %v3264_v59  ;;  %v3478_v59 = vld [vmem:[#allocation14 + $0x210] sm:$0xff]  ;;  %v3378_v47 = vcombine.low %v3370_v22, %v12580_v56  ;;  %v3510_v34 = vcombine.low %v12554_v7, %v3174_v48  ;;  %v3509_v50 = vcombine.low %v12580_v56, %v12589_v10  ;;  %v3748_v7 = vld [vmem:[#allocation15 + $0x180] sm:$0xff]  ;;  %v3749_v22 = vld [vmem:[#allocation15 + $0x188] sm:$0xff] }
 0x7b3   :  { %10459 = vmatpush1.bf16.msra.mxu1 %v10458_v32  ;;  %3354 = vmatprep.mubr.f32.mxu1 %v11507_v1  ;;  %v3476_v32 = vld [vmem:[#allocation14 + $0x200] sm:$0xff]  ;;  %v10552_v4 = vpack.c.bf16 %v3749_v22, %v3748_v7  ;;  %v3156_v56 = vld [vmem:[%s13222_s8] sm:$0x3] }
 0x7b4   :  { %10461 = vmatprep.subr.bf16.mxu1 %v10460_v62  ;;  %v3483_v62 = vld [vmem:[#allocation14 + $0x238] sm:$0xff]  ;;  %v10490_v27 = vpack.c.bf16 %v3478_v59, %v3476_v32  ;;  %v3517_v51 = vrot.slane %v3510_v34, %v11870_v40  ;;  %v3732_v10 = vld [vmem:[#allocation15 + $0x100] sm:$0xff] }
 0x7b5   :  { %v10492_v12 = vpack.c.bf16 %v3483_v62, %v3481_v57  ;;  %v3648_v32 = vld [vmem:[#allocation15 + $0xf8] sm:$0xff]  ;;  %v3744_v34 = vld [vmem:[#allocation15 + $0x160] sm:$0xff] }
 0x7b6   :  { %3355 = vmatmul.mubr.f32.gmra.mrb[22].mxu1 %v3281_v54  ;;  %v3485_v54 = vld [vmem:[#allocation14 + $0x248] sm:$0xff]  ;;  %v3632_v57 = vld [vmem:[#allocation15 + $0x78] sm:$0xff] }
 0x7b7   :  { %10463 = vmatpush1.bf16.msra.mxu1 %v10462_v13  ;;  %3462 = vmatprep.mubr.f32.mxu1 %v11507_v1  ;;  %v3482_v13 = vld [vmem:[#allocation14 + $0x230] sm:$0xff]  ;;  %v10550_v62 = vpack.c.bf16 %v3632_v57, %v3631_v29  ;;  %v3747_v29 = vld [vmem:[#allocation15 + $0x178] sm:$0xff]  ;;  %v3866_v57 = vld [vmem:[#allocation15 + $0x280] sm:$0xff] }
 0x7b8   :  { %10465 = vmatprep.subr.bf16.mxu1 %v10464_v14  ;;  %v10494_v9 = vpack.c.bf16 %v3482_v13, %v3480_v26  ;;  %v10496_v14 = vpack.c.bf16 %v3487_v38, %v3485_v54  ;;  %v3750_v13 = vld [vmem:[#allocation15 + $0x190] sm:$0xff]  ;;  %v3751_v54 = vld [vmem:[#allocation15 + $0x198] sm:$0xff] }
 0x7bb   :  { %10467 = vmatpush1.bf16.msra.mxu1 %v10466_v42  ;;  %v10498_v42 = vpack.c.bf16 %v3486_v6, %v3484_v18  ;;  %v3734_v18 = vld [vmem:[#allocation15 + $0x110] sm:$0xff]  ;;  %v3735_v6 = vld [vmem:[#allocation15 + $0x118] sm:$0xff] }
 0x7bc   :  { %10469 = vmatprep.subr.bf16.mxu1 %v10468_v0  ;;  %v10500_v0 = vpack.c.bf16 %v3491_v20, %v3489_v16  ;;  %v3752_v20 = vld [vmem:[#allocation15 + $0x1a0] sm:$0xff] }
 0x7bf   :  { %10471 = vmatpush1.bf16.msra.mxu1 %v10470_v19  ;;  %v10502_v19 = vpack.c.bf16 %v3490_v60, %v3488_v53  ;;  %v10558_v60 = vpack.c.bf16 %v3735_v6, %v3734_v18  ;;  %v3854_v18 = vld [vmem:[#allocation15 + $0x220] sm:$0xff]  ;;  %v3855_v6 = vld [vmem:[#allocation15 + $0x228] sm:$0xff] }
 0x7c0   :  { %10473 = vmatprep.subr.bf16.mxu1 %v10472_v8  ;;  %v10504_v8 = vpack.c.bf16 %v3495_v5, %v3493_v3 }
 0x7c3   :  { %10475 = vmatpush1.bf16.msra.mxu1 %v10474_v15  ;;  %v10506_v15 = vpack.c.bf16 %v3494_v28, %v3492_v24  ;;  %v3754_v24 = vld [vmem:[#allocation15 + $0x1b0] sm:$0xff]  ;;  %v3755_v28 = vld [vmem:[#allocation15 + $0x1b8] sm:$0xff] }
 0x7c4   :  { %10477 = vmatprep.subr.bf16.mxu1 %v10476_v30  ;;  %v10508_v30 = vpack.c.bf16 %v3499_v35, %v3497_v33  ;;  %v10564_v35 = vpack.c.bf16 %v3755_v28, %v3754_v24 }
 0x7c7   :  { %10479 = vmatpush1.bf16.msra.mxu1 %v10478_v39  ;;  %v10510_v39 = vpack.c.bf16 %v3498_v11, %v3496_v37  ;;  %v3756_v37 = vld [vmem:[#allocation15 + $0x1c0] sm:$0xff]  ;;  %v3757_v11 = vld [vmem:[#allocation15 + $0x1c8] sm:$0xff] }
 0x7c8   :  { %10481 = vmatprep.subr.bf16.mxu1 %v10480_v25  ;;  %v10512_v25 = vpack.c.bf16 %v3503_v21, %v3501_v63  ;;  %v10568_v21 = vpack.c.bf16 %v3757_v11, %v3756_v37 }
 0x7cb   :  { %10483 = vmatpush1.bf16.msra.mxu1 %v10482_v23  ;;  %v10516_v23 = vpack.c.bf16 %v3507_v45, %v3505_v44  ;;  %v10572_v45 = vpack.c.bf16 %v3759_v43, %v3758_v41  ;;  %v3862_v43 = vld [vmem:[#allocation15 + $0x260] sm:$0xff] }
 0x7cc   :  { %10485 = vmatprep.subr.bf16.mxu1 %v10484_v17  ;;  %v3506_v17 = vld [vmem:[#allocation14 + $0x2f0] sm:$0xff] }
 0x7cd   :  { %v10518_v49 = vpack.c.bf16 %v3506_v17, %v3504_v31  ;;  %v3760_v31 = vld [vmem:[#allocation15 + $0x1e0] sm:$0xff]  ;;  %v3761_v17 = vld [vmem:[#allocation15 + $0x1e8] sm:$0xff] }
 0x7cf   :  { %10487 = vmatpush1.bf16.msra.mxu1 %v10486_v55  ;;  %v3518_v55 = vcombine.low %v3394_v52, %v3517_v51  ;;  %v3762_v51 = vld [vmem:[#allocation15 + $0x1f0] sm:$0xff] }
 0x7d0   :  { %10489 = vmatprep.subr.bf16.mxu1 %v10488_v58  ;;  %v3647_v58 = vld [vmem:[#allocation15 + $0xf0] sm:$0xff] }
 0x7d1   :  { %v10548_v59 = vpack.c.bf16 %v3648_v32, %v3647_v58 }
 0x7d2   :  { %3463 = vmatmul.mubr.f32.vlgmr.msra.gmra.mrb[20].mxu1 %v3378_v47  ;;  %v3606_v47 = vrot.slane %v3156_v56, %v12228_v2 }
 0x7d3   :  { %10491 = vmatpush1.bf16.msra.mxu1 %v10490_v27  ;;  %3468 = vmatprep.mubr.f32.mxu1 %v11507_v1  ;;  %v3610_v27 = vrot.slane %v3156_v56, %v12222_v61  ;;  %v3851_v56 = vld [vmem:[#allocation15 + $0x208] sm:$0xff] }
 0x7d4   :  { %10493 = vmatprep.subr.bf16.mxu1 %v10492_v12  ;;  %10549 = vmatprep.subr.bf16.mxu0 %v10548_v59  ;;  %v3733_v12 = vld [vmem:[#allocation15 + $0x108] sm:$0xff]  ;;  %v3746_v59 = vld [vmem:[#allocation15 + $0x170] sm:$0xff] }
 0x7d5   :  { %10551 = vmatpush3.bf16.msra.mxu0 %v10550_v62  ;;  %v3867_v62 = vld [vmem:[#allocation15 + $0x288] sm:$0xff]  ;;  %v10582_v7 = vpack.c.bf16 %v3747_v29, %v3746_v59  ;;  %v4066_v29 = vld [vmem:[#allocation17 + $0x18] sm:$0xff] }
 0x7d6   :  { %3469 = vmatmul.mubr.f32.gmra.mrb[22].mxu1 %v3395_v36  ;;  %10553 = vmatprep.subr.bf16.mxu0 %v10552_v4  ;;  %v10584_v22 = vpack.c.bf16 %v3867_v62, %v3866_v57  ;;  %v3850_v4 = vld [vmem:[#allocation15 + $0x200] sm:$0xff]  ;;  %v4083_v57 = vld [vmem:[#allocation17 + $0x98] sm:$0xff] }
 0x7d7   :  { %10495 = vmatpush1.bf16.msra.mxu1 %v10494_v9  ;;  %3585 = vmatprep.mubr.f32.mxu1 %v11507_v1  ;;  %v10554_v9 = vpack.c.bf16 %v3733_v12, %v3732_v10  ;;  %v10586_v10 = vpack.c.bf16 %v3851_v56, %v3850_v4  ;;  %v4084_v56 = vld [vmem:[#allocation17 + $0xa0] sm:$0xff] }
 0x7d8   :  { %10497 = vmatprep.subr.bf16.mxu1 %v10496_v14  ;;  %v10556_v14 = vpack.c.bf16 %v3751_v54, %v3750_v13  ;;  %v3853_v13 = vld [vmem:[#allocation15 + $0x218] sm:$0xff]  ;;  %v3870_v54 = vld [vmem:[#allocation15 + $0x2a0] sm:$0xff] }
 0x7db   :  { %10499 = vmatpush1.bf16.msra.mxu1 %v10498_v42  ;;  %v3753_v42 = vld [vmem:[#allocation15 + $0x1a8] sm:$0xff] }
 0x7dc   :  { %10501 = vmatprep.subr.bf16.mxu1 %v10500_v0  ;;  %v10560_v5 = vpack.c.bf16 %v3753_v42, %v3752_v20  ;;  %v3873_v20 = vld [vmem:[#allocation15 + $0x2b8] sm:$0xff]  ;;  %v10594_v42 = vpack.c.bf16 %v3855_v6, %v3854_v18  ;;  %v4088_v6 = vld [vmem:[#allocation17 + $0xc0] sm:$0xff] }
 0x7df   :  { %10503 = vmatpush1.bf16.msra.mxu1 %v10502_v19  ;;  %v3736_v19 = vld [vmem:[#allocation15 + $0x120] sm:$0xff] }
 0x7e0   :  { %10505 = vmatprep.subr.bf16.mxu1 %v10504_v8  ;;  %v3737_v8 = vld [vmem:[#allocation15 + $0x128] sm:$0xff] }
 0x7e1   :  { %v10562_v33 = vpack.c.bf16 %v3737_v8, %v3736_v19  ;;  %v3874_v19 = vld [vmem:[#allocation15 + $0x2c0] sm:$0xff]  ;;  %v3875_v8 = vld [vmem:[#allocation15 + $0x2c8] sm:$0xff] }
 0x7e2   :  { %v10600_v28 = vpack.c.bf16 %v3875_v8, %v3874_v19  ;;  %v4091_v19 = vld [vmem:[#allocation17 + $0xd8] sm:$0xff] }
 0x7e3   :  { %10507 = vmatpush1.bf16.msra.mxu1 %v10506_v15  ;;  %v3738_v15 = vld [vmem:[#allocation15 + $0x130] sm:$0xff] }
 0x7e4   :  { %10509 = vmatprep.subr.bf16.mxu1 %v10508_v30  ;;  %v3739_v30 = vld [vmem:[#allocation15 + $0x138] sm:$0xff] }
 0x7e5   :  { %v10566_v63 = vpack.c.bf16 %v3739_v30, %v3738_v15  ;;  %v3876_v15 = vld [vmem:[#allocation15 + $0x2d0] sm:$0xff]  ;;  %v3877_v30 = vld [vmem:[#allocation15 + $0x2d8] sm:$0xff] }
 0x7e6   :  { %v10604_v11 = vpack.c.bf16 %v3877_v30, %v3876_v15  ;;  %v4093_v15 = vld [vmem:[#allocation17 + $0xe8] sm:$0xff] }
 0x7e7   :  { %10511 = vmatpush1.bf16.msra.mxu1 %v10510_v39  ;;  %v3740_v39 = vld [vmem:[#allocation15 + $0x140] sm:$0xff] }
 0x7e8   :  { %10513 = vmatprep.subr.bf16.mxu1 %v10512_v25  ;;  %v3741_v25 = vld [vmem:[#allocation15 + $0x148] sm:$0xff] }
 0x7e9   :  { %v10570_v44 = vpack.c.bf16 %v3741_v25, %v3740_v39  ;;  %v3879_v39 = vld [vmem:[#allocation15 + $0x2e8] sm:$0xff] }
 0x7eb   :  { %10515 = vmatpush1.bf16.msra.mxu1 %v10514_v46  ;;  %v3742_v46 = vld [vmem:[#allocation15 + $0x150] sm:$0xff] }
 0x7ec   :  { %10517 = vmatprep.subr.bf16.mxu1 %v10516_v23  ;;  %v3743_v23 = vld [vmem:[#allocation15 + $0x158] sm:$0xff] }
 0x7ed   :  { %v10574_v48 = vpack.c.bf16 %v3743_v23, %v3742_v46  ;;  %v3881_v46 = vld [vmem:[#allocation15 + $0x2f8] sm:$0xff] }
 0x7ef   :  { %10519 = vmatpush1.bf16.msra.mxu1 %v10518_v49  ;;  %v10576_v49 = vpack.c.bf16 %v3761_v17, %v3760_v31  ;;  %v3864_v17 = vld [vmem:[#allocation15 + $0x270] sm:$0xff] }
 0x7f2   :  { %3586 = vmatmul.mubr.f32.vlgmr.msra.gmra.mrb[20].mxu1 %v3509_v50  ;;  %v3745_v50 = vld [vmem:[#allocation15 + $0x168] sm:$0xff] }
 0x7f3   :  { %3591 = vmatprep.mubr.f32.mxu1 %v11507_v1  ;;  %v10578_v58 = vpack.c.bf16 %v3745_v50, %v3744_v34  ;;  %v4063_v34 = vld [vmem:[#allocation17] sm:$0xff]  ;;  %v4064_v50 = vld [vmem:[#allocation17 + $0x8] sm:$0xff] }
 0x7f6   :  { %3592 = vmatmul.mubr.f32.gmra.mrb[22].mxu1 %v3518_v55  ;;  %v3763_v55 = vld [vmem:[#allocation15 + $0x1f8] sm:$0xff] }
 0x7f7   :  { %v10580_v32 = vpack.c.bf16 %v3763_v55, %v3762_v51  ;;  %v10641_v51 = vpack.c.bf16 %v4064_v50, %v4063_v34  ;;  %v4080_v55 = vld [vmem:[#allocation17 + $0x80] sm:$0xff]  ;;  %9082 = vmatprep.mubr.msk.f32.mxu1 %vm11510_vm3, %v11507_v1 }
 0x8c5   :  { %v3587_v26 = vpop.f32.mrb[20].mxu1 }
 0x8c6   :  { %v3589_v38 = vpop.f32.mrb[21].mxu1  ;;  %v12607_v36 = vadd.f32 %v3606_v47, %v3587_v26  ;;  %v3852_v26 = vld [vmem:[#allocation15 + $0x210] sm:$0xff] }
 0x8c7   :  { %v12605_v52 = vadd.f32 %v3610_v27, %v3589_v38  ;;  %v3871_v38 = vld [vmem:[#allocation15 + $0x2a8] sm:$0xff] }
 0x8c9   :  { %v3593_v16 = vpop.f32.mrb[22].mxu1  ;;  %3720 = vmatprep.mubr.f32.mxu0 %v12605_v52 }
 0x8ca   :  { %v3595_v0 = vpop.f32.mrb[23].mxu1  ;;  %3721 = vmatmul.mubr.f32.vlgmr.msra.gmra.mrb[20].mxu0 %v12607_v36  ;;  %v12613_v3 = vadd.f32 %v3606_v47, %v3593_v16  ;;  %v3869_v47 = vld [vmem:[#allocation15 + $0x298] sm:$0xff]  ;;  %v3872_v16 = vld [vmem:[#allocation15 + $0x2b0] sm:$0xff] }
 0x8cb   :  { %v12611_v53 = vadd.f32 %v3610_v27, %v3595_v0  ;;  %10555 = vmatpush3.bf16.msra.mxu0 %v10554_v9  ;;  %v3868_v27 = vld [vmem:[#allocation15 + $0x290] sm:$0xff]  ;;  %v10590_v9 = vpack.c.bf16 %v3853_v13, %v3852_v26  ;;  %v10596_v0 = vpack.c.bf16 %v3873_v20, %v3872_v16  ;;  %v4089_v16 = vld [vmem:[#allocation17 + $0xc8] sm:$0xff] }
 0x8cc   :  { %10557 = vmatprep.subr.bf16.mxu0 %v10556_v14  ;;  %v10588_v12 = vpack.c.bf16 %v3869_v47, %v3868_v27  ;;  %v10592_v14 = vpack.c.bf16 %v3871_v38, %v3870_v54  ;;  %v4085_v27 = vld [vmem:[#allocation17 + $0xa8] sm:$0xff]  ;;  %v4086_v13 = vld [vmem:[#allocation17 + $0xb0] sm:$0xff]  ;;  %v4087_v54 = vld [vmem:[#allocation17 + $0xb8] sm:$0xff]  ;;  %v10629_v20 = vpack.c.bf16 %v4089_v16, %v4088_v6 }
 0x8cd   :  { %3725 = vmatprep.mubr.f32.mxu0 %v12611_v53  ;;  %v10623_v47 = vpack.c.bf16 %v4085_v27, %v4084_v56  ;;  %v10626_v38 = vpack.c.bf16 %v4087_v54, %v4086_v13 }
 0x8ce   :  { %3726 = vmatmul.mubr.f32.gmra.mrb[22].mxu0 %v12613_v3 }
 0x8cf   :  { %10559 = vmatpush3.bf16.msra.mxu0 %v10558_v60  ;;  %3836 = vmatprep.mubr.f32.mxu0 %v12605_v52  ;;  %v3856_v60 = vld [vmem:[#allocation15 + $0x230] sm:$0xff] }
 0x8d0   :  { %10561 = vmatprep.subr.bf16.mxu0 %v10560_v5  ;;  %v3857_v5 = vld [vmem:[#allocation15 + $0x238] sm:$0xff] }
 0x8d1   :  { %v10598_v24 = vpack.c.bf16 %v3857_v5, %v3856_v60  ;;  %v4090_v5 = vld [vmem:[#allocation17 + $0xd0] sm:$0xff] }
 0x8d2   :  { %v10632_v8 = vpack.c.bf16 %v4091_v19, %v4090_v5 }
 0x8d3   :  { %10563 = vmatpush3.bf16.msra.mxu0 %v10562_v33  ;;  %v3858_v33 = vld [vmem:[#allocation15 + $0x240] sm:$0xff] }
 0x8d4   :  { %10565 = vmatprep.subr.bf16.mxu0 %v10564_v35  ;;  %v3859_v35 = vld [vmem:[#allocation15 + $0x248] sm:$0xff] }
 0x8d5   :  { %v10602_v37 = vpack.c.bf16 %v3859_v35, %v3858_v33  ;;  %v4092_v33 = vld [vmem:[#allocation17 + $0xe0] sm:$0xff] }
 0x8d6   :  { %v10635_v30 = vpack.c.bf16 %v4093_v15, %v4092_v33 }
 0x8d7   :  { %10567 = vmatpush3.bf16.msra.mxu0 %v10566_v63  ;;  %v3861_v63 = vld [vmem:[#allocation15 + $0x258] sm:$0xff] }
 0x8d8   :  { %10569 = vmatprep.subr.bf16.mxu0 %v10568_v21  ;;  %v3878_v21 = vld [vmem:[#allocation15 + $0x2e0] sm:$0xff] }
 0x8d9   :  { %v10608_v41 = vpack.c.bf16 %v3879_v39, %v3878_v21 }
 0x8db   :  { %10571 = vmatpush3.bf16.msra.mxu0 %v10570_v44  ;;  %v3863_v44 = vld [vmem:[#allocation15 + $0x268] sm:$0xff] }
 0x8dc   :  { %10573 = vmatprep.subr.bf16.mxu0 %v10572_v45  ;;  %v3880_v45 = vld [vmem:[#allocation15 + $0x2f0] sm:$0xff]  ;;  %v10610_v23 = vpack.c.bf16 %v3863_v44, %v3862_v43 }
 0x8dd   :  { %v10612_v31 = vpack.c.bf16 %v3881_v46, %v3880_v45 }
 0x8df   :  { %10575 = vmatpush3.bf16.msra.mxu0 %v10574_v48  ;;  %v3865_v48 = vld [vmem:[#allocation15 + $0x278] sm:$0xff] }
 0x8e0   :  { %10577 = vmatprep.subr.bf16.mxu0 %v10576_v49  ;;  %v10614_v49 = vpack.c.bf16 %v3865_v48, %v3864_v17  ;;  %v7680_v17 = vld [vmem:[%s13224_s10 + $0x1] ss:$0 sm:$0xff] }
 0x8e3   :  { %10579 = vmatpush3.bf16.msra.mxu0 %v10578_v58  ;;  %v4081_v58 = vld [vmem:[#allocation17 + $0x88] sm:$0xff] }
 0x8e4   :  { %10581 = vmatprep.subr.bf16.mxu0 %v10580_v32  ;;  %v11509_v32 = vmov 0.0|0.0   ;;  %v10617_v59 = vpack.c.bf16 %v4081_v58, %v4080_v55 }
 0x8e5   :  { %10616 = vmatprep.subr.bf16.mxu1 %v11509_v32 }
 0x8e6   :  { %10618 = vmatpush3.bf16.msra.mxu1 %v10617_v59 }
 0x8e7   :  { %10583 = vmatpush3.bf16.msra.mxu0 %v10582_v7  ;;  %10619 = vmatprep.subr.bf16.mxu1 %v11509_v32  ;;  %v4067_v7 = vld [vmem:[#allocation17 + $0x20] sm:$0xff] }
 0x8e8   :  { %10585 = vmatprep.subr.bf16.mxu0 %v10584_v22  ;;  %v4068_v22 = vld [vmem:[#allocation17 + $0x28] sm:$0xff] }
 0x8e9   :  { %v10647_v4 = vpack.c.bf16 %v4068_v22, %v4067_v7 }
 0x8ea   :  { %3837 = vmatmul.mubr.f32.vlgmr.msra.gmra.mrb[24].mxu0 %v12607_v36 }
 0x8eb   :  { %3841 = vmatprep.mubr.f32.mxu0 %v12611_v53  ;;  %10587 = vmatpush3.bf16.msra.mxu0 %v10586_v10  ;;  %v4069_v10 = vld [vmem:[#allocation17 + $0x30] sm:$0xff] }
 0x8ec   :  { %10589 = vmatprep.subr.bf16.mxu0 %v10588_v12  ;;  %v4070_v12 = vld [vmem:[#allocation17 + $0x38] sm:$0xff] }
 0x8ed   :  { %v10650_v26 = vpack.c.bf16 %v4070_v12, %v4069_v10 }
 0x8ee   :  { %3842 = vmatmul.mubr.f32.gmra.mrb[26].mxu0 %v12613_v3 }
 0x8ef   :  { %10591 = vmatpush3.bf16.msra.mxu0 %v10590_v9  ;;  %3954 = vmatprep.mubr.f32.mxu0 %v12605_v52  ;;  %v3860_v52 = vld [vmem:[#allocation15 + $0x250] sm:$0xff]  ;;  %v4071_v9 = vld [vmem:[#allocation17 + $0x40] sm:$0xff] }
 0x8f0   :  { %10593 = vmatprep.subr.bf16.mxu0 %v10592_v14  ;;  %v10606_v25 = vpack.c.bf16 %v3861_v63, %v3860_v52  ;;  %v4072_v14 = vld [vmem:[#allocation17 + $0x48] sm:$0xff]  ;;  %v4094_v52 = vld [vmem:[#allocation17 + $0xf0] sm:$0xff]  ;;  %v4095_v63 = vld [vmem:[#allocation17 + $0xf8] sm:$0xff] }
 0x8f1   :  { %v10653_v18 = vpack.c.bf16 %v4072_v14, %v4071_v9  ;;  %v10638_v39 = vpack.c.bf16 %v4095_v63, %v4094_v52 }
 0x8f3   :  { %10595 = vmatpush3.bf16.msra.mxu0 %v10594_v42  ;;  %v4073_v42 = vld [vmem:[#allocation17 + $0x50] sm:$0xff] }
 0x8f4   :  { %10597 = vmatprep.subr.bf16.mxu0 %v10596_v0  ;;  %v4074_v0 = vld [vmem:[#allocation17 + $0x58] sm:$0xff] }
 0x8f5   :  { %v10656_v60 = vpack.c.bf16 %v4074_v0, %v4073_v42 }
 0x8f7   :  { %10599 = vmatpush3.bf16.msra.mxu0 %v10598_v24  ;;  %v4075_v24 = vld [vmem:[#allocation17 + $0x60] sm:$0xff] }
 0x8f8   :  { %10601 = vmatprep.subr.bf16.mxu0 %v10600_v28  ;;  %v4076_v28 = vld [vmem:[#allocation17 + $0x68] sm:$0xff] }
 0x8f9   :  { %v10659_v35 = vpack.c.bf16 %v4076_v28, %v4075_v24 }
 0x8fb   :  { %10603 = vmatpush3.bf16.msra.mxu0 %v10602_v37  ;;  %v4077_v37 = vld [vmem:[#allocation17 + $0x70] sm:$0xff] }
 0x8fc   :  { %10605 = vmatprep.subr.bf16.mxu0 %v10604_v11  ;;  %v4078_v11 = vld [vmem:[#allocation17 + $0x78] sm:$0xff] }
 0x8fd   :  { %v10662_v21 = vpack.c.bf16 %v4078_v11, %v4077_v37 }
 0x8ff   :  { %10607 = vmatpush3.bf16.msra.mxu0 %v10606_v25 }
 0x900   :  { %10609 = vmatprep.subr.bf16.mxu0 %v10608_v41 }
 0x903   :  { %10611 = vmatpush3.bf16.msra.mxu0 %v10610_v23 }
 0x904   :  { %10613 = vmatprep.subr.bf16.mxu0 %v10612_v31  ;;  %v7678_v31 = vld [vmem:[%s13224_s10] ss:$0 sm:$0xff] }
 0x907   :  { %10615 = vmatpush3.bf16.msra.mxu0 %v10614_v49 }
 0x908   :  { %10640 = vmatprep.subr.bf16.mxu0 %v11509_v32 }
 0x90a   :  { %3955 = vmatmul.mubr.f32.vlgmr.msra.gmra.mrb[28].mxu0 %v12607_v36  ;;  %v4065_v36 = vld [vmem:[#allocation17 + $0x10] sm:$0xff] }
 0x90b   :  { %3959 = vmatprep.mubr.f32.mxu0 %v12611_v53  ;;  %10642 = vmatpush3.bf16.msra.mxu0 %v10641_v51  ;;  %v10644_v53 = vpack.c.bf16 %v4066_v29, %v4065_v36 }
 0x90c   :  { %10643 = vmatprep.subr.bf16.mxu0 %v11509_v32 }
 0x90e   :  { %3960 = vmatmul.mubr.f32.gmra.mrb[30].mxu0 %v12613_v3  ;;  %v4082_v3 = vld [vmem:[#allocation17 + $0x90] sm:$0xff] }
 0x90f   :  { %v10620_v62 = vpack.c.bf16 %v4083_v57, %v4082_v3  ;;  %10645 = vmatpush3.bf16.msra.mxu0 %v10644_v53  ;;  %9117 = vmatprep.mubr.msk.f32.mxu0 %vm11510_vm3, %v11507_v1  ;;  %v7682_v57 = vld [vmem:[%s13224_s10 + $0x2] ss:$0 sm:$0xff] }
 0x910   :  { %10646 = vmatprep.subr.bf16.mxu0 %v11509_v32 }
 0x911   :  { %10621 = vmatpush3.bf16.msra.mxu1 %v10620_v62 }
 0x912   :  { %10622 = vmatprep.subr.bf16.mxu1 %v11509_v32 }
 0x913   :  { %10648 = vmatpush3.bf16.msra.mxu0 %v10647_v4 }
 0x914   :  { %10649 = vmatprep.subr.bf16.mxu0 %v11509_v32 }
 0x915   :  { %10624 = vmatpush3.bf16.msra.mxu1 %v10623_v47 }
 0x916   :  { %10625 = vmatprep.subr.bf16.mxu1 %v11509_v32 }
 0x917   :  { %10651 = vmatpush3.bf16.msra.mxu0 %v10650_v26 }
 0x918   :  { %10652 = vmatprep.subr.bf16.mxu0 %v11509_v32 }
 0x919   :  { %10627 = vmatpush3.bf16.msra.mxu1 %v10626_v38 }
 0x91a   :  { %10628 = vmatprep.subr.bf16.mxu1 %v11509_v32 }
 0x91b   :  { %10654 = vmatpush3.bf16.msra.mxu0 %v10653_v18 }
 0x91c   :  { %10655 = vmatprep.subr.bf16.mxu0 %v11509_v32 }
 0x91d   :  { %10630 = vmatpush3.bf16.msra.mxu1 %v10629_v20  ;;  %v4030_v20 = vld [vmem:[#allocation7] sm:$0x3] }
 0x91e   :  { %10631 = vmatprep.subr.bf16.mxu1 %v11509_v32 }
 0x91f   :  { %10657 = vmatpush3.bf16.msra.mxu0 %v10656_v60 }
 0x920   :  { %10658 = vmatprep.subr.bf16.mxu0 %v11509_v32 }
 0x921   :  { %10633 = vmatpush3.bf16.msra.mxu1 %v10632_v8 }
 0x922   :  { %10634 = vmatprep.subr.bf16.mxu1 %v11509_v32 }
 0x923   :  { %10660 = vmatpush3.bf16.msra.mxu0 %v10659_v35 }
 0x924   :  { %10661 = vmatprep.subr.bf16.mxu0 %v11509_v32 }
 0x925   :  { %10636 = vmatpush3.bf16.msra.mxu1 %v10635_v30 }
 0x926   :  { %10637 = vmatprep.subr.bf16.mxu1 %v11509_v32 }
 0x927   :  { %10663 = vmatpush3.bf16.msra.mxu0 %v10662_v21 }
 0x928   :  { %10688 = vmatprep.subr.bf16.mxu0 %v11509_v32 }
 0x929   :  { %10639 = vmatpush3.bf16.msra.mxu1 %v10638_v39 }
 0x92a   :  { %10664 = vmatprep.subr.bf16.mxu1 %v11509_v32 }
 0x99d   :  { %v8134_v25 = vpop.f32.mrb[20].mxu0 }
 0x99e   :  { %v8135_v41 = vpop.f32.mrb[21].mxu0 }
 0x99f   :  { %v8136_v43 = vadd.f32 %v8135_v41, %v8134_v25 }
 0x9a1   :  { %v8137_v44 = vpop.f32.mrb[22].mxu0  ;;  %v3723_v34 = vadd.f32 %v8136_v43, %v7678_v31 }
 0x9a2   :  { %v8138_v45 = vpop.f32.mrb[23].mxu0 }
 0x9a3   :  { %v8139_v46 = vadd.f32 %v8138_v45, %v8137_v44  ;;  %v4057_v44 = vld [vmem:[#allocation4] sm:$0x3] }
 0x9a5   :  { %v3728_v36 = vadd.f32 %v8139_v46, %v7678_v31 }
 0x9bd   :  { %v8172_v23 = vpop.f32.mrb[24].mxu0 }
 0x9be   :  { %v8173_v48 = vpop.f32.mrb[25].mxu0 }
 0x9bf   :  { %v8174_v49 = vadd.f32 %v8173_v48, %v8172_v23 }
 0x9c1   :  { %v3839_v50 = vadd.f32 %v8174_v49, %v7680_v17  ;;  %v8175_v51 = vpop.f32.mrb[26].mxu0 }
 0x9c2   :  { %v8176_v55 = vpop.f32.mrb[27].mxu0 }
 0x9c3   :  { %v3847_v58 = vmax.f32 %v3723_v34, %v3839_v50  ;;  %v8177_v59 = vadd.f32 %v8176_v55, %v8175_v51  ;;  %v4278_v55 = vld [vmem:[#allocation17 + $0x100] sm:$0xff] }
 0x9c5   :  { %v3844_v29 = vadd.f32 %v8177_v59, %v7680_v17 }
 0x9c7   :  { %v3848_v53 = vmax.f32 %v3728_v36, %v3844_v29 }
 0x9dd   :  { %v8210_v3 = vpop.f32.mrb[28].mxu0 }
 0x9de   :  { %v8211_v62 = vpop.f32.mrb[29].mxu0 }
 0x9df   :  { %v8212_v7 = vadd.f32 %v8211_v62, %v8210_v3  ;;  %v4281_v62 = vld [vmem:[#allocation17 + $0x118] sm:$0xff] }
 0x9e1   :  { %v3957_v22 = vadd.f32 %v8212_v7, %v7682_v57  ;;  %v8213_v4 = vpop.f32.mrb[30].mxu0 }
 0x9e2   :  { %v8214_v56 = vpop.f32.mrb[31].mxu0 }
 0x9e3   :  { %v3965_v27 = vmax.f32 %v3847_v58, %v3957_v22  ;;  %v8215_v47 = vadd.f32 %v8214_v56, %v8213_v4  ;;  %v4279_v58 = vld [vmem:[#allocation17 + $0x108] sm:$0xff]  ;;  %v4282_v22 = vld [vmem:[#allocation17 + $0x120] sm:$0xff] }
 0x9e4   :  { %v4283_v4 = vld [vmem:[#allocation17 + $0x128] sm:$0xff] }
 0x9e5   :  { %v3979_v10 = vcombine.high %v3965_v27, %v3965_v27  ;;  %v3986_v12 = vrot.slane %v3965_v27, %v11870_v40  ;;  %7683 = vst.sshfl [vmem:[#allocation7 + $0x2] sm:$0x3 pattern:$0x76325410] %v3965_v27  ;;  %v3962_v26 = vadd.f32 %v8215_v47, %v7682_v57  ;;  %v4280_v57 = vld [vmem:[#allocation17 + $0x110] sm:$0xff]  ;;  %v10671_v56 = vpack.c.bf16 %v4283_v4, %v4282_v22  ;;  %v4285_v47 = vld [vmem:[#allocation17 + $0x138] sm:$0xff] }
 0x9e6   :  { %v10668_v7 = vpack.c.bf16 %v4281_v62, %v4280_v57  ;;  %v4284_v27 = vld [vmem:[#allocation17 + $0x130] sm:$0xff]  ;;  %v4433_v62 = vld [vmem:[#allocation17 + $0x1d8] sm:$0xff] }
 0x9e7   :  { %v3993_v13 = vrot.slane %v3979_v10, %v11870_v40  ;;  %v3994_v54 = vcombine.high %v3986_v12, %v3986_v12  ;;  %7684 = vst.sshfl [vmem:[#allocation7 + $0x6] sm:$0x3 pattern:$0x76325410] %v3979_v10  ;;  %v3966_v38 = vmax.f32 %v3848_v53, %v3962_v26  ;;  %v10665_v53 = vpack.c.bf16 %v4279_v58, %v4278_v55  ;;  %v4286_v12 = vld [vmem:[#allocation17 + $0x140] sm:$0xff]  ;;  %v4287_v26 = vld [vmem:[#allocation17 + $0x148] sm:$0xff] }
 0x9e8   :  { %v10674_v10 = vpack.c.bf16 %v4285_v47, %v4284_v27  ;;  %v4430_v58 = vld [vmem:[#allocation17 + $0x1c0] sm:$0xff]  ;;  %v4432_v57 = vld [vmem:[#allocation17 + $0x1d0] sm:$0xff]  ;;  %v4450_v4 = vld [vmem:[#allocation17 + $0x258] sm:$0xff] }
 0x9e9   :  { %v3995_v9 = vcombine.high %v3993_v13, %v3993_v13  ;;  %4023 = vst [vmem:[#allocation7 + $0x4] sm:$0x3] %v3994_v54  ;;  %v3996_v14 = vcombine.high %v3966_v38, %v3966_v38  ;;  %v4003_v18 = vrot.slane %v3966_v38, %v11870_v40  ;;  %7685 = vst.sshfl [vmem:[#allocation7 + $0xa] sm:$0x3 pattern:$0x76325410] %v3966_v38 }
 0x9ea   :  { %v10677_v13 = vpack.c.bf16 %v4287_v26, %v4286_v12  ;;  %v4288_v54 = vld [vmem:[#allocation17 + $0x150] sm:$0xff]  ;;  %v4289_v38 = vld [vmem:[#allocation17 + $0x158] sm:$0xff]  ;;  %v4434_v27 = vld [vmem:[#allocation17 + $0x1e0] sm:$0xff] }
 0x9eb   :  { %4025 = vst [vmem:[#allocation7 + $0x8] sm:$0x3] %v3995_v9  ;;  %v4010_v6 = vrot.slane %v3996_v14, %v11870_v40  ;;  %v4011_v16 = vcombine.high %v4003_v18, %v4003_v18  ;;  %7686 = vst.sshfl [vmem:[#allocation7 + $0xe] sm:$0x3 pattern:$0x76325410] %v3996_v14  ;;  %v10680_v9 = vpack.c.bf16 %v4289_v38, %v4288_v54 }
 0x9ec   :  { %v4031_v42 = vld [vmem:[#allocation7 + $0x2] sm:$0x3]  ;;  %v4291_v18 = vld [vmem:[#allocation17 + $0x168] sm:$0xff]  ;;  %v4449_v22 = vld [vmem:[#allocation17 + $0x250] sm:$0xff] }
 0x9ed   :  { %v4012_v0 = vcombine.high %v4010_v6, %v4010_v6  ;;  %4027 = vst [vmem:[#allocation7 + $0xc] sm:$0x3] %v4011_v16  ;;  %v4039_v60 = vmax.f32 %v4030_v20, %v4031_v42  ;;  %v4290_v14 = vld [vmem:[#allocation17 + $0x160] sm:$0xff]  ;;  %v4062_v6 = vld [vmem:[#allocation4 + $0xa] sm:$0x3]  ;;  %v4293_v42 = vld [vmem:[#allocation17 + $0x178] sm:$0xff] }
 0x9ee   :  { %v4033_v19 = vld [vmem:[#allocation7 + $0x6] sm:$0x3]  ;;  %v10683_v16 = vpack.c.bf16 %v4291_v18, %v4290_v14  ;;  %v4292_v20 = vld [vmem:[#allocation17 + $0x170] sm:$0xff]  ;;  %v4435_v47 = vld [vmem:[#allocation17 + $0x1e8] sm:$0xff] }
 0x9ef   :  { %4029 = vst [vmem:[#allocation7 + $0x10] sm:$0x3] %v4012_v0  ;;  %v10731_v12 = vpack.c.bf16 %v4435_v47, %v4434_v27  ;;  %v4452_v26 = vld [vmem:[#allocation17 + $0x268] sm:$0xff]  ;;  %v4436_v54 = vld [vmem:[#allocation17 + $0x1f0] sm:$0xff]  ;;  %v4437_v38 = vld [vmem:[#allocation17 + $0x1f8] sm:$0xff] }
 0x9f0   :  { %v4032_v5 = vld [vmem:[#allocation7 + $0x4] sm:$0x3]  ;;  %v4035_v33 = vld [vmem:[#allocation7 + $0xa] sm:$0x3]  ;;  %v4454_v14 = vld [vmem:[#allocation17 + $0x278] sm:$0xff]  ;;  %v10734_v18 = vpack.c.bf16 %v4437_v38, %v4436_v54 }
 0x9f1   :  { %v12660_v8 = vmax.f32 %v4039_v60, %v4032_v5  ;;  %v4040_v24 = vmax.f32 %v4032_v5, %v4033_v19  ;;  %v10686_v60 = vpack.c.bf16 %v4293_v42, %v4292_v20  ;;  %v4643_v27 = vld [vmem:[#allocation17 + $0x2b0] sm:$0xff]  ;;  %v4644_v47 = vld [vmem:[#allocation17 + $0x2b8] sm:$0xff] }
 0x9f2   :  { %v4034_v28 = vld [vmem:[#allocation7 + $0x8] sm:$0x3]  ;;  %v4037_v11 = vld [vmem:[#allocation7 + $0xe] sm:$0x3]  ;;  %v4647_v54 = vld [vmem:[#allocation17 + $0x2d0] sm:$0xff] }
 0x9f3   :  { %v4047_v35 = vmax.f32 %v12660_v8, 0.0  ;;  %v4041_v15 = vmax.f32 %v4034_v28, %v4035_v33  ;;  %v12663_v30 = vmax.f32 %v4040_v24, %v4034_v28  ;;  %v4422_v24 = vld [vmem:[#allocation17 + $0x180] sm:$0xff]  ;;  %v4423_v28 = vld [vmem:[#allocation17 + $0x188] sm:$0xff]  ;;  %v4648_v38 = vld [vmem:[#allocation17 + $0x2d8] sm:$0xff] }
 0x9f4   :  { %v4036_v37 = vld [vmem:[#allocation7 + $0xc] sm:$0x3]  ;;  %v4439_v33 = vld [vmem:[#allocation17 + $0x200] sm:$0xff] }
 0x9f5   :  { %4053 = vst [vmem:[#allocation4 + $0x2] sm:$0x3] %v4047_v35  ;;  %v4042_v52 = vmax.f32 %v4036_v37, %v4037_v11  ;;  %v12665_v63 = vmax.f32 %v4041_v15, %v4036_v37  ;;  %v4048_v21 = vmax.f32 %v12663_v30, 0.0  ;;  %v10713_v35 = vpack.c.bf16 %v4423_v28, %v4422_v24  ;;  %v4440_v15 = vld [vmem:[#allocation17 + $0x208] sm:$0xff]  ;;  %v4424_v37 = vld [vmem:[#allocation17 + $0x190] sm:$0xff]  ;;  %v4425_v11 = vld [vmem:[#allocation17 + $0x198] sm:$0xff] }
 0x9f6   :  { %v4038_v39 = vld [vmem:[#allocation7 + $0x10] sm:$0x3] }
 0x9f7   :  { %v12668_v25 = vmax.f32 %v4042_v52, %v4038_v39  ;;  %v4049_v41 = vmax.f32 %v12665_v63, 0.0  ;;  %4054 = vst [vmem:[#allocation4 + $0x4] sm:$0x3] %v4048_v21  ;;  %v10689_v52 = vpack.c.bf16 %v4440_v15, %v4439_v33  ;;  %v4441_v21 = vld [vmem:[#allocation17 + $0x210] sm:$0xff]  ;;  %v4442_v39 = vld [vmem:[#allocation17 + $0x218] sm:$0xff] }
 0x9f9   :  { %v4050_v43 = vmax.f32 %v12668_v25, 0.0  ;;  %4055 = vst [vmem:[#allocation4 + $0x6] sm:$0x3] %v4049_v41  ;;  %v10716_v41 = vpack.c.bf16 %v4425_v11, %v4424_v37 }
 0x9fb   :  { %4056 = vst [vmem:[#allocation4 + $0x8] sm:$0x3] %v4050_v43  ;;  %v10692_v43 = vpack.c.bf16 %v4442_v39, %v4441_v21 }
 0x9fc   :  { %v4058_v45 = vld [vmem:[#allocation4 + $0x2] sm:$0x3] }
 0x9fd   :  { %v4189_v23 = vcombine.low %v4057_v44, %v4058_v45  ;;  %v4426_v44 = vld [vmem:[#allocation17 + $0x1a0] sm:$0xff] }
 0x9fe   :  { %v4059_v46 = vld [vmem:[#allocation4 + $0x4] sm:$0x3] }
 0x9ff   :  { %v4100_v48 = vcombine.low %v4058_v45, %v4059_v46  ;;  %v4197_v34 = vrot.slane %v4189_v23, %v11870_v40  ;;  %v4427_v45 = vld [vmem:[#allocation17 + $0x1a8] sm:$0xff]  ;;  %v4443_v23 = vld [vmem:[#allocation17 + $0x220] sm:$0xff] }
 0xa00   :  { %v4060_v31 = vld [vmem:[#allocation4 + $0x6] sm:$0x3] }
 0xa01   :  { %v4190_v17 = vcombine.low %v4059_v46, %v4060_v31  ;;  %v4108_v36 = vrot.slane %v4100_v48, %v11870_v40  ;;  %v10719_v46 = vpack.c.bf16 %v4427_v45, %v4426_v44  ;;  %v4428_v48 = vld [vmem:[#allocation17 + $0x1b0] sm:$0xff]  ;;  %v4415_v44 = vld [vmem:[#allocation4] sm:$0x3] }
 0xa02   :  { %v4061_v49 = vld [vmem:[#allocation4 + $0x8] sm:$0x3] }
 0xa03   :  { %v4204_v50 = vrot.slane %v4190_v17, %v11870_v40  ;;  %v4101_v51 = vcombine.low %v4060_v31, %v4061_v49  ;;  %v4295_v0 = vcombine.low %v4061_v49, %v4062_v6  ;;  %v4444_v31 = vld [vmem:[#allocation17 + $0x228] sm:$0xff]  ;;  %v4429_v49 = vld [vmem:[#allocation17 + $0x1b8] sm:$0xff] }
 0xa04   :  { %v10695_v17 = vpack.c.bf16 %v4444_v31, %v4443_v23 }
 0xa05   :  { %v4205_v59 = vcombine.low %v4197_v34, %v4204_v50  ;;  %v4115_v29 = vrot.slane %v4101_v51, %v11870_v40  ;;  %v4302_v5 = vrot.slane %v4295_v0, %v11870_v40  ;;  %v10722_v34 = vpack.c.bf16 %v4429_v49, %v4428_v48  ;;  %v4446_v51 = vld [vmem:[#allocation17 + $0x238] sm:$0xff] }
 0xa07   :  { %9118 = vmatmul.mubr.f32.vlgmr.msra.gmra.mrb[32].mxu0 %v4205_v59  ;;  %v4116_v3 = vcombine.low %v4108_v36, %v4115_v29  ;;  %v4303_v19 = vcombine.low %v4204_v50, %v4302_v5  ;;  %v4445_v50 = vld [vmem:[#allocation17 + $0x230] sm:$0xff]  ;;  %v4431_v59 = vld [vmem:[#allocation17 + $0x1c8] sm:$0xff]  ;;  %v4447_v29 = vld [vmem:[#allocation17 + $0x240] sm:$0xff] }
 0xa08   :  { %9187 = vmatprep.mubr.msk.f32.mxu0 %vm11510_vm3, %v11507_v1  ;;  %10690 = vmatpush3.bf16.msra.mxu0 %v10689_v52  ;;  %v10698_v55 = vpack.c.bf16 %v4446_v51, %v4445_v50  ;;  %v10725_v36 = vpack.c.bf16 %v4431_v59, %v4430_v58  ;;  %v7687_v5 = vld [vmem:[%s13226_s12] ss:$0 sm:$0xff]  ;;  %v4638_v58 = vld [vmem:[#allocation17 + $0x288] sm:$0xff] }
 0xa09   :  { %9083 = vmatmul.mubr.f32.vlgmr.msra.gmra.mrb[24].mxu1 %v4116_v3  ;;  %10691 = vmatprep.subr.bf16.mxu0 %v11509_v32 }
 0xa0a   :  { %10666 = vmatpush3.bf16.msra.mxu1 %v10665_v53  ;;  %9152 = vmatprep.mubr.msk.f32.mxu1 %vm11510_vm3, %v11507_v1  ;;  %v4448_v53 = vld [vmem:[#allocation17 + $0x248] sm:$0xff] }
 0xa0b   :  { %10667 = vmatprep.subr.bf16.mxu1 %v11509_v32  ;;  %v10701_v3 = vpack.c.bf16 %v4448_v53, %v4447_v29 }
 0xa0c   :  { %10693 = vmatpush3.bf16.msra.mxu0 %v10692_v43 }
 0xa0d   :  { %10694 = vmatprep.subr.bf16.mxu0 %v11509_v32 }
 0xa0e   :  { %10669 = vmatpush3.bf16.msra.mxu1 %v10668_v7  ;;  %v10728_v7 = vpack.c.bf16 %v4433_v62, %v4432_v57  ;;  %v4639_v57 = vld [vmem:[#allocation17 + $0x290] sm:$0xff]  ;;  %v4640_v62 = vld [vmem:[#allocation17 + $0x298] sm:$0xff] }
 0xa0f   :  { %10670 = vmatprep.subr.bf16.mxu1 %v11509_v32 }
 0xa10   :  { %10696 = vmatpush3.bf16.msra.mxu0 %v10695_v17 }
 0xa11   :  { %10697 = vmatprep.subr.bf16.mxu0 %v11509_v32 }
 0xa12   :  { %10672 = vmatpush3.bf16.msra.mxu1 %v10671_v56  ;;  %v10704_v56 = vpack.c.bf16 %v4450_v4, %v4449_v22  ;;  %v4641_v22 = vld [vmem:[#allocation17 + $0x2a0] sm:$0xff]  ;;  %v4642_v4 = vld [vmem:[#allocation17 + $0x2a8] sm:$0xff] }
 0xa13   :  { %10673 = vmatprep.subr.bf16.mxu1 %v11509_v32 }
 0xa14   :  { %10699 = vmatpush3.bf16.msra.mxu0 %v10698_v55  ;;  %v4637_v55 = vld [vmem:[#allocation17 + $0x280] sm:$0xff] }
 0xa15   :  { %10700 = vmatprep.subr.bf16.mxu0 %v11509_v32  ;;  %v10737_v53 = vpack.c.bf16 %v4638_v58, %v4637_v55  ;;  %v4793_v58 = vld [vmem:[#allocation17 + $0x340] sm:$0xff] }
 0xa16   :  { %10675 = vmatpush3.bf16.msra.mxu1 %v10674_v10  ;;  %v4451_v10 = vld [vmem:[#allocation17 + $0x260] sm:$0xff] }
 0xa17   :  { %10676 = vmatprep.subr.bf16.mxu1 %v11509_v32 }
 0xa18   :  { %10702 = vmatpush3.bf16.msra.mxu0 %v10701_v3 }
 0xa19   :  { %10703 = vmatprep.subr.bf16.mxu0 %v11509_v32 }
 0xa1a   :  { %10678 = vmatpush3.bf16.msra.mxu1 %v10677_v13  ;;  %v10707_v13 = vpack.c.bf16 %v4452_v26, %v4451_v10  ;;  %v10746_v10 = vpack.c.bf16 %v4644_v47, %v4643_v27  ;;  %v4646_v26 = vld [vmem:[#allocation17 + $0x2c8] sm:$0xff]  ;;  %v4797_v27 = vld [vmem:[#allocation17 + $0x360] sm:$0xff] }
 0xa1b   :  { %10679 = vmatprep.subr.bf16.mxu1 %v11509_v32  ;;  %v4798_v47 = vld [vmem:[#allocation17 + $0x368] sm:$0xff] }
 0xa1c   :  { %10705 = vmatpush3.bf16.msra.mxu0 %v10704_v56  ;;  %v10743_v56 = vpack.c.bf16 %v4642_v4, %v4641_v22  ;;  %v4812_v22 = vld [vmem:[#allocation17 + $0x3d0] sm:$0xff]  ;;  %v4813_v4 = vld [vmem:[#allocation17 + $0x3d8] sm:$0xff] }
 0xa1d   :  { %10706 = vmatprep.subr.bf16.mxu0 %v11509_v32 }
 0xa1e   :  { %10681 = vmatpush3.bf16.msra.mxu1 %v10680_v9  ;;  %v4453_v9 = vld [vmem:[#allocation17 + $0x270] sm:$0xff] }
 0xa1f   :  { %10682 = vmatprep.subr.bf16.mxu1 %v11509_v32  ;;  %v10710_v6 = vpack.c.bf16 %v4454_v14, %v4453_v9  ;;  %v10752_v9 = vpack.c.bf16 %v4648_v38, %v4647_v54  ;;  %v4649_v14 = vld [vmem:[#allocation17 + $0x2e0] sm:$0xff]  ;;  %v4799_v54 = vld [vmem:[#allocation17 + $0x370] sm:$0xff]  ;;  %v4800_v38 = vld [vmem:[#allocation17 + $0x378] sm:$0xff] }
 0xa20   :  { %10708 = vmatpush3.bf16.msra.mxu0 %v10707_v13 }
 0xa21   :  { %10709 = vmatprep.subr.bf16.mxu0 %v11509_v32 }
 0xa22   :  { %10684 = vmatpush3.bf16.msra.mxu1 %v10683_v16 }
 0xa23   :  { %10685 = vmatprep.subr.bf16.mxu1 %v11509_v32 }
 0xa24   :  { %10711 = vmatpush3.bf16.msra.mxu0 %v10710_v6  ;;  %v4420_v6 = vld [vmem:[#allocation4 + $0xa] sm:$0x3] }
 0xa25   :  { %10736 = vmatprep.subr.bf16.mxu0 %v11509_v32 }
 0xa26   :  { %10687 = vmatpush3.bf16.msra.mxu1 %v10686_v60 }
 0xa27   :  { %10712 = vmatprep.subr.bf16.mxu1 %v11509_v32 }
 0xa29   :  { %9153 = vmatmul.mubr.f32.vlgmr.msra.gmra.mrb[26].mxu1 %v4303_v19 }
 0xa2a   :  { %9222 = vmatprep.mubr.msk.f32.mxu1 %vm11510_vm3, %v11507_v1  ;;  %10714 = vmatpush3.bf16.msra.mxu1 %v10713_v35 }
 0xa2b   :  { %10715 = vmatprep.subr.bf16.mxu1 %v11509_v32 }
 0xa2e   :  { %10717 = vmatpush3.bf16.msra.mxu1 %v10716_v41 }
 0xa2f   :  { %10718 = vmatprep.subr.bf16.mxu1 %v11509_v32 }
 0xa32   :  { %10720 = vmatpush3.bf16.msra.mxu1 %v10719_v46 }
 0xa33   :  { %10721 = vmatprep.subr.bf16.mxu1 %v11509_v32 }
 0xa36   :  { %10723 = vmatpush3.bf16.msra.mxu1 %v10722_v34 }
 0xa37   :  { %10724 = vmatprep.subr.bf16.mxu1 %v11509_v32 }
 0xa3a   :  { %10726 = vmatpush3.bf16.msra.mxu1 %v10725_v36 }
 0xa3b   :  { %10727 = vmatprep.subr.bf16.mxu1 %v11509_v32 }
 0xa3e   :  { %10729 = vmatpush3.bf16.msra.mxu1 %v10728_v7  ;;  %v10740_v7 = vpack.c.bf16 %v4640_v62, %v4639_v57  ;;  %v4795_v57 = vld [vmem:[#allocation17 + $0x350] sm:$0xff]  ;;  %v4796_v62 = vld [vmem:[#allocation17 + $0x358] sm:$0xff] }
 0xa3f   :  { %10730 = vmatprep.subr.bf16.mxu1 %v11509_v32 }
 0xa42   :  { %10732 = vmatpush3.bf16.msra.mxu1 %v10731_v12  ;;  %v4645_v12 = vld [vmem:[#allocation17 + $0x2c0] sm:$0xff] }
 0xa43   :  { %10733 = vmatprep.subr.bf16.mxu1 %v11509_v32  ;;  %v10749_v13 = vpack.c.bf16 %v4646_v26, %v4645_v12  ;;  %v10803_v12 = vpack.c.bf16 %v4798_v47, %v4797_v27  ;;  %v4815_v26 = vld [vmem:[#allocation17 + $0x3e8] sm:$0xff]  ;;  %v5006_v27 = vld [vmem:[#allocation17 + $0x430] sm:$0xff]  ;;  %v5007_v47 = vld [vmem:[#allocation17 + $0x438] sm:$0xff] }
 0xa46   :  { %10735 = vmatpush3.bf16.msra.mxu1 %v10734_v18  ;;  %v4650_v18 = vld [vmem:[#allocation17 + $0x2e8] sm:$0xff] }
 0xa47   :  { %10760 = vmatprep.subr.bf16.mxu1 %v11509_v32 }
 0xada   :  { %v4273_v16 = vpop.f32.mrb[32].mxu0 }
 0xadb   :  { %v9119_v20 = vpop.f32.mrb[33].mxu0 }
 0xadc   :  { %v4184_v42 = vpop.f32.mrb[24].mxu1  ;;  %v4651_v20 = vld [vmem:[#allocation17 + $0x2f0] sm:$0xff] }
 0xadd   :  { %v4274_v0 = vadd.f32 %v4273_v16, %v4184_v42  ;;  %v9084_v60 = vpop.f32.mrb[25].mxu1  ;;  %v10755_v16 = vpack.c.bf16 %v4650_v18, %v4649_v14  ;;  %v4652_v42 = vld [vmem:[#allocation17 + $0x2f8] sm:$0xff]  ;;  %v10806_v18 = vpack.c.bf16 %v4800_v38, %v4799_v54  ;;  %v5010_v54 = vld [vmem:[#allocation17 + $0x450] sm:$0xff] }
 0xade   :  { %v10758_v60 = vpack.c.bf16 %v4652_v42, %v4651_v20  ;;  %v4817_v14 = vld [vmem:[#allocation17 + $0x3f8] sm:$0xff] }
 0xadf   :  { %v5011_v38 = vld [vmem:[#allocation17 + $0x458] sm:$0xff] }
 0xafc   :  { %v4371_v19 = vpop.f32.mrb[26].mxu1 }
 0xafd   :  { %v4375_v24 = vadd.f32 %v4371_v19, %v4274_v0  ;;  %v9154_v28 = vpop.f32.mrb[27].mxu1 }
 0xafe   :  { %v4786_v28 = vld [vmem:[#allocation17 + $0x308] sm:$0xff] }
 0xaff   :  { %v4382_v33 = vadd.f32 %v7687_v5, %v4375_v24  ;;  %v4785_v24 = vld [vmem:[#allocation17 + $0x300] sm:$0xff] }
 0xb01   :  { %v4384_v35 = vcombine.high %v4382_v33, %v4382_v33  ;;  %v4391_v15 = vrot.slane %v4382_v33, %v11870_v40  ;;  %v4802_v33 = vld [vmem:[#allocation17 + $0x380] sm:$0xff] }
 0xb03   :  { %v4398_v37 = vrot.slane %v4384_v35, %v11870_v40  ;;  %v4399_v11 = vcombine.high %v4391_v15, %v4391_v15  ;;  %v4405_v52 = vmax.f32 %v4391_v15, 0.0  ;;  %v10785_v35 = vpack.c.bf16 %v4786_v28, %v4785_v24  ;;  %v4803_v15 = vld [vmem:[#allocation17 + $0x388] sm:$0xff] }
 0xb05   :  { %v4400_v21 = vcombine.high %v4398_v37, %v4398_v37  ;;  %v4406_v39 = vmax.f32 %v4399_v11, 0.0  ;;  %v4407_v41 = vmax.f32 %v4398_v37, 0.0  ;;  %4411 = vst [vmem:[#allocation4 + $0x2] sm:$0x3] %v4405_v52  ;;  %v10761_v37 = vpack.c.bf16 %v4803_v15, %v4802_v33  ;;  %v4787_v11 = vld [vmem:[#allocation17 + $0x310] sm:$0xff]  ;;  %v4788_v52 = vld [vmem:[#allocation17 + $0x318] sm:$0xff] }
 0xb07   :  { %v4408_v43 = vmax.f32 %v4400_v21, 0.0  ;;  %4412 = vst [vmem:[#allocation4 + $0x4] sm:$0x3] %v4406_v39  ;;  %4413 = vst [vmem:[#allocation4 + $0x6] sm:$0x3] %v4407_v41  ;;  %v10788_v21 = vpack.c.bf16 %v4788_v52, %v4787_v11  ;;  %v4804_v39 = vld [vmem:[#allocation17 + $0x390] sm:$0xff] }
 0xb08   :  { %v4805_v41 = vld [vmem:[#allocation17 + $0x398] sm:$0xff] }
 0xb09   :  { %4414 = vst [vmem:[#allocation4 + $0x8] sm:$0x3] %v4408_v43  ;;  %v10764_v43 = vpack.c.bf16 %v4805_v41, %v4804_v39 }
 0xb0c   :  { %v4416_v45 = vld [vmem:[#allocation4 + $0x2] sm:$0x3] }
 0xb0d   :  { %v4548_v46 = vcombine.low %v4415_v44, %v4416_v45  ;;  %v4789_v44 = vld [vmem:[#allocation17 + $0x320] sm:$0xff] }
 0xb0e   :  { %v4417_v23 = vld [vmem:[#allocation4 + $0x4] sm:$0x3]  ;;  %v4418_v31 = vld [vmem:[#allocation4 + $0x6] sm:$0x3] }
 0xb0f   :  { %v4549_v17 = vcombine.low %v4417_v23, %v4418_v31  ;;  %v4459_v48 = vcombine.low %v4416_v45, %v4417_v23  ;;  %v4556_v34 = vrot.slane %v4548_v46, %v11870_v40  ;;  %v4790_v45 = vld [vmem:[#allocation17 + $0x328] sm:$0xff]  ;;  %v4806_v23 = vld [vmem:[#allocation17 + $0x3a0] sm:$0xff] }
 0xb10   :  { %v4419_v49 = vld [vmem:[#allocation4 + $0x8] sm:$0x3]  ;;  %v10791_v46 = vpack.c.bf16 %v4790_v45, %v4789_v44 }
 0xb11   :  { %v4563_v50 = vrot.slane %v4549_v17, %v11870_v40  ;;  %v4460_v51 = vcombine.low %v4418_v31, %v4419_v49  ;;  %v4467_v36 = vrot.slane %v4459_v48, %v11870_v40  ;;  %v4654_v0 = vcombine.low %v4419_v49, %v4420_v6  ;;  %v4807_v31 = vld [vmem:[#allocation17 + $0x3a8] sm:$0xff]  ;;  %v4791_v48 = vld [vmem:[#allocation17 + $0x330] sm:$0xff]  ;;  %v4792_v49 = vld [vmem:[#allocation17 + $0x338] sm:$0xff] }
 0xb12   :  { %v10767_v17 = vpack.c.bf16 %v4807_v31, %v4806_v23 }
 0xb13   :  { %v4564_v59 = vcombine.low %v4556_v34, %v4563_v50  ;;  %v4474_v29 = vrot.slane %v4460_v51, %v11870_v40  ;;  %v4661_v5 = vrot.slane %v4654_v0, %v11870_v40  ;;  %v10794_v34 = vpack.c.bf16 %v4792_v49, %v4791_v48  ;;  %v4809_v51 = vld [vmem:[#allocation17 + $0x3b8] sm:$0xff] }
 0xb15   :  { %9223 = vmatmul.mubr.f32.vlgmr.msra.gmra.mrb[28].mxu1 %v4564_v59  ;;  %v4475_v3 = vcombine.low %v4467_v36, %v4474_v29  ;;  %v4662_v19 = vcombine.low %v4563_v50, %v4661_v5  ;;  %v4808_v50 = vld [vmem:[#allocation17 + $0x3b0] sm:$0xff]  ;;  %v4794_v59 = vld [vmem:[#allocation17 + $0x348] sm:$0xff]  ;;  %v4810_v29 = vld [vmem:[#allocation17 + $0x3c0] sm:$0xff] }
 0xb16   :  { %9292 = vmatprep.mubr.msk.f32.mxu1 %vm11510_vm3, %v11507_v1  ;;  %10762 = vmatpush3.bf16.msra.mxu1 %v10761_v37  ;;  %v10770_v55 = vpack.c.bf16 %v4809_v51, %v4808_v50  ;;  %v10797_v36 = vpack.c.bf16 %v4794_v59, %v4793_v58  ;;  %v7689_v5 = vld [vmem:[%s13226_s12 + $0x1] ss:$0 sm:$0xff]  ;;  %v5001_v58 = vld [vmem:[#allocation17 + $0x408] sm:$0xff] }
 0xb17   :  { %9188 = vmatmul.mubr.f32.vlgmr.msra.gmra.mrb[34].mxu0 %v4475_v3  ;;  %10763 = vmatprep.subr.bf16.mxu1 %v11509_v32 }
 0xb18   :  { %10738 = vmatpush3.bf16.msra.mxu0 %v10737_v53  ;;  %9257 = vmatprep.mubr.msk.f32.mxu0 %vm11510_vm3, %v11507_v1  ;;  %v4811_v53 = vld [vmem:[#allocation17 + $0x3c8] sm:$0xff] }
 0xb19   :  { %10739 = vmatprep.subr.bf16.mxu0 %v11509_v32  ;;  %v10773_v3 = vpack.c.bf16 %v4811_v53, %v4810_v29 }
 0xb1a   :  { %10765 = vmatpush3.bf16.msra.mxu1 %v10764_v43 }
 0xb1b   :  { %10766 = vmatprep.subr.bf16.mxu1 %v11509_v32 }
 0xb1c   :  { %10741 = vmatpush3.bf16.msra.mxu0 %v10740_v7  ;;  %v10800_v7 = vpack.c.bf16 %v4796_v62, %v4795_v57  ;;  %v5002_v57 = vld [vmem:[#allocation17 + $0x410] sm:$0xff]  ;;  %v5003_v62 = vld [vmem:[#allocation17 + $0x418] sm:$0xff] }
 0xb1d   :  { %10742 = vmatprep.subr.bf16.mxu0 %v11509_v32 }
 0xb1e   :  { %10768 = vmatpush3.bf16.msra.mxu1 %v10767_v17 }
 0xb1f   :  { %10769 = vmatprep.subr.bf16.mxu1 %v11509_v32 }
 0xb20   :  { %10744 = vmatpush3.bf16.msra.mxu0 %v10743_v56  ;;  %v10776_v56 = vpack.c.bf16 %v4813_v4, %v4812_v22  ;;  %v5004_v22 = vld [vmem:[#allocation17 + $0x420] sm:$0xff]  ;;  %v5005_v4 = vld [vmem:[#allocation17 + $0x428] sm:$0xff] }
 0xb21   :  { %10745 = vmatprep.subr.bf16.mxu0 %v11509_v32 }
 0xb22   :  { %10771 = vmatpush3.bf16.msra.mxu1 %v10770_v55  ;;  %v5000_v55 = vld [vmem:[#allocation17 + $0x400] sm:$0xff] }
 0xb23   :  { %10772 = vmatprep.subr.bf16.mxu1 %v11509_v32  ;;  %v10809_v53 = vpack.c.bf16 %v5001_v58, %v5000_v55  ;;  %v5152_v58 = vld [vmem:[#allocation17 + $0x4c0] sm:$0xff] }
 0xb24   :  { %10747 = vmatpush3.bf16.msra.mxu0 %v10746_v10  ;;  %v4814_v10 = vld [vmem:[#allocation17 + $0x3e0] sm:$0xff] }
 0xb25   :  { %10748 = vmatprep.subr.bf16.mxu0 %v11509_v32 }
 0xb26   :  { %10774 = vmatpush3.bf16.msra.mxu1 %v10773_v3 }
 0xb27   :  { %10775 = vmatprep.subr.bf16.mxu1 %v11509_v32 }
 0xb28   :  { %10750 = vmatpush3.bf16.msra.mxu0 %v10749_v13  ;;  %v10779_v13 = vpack.c.bf16 %v4815_v26, %v4814_v10  ;;  %v10818_v10 = vpack.c.bf16 %v5007_v47, %v5006_v27  ;;  %v5009_v26 = vld [vmem:[#allocation17 + $0x448] sm:$0xff]  ;;  %v5156_v27 = vld [vmem:[#allocation17 + $0x4e0] sm:$0xff] }
 0xb29   :  { %10751 = vmatprep.subr.bf16.mxu0 %v11509_v32  ;;  %v5157_v47 = vld [vmem:[#allocation17 + $0x4e8] sm:$0xff] }
 0xb2a   :  { %10777 = vmatpush3.bf16.msra.mxu1 %v10776_v56  ;;  %v10815_v56 = vpack.c.bf16 %v5005_v4, %v5004_v22  ;;  %v5171_v22 = vld [vmem:[#allocation17 + $0x550] sm:$0xff]  ;;  %v5172_v4 = vld [vmem:[#allocation17 + $0x558] sm:$0xff] }
 0xb2b   :  { %10778 = vmatprep.subr.bf16.mxu1 %v11509_v32 }
 0xb2c   :  { %10753 = vmatpush3.bf16.msra.mxu0 %v10752_v9  ;;  %v4816_v9 = vld [vmem:[#allocation17 + $0x3f0] sm:$0xff] }
 0xb2d   :  { %10754 = vmatprep.subr.bf16.mxu0 %v11509_v32  ;;  %v10782_v6 = vpack.c.bf16 %v4817_v14, %v4816_v9  ;;  %v10824_v9 = vpack.c.bf16 %v5011_v38, %v5010_v54  ;;  %v5012_v14 = vld [vmem:[#allocation17 + $0x460] sm:$0xff]  ;;  %v5158_v54 = vld [vmem:[#allocation17 + $0x4f0] sm:$0xff]  ;;  %v5159_v38 = vld [vmem:[#allocation17 + $0x4f8] sm:$0xff] }
 0xb2e   :  { %10780 = vmatpush3.bf16.msra.mxu1 %v10779_v13 }
 0xb2f   :  { %10781 = vmatprep.subr.bf16.mxu1 %v11509_v32 }
 0xb30   :  { %10756 = vmatpush3.bf16.msra.mxu0 %v10755_v16 }
 0xb31   :  { %10757 = vmatprep.subr.bf16.mxu0 %v11509_v32 }
 0xb32   :  { %10783 = vmatpush3.bf16.msra.mxu1 %v10782_v6  ;;  %v4783_v6 = vld [vmem:[#allocation4 + $0xa] sm:$0x3] }
 0xb33   :  { %10808 = vmatprep.subr.bf16.mxu1 %v11509_v32 }
 0xb34   :  { %10759 = vmatpush3.bf16.msra.mxu0 %v10758_v60 }
 0xb35   :  { %10784 = vmatprep.subr.bf16.mxu0 %v11509_v32 }
 0xb37   :  { %9258 = vmatmul.mubr.f32.vlgmr.msra.gmra.mrb[36].mxu0 %v4662_v19 }
 0xb38   :  { %9327 = vmatprep.mubr.msk.f32.mxu0 %vm11510_vm3, %v11507_v1  ;;  %10786 = vmatpush3.bf16.msra.mxu0 %v10785_v35 }
 0xb39   :  { %10787 = vmatprep.subr.bf16.mxu0 %v11509_v32 }
 0xb3c   :  { %10789 = vmatpush3.bf16.msra.mxu0 %v10788_v21 }
 0xb3d   :  { %10790 = vmatprep.subr.bf16.mxu0 %v11509_v32 }
 0xb40   :  { %10792 = vmatpush3.bf16.msra.mxu0 %v10791_v46 }
 0xb41   :  { %10793 = vmatprep.subr.bf16.mxu0 %v11509_v32 }
 0xb44   :  { %10795 = vmatpush3.bf16.msra.mxu0 %v10794_v34 }
 0xb45   :  { %10796 = vmatprep.subr.bf16.mxu0 %v11509_v32 }
 0xb48   :  { %10798 = vmatpush3.bf16.msra.mxu0 %v10797_v36 }
 0xb49   :  { %10799 = vmatprep.subr.bf16.mxu0 %v11509_v32 }
 0xb4c   :  { %10801 = vmatpush3.bf16.msra.mxu0 %v10800_v7  ;;  %v10812_v7 = vpack.c.bf16 %v5003_v62, %v5002_v57  ;;  %v5154_v57 = vld [vmem:[#allocation17 + $0x4d0] sm:$0xff]  ;;  %v5155_v62 = vld [vmem:[#allocation17 + $0x4d8] sm:$0xff] }
 0xb4d   :  { %10802 = vmatprep.subr.bf16.mxu0 %v11509_v32 }
 0xb50   :  { %10804 = vmatpush3.bf16.msra.mxu0 %v10803_v12  ;;  %v5008_v12 = vld [vmem:[#allocation17 + $0x440] sm:$0xff] }
 0xb51   :  { %10805 = vmatprep.subr.bf16.mxu0 %v11509_v32  ;;  %v10821_v13 = vpack.c.bf16 %v5009_v26, %v5008_v12  ;;  %v10875_v12 = vpack.c.bf16 %v5157_v47, %v5156_v27  ;;  %v5174_v26 = vld [vmem:[#allocation17 + $0x568] sm:$0xff]  ;;  %v5365_v27 = vld [vmem:[#allocation17 + $0x5b0] sm:$0xff]  ;;  %v5366_v47 = vld [vmem:[#allocation17 + $0x5b8] sm:$0xff] }
 0xb54   :  { %10807 = vmatpush3.bf16.msra.mxu0 %v10806_v18  ;;  %v5013_v18 = vld [vmem:[#allocation17 + $0x468] sm:$0xff] }
 0xb55   :  { %10832 = vmatprep.subr.bf16.mxu0 %v11509_v32 }
 0xbe8   :  { %v4632_v16 = vpop.f32.mrb[28].mxu1 }
 0xbe9   :  { %v9224_v20 = vpop.f32.mrb[29].mxu1 }
 0xbea   :  { %v4543_v42 = vpop.f32.mrb[34].mxu0  ;;  %v5014_v20 = vld [vmem:[#allocation17 + $0x470] sm:$0xff] }
 0xbeb   :  { %v4633_v0 = vadd.f32 %v4632_v16, %v4543_v42  ;;  %v9189_v60 = vpop.f32.mrb[35].mxu0  ;;  %v10827_v16 = vpack.c.bf16 %v5013_v18, %v5012_v14  ;;  %v5015_v42 = vld [vmem:[#allocation17 + $0x478] sm:$0xff]  ;;  %v10878_v18 = vpack.c.bf16 %v5159_v38, %v5158_v54  ;;  %v5369_v54 = vld [vmem:[#allocation17 + $0x5d0] sm:$0xff] }
 0xbec   :  { %v10830_v60 = vpack.c.bf16 %v5015_v42, %v5014_v20  ;;  %v5176_v14 = vld [vmem:[#allocation17 + $0x578] sm:$0xff] }
 0xbed   :  { %v5370_v38 = vld [vmem:[#allocation17 + $0x5d8] sm:$0xff] }
 0xc0a   :  { %v4730_v19 = vpop.f32.mrb[36].mxu0 }
 0xc0b   :  { %v4734_v24 = vadd.f32 %v4730_v19, %v4633_v0  ;;  %v9259_v28 = vpop.f32.mrb[37].mxu0 }
 0xc0c   :  { %v5145_v28 = vld [vmem:[#allocation17 + $0x488] sm:$0xff] }
 0xc0d   :  { %v4741_v33 = vadd.f32 %v7689_v5, %v4734_v24  ;;  %v5144_v24 = vld [vmem:[#allocation17 + $0x480] sm:$0xff] }
 0xc0f   :  { %v4743_v35 = vcombine.high %v4741_v33, %v4741_v33  ;;  %v4750_v15 = vrot.slane %v4741_v33, %v11870_v40  ;;  %v5161_v33 = vld [vmem:[#allocation17 + $0x500] sm:$0xff] }
 0xc11   :  { %v4757_v37 = vrot.slane %v4743_v35, %v11870_v40  ;;  %v4758_v11 = vcombine.high %v4750_v15, %v4750_v15  ;;  %v12753_v52 = vadd.f32 %v4750_v15, %v12660_v8  ;;  %v10857_v35 = vpack.c.bf16 %v5145_v28, %v5144_v24  ;;  %v5162_v15 = vld [vmem:[#allocation17 + $0x508] sm:$0xff] }
 0xc13   :  { %v4759_v21 = vcombine.high %v4757_v37, %v4757_v37  ;;  %v12756_v39 = vadd.f32 %v4758_v11, %v12663_v30  ;;  %v12759_v41 = vadd.f32 %v4757_v37, %v12665_v63  ;;  %v4768_v43 = vmax.f32 %v12753_v52, 0.0  ;;  %v4778_v30 = vld [vmem:[#allocation4] sm:$0x3]  ;;  %v5146_v37 = vld [vmem:[#allocation17 + $0x490] sm:$0xff]  ;;  %v5147_v11 = vld [vmem:[#allocation17 + $0x498] sm:$0xff] }
 0xc15   :  { %v12763_v44 = vadd.f32 %v4759_v21, %v12668_v25  ;;  %v4769_v45 = vmax.f32 %v12756_v39, 0.0  ;;  %v4770_v46 = vmax.f32 %v12759_v41, 0.0  ;;  %4774 = vst [vmem:[#allocation4 + $0x2] sm:$0x3] %v4768_v43  ;;  %v10833_v21 = vpack.c.bf16 %v5162_v15, %v5161_v33  ;;  %v5163_v43 = vld [vmem:[#allocation17 + $0x510] sm:$0xff] }
 0xc17   :  { %v4771_v8 = vmax.f32 %v12763_v44, 0.0  ;;  %4775 = vst [vmem:[#allocation4 + $0x4] sm:$0x3] %v4769_v45  ;;  %4776 = vst [vmem:[#allocation4 + $0x6] sm:$0x3] %v4770_v46  ;;  %v5164_v45 = vld [vmem:[#allocation17 + $0x518] sm:$0xff]  ;;  %v10860_v46 = vpack.c.bf16 %v5147_v11, %v5146_v37 }
 0xc19   :  { %4777 = vst [vmem:[#allocation4 + $0x8] sm:$0x3] %v4771_v8  ;;  %v10836_v8 = vpack.c.bf16 %v5164_v45, %v5163_v43 }
 0xc1c   :  { %v4779_v23 = vld [vmem:[#allocation4 + $0x2] sm:$0x3] }
 0xc1d   :  { %v4911_v31 = vcombine.low %v4778_v30, %v4779_v23  ;;  %v5148_v30 = vld [vmem:[#allocation17 + $0x4a0] sm:$0xff] }
 0xc1e   :  { %v4780_v63 = vld [vmem:[#allocation4 + $0x4] sm:$0x3]  ;;  %v4781_v17 = vld [vmem:[#allocation4 + $0x6] sm:$0x3] }
 0xc1f   :  { %v4912_v48 = vcombine.low %v4780_v63, %v4781_v17  ;;  %v4822_v49 = vcombine.low %v4779_v23, %v4780_v63  ;;  %v4919_v25 = vrot.slane %v4911_v31, %v11870_v40  ;;  %v5149_v23 = vld [vmem:[#allocation17 + $0x4a8] sm:$0xff]  ;;  %v5165_v63 = vld [vmem:[#allocation17 + $0x520] sm:$0xff] }
 0xc20   :  { %v4782_v34 = vld [vmem:[#allocation4 + $0x8] sm:$0x3]  ;;  %v10863_v31 = vpack.c.bf16 %v5149_v23, %v5148_v30  ;;  %v5137_v30 = vld [vmem:[#allocation4] sm:$0x3] }
 0xc21   :  { %v4926_v50 = vrot.slane %v4912_v48, %v11870_v40  ;;  %v4823_v51 = vcombine.low %v4781_v17, %v4782_v34  ;;  %v4830_v36 = vrot.slane %v4822_v49, %v11870_v40  ;;  %v5017_v0 = vcombine.low %v4782_v34, %v4783_v6  ;;  %v5166_v17 = vld [vmem:[#allocation17 + $0x528] sm:$0xff]  ;;  %v5150_v49 = vld [vmem:[#allocation17 + $0x4b0] sm:$0xff]  ;;  %v5151_v34 = vld [vmem:[#allocation17 + $0x4b8] sm:$0xff] }
 0xc22   :  { %v10839_v48 = vpack.c.bf16 %v5166_v17, %v5165_v63 }
 0xc23   :  { %v4927_v59 = vcombine.low %v4919_v25, %v4926_v50  ;;  %v4837_v29 = vrot.slane %v4823_v51, %v11870_v40  ;;  %v5024_v5 = vrot.slane %v5017_v0, %v11870_v40  ;;  %v10866_v25 = vpack.c.bf16 %v5151_v34, %v5150_v49  ;;  %v5168_v51 = vld [vmem:[#allocation17 + $0x538] sm:$0xff] }
 0xc25   :  { %9328 = vmatmul.mubr.f32.vlgmr.msra.gmra.mrb[38].mxu0 %v4927_v59  ;;  %v4838_v3 = vcombine.low %v4830_v36, %v4837_v29  ;;  %v5025_v19 = vcombine.low %v4926_v50, %v5024_v5  ;;  %v5167_v50 = vld [vmem:[#allocation17 + $0x530] sm:$0xff]  ;;  %v5153_v59 = vld [vmem:[#allocation17 + $0x4c8] sm:$0xff]  ;;  %v5169_v29 = vld [vmem:[#allocation17 + $0x540] sm:$0xff] }
 0xc26   :  { %9397 = vmatprep.mubr.msk.f32.mxu0 %vm11510_vm3, %v11507_v1  ;;  %10834 = vmatpush3.bf16.msra.mxu0 %v10833_v21  ;;  %v10842_v55 = vpack.c.bf16 %v5168_v51, %v5167_v50  ;;  %v10869_v36 = vpack.c.bf16 %v5153_v59, %v5152_v58  ;;  %v7691_v5 = vld [vmem:[%s13226_s12 + $0x2] ss:$0 sm:$0xff]  ;;  %v5360_v58 = vld [vmem:[#allocation17 + $0x588] sm:$0xff] }
 0xc27   :  { %9293 = vmatmul.mubr.f32.vlgmr.msra.gmra.mrb[30].mxu1 %v4838_v3  ;;  %10835 = vmatprep.subr.bf16.mxu0 %v11509_v32 }
 0xc28   :  { %10810 = vmatpush3.bf16.msra.mxu1 %v10809_v53  ;;  %9362 = vmatprep.mubr.msk.f32.mxu1 %vm11510_vm3, %v11507_v1  ;;  %v5170_v53 = vld [vmem:[#allocation17 + $0x548] sm:$0xff] }
 0xc29   :  { %10811 = vmatprep.subr.bf16.mxu1 %v11509_v32  ;;  %v10845_v3 = vpack.c.bf16 %v5170_v53, %v5169_v29 }
 0xc2a   :  { %10837 = vmatpush3.bf16.msra.mxu0 %v10836_v8 }
 0xc2b   :  { %10838 = vmatprep.subr.bf16.mxu0 %v11509_v32 }
 0xc2c   :  { %10813 = vmatpush3.bf16.msra.mxu1 %v10812_v7  ;;  %v10872_v7 = vpack.c.bf16 %v5155_v62, %v5154_v57  ;;  %v5361_v57 = vld [vmem:[#allocation17 + $0x590] sm:$0xff]  ;;  %v5362_v62 = vld [vmem:[#allocation17 + $0x598] sm:$0xff] }
 0xc2d   :  { %10814 = vmatprep.subr.bf16.mxu1 %v11509_v32 }
 0xc2e   :  { %10840 = vmatpush3.bf16.msra.mxu0 %v10839_v48 }
 0xc2f   :  { %10841 = vmatprep.subr.bf16.mxu0 %v11509_v32 }
 0xc30   :  { %10816 = vmatpush3.bf16.msra.mxu1 %v10815_v56  ;;  %v10848_v56 = vpack.c.bf16 %v5172_v4, %v5171_v22  ;;  %v5363_v22 = vld [vmem:[#allocation17 + $0x5a0] sm:$0xff]  ;;  %v5364_v4 = vld [vmem:[#allocation17 + $0x5a8] sm:$0xff] }
 0xc31   :  { %10817 = vmatprep.subr.bf16.mxu1 %v11509_v32 }
 0xc32   :  { %10843 = vmatpush3.bf16.msra.mxu0 %v10842_v55  ;;  %v5359_v55 = vld [vmem:[#allocation17 + $0x580] sm:$0xff] }
 0xc33   :  { %10844 = vmatprep.subr.bf16.mxu0 %v11509_v32  ;;  %v10881_v53 = vpack.c.bf16 %v5360_v58, %v5359_v55  ;;  %v5509_v58 = vld [vmem:[#allocation18 + $0x40] sm:$0xff] }
 0xc34   :  { %10819 = vmatpush3.bf16.msra.mxu1 %v10818_v10  ;;  %v5173_v10 = vld [vmem:[#allocation17 + $0x560] sm:$0xff] }
 0xc35   :  { %10820 = vmatprep.subr.bf16.mxu1 %v11509_v32 }
 0xc36   :  { %10846 = vmatpush3.bf16.msra.mxu0 %v10845_v3 }
 0xc37   :  { %10847 = vmatprep.subr.bf16.mxu0 %v11509_v32 }
 0xc38   :  { %10822 = vmatpush3.bf16.msra.mxu1 %v10821_v13  ;;  %v10851_v13 = vpack.c.bf16 %v5174_v26, %v5173_v10  ;;  %v10890_v10 = vpack.c.bf16 %v5366_v47, %v5365_v27  ;;  %v5368_v26 = vld [vmem:[#allocation17 + $0x5c8] sm:$0xff]  ;;  %v5513_v27 = vld [vmem:[#allocation18 + $0x60] sm:$0xff] }
 0xc39   :  { %10823 = vmatprep.subr.bf16.mxu1 %v11509_v32  ;;  %v5514_v47 = vld [vmem:[#allocation18 + $0x68] sm:$0xff] }
 0xc3a   :  { %10849 = vmatpush3.bf16.msra.mxu0 %v10848_v56  ;;  %v10887_v56 = vpack.c.bf16 %v5364_v4, %v5363_v22  ;;  %v5528_v22 = vld [vmem:[#allocation18 + $0xd0] sm:$0xff]  ;;  %v5529_v4 = vld [vmem:[#allocation18 + $0xd8] sm:$0xff] }
 0xc3b   :  { %10850 = vmatprep.subr.bf16.mxu0 %v11509_v32 }
 0xc3c   :  { %10825 = vmatpush3.bf16.msra.mxu1 %v10824_v9  ;;  %v5175_v9 = vld [vmem:[#allocation17 + $0x570] sm:$0xff] }
 0xc3d   :  { %10826 = vmatprep.subr.bf16.mxu1 %v11509_v32  ;;  %v10854_v6 = vpack.c.bf16 %v5176_v14, %v5175_v9  ;;  %v10896_v9 = vpack.c.bf16 %v5370_v38, %v5369_v54  ;;  %v5371_v14 = vld [vmem:[#allocation17 + $0x5e0] sm:$0xff]  ;;  %v5515_v54 = vld [vmem:[#allocation18 + $0x70] sm:$0xff]  ;;  %v5516_v38 = vld [vmem:[#allocation18 + $0x78] sm:$0xff] }
 0xc3e   :  { %10852 = vmatpush3.bf16.msra.mxu0 %v10851_v13 }
 0xc3f   :  { %10853 = vmatprep.subr.bf16.mxu0 %v11509_v32 }
 0xc40   :  { %10828 = vmatpush3.bf16.msra.mxu1 %v10827_v16 }
 0xc41   :  { %10829 = vmatprep.subr.bf16.mxu1 %v11509_v32 }
 0xc42   :  { %10855 = vmatpush3.bf16.msra.mxu0 %v10854_v6  ;;  %v5142_v6 = vld [vmem:[#allocation4 + $0xa] sm:$0x3] }
 0xc43   :  { %10880 = vmatprep.subr.bf16.mxu0 %v11509_v32 }
 0xc44   :  { %10831 = vmatpush3.bf16.msra.mxu1 %v10830_v60 }
 0xc45   :  { %10856 = vmatprep.subr.bf16.mxu1 %v11509_v32 }
 0xc47   :  { %9363 = vmatmul.mubr.f32.vlgmr.msra.gmra.mrb[32].mxu1 %v5025_v19 }
 0xc48   :  { %9432 = vmatprep.mubr.msk.f32.mxu1 %vm11510_vm3, %v11507_v1  ;;  %10858 = vmatpush3.bf16.msra.mxu1 %v10857_v35 }
 0xc49   :  { %10859 = vmatprep.subr.bf16.mxu1 %v11509_v32 }
 0xc4c   :  { %10861 = vmatpush3.bf16.msra.mxu1 %v10860_v46 }
 0xc4d   :  { %10862 = vmatprep.subr.bf16.mxu1 %v11509_v32 }
 0xc50   :  { %10864 = vmatpush3.bf16.msra.mxu1 %v10863_v31 }
 0xc51   :  { %10865 = vmatprep.subr.bf16.mxu1 %v11509_v32 }
 0xc54   :  { %10867 = vmatpush3.bf16.msra.mxu1 %v10866_v25 }
 0xc55   :  { %10868 = vmatprep.subr.bf16.mxu1 %v11509_v32 }
 0xc58   :  { %10870 = vmatpush3.bf16.msra.mxu1 %v10869_v36 }
 0xc59   :  { %10871 = vmatprep.subr.bf16.mxu1 %v11509_v32 }
 0xc5c   :  { %10873 = vmatpush3.bf16.msra.mxu1 %v10872_v7  ;;  %v10884_v7 = vpack.c.bf16 %v5362_v62, %v5361_v57  ;;  %v5511_v57 = vld [vmem:[#allocation18 + $0x50] sm:$0xff]  ;;  %v5512_v62 = vld [vmem:[#allocation18 + $0x58] sm:$0xff] }
 0xc5d   :  { %10874 = vmatprep.subr.bf16.mxu1 %v11509_v32 }
 0xc60   :  { %10876 = vmatpush3.bf16.msra.mxu1 %v10875_v12  ;;  %v5367_v12 = vld [vmem:[#allocation17 + $0x5c0] sm:$0xff] }
 0xc61   :  { %10877 = vmatprep.subr.bf16.mxu1 %v11509_v32  ;;  %v10893_v13 = vpack.c.bf16 %v5368_v26, %v5367_v12  ;;  %v10947_v12 = vpack.c.bf16 %v5514_v47, %v5513_v27  ;;  %v5531_v26 = vld [vmem:[#allocation18 + $0xe8] sm:$0xff] }
 0xc62   :  { %v5725_v27 = vld [vmem:[#allocation18 + $0x148] sm:$0xff] }
 0xc64   :  { %10879 = vmatpush3.bf16.msra.mxu1 %v10878_v18  ;;  %v5372_v18 = vld [vmem:[#allocation17 + $0x5e8] sm:$0xff] }
 0xc65   :  { %10904 = vmatprep.subr.bf16.mxu1 %v11509_v32 }
 0xcf8   :  { %v4995_v16 = vpop.f32.mrb[38].mxu0 }
 0xcf9   :  { %v9329_v20 = vpop.f32.mrb[39].mxu0 }
 0xcfa   :  { %v4906_v42 = vpop.f32.mrb[30].mxu1  ;;  %v5373_v20 = vld [vmem:[#allocation17 + $0x5f0] sm:$0xff] }
 0xcfb   :  { %v4996_v0 = vadd.f32 %v4995_v16, %v4906_v42  ;;  %v9294_v60 = vpop.f32.mrb[31].mxu1  ;;  %v10899_v16 = vpack.c.bf16 %v5372_v18, %v5371_v14  ;;  %v5374_v42 = vld [vmem:[#allocation17 + $0x5f8] sm:$0xff]  ;;  %v10950_v18 = vpack.c.bf16 %v5516_v38, %v5515_v54  ;;  %v5729_v54 = vld [vmem:[#allocation18 + $0x168] sm:$0xff]  ;;  %v5500_v38 = vld [vmem:[#allocation4 + $0xa] sm:$0x3] }
 0xcfc   :  { %v10902_v60 = vpack.c.bf16 %v5374_v42, %v5373_v20  ;;  %v5533_v14 = vld [vmem:[#allocation18 + $0xf8] sm:$0xff] }
 0xd1a   :  { %v5093_v19 = vpop.f32.mrb[32].mxu1 }
 0xd1b   :  { %v5097_v24 = vadd.f32 %v5093_v19, %v4996_v0  ;;  %v9364_v28 = vpop.f32.mrb[33].mxu1 }
 0xd1c   :  { %v5502_v28 = vld [vmem:[#allocation18 + $0x8] sm:$0xff] }
 0xd1d   :  { %v5104_v33 = vadd.f32 %v7691_v5, %v5097_v24  ;;  %v5501_v24 = vld [vmem:[#allocation18] sm:$0xff] }
 0xd1f   :  { %v5106_v35 = vcombine.high %v5104_v33, %v5104_v33  ;;  %v5113_v15 = vrot.slane %v5104_v33, %v11870_v40  ;;  %v5518_v33 = vld [vmem:[#allocation18 + $0x80] sm:$0xff] }
 0xd21   :  { %v5120_v37 = vrot.slane %v5106_v35, %v11870_v40  ;;  %v5121_v11 = vcombine.high %v5113_v15, %v5113_v15  ;;  %v5127_v21 = vmax.f32 %v5113_v15, 0.0  ;;  %v10929_v35 = vpack.c.bf16 %v5502_v28, %v5501_v24  ;;  %v5519_v15 = vld [vmem:[#allocation18 + $0x88] sm:$0xff] }
 0xd23   :  { %v5122_v43 = vcombine.high %v5120_v37, %v5120_v37  ;;  %v5128_v45 = vmax.f32 %v5121_v11, 0.0  ;;  %v5129_v46 = vmax.f32 %v5120_v37, 0.0  ;;  %5133 = vst [vmem:[#allocation4 + $0x2] sm:$0x3] %v5127_v21  ;;  %v5503_v37 = vld [vmem:[#allocation18 + $0x10] sm:$0xff]  ;;  %v5504_v11 = vld [vmem:[#allocation18 + $0x18] sm:$0xff]  ;;  %v10905_v21 = vpack.c.bf16 %v5519_v15, %v5518_v33 }
 0xd25   :  { %v5130_v8 = vmax.f32 %v5122_v43, 0.0  ;;  %5134 = vst [vmem:[#allocation4 + $0x4] sm:$0x3] %v5128_v45  ;;  %5135 = vst [vmem:[#allocation4 + $0x6] sm:$0x3] %v5129_v46  ;;  %v5520_v43 = vld [vmem:[#allocation18 + $0x90] sm:$0xff]  ;;  %v10932_v46 = vpack.c.bf16 %v5504_v11, %v5503_v37 }
 0xd26   :  { %v5521_v45 = vld [vmem:[#allocation18 + $0x98] sm:$0xff] }
 0xd27   :  { %5136 = vst [vmem:[#allocation4 + $0x8] sm:$0x3] %v5130_v8  ;;  %v10908_v8 = vpack.c.bf16 %v5521_v45, %v5520_v43 }
 0xd2a   :  { %v5138_v23 = vld [vmem:[#allocation4 + $0x2] sm:$0x3] }
 0xd2b   :  { %v5270_v31 = vcombine.low %v5137_v30, %v5138_v23  ;;  %v5505_v30 = vld [vmem:[#allocation18 + $0x20] sm:$0xff] }
 0xd2c   :  { %v5139_v63 = vld [vmem:[#allocation4 + $0x4] sm:$0x3]  ;;  %v5140_v17 = vld [vmem:[#allocation4 + $0x6] sm:$0x3] }
 0xd2d   :  { %v5271_v48 = vcombine.low %v5139_v63, %v5140_v17  ;;  %v5181_v49 = vcombine.low %v5138_v23, %v5139_v63  ;;  %v5278_v25 = vrot.slane %v5270_v31, %v11870_v40  ;;  %v5506_v23 = vld [vmem:[#allocation18 + $0x28] sm:$0xff]  ;;  %v5522_v63 = vld [vmem:[#allocation18 + $0xa0] sm:$0xff] }
 0xd2e   :  { %v5141_v34 = vld [vmem:[#allocation4 + $0x8] sm:$0x3]  ;;  %v10935_v31 = vpack.c.bf16 %v5506_v23, %v5505_v30  ;;  %v5495_v30 = vld [vmem:[#allocation4] sm:$0x3] }
 0xd2f   :  { %v5285_v50 = vrot.slane %v5271_v48, %v11870_v40  ;;  %v5182_v51 = vcombine.low %v5140_v17, %v5141_v34  ;;  %v5189_v36 = vrot.slane %v5181_v49, %v11870_v40  ;;  %v5376_v0 = vcombine.low %v5141_v34, %v5142_v6  ;;  %v5523_v17 = vld [vmem:[#allocation18 + $0xa8] sm:$0xff]  ;;  %v5507_v49 = vld [vmem:[#allocation18 + $0x30] sm:$0xff]  ;;  %v5508_v34 = vld [vmem:[#allocation18 + $0x38] sm:$0xff] }
 0xd30   :  { %v10911_v48 = vpack.c.bf16 %v5523_v17, %v5522_v63 }
 0xd31   :  { %v5286_v59 = vcombine.low %v5278_v25, %v5285_v50  ;;  %v5196_v29 = vrot.slane %v5182_v51, %v11870_v40  ;;  %v5383_v5 = vrot.slane %v5376_v0, %v11870_v40  ;;  %v10938_v25 = vpack.c.bf16 %v5508_v34, %v5507_v49  ;;  %v5525_v51 = vld [vmem:[#allocation18 + $0xb8] sm:$0xff] }
 0xd33   :  { %9433 = vmatmul.mubr.f32.vlgmr.msra.gmra.mrb[34].mxu1 %v5286_v59  ;;  %v5197_v3 = vcombine.low %v5189_v36, %v5196_v29  ;;  %v5384_v19 = vcombine.low %v5285_v50, %v5383_v5  ;;  %v5524_v50 = vld [vmem:[#allocation18 + $0xb0] sm:$0xff]  ;;  %v5510_v59 = vld [vmem:[#allocation18 + $0x48] sm:$0xff]  ;;  %v5526_v29 = vld [vmem:[#allocation18 + $0xc0] sm:$0xff] }
 0xd34   :  { %9502 = vmatprep.mubr.msk.f32.mxu1 %vm11510_vm3, %v11507_v1  ;;  %10906 = vmatpush3.bf16.msra.mxu1 %v10905_v21  ;;  %v10914_v55 = vpack.c.bf16 %v5525_v51, %v5524_v50  ;;  %v10941_v36 = vpack.c.bf16 %v5510_v59, %v5509_v58  ;;  %v7693_v5 = vld [vmem:[%s13226_s12 + $0x3] ss:$0 sm:$0xff]  ;;  %v5717_v50 = vld [vmem:[#allocation18 + $0x108] sm:$0xff] }
 0xd35   :  { %9398 = vmatmul.mubr.f32.vlgmr.msra.gmra.mrb[40].mxu0 %v5197_v3  ;;  %10907 = vmatprep.subr.bf16.mxu1 %v11509_v32 }
 0xd36   :  { %10882 = vmatpush3.bf16.msra.mxu0 %v10881_v53  ;;  %9467 = vmatprep.mubr.msk.f32.mxu0 %vm11510_vm3, %v11507_v1  ;;  %v5527_v53 = vld [vmem:[#allocation18 + $0xc8] sm:$0xff] }
 0xd37   :  { %10883 = vmatprep.subr.bf16.mxu0 %v11509_v32  ;;  %v10917_v3 = vpack.c.bf16 %v5527_v53, %v5526_v29  ;;  %v5719_v29 = vld [vmem:[#allocation18 + $0x118] sm:$0xff] }
 0xd38   :  { %10909 = vmatpush3.bf16.msra.mxu1 %v10908_v8 }
 0xd39   :  { %10910 = vmatprep.subr.bf16.mxu1 %v11509_v32 }
 0xd3a   :  { %10885 = vmatpush3.bf16.msra.mxu0 %v10884_v7  ;;  %v10944_v7 = vpack.c.bf16 %v5512_v62, %v5511_v57  ;;  %v5721_v57 = vld [vmem:[#allocation18 + $0x128] sm:$0xff] }
 0xd3b   :  { %10886 = vmatprep.subr.bf16.mxu0 %v11509_v32 }
 0xd3c   :  { %10912 = vmatpush3.bf16.msra.mxu1 %v10911_v48 }
 0xd3d   :  { %10913 = vmatprep.subr.bf16.mxu1 %v11509_v32 }
 0xd3e   :  { %10888 = vmatpush3.bf16.msra.mxu0 %v10887_v56  ;;  %v10920_v56 = vpack.c.bf16 %v5529_v4, %v5528_v22  ;;  %v5723_v22 = vld [vmem:[#allocation18 + $0x138] sm:$0xff] }
 0xd3f   :  { %10889 = vmatprep.subr.bf16.mxu0 %v11509_v32 }
 0xd40   :  { %10915 = vmatpush3.bf16.msra.mxu1 %v10914_v55 }
 0xd41   :  { %10916 = vmatprep.subr.bf16.mxu1 %v11509_v32 }
 0xd42   :  { %10891 = vmatpush3.bf16.msra.mxu0 %v10890_v10  ;;  %v5530_v10 = vld [vmem:[#allocation18 + $0xe0] sm:$0xff] }
 0xd43   :  { %10892 = vmatprep.subr.bf16.mxu0 %v11509_v32 }
 0xd44   :  { %10918 = vmatpush3.bf16.msra.mxu1 %v10917_v3  ;;  %v5720_v3 = vld [vmem:[#allocation18 + $0x120] sm:$0xff] }
 0xd45   :  { %10919 = vmatprep.subr.bf16.mxu1 %v11509_v32  ;;  %v10959_v62 = vpack.c.bf16 %v5721_v57, %v5720_v3  ;;  %v5834_v3 = vld [vmem:[%s13229_s15 + $0x68] sm:$0xff]  ;;  %v7708_v57 = vld [vmem:[%s13229_s15 + $0xe0] sm:$0xff] }
 0xd46   :  { %10894 = vmatpush3.bf16.msra.mxu0 %v10893_v13  ;;  %v10923_v13 = vpack.c.bf16 %v5531_v26, %v5530_v10  ;;  %v5726_v10 = vld [vmem:[#allocation18 + $0x150] sm:$0xff] }
 0xd47   :  { %10895 = vmatprep.subr.bf16.mxu0 %v11509_v32 }
 0xd48   :  { %10921 = vmatpush3.bf16.msra.mxu1 %v10920_v56  ;;  %v5724_v56 = vld [vmem:[#allocation18 + $0x140] sm:$0xff] }
 0xd49   :  { %10922 = vmatprep.subr.bf16.mxu1 %v11509_v32  ;;  %v10965_v47 = vpack.c.bf16 %v5725_v27, %v5724_v56  ;;  %v5836_v56 = vld [vmem:[%s13229_s15 + $0x78] sm:$0xff] }
 0xd4a   :  { %10897 = vmatpush3.bf16.msra.mxu0 %v10896_v9  ;;  %v5532_v9 = vld [vmem:[#allocation18 + $0xf0] sm:$0xff] }
 0xd4b   :  { %10898 = vmatprep.subr.bf16.mxu0 %v11509_v32  ;;  %v10926_v6 = vpack.c.bf16 %v5533_v14, %v5532_v9  ;;  %v5730_v14 = vld [vmem:[#allocation18 + $0x170] sm:$0xff] }
 0xd4c   :  { %10924 = vmatpush3.bf16.msra.mxu1 %v10923_v13  ;;  %v5728_v13 = vld [vmem:[#allocation18 + $0x160] sm:$0xff] }
 0xd4d   :  { %10925 = vmatprep.subr.bf16.mxu1 %v11509_v32  ;;  %v10971_v9 = vpack.c.bf16 %v5729_v54, %v5728_v13 }
 0xd4e   :  { %10900 = vmatpush3.bf16.msra.mxu0 %v10899_v16 }
 0xd4f   :  { %10901 = vmatprep.subr.bf16.mxu0 %v11509_v32 }
 0xd50   :  { %10927 = vmatpush3.bf16.msra.mxu1 %v10926_v6 }
 0xd51   :  { %10952 = vmatprep.subr.bf16.mxu1 %v11509_v32 }
 0xd52   :  { %10903 = vmatpush3.bf16.msra.mxu0 %v10902_v60 }
 0xd53   :  { %10928 = vmatprep.subr.bf16.mxu0 %v11509_v32 }
 0xd55   :  { %9468 = vmatmul.mubr.f32.vlgmr.msra.gmra.mrb[42].mxu0 %v5384_v19 }
 0xd56   :  { %9537 = vmatprep.mubr.msk.f32.mxu0 %vm11510_vm3, %v11507_v1  ;;  %10930 = vmatpush3.bf16.msra.mxu0 %v10929_v35 }
 0xd57   :  { %10931 = vmatprep.subr.bf16.mxu0 %v11509_v32 }
 0xd5a   :  { %10933 = vmatpush3.bf16.msra.mxu0 %v10932_v46 }
 0xd5b   :  { %10934 = vmatprep.subr.bf16.mxu0 %v11509_v32 }
 0xd5e   :  { %10936 = vmatpush3.bf16.msra.mxu0 %v10935_v31 }
 0xd5f   :  { %10937 = vmatprep.subr.bf16.mxu0 %v11509_v32 }
 0xd62   :  { %10939 = vmatpush3.bf16.msra.mxu0 %v10938_v25 }
 0xd63   :  { %10940 = vmatprep.subr.bf16.mxu0 %v11509_v32 }
 0xd66   :  { %10942 = vmatpush3.bf16.msra.mxu0 %v10941_v36  ;;  %v5718_v36 = vld [vmem:[#allocation18 + $0x110] sm:$0xff] }
 0xd67   :  { %10943 = vmatprep.subr.bf16.mxu0 %v11509_v32  ;;  %v10956_v53 = vpack.c.bf16 %v5719_v29, %v5718_v36 }
 0xd6a   :  { %10945 = vmatpush3.bf16.msra.mxu0 %v10944_v7  ;;  %v5722_v7 = vld [vmem:[#allocation18 + $0x130] sm:$0xff] }
 0xd6b   :  { %10946 = vmatprep.subr.bf16.mxu0 %v11509_v32  ;;  %v10962_v4 = vpack.c.bf16 %v5723_v22, %v5722_v7 }
 0xd6e   :  { %10948 = vmatpush3.bf16.msra.mxu0 %v10947_v12  ;;  %v5727_v12 = vld [vmem:[#allocation18 + $0x158] sm:$0xff] }
 0xd6f   :  { %10949 = vmatprep.subr.bf16.mxu0 %v11509_v32  ;;  %v10968_v26 = vpack.c.bf16 %v5727_v12, %v5726_v10  ;;  %v7711_v10 = vld [vmem:[%s13229_s15 + $0xf8] sm:$0xff] }
 0xd72   :  { %10951 = vmatpush3.bf16.msra.mxu0 %v10950_v18  ;;  %v5731_v18 = vld [vmem:[#allocation18 + $0x178] sm:$0xff] }
 0xd73   :  { %10976 = vmatprep.subr.bf16.mxu0 %v11509_v32 }
 0xe06   :  { %v5354_v16 = vpop.f32.mrb[34].mxu1 }
 0xe07   :  { %v9434_v20 = vpop.f32.mrb[35].mxu1 }
 0xe08   :  { %v5265_v42 = vpop.f32.mrb[40].mxu0 }
 0xe09   :  { %v5355_v0 = vadd.f32 %v5354_v16, %v5265_v42  ;;  %v9399_v60 = vpop.f32.mrb[41].mxu0  ;;  %v10974_v16 = vpack.c.bf16 %v5731_v18, %v5730_v14  ;;  %v7714_v14 = vld [vmem:[%s13229_s15 + $0x100] sm:$0xff]  ;;  %v7715_v18 = vld [vmem:[%s13229_s15 + $0x108] sm:$0xff] }
 0xe0a   :  { %v5822_v60 = vld [vmem:[%s13229_s15 + $0x8] sm:$0xff] }
 0xe28   :  { %v5452_v19 = vpop.f32.mrb[42].mxu0 }
 0xe29   :  { %v5456_v24 = vadd.f32 %v5452_v19, %v5355_v0  ;;  %v9469_v28 = vpop.f32.mrb[43].mxu0  ;;  %v5821_v0 = vld [vmem:[%s13229_s15] sm:$0xff] }
 0xe2a   :  { %v10977_v19 = vpack.c.bf16 %v5822_v60, %v5821_v0  ;;  %v5823_v28 = vld [vmem:[%s13229_s15 + $0x10] sm:$0xff]  ;;  %v11025_v0 = vpack.c.bf16 %v7715_v18, %v7714_v14 }
 0xe2b   :  { %v5463_v33 = vadd.f32 %v7693_v5, %v5456_v24  ;;  %v7696_v5 = vld [vmem:[%s13229_s15 + $0x80] sm:$0xff]  ;;  %v7697_v24 = vld [vmem:[%s13229_s15 + $0x88] sm:$0xff] }
 0xe2d   :  { %v5465_v35 = vcombine.high %v5463_v33, %v5463_v33  ;;  %v5472_v15 = vrot.slane %v5463_v33, %v11870_v40  ;;  %v5824_v33 = vld [vmem:[%s13229_s15 + $0x18] sm:$0xff] }
 0xe2f   :  { %v5479_v37 = vrot.slane %v5465_v35, %v11870_v40  ;;  %v5480_v11 = vcombine.high %v5472_v15, %v5472_v15  ;;  %v5486_v21 = vadd.f32 %v5472_v15, %v12753_v52  ;;  %v11001_v35 = vpack.c.bf16 %v7697_v24, %v7696_v5  ;;  %v7698_v15 = vld [vmem:[%s13229_s15 + $0x90] sm:$0xff] }
 0xe30   :  { %v7716_v5 = vld [vmem:[%s13229_s15 + $0x110] sm:$0xff] }
 0xe31   :  { %v5481_v43 = vcombine.high %v5479_v37, %v5479_v37  ;;  %v5487_v45 = vadd.f32 %v5480_v11, %v12756_v39  ;;  %v5488_v46 = vadd.f32 %v5479_v37, %v12759_v41  ;;  %5491 = vst [vmem:[#allocation4 + $0x2] sm:$0x3] %v5486_v21  ;;  %v5716_v41 = vld [vmem:[#allocation18 + $0x100] sm:$0xff]  ;;  %v7699_v37 = vld [vmem:[%s13229_s15 + $0x98] sm:$0xff]  ;;  %v10980_v11 = vpack.c.bf16 %v5824_v33, %v5823_v28  ;;  %v7718_v28 = vld [vmem:[%s13229_s15 + $0x120] sm:$0xff] }
 0xe32   :  { %v10953_v58 = vpack.c.bf16 %v5717_v50, %v5716_v41  ;;  %v11004_v21 = vpack.c.bf16 %v7699_v37, %v7698_v15  ;;  %v7705_v41 = vld [vmem:[%s13229_s15 + $0xc8] sm:$0xff]  ;;  %v7720_v15 = vld [vmem:[%s13229_s15 + $0x130] sm:$0xff]  ;;  %v7721_v37 = vld [vmem:[%s13229_s15 + $0x138] sm:$0xff] }
 0xe33   :  { %v5489_v8 = vadd.f32 %v5481_v43, %v12763_v44  ;;  %5492 = vst [vmem:[#allocation4 + $0x4] sm:$0x3] %v5487_v45  ;;  %5493 = vst [vmem:[#allocation4 + $0x6] sm:$0x3] %v5488_v46  ;;  %v5825_v43 = vld [vmem:[%s13229_s15 + $0x20] sm:$0xff]  ;;  %v5826_v45 = vld [vmem:[%s13229_s15 + $0x28] sm:$0xff] }
 0xe34   :  { %v7700_v46 = vld [vmem:[%s13229_s15 + $0xa0] sm:$0xff]  ;;  %v7719_v33 = vld [vmem:[%s13229_s15 + $0x128] sm:$0xff] }
 0xe35   :  { %5494 = vst [vmem:[#allocation4 + $0x8] sm:$0x3] %v5489_v8  ;;  %v7701_v8 = vld [vmem:[%s13229_s15 + $0xa8] sm:$0xff] }
 0xe38   :  { %v5496_v23 = vld [vmem:[#allocation4 + $0x2] sm:$0x3] }
 0xe39   :  { %v5627_v31 = vcombine.low %v5495_v30, %v5496_v23  ;;  %v10983_v30 = vpack.c.bf16 %v5826_v45, %v5825_v43  ;;  %v7723_v43 = vld [vmem:[%s13229_s15 + $0x148] sm:$0xff] }
 0xe3a   :  { %v5497_v63 = vld [vmem:[#allocation4 + $0x4] sm:$0x3]  ;;  %v5498_v17 = vld [vmem:[#allocation4 + $0x6] sm:$0x3] }
 0xe3b   :  { %v5628_v48 = vcombine.low %v5497_v63, %v5498_v17  ;;  %v5538_v49 = vcombine.low %v5496_v23, %v5497_v63  ;;  %v5635_v52 = vrot.slane %v5627_v31, %v11870_v40  ;;  %v11007_v23 = vpack.c.bf16 %v7701_v8, %v7700_v46  ;;  %v5827_v31 = vld [vmem:[%s13229_s15 + $0x30] sm:$0xff]  ;;  %v5828_v63 = vld [vmem:[%s13229_s15 + $0x38] sm:$0xff] }
 0xe3c   :  { %v5499_v34 = vld [vmem:[#allocation4 + $0x8] sm:$0x3]  ;;  %v7724_v46 = vld [vmem:[%s13229_s15 + $0x150] sm:$0xff]  ;;  %v7725_v8 = vld [vmem:[%s13229_s15 + $0x158] sm:$0xff] }
 0xe3d   :  { %v5642_v39 = vrot.slane %v5628_v48, %v11870_v40  ;;  %v5539_v25 = vcombine.low %v5498_v17, %v5499_v34  ;;  %v5546_v44 = vrot.slane %v5538_v49, %v11870_v40  ;;  %v5733_v6 = vcombine.low %v5499_v34, %v5500_v38  ;;  %v7702_v17 = vld [vmem:[%s13229_s15 + $0xb0] sm:$0xff]  ;;  %v7703_v48 = vld [vmem:[%s13229_s15 + $0xb8] sm:$0xff] }
 0xe3e   :  { %v10986_v49 = vpack.c.bf16 %v5828_v63, %v5827_v31  ;;  %v11010_v34 = vpack.c.bf16 %v7703_v48, %v7702_v17  ;;  %v7727_v31 = vld [vmem:[%s13229_s15 + $0x168] sm:$0xff]  ;;  %v7728_v17 = vld [vmem:[%s13229_s15 + $0x170] sm:$0xff]  ;;  %v7729_v48 = vld [vmem:[%s13229_s15 + $0x178] sm:$0xff] }
 0xe3f   :  { %v5643_v51 = vcombine.low %v5635_v52, %v5642_v39  ;;  %v5553_v55 = vrot.slane %v5539_v25, %v11870_v40  ;;  %v5740_v20 = vrot.slane %v5733_v6, %v11870_v40  ;;  %v5829_v52 = vld [vmem:[%s13229_s15 + $0x40] sm:$0xff] }
 0xe40   :  { %v7704_v25 = vld [vmem:[%s13229_s15 + $0xc0] sm:$0xff] }
 0xe41   :  { %9538 = vmatmul.mubr.f32.vlgmr.msra.gmra.mrb[44].mxu0 %v5643_v51  ;;  %v5554_v59 = vcombine.low %v5546_v44, %v5553_v55  ;;  %v5741_v42 = vcombine.low %v5642_v39, %v5740_v20  ;;  %v5830_v39 = vld [vmem:[%s13229_s15 + $0x48] sm:$0xff]  ;;  %v11013_v51 = vpack.c.bf16 %v7705_v41, %v7704_v25  ;;  %v5831_v44 = vld [vmem:[%s13229_s15 + $0x50] sm:$0xff]  ;;  %v5832_v55 = vld [vmem:[%s13229_s15 + $0x58] sm:$0xff] }
 0xe42   :  { %9607 = vmatprep.mubr.msk.f32.mxu0 %vm11510_vm3, %v11507_v1  ;;  %10978 = vmatpush3.bf16.msra.mxu0 %v10977_v19  ;;  %v10989_v50 = vpack.c.bf16 %v5830_v39, %v5829_v52  ;;  %v10992_v36 = vpack.c.bf16 %v5832_v55, %v5831_v44  ;;  %v7694_v6 = vld [vmem:[%s13228_s14] ss:$0 sm:$0xff]  ;;  %v7717_v19 = vld [vmem:[%s13229_s15 + $0x118] sm:$0xff]  ;;  %v6340_v25 = vld [vmem:[#allocation20 + $0x80] sm:$0xff] }
 0xe43   :  { %9503 = vmatmul.mubr.f32.vlgmr.msra.gmra.mrb[36].mxu1 %v5554_v59  ;;  %10979 = vmatprep.subr.bf16.mxu0 %v11509_v32  ;;  %v7707_v59 = vld [vmem:[%s13229_s15 + $0xd8] sm:$0xff]  ;;  %v11028_v24 = vpack.c.bf16 %v7717_v19, %v7716_v5  ;;  %v6170_v44 = vld [vmem:[#allocation20 + $0x58] sm:$0xff] }
 0xe44   :  { %10954 = vmatpush3.bf16.msra.mxu1 %v10953_v58  ;;  %9572 = vmatprep.mubr.msk.f32.mxu1 %vm11510_vm3, %v11507_v1  ;;  %v7706_v58 = vld [vmem:[%s13229_s15 + $0xd0] sm:$0xff]  ;;  %v6168_v52 = vld [vmem:[#allocation20 + $0x48] sm:$0xff] }
 0xe45   :  { %10955 = vmatprep.subr.bf16.mxu1 %v11509_v32  ;;  %v11016_v29 = vpack.c.bf16 %v7707_v59, %v7706_v58  ;;  %v6341_v41 = vld [vmem:[#allocation20 + $0x88] sm:$0xff]  ;;  %v6342_v58 = vld [vmem:[#allocation20 + $0x90] sm:$0xff]  ;;  %v6343_v59 = vld [vmem:[#allocation20 + $0x98] sm:$0xff] }
 0xe46   :  { %10981 = vmatpush3.bf16.msra.mxu0 %v10980_v11  ;;  %v11034_v11 = vpack.c.bf16 %v7721_v37, %v7720_v15 }
 0xe47   :  { %10982 = vmatprep.subr.bf16.mxu0 %v11509_v32 }
 0xe48   :  { %10957 = vmatpush3.bf16.msra.mxu1 %v10956_v53  ;;  %v5833_v53 = vld [vmem:[%s13229_s15 + $0x60] sm:$0xff] }
 0xe49   :  { %10958 = vmatprep.subr.bf16.mxu1 %v11509_v32  ;;  %v10995_v7 = vpack.c.bf16 %v5834_v3, %v5833_v53  ;;  %v6172_v53 = vld [vmem:[#allocation20 + $0x68] sm:$0xff]  ;;  %v6344_v3 = vld [vmem:[#allocation20 + $0xa0] sm:$0xff] }
 0xe4a   :  { %10984 = vmatpush3.bf16.msra.mxu0 %v10983_v30  ;;  %v11040_v30 = vpack.c.bf16 %v7725_v8, %v7724_v46 }
 0xe4b   :  { %10985 = vmatprep.subr.bf16.mxu0 %v11509_v32 }
 0xe4c   :  { %10960 = vmatpush3.bf16.msra.mxu1 %v10959_v62  ;;  %v7709_v62 = vld [vmem:[%s13229_s15 + $0xe8] sm:$0xff] }
 0xe4d   :  { %10961 = vmatprep.subr.bf16.mxu1 %v11509_v32  ;;  %v11019_v22 = vpack.c.bf16 %v7709_v62, %v7708_v57  ;;  %v6345_v62 = vld [vmem:[#allocation20 + $0xa8] sm:$0xff] }
 0xe4e   :  { %10987 = vmatpush3.bf16.msra.mxu0 %v10986_v49  ;;  %v11046_v49 = vpack.c.bf16 %v7729_v48, %v7728_v17  ;;  %v6159_v17 = vld [vmem:[#allocation20 + $0x8] sm:$0xff] }
 0xe4f   :  { %10988 = vmatprep.subr.bf16.mxu0 %v11509_v32 }
 0xe50   :  { %10963 = vmatpush3.bf16.msra.mxu1 %v10962_v4  ;;  %v5835_v4 = vld [vmem:[%s13229_s15 + $0x70] sm:$0xff] }
 0xe51   :  { %10964 = vmatprep.subr.bf16.mxu1 %v11509_v32  ;;  %v10998_v27 = vpack.c.bf16 %v5836_v56, %v5835_v4  ;;  %v11079_v4 = vpack.c.bf16 %v6345_v62, %v6344_v3  ;;  %v6346_v56 = vld [vmem:[#allocation20 + $0xb0] sm:$0xff] }
 0xe52   :  { %10990 = vmatpush3.bf16.msra.mxu0 %v10989_v50  ;;  %v11073_v50 = vpack.c.bf16 %v6341_v41, %v6340_v25 }
 0xe53   :  { %10991 = vmatprep.subr.bf16.mxu0 %v11509_v32 }
 0xe54   :  { %10966 = vmatpush3.bf16.msra.mxu1 %v10965_v47  ;;  %v7710_v47 = vld [vmem:[%s13229_s15 + $0xf0] sm:$0xff] }
 0xe55   :  { %10967 = vmatprep.subr.bf16.mxu1 %v11509_v32  ;;  %v11022_v12 = vpack.c.bf16 %v7711_v10, %v7710_v47 }
 0xe56   :  { %10993 = vmatpush3.bf16.msra.mxu0 %v10992_v36  ;;  %v11076_v36 = vpack.c.bf16 %v6343_v59, %v6342_v58  ;;  %v6163_v58 = vld [vmem:[#allocation20 + $0x28] sm:$0xff] }
 0xe57   :  { %10994 = vmatprep.subr.bf16.mxu0 %v11509_v32 }
 0xe58   :  { %10969 = vmatpush3.bf16.msra.mxu1 %v10968_v26 }
 0xe59   :  { %10970 = vmatprep.subr.bf16.mxu1 %v11509_v32 }
 0xe5a   :  { %10996 = vmatpush3.bf16.msra.mxu0 %v10995_v7  ;;  %v6173_v7 = vld [vmem:[#allocation20 + $0x70] sm:$0xff] }
 0xe5b   :  { %10997 = vmatprep.subr.bf16.mxu0 %v11509_v32 }
 0xe5c   :  { %10972 = vmatpush3.bf16.msra.mxu1 %v10971_v9 }
 0xe5d   :  { %10973 = vmatprep.subr.bf16.mxu1 %v11509_v32 }
 0xe5e   :  { %10999 = vmatpush3.bf16.msra.mxu0 %v10998_v27  ;;  %v6347_v27 = vld [vmem:[#allocation20 + $0xb8] sm:$0xff] }
 0xe5f   :  { %11024 = vmatprep.subr.bf16.mxu0 %v11509_v32  ;;  %v11082_v10 = vpack.c.bf16 %v6347_v27, %v6346_v56  ;;  %v6468_v56 = vld [vmem:[#allocation20 + $0x100] sm:$0xff]  ;;  %v6469_v27 = vld [vmem:[#allocation20 + $0x108] sm:$0xff] }
 0xe60   :  { %10975 = vmatpush3.bf16.msra.mxu1 %v10974_v16 }
 0xe61   :  { %11000 = vmatprep.subr.bf16.mxu1 %v11509_v32 }
 0xe63   :  { %9573 = vmatmul.mubr.f32.vlgmr.msra.gmra.mrb[38].mxu1 %v5741_v42 }
 0xe64   :  { %9642 = vmatprep.mubr.msk.f32.mxu1 %vm11510_vm3, %v11507_v1  ;;  %11002 = vmatpush3.bf16.msra.mxu1 %v11001_v35  ;;  %v11031_v35 = vpack.c.bf16 %v7719_v33, %v7718_v28 }
 0xe65   :  { %11003 = vmatprep.subr.bf16.mxu1 %v11509_v32 }
 0xe68   :  { %11005 = vmatpush3.bf16.msra.mxu1 %v11004_v21  ;;  %v7722_v21 = vld [vmem:[%s13229_s15 + $0x140] sm:$0xff] }
 0xe69   :  { %11006 = vmatprep.subr.bf16.mxu1 %v11509_v32  ;;  %v11037_v45 = vpack.c.bf16 %v7723_v43, %v7722_v21 }
 0xe6c   :  { %11008 = vmatpush3.bf16.msra.mxu1 %v11007_v23  ;;  %v7726_v23 = vld [vmem:[%s13229_s15 + $0x160] sm:$0xff] }
 0xe6d   :  { %11009 = vmatprep.subr.bf16.mxu1 %v11509_v32  ;;  %v11043_v63 = vpack.c.bf16 %v7727_v31, %v7726_v23  ;;  %v6157_v31 = vld [vmem:[#allocation5 + $0x6] sm:$0x3] }
 0xe70   :  { %11011 = vmatpush3.bf16.msra.mxu1 %v11010_v34  ;;  %v6167_v34 = vld [vmem:[#allocation20 + $0x40] sm:$0xff] }
 0xe71   :  { %11012 = vmatprep.subr.bf16.mxu1 %v11509_v32  ;;  %v11049_v39 = vpack.c.bf16 %v6168_v52, %v6167_v34 }
 0xe74   :  { %11014 = vmatpush3.bf16.msra.mxu1 %v11013_v51  ;;  %v6169_v51 = vld [vmem:[#allocation20 + $0x50] sm:$0xff] }
 0xe75   :  { %11015 = vmatprep.subr.bf16.mxu1 %v11509_v32  ;;  %v11052_v55 = vpack.c.bf16 %v6170_v44, %v6169_v51  ;;  %v6161_v51 = vld [vmem:[#allocation20 + $0x18] sm:$0xff] }
 0xe78   :  { %11017 = vmatpush3.bf16.msra.mxu1 %v11016_v29  ;;  %v6171_v29 = vld [vmem:[#allocation20 + $0x60] sm:$0xff] }
 0xe79   :  { %11018 = vmatprep.subr.bf16.mxu1 %v11509_v32  ;;  %v11055_v57 = vpack.c.bf16 %v6172_v53, %v6171_v29  ;;  %v6165_v29 = vld [vmem:[#allocation20 + $0x38] sm:$0xff]  ;;  %v6154_v53 = vld [vmem:[#allocation5] sm:$0x3] }
 0xe7c   :  { %11020 = vmatpush3.bf16.msra.mxu1 %v11019_v22  ;;  %v6174_v22 = vld [vmem:[#allocation20 + $0x78] sm:$0xff] }
 0xe7d   :  { %11021 = vmatprep.subr.bf16.mxu1 %v11509_v32  ;;  %v11058_v47 = vpack.c.bf16 %v6174_v22, %v6173_v7  ;;  %v6459_v7 = vld [vmem:[#allocation20 + $0xc0] sm:$0xff]  ;;  %v6460_v22 = vld [vmem:[#allocation20 + $0xc8] sm:$0xff] }
 0xe80   :  { %11023 = vmatpush3.bf16.msra.mxu1 %v11022_v12  ;;  %v7695_v12 = vld [vmem:[%s13230_s16] ss:$0 sm:$0xff] }
 0xe81   :  { %11072 = vmatprep.subr.bf16.mxu1 %v11509_v32 }
 0xf14   :  { %v5711_v26 = vpop.f32.mrb[44].mxu0 }
 0xf15   :  { %v9539_v13 = vpop.f32.mrb[45].mxu0 }
 0xf16   :  { %v5622_v54 = vpop.f32.mrb[36].mxu1 }
 0xf17   :  { %v5712_v38 = vadd.f32 %v5711_v26, %v5622_v54  ;;  %v9504_v9 = vpop.f32.mrb[37].mxu1  ;;  %v7713_v26 = vld [vmem:[%s13230_s16 + $0x1] ss:$0 sm:$0xff] }
 0xf36   :  { %v5809_v16 = vpop.f32.mrb[38].mxu1 }
 0xf37   :  { %v5813_v20 = vadd.f32 %v5809_v16, %v5712_v38  ;;  %v9574_v42 = vpop.f32.mrb[39].mxu1  ;;  %v7731_v16 = vld [vmem:[%s13230_s16 + $0x2] ss:$0 sm:$0xff] }
 0xf39   :  { %v5820_v60 = vadd.f32 %v7694_v6, %v5813_v20 }
 0xf3b   :  { %9608 = vmatmul.mubr.f32.vlgmr.msra.gmra.mrb[46].mxu0 %v5820_v60  ;;  %9643 = vmatmul.mubr.f32.vlgmr.msra.gmra.mrb[40].mxu1 %v5820_v60 }
 0xf3c   :  { %11026 = vmatpush3.bf16.msra.mxu0 %v11025_v0  ;;  %9677 = vmatprep.mubr.msk.f32.mxu0 %vm11510_vm3, %v11507_v1 }
 0xf3d   :  { %11027 = vmatprep.subr.bf16.mxu0 %v11509_v32  ;;  %9734 = vmatprep.mubr.msk.f32.mxu1 %vm11510_vm3, %v11507_v1 }
 0xf3e   :  { %11074 = vmatpush3.bf16.msra.mxu1 %v11073_v50  ;;  %v6160_v50 = vld [vmem:[#allocation20 + $0x10] sm:$0xff] }
 0xf3f   :  { %11075 = vmatprep.subr.bf16.mxu1 %v11509_v32  ;;  %v11064_v44 = vpack.c.bf16 %v6161_v51, %v6160_v50 }
 0xf40   :  { %11029 = vmatpush3.bf16.msra.mxu0 %v11028_v24 }
 0xf41   :  { %11030 = vmatprep.subr.bf16.mxu0 %v11509_v32 }
 0xf42   :  { %11077 = vmatpush3.bf16.msra.mxu1 %v11076_v36  ;;  %v6164_v36 = vld [vmem:[#allocation20 + $0x30] sm:$0xff] }
 0xf43   :  { %11078 = vmatprep.subr.bf16.mxu1 %v11509_v32  ;;  %v11070_v3 = vpack.c.bf16 %v6165_v29, %v6164_v36  ;;  %v6644_v36 = vld [vmem:[#allocation20 + $0x160] sm:$0xff]  ;;  %v6645_v29 = vld [vmem:[#allocation20 + $0x168] sm:$0xff] }
 0xf44   :  { %11032 = vmatpush3.bf16.msra.mxu0 %v11031_v35  ;;  %v6139_v35 = vld [vmem:[#allocation8] sm:$0x3] }
 0xf45   :  { %11033 = vmatprep.subr.bf16.mxu0 %v11509_v32 }
 0xf46   :  { %11080 = vmatpush3.bf16.msra.mxu1 %v11079_v4  ;;  %v11097_v4 = vpack.c.bf16 %v6460_v22, %v6459_v7 }
 0xf47   :  { %11081 = vmatprep.subr.bf16.mxu1 %v11509_v32 }
 0xf48   :  { %11035 = vmatpush3.bf16.msra.mxu0 %v11034_v11 }
 0xf49   :  { %11036 = vmatprep.subr.bf16.mxu0 %v11509_v32 }
 0xf4a   :  { %11083 = vmatpush3.bf16.msra.mxu1 %v11082_v10  ;;  %v6461_v10 = vld [vmem:[#allocation20 + $0xd0] sm:$0xff] }
 0xf4b   :  { %11096 = vmatprep.subr.bf16.mxu1 %v11509_v32 }
 0xf4c   :  { %11038 = vmatpush3.bf16.msra.mxu0 %v11037_v45 }
 0xf4d   :  { %11039 = vmatprep.subr.bf16.mxu0 %v11509_v32 }
 0xf50   :  { %11041 = vmatpush3.bf16.msra.mxu0 %v11040_v30 }
 0xf51   :  { %11042 = vmatprep.subr.bf16.mxu0 %v11509_v32 }
 0xf54   :  { %11044 = vmatpush3.bf16.msra.mxu0 %v11043_v63  ;;  %v6158_v63 = vld [vmem:[#allocation20] sm:$0xff] }
 0xf55   :  { %11045 = vmatprep.subr.bf16.mxu0 %v11509_v32 }
 0xf58   :  { %11047 = vmatpush3.bf16.msra.mxu0 %v11046_v49 }
 0xf59   :  { %11048 = vmatprep.subr.bf16.mxu0 %v11509_v32 }
 0xf5b   :  { %9678 = vmatmul.mubr.f32.vlgmr.msra.gmra.mrb[48].mxu0 %v5820_v60 }
 0xf5c   :  { %9696 = vmatprep.mubr.msk.f32.mxu0 %vm11510_vm3, %v11507_v1  ;;  %11050 = vmatpush3.bf16.msra.mxu0 %v11049_v39  ;;  %v11061_v39 = vpack.c.bf16 %v6159_v17, %v6158_v63 }
 0xf5d   :  { %11051 = vmatprep.subr.bf16.mxu0 %v11509_v32 }
 0xf60   :  { %11053 = vmatpush3.bf16.msra.mxu0 %v11052_v55  ;;  %v6162_v55 = vld [vmem:[#allocation20 + $0x20] sm:$0xff] }
 0xf61   :  { %11054 = vmatprep.subr.bf16.mxu0 %v11509_v32  ;;  %v11067_v59 = vpack.c.bf16 %v6163_v58, %v6162_v55  ;;  %v6642_v55 = vld [vmem:[#allocation20 + $0x150] sm:$0xff]  ;;  %v6643_v58 = vld [vmem:[#allocation20 + $0x158] sm:$0xff] }
 0xf64   :  { %11056 = vmatpush3.bf16.msra.mxu0 %v11055_v57 }
 0xf65   :  { %11057 = vmatprep.subr.bf16.mxu0 %v11509_v32 }
 0xf68   :  { %11059 = vmatpush3.bf16.msra.mxu0 %v11058_v47  ;;  %v11085_v47 = vpack.c.bf16 %v6469_v27, %v6468_v56  ;;  %v6761_v56 = vld [vmem:[#allocation20 + $0x180] sm:$0xff]  ;;  %v6762_v27 = vld [vmem:[#allocation20 + $0x188] sm:$0xff] }
 0xf69   :  { %11060 = vmatprep.subr.bf16.mxu0 %v11509_v32 }
0x100e   :  { %v5910_v13 = vpop.f32.mrb[46].mxu0  ;;  %v6005_v54 = vpop.f32.mrb[40].mxu1 }
0x100f   :  { %v5911_v38 = vadd.f32 %v7695_v12, %v5910_v13  ;;  %v6006_v9 = vadd.f32 %v7713_v26, %v6005_v54  ;;  %v9609_v14 = vpop.f32.mrb[47].mxu0  ;;  %v9644_v18 = vpop.f32.mrb[41].mxu1  ;;  %v6462_v12 = vld [vmem:[#allocation20 + $0xd8] sm:$0xff]  ;;  %v6470_v13 = vld [vmem:[#allocation20 + $0x110] sm:$0xff] }
0x1010   :  { %v11100_v26 = vpack.c.bf16 %v6462_v12, %v6461_v10  ;;  %v6471_v54 = vld [vmem:[#allocation20 + $0x118] sm:$0xff]  ;;  %v6464_v14 = vld [vmem:[#allocation20 + $0xe8] sm:$0xff]  ;;  %v6472_v18 = vld [vmem:[#allocation20 + $0x120] sm:$0xff] }
0x1011   :  { %v6009_v6 = vmax.f32 %v5911_v38, %v6006_v9  ;;  %v11088_v38 = vpack.c.bf16 %v6471_v54, %v6470_v13  ;;  %v6463_v9 = vld [vmem:[#allocation20 + $0xe0] sm:$0xff]  ;;  %v6771_v12 = vld [vmem:[#allocation20 + $0x1c8] sm:$0xff]  ;;  %v6763_v13 = vld [vmem:[#allocation20 + $0x190] sm:$0xff] }
0x1012   :  { %v6770_v10 = vld [vmem:[#allocation20 + $0x1c0] sm:$0xff]  ;;  %v6764_v54 = vld [vmem:[#allocation20 + $0x198] sm:$0xff] }
0x102e   :  { %v6101_v20 = vpop.f32.mrb[48].mxu0 }
0x102f   :  { %v6102_v42 = vadd.f32 %v7731_v16, %v6101_v20  ;;  %v9679_v0 = vpop.f32.mrb[49].mxu0  ;;  %v6473_v16 = vld [vmem:[#allocation20 + $0x128] sm:$0xff]  ;;  %v6465_v20 = vld [vmem:[#allocation20 + $0xf0] sm:$0xff] }
0x1030   :  { %v11091_v0 = vpack.c.bf16 %v6473_v16, %v6472_v18  ;;  %v6766_v16 = vld [vmem:[#allocation20 + $0x1a8] sm:$0xff] }
0x1031   :  { %v6105_v60 = vmax.f32 %v6009_v6, %v6102_v42  ;;  %v11103_v6 = vpack.c.bf16 %v6464_v14, %v6463_v9  ;;  %v6466_v42 = vld [vmem:[#allocation20 + $0xf8] sm:$0xff]  ;;  %v6772_v9 = vld [vmem:[#allocation20 + $0x1d0] sm:$0xff] }
0x1032   :  { %v6773_v14 = vld [vmem:[#allocation20 + $0x1d8] sm:$0xff] }
0x1033   :  { %v6113_v5 = vcombine.high %v6105_v60, %v6105_v60  ;;  %v6120_v19 = vrot.slane %v6105_v60, %v11870_v40  ;;  %v6474_v60 = vld [vmem:[#allocation20 + $0x130] sm:$0xff]  ;;  %v11124_v18 = vpack.c.bf16 %v6773_v14, %v6772_v9  ;;  %v7064_v14 = vld [vmem:[#allocation20 + $0x258] sm:$0xff] }
0x1034   :  { %v7063_v9 = vld [vmem:[#allocation20 + $0x250] sm:$0xff] }
0x1035   :  { %v6127_v24 = vrot.slane %v6113_v5, %v11870_v40  ;;  %v6128_v28 = vcombine.high %v6120_v19, %v6120_v19  ;;  %6135 = vst.msk [vmem:[#allocation8 + $0x2] sm:$0x3] %vm213_vm0, %v6120_v19  ;;  %v6475_v5 = vld [vmem:[#allocation20 + $0x138] sm:$0xff]  ;;  %v11106_v19 = vpack.c.bf16 %v6466_v42, %v6465_v20  ;;  %v6774_v20 = vld [vmem:[#allocation20 + $0x1e0] sm:$0xff] }
0x1037   :  { %v6129_v33 = vcombine.high %v6127_v24, %v6127_v24  ;;  %6136 = vst.msk [vmem:[#allocation8 + $0x4] sm:$0x3] %vm213_vm0, %v6128_v28  ;;  %6137 = vst.msk [vmem:[#allocation8 + $0x6] sm:$0x3] %vm213_vm0, %v6127_v24  ;;  %v11094_v24 = vpack.c.bf16 %v6475_v5, %v6474_v60  ;;  %v6767_v60 = vld [vmem:[#allocation20 + $0x1b0] sm:$0xff]  ;;  %v6768_v5 = vld [vmem:[#allocation20 + $0x1b8] sm:$0xff] }
0x1039   :  { %6138 = vst.msk [vmem:[#allocation8 + $0x8] sm:$0x3] %vm213_vm0, %v6129_v33 }
0x103c   :  { %v6140_v15 = vld [vmem:[#allocation8 + $0x2] sm:$0x3] }
0x103d   :  { %v6144_v37 = vmax.f32 %v6139_v35, %v6140_v15 }
0x103e   :  { %v6141_v11 = vld [vmem:[#allocation8 + $0x4] sm:$0x3]  ;;  %v6142_v21 = vld [vmem:[#allocation8 + $0x6] sm:$0x3] }
0x103f   :  { %v6145_v43 = vmax.f32 %v6141_v11, %v6142_v21  ;;  %v13071_v45 = vmax.f32 %v6144_v37, %v6141_v11 }
0x1040   :  { %v6143_v46 = vld [vmem:[#allocation8 + $0x8] sm:$0x3] }
0x1041   :  { %v13073_v8 = vmax.f32 %v6145_v43, %v6143_v46  ;;  %v6148_v30 = vmax.f32 %v13071_v45, 0.0  ;;  %v7735_v43 = vld [vmem:[%s13232_s18] ss:$0 sm:$0xff] }
0x1043   :  { %v6149_v23 = vmax.f32 %v13073_v8, 0.0  ;;  %6152 = vst.msk [vmem:[#allocation5 + $0x2] sm:$0x3] %vm213_vm0, %v6148_v30 }
0x1045   :  { %6153 = vst.msk [vmem:[#allocation5 + $0x4] sm:$0x3] %vm213_vm0, %v6149_v23 }
0x104a   :  { %v6155_v48 = vld [vmem:[#allocation5 + $0x2] sm:$0x3] }
0x104b   :  { %v6259_v57 = vcombine.low %v6154_v53, %v6155_v48  ;;  %v11115_v53 = vpack.c.bf16 %v6645_v29, %v6644_v36  ;;  %v6944_v36 = vld [vmem:[#allocation20 + $0x210] sm:$0xff]  ;;  %v6945_v29 = vld [vmem:[#allocation20 + $0x218] sm:$0xff] }
0x104c   :  { %v6156_v49 = vld [vmem:[#allocation5 + $0x4] sm:$0x3] }
0x104d   :  { %v6177_v34 = vcombine.low %v6155_v48, %v6156_v49  ;;  %v6349_v52 = vcombine.low %v6156_v49, %v6157_v31  ;;  %v6266_v62 = vrot.slane %v6259_v57, %v11870_v40  ;;  %v6454_v48 = vld [vmem:[#allocation5] sm:$0x3]  ;;  %v6647_v57 = vld [vmem:[#allocation20 + $0x178] sm:$0xff] }
0x104f   :  { %v6184_v25 = vrot.slane %v6177_v34, %v11870_v40  ;;  %v6356_v41 = vrot.slane %v6349_v52, %v11870_v40  ;;  %v6640_v52 = vld [vmem:[#allocation20 + $0x140] sm:$0xff] }
0x1051   :  { %9697 = vmatmul.mubr.msk.f32.vlgmr.msra.gmra.mrb[50].mxu0 %vm6185_vm4, %v6184_v25  ;;  %9735 = vmatmul.mubr.msk.f32.vlgmr.msra.gmra.mrb[42].mxu1 %vm6185_vm4, %v6356_v41 }
0x1052   :  { %11062 = vmatpush3.bf16.msra.mxu0 %v11061_v39  ;;  %9715 = vmatprep.mubr.msk.f32.mxu0 %vm11510_vm3, %v11507_v1  ;;  %v6641_v39 = vld [vmem:[#allocation20 + $0x148] sm:$0xff] }
0x1053   :  { %11063 = vmatprep.subr.bf16.mxu0 %v11509_v32  ;;  %9772 = vmatprep.mubr.msk.f32.mxu1 %vm11510_vm3, %v11507_v1  ;;  %v11109_v51 = vpack.c.bf16 %v6641_v39, %v6640_v52 }
0x1054   :  { %11098 = vmatpush3.bf16.msra.mxu1 %v11097_v4 }
0x1055   :  { %11099 = vmatprep.subr.bf16.mxu1 %v11509_v32 }
0x1056   :  { %11065 = vmatpush3.bf16.msra.mxu0 %v11064_v44 }
0x1057   :  { %11066 = vmatprep.subr.bf16.mxu0 %v11509_v32 }
0x1058   :  { %11101 = vmatpush3.bf16.msra.mxu1 %v11100_v26  ;;  %v11121_v26 = vpack.c.bf16 %v6771_v12, %v6770_v10  ;;  %v7061_v10 = vld [vmem:[#allocation20 + $0x240] sm:$0xff]  ;;  %v7062_v12 = vld [vmem:[#allocation20 + $0x248] sm:$0xff] }
0x1059   :  { %11102 = vmatprep.subr.bf16.mxu1 %v11509_v32 }
0x105a   :  { %11068 = vmatpush3.bf16.msra.mxu0 %v11067_v59  ;;  %v11112_v59 = vpack.c.bf16 %v6643_v58, %v6642_v55 }
0x105b   :  { %11069 = vmatprep.subr.bf16.mxu0 %v11509_v32 }
0x105c   :  { %11104 = vmatpush3.bf16.msra.mxu1 %v11103_v6  ;;  %v6765_v6 = vld [vmem:[#allocation20 + $0x1a0] sm:$0xff] }
0x105d   :  { %11105 = vmatprep.subr.bf16.mxu1 %v11509_v32  ;;  %v11139_v42 = vpack.c.bf16 %v6766_v16, %v6765_v6  ;;  %v7072_v6 = vld [vmem:[#allocation20 + $0x290] sm:$0xff]  ;;  %v7073_v16 = vld [vmem:[#allocation20 + $0x298] sm:$0xff] }
0x105e   :  { %11071 = vmatpush3.bf16.msra.mxu0 %v11070_v3  ;;  %v6646_v3 = vld [vmem:[#allocation20 + $0x170] sm:$0xff] }
0x105f   :  { %11084 = vmatprep.subr.bf16.mxu0 %v11509_v32  ;;  %v11118_v7 = vpack.c.bf16 %v6647_v57, %v6646_v3  ;;  %v6946_v3 = vld [vmem:[#allocation20 + $0x220] sm:$0xff]  ;;  %v6947_v57 = vld [vmem:[#allocation20 + $0x228] sm:$0xff] }
0x1060   :  { %11107 = vmatpush3.bf16.msra.mxu1 %v11106_v19 }
0x1061   :  { %9716 = vmatmul.mubr.msk.f32.vlgmr.msra.gmra.mrb[52].mxu0 %vm6185_vm4, %v6266_v62  ;;  %11120 = vmatprep.subr.bf16.mxu1 %v11509_v32  ;;  %v6457_v62 = vld [vmem:[#allocation5 + $0x6] sm:$0x3] }
0x1062   :  { %9753 = vmatprep.mubr.msk.f32.mxu0 %vm11510_vm3, %v11507_v1  ;;  %11086 = vmatpush3.bf16.msra.mxu0 %v11085_v47  ;;  %v11133_v47 = vpack.c.bf16 %v6762_v27, %v6761_v56 }
0x1063   :  { %11087 = vmatprep.subr.bf16.mxu0 %v11509_v32 }
0x1066   :  { %11089 = vmatpush3.bf16.msra.mxu0 %v11088_v38  ;;  %v11136_v38 = vpack.c.bf16 %v6764_v54, %v6763_v13  ;;  %v7070_v13 = vld [vmem:[#allocation20 + $0x280] sm:$0xff]  ;;  %v7071_v54 = vld [vmem:[#allocation20 + $0x288] sm:$0xff] }
0x1067   :  { %11090 = vmatprep.subr.bf16.mxu0 %v11509_v32 }
0x106a   :  { %11092 = vmatpush3.bf16.msra.mxu0 %v11091_v0  ;;  %v6775_v0 = vld [vmem:[#allocation20 + $0x1e8] sm:$0xff] }
0x106b   :  { %11093 = vmatprep.subr.bf16.mxu0 %v11509_v32  ;;  %v11127_v19 = vpack.c.bf16 %v6775_v0, %v6774_v20  ;;  %v11160_v20 = vpack.c.bf16 %v7073_v16, %v7072_v6  ;;  %v7066_v0 = vld [vmem:[#allocation20 + $0x268] sm:$0xff]  ;;  %v7378_v16 = vld [vmem:[#allocation21 + $0xb8] sm:$0xff] }
0x106c   :  { %v7376_v6 = vld [vmem:[#allocation21 + $0xa8] sm:$0xff] }
0x106e   :  { %11095 = vmatpush3.bf16.msra.mxu0 %v11094_v24  ;;  %v6776_v24 = vld [vmem:[#allocation20 + $0x1f0] sm:$0xff] }
0x106f   :  { %11108 = vmatprep.subr.bf16.mxu0 %v11509_v32 }
0x1124   :  { %v6254_v28 = vpop.f32.mrb[50].mxu0  ;;  %v6425_v33 = vpop.f32.mrb[42].mxu1 }
0x1125   :  { %v9698_v35 = vpop.f32.mrb[51].mxu0  ;;  %v9736_v15 = vpop.f32.mrb[43].mxu1 }
0x1134   :  { %v6335_v37 = vpop.f32.mrb[52].mxu0 }
0x1135   :  { %v6336_v11 = vadd.f32 %v6335_v37, %v6254_v28  ;;  %v9717_v21 = vpop.f32.mrb[53].mxu0  ;;  %v6777_v28 = vld [vmem:[#allocation20 + $0x1f8] sm:$0xff] }
0x1136   :  { %v11130_v35 = vpack.c.bf16 %v6777_v28, %v6776_v24  ;;  %v7067_v24 = vld [vmem:[#allocation20 + $0x270] sm:$0xff]  ;;  %v7068_v28 = vld [vmem:[#allocation20 + $0x278] sm:$0xff] }
0x1137   :  { %v6429_v46 = vadd.f32 %v6425_v33, %v6336_v11  ;;  %v11142_v33 = vpack.c.bf16 %v6768_v5, %v6767_v60  ;;  %v7074_v60 = vld [vmem:[#allocation20 + $0x2a0] sm:$0xff] }
0x1139   :  { %v6436_v30 = vadd.f32 %v7735_v43, %v6429_v46  ;;  %v7740_v46 = vld [vmem:[%s13232_s18 + $0x1] ss:$0 sm:$0xff] }
0x113b   :  { %v6444_v23 = vrot.slane %v6436_v30, %v11870_v40 }
0x113d   :  { %v6445_v31 = vcombine.high %v6444_v23, %v6444_v23  ;;  %v6448_v63 = vmax.f32 %v6444_v23, 0.0 }
0x113f   :  { %v6449_v17 = vmax.f32 %v6445_v31, 0.0  ;;  %6452 = vst.msk [vmem:[#allocation5 + $0x2] sm:$0x3] %vm213_vm0, %v6448_v63 }
0x1141   :  { %6453 = vst.msk [vmem:[#allocation5 + $0x4] sm:$0x3] %vm213_vm0, %v6449_v17 }
0x1146   :  { %v6455_v49 = vld [vmem:[#allocation5 + $0x2] sm:$0x3] }
0x1147   :  { %v6559_v34 = vcombine.low %v6454_v48, %v6455_v49 }
0x1148   :  { %v6456_v25 = vld [vmem:[#allocation5 + $0x4] sm:$0x3] }
0x1149   :  { %v6566_v41 = vrot.slane %v6559_v34, %v11870_v40  ;;  %v6478_v50 = vcombine.low %v6455_v49, %v6456_v25  ;;  %v6649_v22 = vcombine.low %v6456_v25, %v6457_v62  ;;  %v6756_v25 = vld [vmem:[#allocation5] sm:$0x3]  ;;  %v11151_v62 = vpack.c.bf16 %v6947_v57, %v6946_v3  ;;  %v7245_v57 = vld [vmem:[#allocation20 + $0x2d8] sm:$0xff] }
0x114a   :  { %v7244_v3 = vld [vmem:[#allocation20 + $0x2d0] sm:$0xff] }
0x114b   :  { %9773 = vmatmul.mubr.msk.f32.vlgmr.msra.gmra.mrb[44].mxu1 %vm6185_vm4, %v6566_v41  ;;  %v6485_v44 = vrot.slane %v6478_v50, %v11870_v40  ;;  %v6656_v4 = vrot.slane %v6649_v22, %v11870_v40  ;;  %v6949_v22 = vld [vmem:[#allocation20 + $0x238] sm:$0xff] }
0x114c   :  { %9810 = vmatprep.mubr.msk.f32.mxu1 %vm11510_vm3, %v11507_v1  ;;  %11122 = vmatpush3.bf16.msra.mxu1 %v11121_v26  ;;  %v11169_v26 = vpack.c.bf16 %v7062_v12, %v7061_v10 }
0x114d   :  { %9754 = vmatmul.mubr.msk.f32.vlgmr.msra.gmra.mrb[54].mxu0 %vm6185_vm4, %v6485_v44  ;;  %11123 = vmatprep.subr.bf16.mxu1 %v11509_v32  ;;  %v6943_v44 = vld [vmem:[#allocation20 + $0x208] sm:$0xff] }
0x114e   :  { %11110 = vmatpush3.bf16.msra.mxu0 %v11109_v51  ;;  %9791 = vmatprep.mubr.msk.f32.mxu0 %vm11510_vm3, %v11507_v1  ;;  %v6942_v51 = vld [vmem:[#allocation20 + $0x200] sm:$0xff] }
0x114f   :  { %11111 = vmatprep.subr.bf16.mxu0 %v11509_v32 }
0x1150   :  { %11125 = vmatpush3.bf16.msra.mxu1 %v11124_v18  ;;  %v11172_v18 = vpack.c.bf16 %v7064_v14, %v7063_v9  ;;  %v7373_v14 = vld [vmem:[#allocation21 + $0x90] sm:$0xff] }
0x1151   :  { %11126 = vmatprep.subr.bf16.mxu1 %v11509_v32 }
0x1152   :  { %11113 = vmatpush3.bf16.msra.mxu0 %v11112_v59  ;;  %v11145_v59 = vpack.c.bf16 %v6943_v44, %v6942_v51  ;;  %v7056_v51 = vld [vmem:[#allocation5] sm:$0x3] }
0x1153   :  { %11114 = vmatprep.subr.bf16.mxu0 %v11509_v32 }
0x1154   :  { %11128 = vmatpush3.bf16.msra.mxu1 %v11127_v19  ;;  %v7075_v19 = vld [vmem:[#allocation20 + $0x2a8] sm:$0xff] }
0x1155   :  { %11129 = vmatprep.subr.bf16.mxu1 %v11509_v32 }
0x1156   :  { %11116 = vmatpush3.bf16.msra.mxu0 %v11115_v53  ;;  %v11148_v53 = vpack.c.bf16 %v6945_v29, %v6944_v36 }
0x1157   :  { %11117 = vmatprep.subr.bf16.mxu0 %v11509_v32 }
0x1158   :  { %11131 = vmatpush3.bf16.msra.mxu1 %v11130_v35  ;;  %v7076_v35 = vld [vmem:[#allocation20 + $0x2b0] sm:$0xff] }
0x1159   :  { %11144 = vmatprep.subr.bf16.mxu1 %v11509_v32 }
0x115a   :  { %11119 = vmatpush3.bf16.msra.mxu0 %v11118_v7  ;;  %v6948_v7 = vld [vmem:[#allocation20 + $0x230] sm:$0xff] }
0x115b   :  { %11132 = vmatprep.subr.bf16.mxu0 %v11509_v32  ;;  %v11154_v56 = vpack.c.bf16 %v6949_v22, %v6948_v7  ;;  %v7246_v7 = vld [vmem:[#allocation20 + $0x2e0] sm:$0xff]  ;;  %v7247_v22 = vld [vmem:[#allocation20 + $0x2e8] sm:$0xff] }
0x115d   :  { %9792 = vmatmul.mubr.msk.f32.vlgmr.msra.gmra.mrb[56].mxu0 %vm6185_vm4, %v6656_v4  ;;  %v6759_v4 = vld [vmem:[#allocation5 + $0x6] sm:$0x3] }
0x115e   :  { %9829 = vmatprep.mubr.msk.f32.mxu0 %vm11510_vm3, %v11507_v1  ;;  %11134 = vmatpush3.bf16.msra.mxu0 %v11133_v47 }
0x115f   :  { %11135 = vmatprep.subr.bf16.mxu0 %v11509_v32 }
0x1162   :  { %11137 = vmatpush3.bf16.msra.mxu0 %v11136_v38  ;;  %v11157_v38 = vpack.c.bf16 %v7071_v54, %v7070_v13  ;;  %v7372_v13 = vld [vmem:[#allocation21 + $0x88] sm:$0xff]  ;;  %v7374_v54 = vld [vmem:[#allocation21 + $0x98] sm:$0xff] }
0x1163   :  { %11138 = vmatprep.subr.bf16.mxu0 %v11509_v32  ;;  %v11192_v9 = vpack.c.bf16 %v7374_v54, %v7372_v13  ;;  %v7368_v13 = vld [vmem:[#allocation21 + $0x70] sm:$0xff] }
0x1166   :  { %11140 = vmatpush3.bf16.msra.mxu0 %v11139_v42  ;;  %v7065_v42 = vld [vmem:[#allocation20 + $0x260] sm:$0xff] }
0x1167   :  { %11141 = vmatprep.subr.bf16.mxu0 %v11509_v32  ;;  %v11175_v5 = vpack.c.bf16 %v7066_v0, %v7065_v42  ;;  %v7375_v42 = vld [vmem:[#allocation21 + $0xa0] sm:$0xff]  ;;  %v7377_v0 = vld [vmem:[#allocation21 + $0xb0] sm:$0xff] }
0x116a   :  { %11143 = vmatpush3.bf16.msra.mxu0 %v11142_v33  ;;  %v11163_v33 = vpack.c.bf16 %v7075_v19, %v7074_v60  ;;  %v7380_v60 = vld [vmem:[#allocation21 + $0xc8] sm:$0xff] }
0x116b   :  { %11156 = vmatprep.subr.bf16.mxu0 %v11509_v32 }
0x121e   :  { %v6635_v15 = vpop.f32.mrb[44].mxu1 }
0x121f   :  { %v9774_v37 = vpop.f32.mrb[45].mxu1 }
0x1220   :  { %v6554_v11 = vpop.f32.mrb[54].mxu0  ;;  %v11178_v37 = vpack.c.bf16 %v7068_v28, %v7067_v24  ;;  %v7379_v24 = vld [vmem:[#allocation21 + $0xc0] sm:$0xff]  ;;  %v7381_v28 = vld [vmem:[#allocation21 + $0xd0] sm:$0xff] }
0x1221   :  { %v6636_v21 = vadd.f32 %v6635_v15, %v6554_v11  ;;  %v9755_v43 = vpop.f32.mrb[55].mxu0  ;;  %v7077_v15 = vld [vmem:[#allocation20 + $0x2b8] sm:$0xff] }
0x1222   :  { %v11166_v11 = vpack.c.bf16 %v7077_v15, %v7076_v35  ;;  %v7384_v35 = vld [vmem:[#allocation21 + $0xe8] sm:$0xff]  ;;  %v7386_v15 = vld [vmem:[#allocation21 + $0xf8] sm:$0xff] }
0x1230   :  { %v6725_v30 = vpop.f32.mrb[56].mxu0 }
0x1231   :  { %v6729_v23 = vadd.f32 %v6725_v30, %v6636_v21  ;;  %v9793_v31 = vpop.f32.mrb[57].mxu0 }
0x1232   :  { %v7745_v31 = vld [vmem:[%s13232_s18 + $0x2] ss:$0 sm:$0xff] }
0x1233   :  { %v6736_v63 = vadd.f32 %v7740_v46, %v6729_v23 }
0x1235   :  { %v6744_v17 = vrot.slane %v6736_v63, %v11870_v40 }
0x1237   :  { %v6745_v48 = vcombine.high %v6744_v17, %v6744_v17  ;;  %v13138_v49 = vadd.f32 %v6744_v17, %v13071_v45 }
0x1239   :  { %v13141_v34 = vadd.f32 %v6745_v48, %v13073_v8  ;;  %v6750_v52 = vmax.f32 %v13138_v49, 0.0 }
0x123b   :  { %v6751_v39 = vmax.f32 %v13141_v34, 0.0  ;;  %6754 = vst.msk [vmem:[#allocation5 + $0x2] sm:$0x3] %vm213_vm0, %v6750_v52 }
0x123d   :  { %6755 = vst.msk [vmem:[#allocation5 + $0x4] sm:$0x3] %vm213_vm0, %v6751_v39 }
0x1242   :  { %v6757_v41 = vld [vmem:[#allocation5 + $0x2] sm:$0x3] }
0x1243   :  { %v6861_v50 = vcombine.low %v6756_v25, %v6757_v41 }
0x1244   :  { %v6758_v55 = vld [vmem:[#allocation5 + $0x4] sm:$0x3] }
0x1245   :  { %v6868_v45 = vrot.slane %v6861_v50, %v11870_v40  ;;  %v6780_v58 = vcombine.low %v6757_v41, %v6758_v55  ;;  %v6951_v27 = vcombine.low %v6758_v55, %v6759_v4  ;;  %v11187_v4 = vpack.c.bf16 %v7247_v22, %v7246_v7  ;;  %v7363_v7 = vld [vmem:[#allocation21 + $0x48] sm:$0xff]  ;;  %v7365_v22 = vld [vmem:[#allocation21 + $0x58] sm:$0xff] }
0x1247   :  { %9830 = vmatmul.mubr.msk.f32.vlgmr.msra.gmra.mrb[58].mxu0 %vm6185_vm4, %v6868_v45  ;;  %v6787_v8 = vrot.slane %v6780_v58, %v11870_v40  ;;  %v6958_v47 = vrot.slane %v6951_v27, %v11870_v40  ;;  %v7242_v45 = vld [vmem:[#allocation20 + $0x2c0] sm:$0xff]  ;;  %v7243_v58 = vld [vmem:[#allocation20 + $0x2c8] sm:$0xff]  ;;  %v7249_v27 = vld [vmem:[#allocation20 + $0x2f8] sm:$0xff] }
0x1248   :  { %9867 = vmatprep.mubr.msk.f32.mxu0 %vm11510_vm3, %v11507_v1  ;;  %11158 = vmatpush3.bf16.msra.mxu0 %v11157_v38  ;;  %v11181_v29 = vpack.c.bf16 %v7243_v58, %v7242_v45  ;;  %v7371_v38 = vld [vmem:[#allocation21 + $0x80] sm:$0xff]  ;;  %v7356_v58 = vld [vmem:[#allocation21 + $0x10] sm:$0xff] }
0x1249   :  { %9811 = vmatmul.mubr.msk.f32.vlgmr.msra.gmra.mrb[46].mxu1 %vm6185_vm4, %v6787_v8  ;;  %11159 = vmatprep.subr.bf16.mxu0 %v11509_v32  ;;  %v7354_v45 = vld [vmem:[#allocation21] sm:$0xff] }
0x124a   :  { %11146 = vmatpush3.bf16.msra.mxu1 %v11145_v59  ;;  %9848 = vmatprep.mubr.msk.f32.mxu1 %vm11510_vm3, %v11507_v1 }
0x124b   :  { %11147 = vmatprep.subr.bf16.mxu1 %v11509_v32 }
0x124c   :  { %11161 = vmatpush3.bf16.msra.mxu0 %v11160_v20  ;;  %v11196_v20 = vpack.c.bf16 %v7378_v16, %v7376_v6 }
0x124d   :  { %11162 = vmatprep.subr.bf16.mxu0 %v11509_v32 }
0x124e   :  { %11149 = vmatpush3.bf16.msra.mxu1 %v11148_v53 }
0x124f   :  { %11150 = vmatprep.subr.bf16.mxu1 %v11509_v32 }
0x1250   :  { %11164 = vmatpush3.bf16.msra.mxu0 %v11163_v33  ;;  %v11202_v33 = vpack.c.bf16 %v7381_v28, %v7379_v24 }
0x1251   :  { %11165 = vmatprep.subr.bf16.mxu0 %v11509_v32 }
0x1252   :  { %11152 = vmatpush3.bf16.msra.mxu1 %v11151_v62  ;;  %v11184_v62 = vpack.c.bf16 %v7245_v57, %v7244_v3  ;;  %v7358_v57 = vld [vmem:[#allocation21 + $0x20] sm:$0xff] }
0x1253   :  { %11153 = vmatprep.subr.bf16.mxu1 %v11509_v32 }
0x1254   :  { %11167 = vmatpush3.bf16.msra.mxu0 %v11166_v11  ;;  %v7383_v11 = vld [vmem:[#allocation21 + $0xe0] sm:$0xff] }
0x1255   :  { %11180 = vmatprep.subr.bf16.mxu0 %v11509_v32 }
0x1256   :  { %11155 = vmatpush3.bf16.msra.mxu1 %v11154_v56  ;;  %v7248_v56 = vld [vmem:[#allocation20 + $0x2f0] sm:$0xff] }
0x1257   :  { %11168 = vmatprep.subr.bf16.mxu1 %v11509_v32  ;;  %v11190_v10 = vpack.c.bf16 %v7249_v27, %v7248_v56  ;;  %v7362_v56 = vld [vmem:[#allocation21 + $0x40] sm:$0xff]  ;;  %v7364_v27 = vld [vmem:[#allocation21 + $0x50] sm:$0xff] }
0x1259   :  { %9849 = vmatmul.mubr.msk.f32.vlgmr.msra.gmra.mrb[48].mxu1 %vm6185_vm4, %v6958_v47  ;;  %v7059_v47 = vld [vmem:[#allocation5 + $0x6] sm:$0x3] }
0x125a   :  { %9886 = vmatprep.mubr.msk.f32.mxu1 %vm11510_vm3, %v11507_v1  ;;  %11170 = vmatpush3.bf16.msra.mxu1 %v11169_v26 }
0x125b   :  { %11171 = vmatprep.subr.bf16.mxu1 %v11509_v32 }
0x125e   :  { %11173 = vmatpush3.bf16.msra.mxu1 %v11172_v18  ;;  %v11194_v18 = vpack.c.bf16 %v7373_v14, %v7371_v38 }
0x125f   :  { %11174 = vmatprep.subr.bf16.mxu1 %v11509_v32 }
0x1262   :  { %11176 = vmatpush3.bf16.msra.mxu1 %v11175_v5  ;;  %v7382_v5 = vld [vmem:[#allocation21 + $0xd8] sm:$0xff] }
0x1263   :  { %11177 = vmatprep.subr.bf16.mxu1 %v11509_v32  ;;  %v11200_v19 = vpack.c.bf16 %v7382_v5, %v7380_v60 }
0x1266   :  { %11179 = vmatpush3.bf16.msra.mxu1 %v11178_v37  ;;  %v11204_v37 = vpack.c.bf16 %v7386_v15, %v7384_v35 }
0x1267   :  { %11193 = vmatprep.subr.bf16.mxu1 %v11192_v9 }
0x131a   :  { %v6937_v21 = vpop.f32.mrb[58].mxu0 }
0x131b   :  { %v9831_v43 = vpop.f32.mrb[59].mxu0 }
0x131c   :  { %v6856_v46 = vpop.f32.mrb[46].mxu1 }
0x131d   :  { %v6938_v30 = vadd.f32 %v6937_v21, %v6856_v46  ;;  %v9812_v23 = vpop.f32.mrb[47].mxu1  ;;  %v7385_v21 = vld [vmem:[#allocation21 + $0xf0] sm:$0xff]  ;;  %v7355_v46 = vld [vmem:[#allocation21 + $0x8] sm:$0xff] }
0x131e   :  { %v11206_v43 = vpack.c.bf16 %v7385_v21, %v7383_v11 }
0x132c   :  { %v7027_v63 = vpop.f32.mrb[48].mxu1 }
0x132d   :  { %v7031_v17 = vadd.f32 %v7027_v63, %v6938_v30  ;;  %v9850_v48 = vpop.f32.mrb[49].mxu1  ;;  %v7357_v30 = vld [vmem:[#allocation21 + $0x18] sm:$0xff] }
0x132e   :  { %v11208_v23 = vpack.c.bf16 %v7357_v30, %v7355_v46 }
0x132f   :  { %v7038_v52 = vadd.f32 %v7745_v31, %v7031_v17 }
0x1331   :  { %v7046_v39 = vrot.slane %v7038_v52, %v11870_v40 }
0x1333   :  { %v7047_v25 = vcombine.high %v7046_v39, %v7046_v39  ;;  %v7050_v41 = vmax.f32 %v7046_v39, 0.0  ;;  %v7750_v39 = vld [vmem:[%s13232_s18 + $0x3] ss:$0 sm:$0xff] }
0x1335   :  { %v7051_v50 = vmax.f32 %v7047_v25, 0.0  ;;  %7054 = vst.msk [vmem:[#allocation5 + $0x2] sm:$0x3] %vm213_vm0, %v7050_v41 }
0x1337   :  { %7055 = vst.msk [vmem:[#allocation5 + $0x4] sm:$0x3] %vm213_vm0, %v7051_v50 }
0x133c   :  { %v7057_v44 = vld [vmem:[#allocation5 + $0x2] sm:$0x3] }
0x133d   :  { %v7161_v55 = vcombine.low %v7056_v51, %v7057_v44 }
0x133e   :  { %v7058_v59 = vld [vmem:[#allocation5 + $0x4] sm:$0x3] }
0x133f   :  { %v7168_v8 = vrot.slane %v7161_v55, %v11870_v40  ;;  %v7080_v36 = vcombine.low %v7057_v44, %v7058_v59  ;;  %v7251_v12 = vcombine.low %v7058_v59, %v7059_v47  ;;  %v7359_v59 = vld [vmem:[#allocation21 + $0x28] sm:$0xff] }
0x1340   :  { %v7367_v47 = vld [vmem:[#allocation21 + $0x68] sm:$0xff] }
0x1341   :  { %9887 = vmatmul.mubr.msk.f32.vlgmr.msra.gmra.mrb[50].mxu1 %vm6185_vm4, %v7168_v8  ;;  %v7087_v53 = vrot.slane %v7080_v36, %v11870_v40  ;;  %v7258_v26 = vrot.slane %v7251_v12, %v11870_v40  ;;  %v7361_v8 = vld [vmem:[#allocation21 + $0x38] sm:$0xff] }
0x1342   :  { %7454 = vmatprep.mubr.f32.mxu1 %v11507_v1  ;;  %11195 = vmatpush1.bf16.msra.mxu1 %v11194_v18  ;;  %v11212_v3 = vpack.c.bf16 %v7361_v8, %v7359_v59 }
0x1343   :  { %9868 = vmatmul.mubr.msk.f32.vlgmr.msra.gmra.mrb[60].mxu0 %vm6185_vm4, %v7087_v53  ;;  %11197 = vmatprep.subr.bf16.mxu1 %v11196_v20 }
0x1344   :  { %11182 = vmatpush3.bf16.msra.mxu0 %v11181_v29  ;;  %9905 = vmatprep.mubr.msk.f32.mxu0 %vm11510_vm3, %v11507_v1  ;;  %v11210_v29 = vpack.c.bf16 %v7356_v58, %v7354_v45 }
0x1345   :  { %11183 = vmatprep.subr.bf16.mxu0 %v11509_v32 }
0x1348   :  { %11185 = vmatpush3.bf16.msra.mxu0 %v11184_v62  ;;  %v7360_v62 = vld [vmem:[#allocation21 + $0x30] sm:$0xff] }
0x1349   :  { %11186 = vmatprep.subr.bf16.mxu0 %v11509_v32 }
0x134c   :  { %11188 = vmatpush3.bf16.msra.mxu0 %v11187_v4  ;;  %v11214_v4 = vpack.c.bf16 %v7360_v62, %v7358_v57 }
0x134d   :  { %11189 = vmatprep.subr.bf16.mxu0 %v11509_v32  ;;  %v11198_v32 = vpack.c.bf16 %v7377_v0, %v7375_v42 }
0x134f   :  { %11199 = vmatpush1.bf16.msra.mxu1 %v11198_v32 }
0x1350   :  { %11191 = vmatpush3.bf16.msra.mxu0 %v11190_v10  ;;  %11201 = vmatprep.subr.bf16.mxu1 %v11200_v19  ;;  %v7369_v10 = vld [vmem:[#allocation21 + $0x78] sm:$0xff] }
0x1351   :  { %v11220_v12 = vpack.c.bf16 %v7369_v10, %v7367_v47 }
0x1353   :  { %9906 = vmatmul.mubr.msk.f32.vlgmr.msra.gmra.mrb[62].mxu0 %vm6185_vm4, %v7258_v26  ;;  %11203 = vmatpush1.bf16.msra.mxu1 %v11202_v33  ;;  %v7366_v26 = vld [vmem:[#allocation21 + $0x60] sm:$0xff] }
0x1354   :  { %11205 = vmatprep.subr.bf16.mxu1 %v11204_v37  ;;  %v11222_v54 = vpack.c.bf16 %v7368_v13, %v7366_v26 }
0x1357   :  { %11207 = vmatpush1.bf16.msra.mxu1 %v11206_v43 }
0x1358   :  { %11209 = vmatprep.subr.bf16.mxu1 %v11208_v23 }
0x1414   :  { %v7237_v31 = vpop.f32.mrb[50].mxu1 }
0x1415   :  { %v9888_v63 = vpop.f32.mrb[51].mxu1 }
0x1416   :  { %v7156_v17 = vpop.f32.mrb[60].mxu0 }
0x1417   :  { %v7238_v48 = vadd.f32 %v7237_v31, %v7156_v17  ;;  %v9869_v52 = vpop.f32.mrb[61].mxu0 }
0x1426   :  { %v7327_v25 = vpop.f32.mrb[62].mxu0 }
0x1427   :  { %v7331_v41 = vadd.f32 %v7327_v25, %v7238_v48  ;;  %v9907_v50 = vpop.f32.mrb[63].mxu0 }
0x1429   :  { %v7338_v51 = vadd.f32 %v7750_v39, %v7331_v41 }
0x142b   :  { %v7346_v44 = vrot.slane %v7338_v51, %v11870_v40  ;;  %v11216_v40 = vpack.c.bf16 %v7365_v22, %v7363_v7 }
0x142d   :  { %v7347_v55 = vcombine.high %v7346_v44, %v7346_v44  ;;  %v7350_v38 = vadd.f32 %v7346_v44, %v13138_v49 }
0x142f   :  { %v7351_v36 = vadd.f32 %v7347_v55, %v13141_v34  ;;  %v11218_v34 = vpack.c.bf16 %v7364_v27, %v7362_v56  ;;  %v7352_v9 = vmax.f32 %v7350_v38, 0.0 }
0x1431   :  { %v7353_v53 = vmax.f32 %v7351_v36, 0.0 }
0x1433   :  { %7751 = vmatmul.mubr.msk.f32.vlgmr.msra.gmra.mrb[52].mxu1 %vm6185_vm4, %v7353_v53 }
0x1434   :  { %11211 = vmatpush1.bf16.msra.mxu1 %v11210_v29  ;;  %7528 = vmatprep.mubr.f32.mxu1 %v11507_v1  ;;  %v7535_v1 = vld [vmem:[%s13256_s25] sm:$0x3] }
0x1435   :  { %11213 = vmatprep.subr.bf16.mxu1 %v11212_v3  ;;  %v7540_v14 = vrot.slane %v7535_v1, %v12228_v2  ;;  %v7544_v18 = vrot.slane %v7535_v1, %v12222_v61 }
0x1438   :  { %11215 = vmatpush1.bf16.msra.mxu1 %v11214_v4 }
0x1439   :  { %11217 = vmatprep.subr.bf16.mxu1 %v11216_v40 }
0x143c   :  { %11219 = vmatpush1.bf16.msra.mxu1 %v11218_v34 }
0x143d   :  { %11221 = vmatprep.subr.bf16.mxu1 %v11220_v12 }
0x1440   :  { %11223 = vmatpush1.bf16.msra.mxu1 %v11222_v54 }
0x1443   :  { %7752 = vmatmul.mubr.msk.f32.vlgmr.msra.gmra.mrb[52].mxu1 %vm6185_vm4, %v7352_v9 }
0x1516   :  { %v7530_v6 = vpop.f32.mrb[52].mxu1 }
0x1517   :  { %v7547_v16 = vadd.f32 %v7540_v14, %v7530_v6  ;;  %v7532_v20 = vpop.f32.mrb[53].mxu1 }
0x1518   :  { %v7548_v42 = vadd.f32 %v7544_v18, %v7532_v20 }
0x1519   :  { %v7549_v0 = vmax.f32 %v7547_v16, 0.0 }
0x151a   :  { %v7550_v49 = vmax.f32 %v7548_v42, 0.0 }
0x151c   :  { %v7553_v32 = vcombine.low %v7549_v0, %v7550_v49 }
0x151e   :  { %7753 = vst.sshfl [vmem:[#allocation23] sm:$0x33 pattern:$0x76325410] %v7553_v32 }
0x151f   :  { %11471 = shalt.err (!%p11468_p12)
}
0x1520   :  { %s13257_s0 = sld [smem:[#allocation37_spill]] }
0x1526   :  { %s11472_s4 = scalar_lea.hbm %s13257_s0, 64 }
0x1527   :  { %p11473_p13 = scmp.ne.s32.totalorder %s13257_s0, %s11472_s4  ;;  %p11476_p0 = scmp.lt.u32.totalorder %s11472_s4, %s13257_s0 }
0x1529   :  { %p11478_p1 = pnand %p11476_p0, %p11473_p13 }
0x152b   :  { %11481 = shalt.err (!%p11478_p1)
}
0x152c   :  { %7572 = dma.vmem_to_hbm [thread:$0]  %s7570_s7, 64, %s13257_s0, [#allocation11]  }
0x152d   :  { %11492 = dma.done.wait [#allocation11], 64  }
0x152e   :  { %11493 = vsyncadd [#allocation11], 4294967232 }
0x152f   :  { %7576 = vsyncpa [#allocation10], 1 }
0x1530   :  { %7577 = vsyncpa [#allocation13], 1 }
0x1531   :  { %7578 = vsyncpa [#allocation16], 1 }
0x1532   :  { %7579 = vsyncpa [#allocation19], 1 }
0x1533   :  { %7580 = vsyncpa [#allocation22], 1 }
0x1534   :  { %7581 = vsyncpa [#allocation11], 1 }

</bundles_post_ra>
